<compile_context>
chip_gen: v6e
topology: v6e:2x2x1
jax: 0.10.0
libtpu: 0.0.40
codegen_flags: <defaults>
</compile_context>

<pallas_src>
import math

import jax
import jax.numpy as jnp
from jax import lax
from jax.experimental import pallas as pl
from jax.experimental.pallas import tpu as pltpu

# Architecture constants implied by the module (fc_in = 320 -> 28x28x1 input).
H_IN = W_IN = 28
K = 5
C1_OUT, C2_OUT = 10, 20
OH1, OW1 = 24, 24          # conv1 output spatial
PH1, PW1 = 12, 12          # after first 2x2 pool
OH2, OW2 = 8, 8            # conv2 output spatial
PH2, PW2 = 4, 4            # after second 2x2 pool
FC1_IN, FC1_OUT, FC2_OUT = 320, 50, 10
OUT_LANES = 128            # lane-dense output width (first 10 columns are real)


def _round_up(n, m):
    return ((n + m - 1) // m) * m


# ---------------------------------------------------------------------------
# Fused kernel
# ---------------------------------------------------------------------------
def _mynet_kernel(x_ref, w1_ref, b1_ref, w2_ref, b2_ref,
                  fc1w_ref, fc1b_ref, fc2w_ref, fc2b_ref, o_ref):
    f32, bf16 = jnp.float32, jnp.bfloat16
    tb = x_ref.shape[0]

    # ---- conv1: ONE fused banded matmul (contraction K = 5*28 = 140) -------
    # lhs1[(b,oh), kh*28 + iw] = x[b, oh+kh, iw]; lanes of the result = (ow, co)
    xv = x_ref[...]                                               # (TB, 28, 28) bf16
    lhs1 = jnp.concatenate(
        [xv[:, kh:kh + OH1, :] for kh in range(K)], axis=-1
    ).reshape(tb * OH1, K * W_IN)                                 # (TB*24, 140)
    acc1 = jnp.dot(lhs1, w1_ref[...], preferred_element_type=f32) + b1_ref[...]

    # ---- maxpool(2x2) + relu ------------------------------------------------
    # rows: adjacent-row max via reshape (no per-row slice/concat).
    a1 = acc1.reshape(tb * PH1, 2, OW1 * C1_OUT)
    t1 = jnp.maximum(a1[:, 0, :], a1[:, 1, :]).reshape(tb, PH1, OW1 * C1_OUT)
    # cols: max with a lane rotation by C1_OUT; valid pooled values sit in the
    # even (ow, channel) chunks — odd chunks are masked by zero rows in w2.
    s1 = jnp.concatenate([t1[:, :, C1_OUT:], t1[:, :, :C1_OUT]], axis=-1)
    h1 = jnp.maximum(jnp.maximum(t1, s1), 0.0).astype(bf16)       # (TB, 12, 240)

    # ---- conv2: ONE fused banded matmul (K = 5*240 = 1200) ------------------
    # TODO(synk): nn.Dropout after conv2 treated as identity (eval/inference mode).
    lhs2 = jnp.concatenate(
        [h1[:, kh:kh + OH2, :] for kh in range(K)], axis=-1
    ).reshape(tb * OH2, K * OW1 * C1_OUT)                         # (TB*8, 1200)
    acc2 = jnp.dot(lhs2, w2_ref[...], preferred_element_type=f32) + b2_ref[...]

    # ---- maxpool(2x2) + relu ------------------------------------------------
    a2 = acc2.reshape(tb * PH2, 2, OW2 * C2_OUT)
    t2 = jnp.maximum(a2[:, 0, :], a2[:, 1, :]).reshape(tb, PH2, OW2 * C2_OUT)
    s2 = jnp.concatenate([t2[:, :, C2_OUT:], t2[:, :, :C2_OUT]], axis=-1)
    h2 = jnp.maximum(jnp.maximum(t2, s2), 0.0).astype(bf16)       # (TB, 4, 160)

    # ---- flatten (row-major over pooled rows; fc1 weights pre-permuted and
    #      zero-padded to match, including masking of the odd lane chunks) ----
    flat = jnp.concatenate([h2[:, i, :] for i in range(PH2)], axis=-1)  # (TB, 640)

    # ---- fc1 + relu ----------------------------------------------------------
    # TODO(synk): nn.Dropout after fc1 treated as identity (eval/inference mode).
    z1 = jnp.dot(flat, fc1w_ref[...], preferred_element_type=f32) + fc1b_ref[...]
    z1 = jnp.maximum(z1, 0.0).astype(bf16)                        # (TB, 50)

    # ---- fc2 + softmax(dim=1), lane-dense 128-wide output -------------------
    z2 = jnp.dot(z1, fc2w_ref[...], preferred_element_type=f32) + fc2b_ref[...]
    z2 = z2 - jnp.max(z2, axis=-1, keepdims=True)
    e = jnp.exp(z2)                      # padded logits are -1e30 -> exp == 0
    o_ref[...] = (e / jnp.sum(e, axis=-1, keepdims=True)).astype(o_ref.dtype)


# ---------------------------------------------------------------------------
# One-time weight re-layout (outside the hot path)
# ---------------------------------------------------------------------------
def prepare_params(params):
    """Build fused banded conv matrices, tiled biases and permuted FC weights."""
    f32, bf16 = jnp.float32, jnp.bfloat16
    w1, b1 = params["conv1_w"], params["conv1_b"]        # (10,1,5,5), (10,)
    w2, b2 = params["conv2_w"], params["conv2_b"]        # (20,10,5,5), (20,)

    kh = jnp.arange(K)
    kw = jnp.arange(K)

    # conv1: W1[kh*28 + iw, ow*C1 + co] = w1[co, 0, kh, iw - ow]  (0 <= iw-ow < 5)
    ow = jnp.arange(OW1)
    co = jnp.arange(C1_OUT)
    rows1 = (kh[:, None, None, None] * W_IN
             + ow[None, :, None, None] + kw[None, None, :, None])          # (K,OW1,K,1)
    cols1 = ow[None, :, None, None] * C1_OUT + co[None, None, None, :]     # (1,OW1,1,C1)
    vals1 = jnp.broadcast_to(
        jnp.transpose(w1[:, 0], (1, 2, 0))[:, None, :, :],                 # (K,1,K,C1)
        (K, OW1, K, C1_OUT))
    w1_f = jnp.zeros((K * W_IN, OW1 * C1_OUT), f32).at[rows1, cols1].set(vals1)

    # conv2: input h1 keeps 240 lanes; valid pooled data lives at lanes
    # l = 2*iw'*C1 + ci (even chunks).  W2[kh*240 + 2*iw'*C1 + ci, ow2*C2 + co]
    #   = w2[co, ci, kh, iw' - ow2]; all other rows stay zero (masks odd chunks).
    ow2 = jnp.arange(OW2)
    ci = jnp.arange(C1_OUT)
    co2 = jnp.arange(C2_OUT)
    rows2 = (kh[:, None, None, None, None] * (OW1 * C1_OUT)
             + (ow2[None, :, None, None, None]
                + kw[None, None, :, None, None]) * (2 * C1_OUT)
             + ci[None, None, None, :, None])                              # (K,OW2,K,C1,1)
    cols2 = (ow2[None, :, None, None, None] * C2_OUT
             + co2[None, None, None, None, :])                             # (1,OW2,1,1,C2)
    vals2 = jnp.broadcast_to(
        jnp.transpose(w2, (2, 3, 1, 0))[:, None, :, :, :],                 # (K,1,K,C1,C2)
        (K, OW2, K, C1_OUT, C2_OUT))
    w2_f = jnp.zeros((K * OW1 * C1_OUT, OW2 * C2_OUT), f32).at[rows2, cols2].set(vals2)

    b1_t = jnp.tile(b1, OW1).reshape(1, OW1 * C1_OUT).astype(f32)          # (1, 240)
    b2_t = jnp.tile(b2, OW2).reshape(1, OW2 * C2_OUT).astype(f32)          # (1, 160)

    # fc1: our flatten order is (pooled row h, 160-lane conv2 output), with
    # valid data at lane 2*w*C2 + c.  Map to PyTorch's (c, h, w) flatten of the
    # NCHW tensor; all other rows stay zero.
    hh = jnp.arange(PH2)
    ww = jnp.arange(PW2)
    cc = jnp.arange(C2_OUT)
    oo = jnp.arange(FC1_OUT)
    rows_fc1 = (hh[:, None, None, None] * (2 * PW2 * C2_OUT)
                + ww[None, :, None, None] * (2 * C2_OUT)
                + cc[None, None, :, None])                                 # (4,4,20,1)
    cols_fc1 = oo[None, None, None, :]                                     # (1,1,1,50)
    vals_fc1 = jnp.transpose(
        params["fc1_w"].reshape(FC1_OUT, C2_OUT, PH2, PW2), (2, 3, 1, 0))  # (h,w,c,out)
    fc1w_f = jnp.zeros((PH2 * 2 * PW2 * C2_OUT, FC1_OUT), f32
                       ).at[rows_fc1, cols_fc1].set(vals_fc1)              # (640, 50)

    # fc2: pad outputs to a lane-dense 128 columns; padded columns get a huge
    # negative bias so softmax assigns them exactly zero probability.
    fc2w_f = jnp.zeros((FC1_OUT, OUT_LANES), f32).at[:, :FC2_OUT].set(params["fc2_w"].T)
    fc2b_f = jnp.full((1, OUT_LANES), -1e30, f32).at[0, :FC2_OUT].set(params["fc2_b"])

    return dict(
        w1=w1_f.astype(bf16), b1=b1_t,
        w2=w2_f.astype(bf16), b2=b2_t,
        fc1w=fc1w_f.astype(bf16),
        fc1b=params["fc1_b"].reshape(1, FC1_OUT).astype(f32),
        fc2w=fc2w_f.astype(bf16),
        fc2b=fc2b_f,
    )


# ---------------------------------------------------------------------------
# Fused forward pass (one pallas_call, grid over batch tiles)
# ---------------------------------------------------------------------------
def mynet_forward(prep, x_nchw, *, batch_tile=128):
    B, C, H, W = x_nchw.shape
    assert C == 1 and H == H_IN and W == W_IN
    batch_tile = _round_up(batch_tile, 8)
    # Clamp the tile to the (8-padded) batch so tiny demo batches stay cheap,
    # while realistic batches use a large, MXU-filling tile.
    tb = max(8, min(batch_tile, _round_up(B, 8)))
    bp = _round_up(B, tb)

    x = x_nchw.reshape(B, H_IN, W_IN).astype(jnp.bfloat16)   # bf16 input DMA
    if bp != B:
        x = jnp.pad(x, ((0, bp - B), (0, 0), (0, 0)))

    def resident(shape):
        # Full-array block with a constant index map: stays VMEM-resident.
        return pl.BlockSpec(shape, lambda i, _n=len(shape): (0,) * _n)

    grid_spec = pltpu.PrefetchScalarGridSpec(
        num_scalar_prefetch=0,
        grid=(bp // tb,),
        in_specs=[
            pl.BlockSpec((tb, H_IN, W_IN), lambda i: (i, 0, 0)),
            resident(prep["w1"].shape), resident(prep["b1"].shape),
            resident(prep["w2"].shape), resident(prep["b2"].shape),
            resident(prep["fc1w"].shape), resident(prep["fc1b"].shape),
            resident(prep["fc2w"].shape), resident(prep["fc2b"].shape),
        ],
        out_specs=pl.BlockSpec((tb, OUT_LANES), lambda i: (i, 0)),
    )
    out = pl.pallas_call(
        _mynet_kernel,
        out_shape=jax.ShapeDtypeStruct((bp, OUT_LANES), jnp.float32),
        grid_spec=grid_spec,
        compiler_params=pltpu.CompilerParams(
            dimension_semantics=("parallel",),        # megacore-shardable batch axis
            vmem_limit_bytes=64 * 1024 * 1024),       # fits tb=128 on v5e/v6e/v7x
    )(x, prep["w1"], prep["b1"], prep["w2"], prep["b2"],
      prep["fc1w"], prep["fc1b"], prep["fc2w"], prep["fc2b"])
    return out[:B, :FC2_OUT]


# ---------------------------------------------------------------------------
# Pure-JAX reference (PyTorch semantics, matched bf16 matmul inputs)
# ---------------------------------------------------------------------------
def mynet_reference(params, x_nchw):
    f32, bf16 = jnp.float32, jnp.bfloat16

    def conv(x, w, b):
        y = lax.conv_general_dilated(
            x.astype(bf16), w.astype(bf16), window_strides=(1, 1),
            padding="VALID", dimension_numbers=("NCHW", "OIHW", "NCHW"),
            preferred_element_type=f32)
        return y + b.reshape(1, -1, 1, 1)

    def pool_relu(x):
        y = lax.reduce_window(x, -jnp.inf, lax.max,
                              (1, 1, 2, 2), (1, 1, 2, 2), "VALID")
        return jnp.maximum(y, 0.0)

    x = pool_relu(conv(x_nchw, params["conv1_w"], params["conv1_b"]))
    x = pool_relu(conv(x, params["conv2_w"], params["conv2_b"]))  # dropout == identity
    x = x.reshape(x.shape[0], -1)                                  # NCHW flatten
    x = jnp.maximum(
        jnp.dot(x.astype(bf16), params["fc1_w"].T.astype(bf16),
                preferred_element_type=f32) + params["fc1_b"], 0.0)
    z = jnp.dot(x.astype(bf16), params["fc2_w"].T.astype(bf16),
                preferred_element_type=f32) + params["fc2_b"]
    e = jnp.exp(z - jnp.max(z, axis=1, keepdims=True))
    return e / jnp.sum(e, axis=1, keepdims=True)


# ---------------------------------------------------------------------------
# Parameters (deterministic, PyTorch-default-style uniform init)
# ---------------------------------------------------------------------------
def init_params(key):
    ks = jax.random.split(key, 8)

    def u(k, shape, fan_in):
        bound = 1.0 / math.sqrt(fan_in)
        return jax.random.uniform(k, shape, jnp.float32, -bound, bound)

    return {
        "conv1_w": u(ks[0], (10, 1, 5, 5), 1 * 5 * 5),
        "conv1_b": u(ks[1], (10,), 1 * 5 * 5),
        "conv2_w": u(ks[2], (20, 10, 5, 5), 10 * 5 * 5),
        "conv2_b": u(ks[3], (20,), 10 * 5 * 5),
        "fc1_w": u(ks[4], (50, 320), 320),   # PyTorch Linear weight: (out, in)
        "fc1_b": u(ks[5], (50,), 320),
        "fc2_w": u(ks[6], (10, 50), 50),
        "fc2_b": u(ks[7], (10,), 50),
    }


if __name__ == "__main__":
    key = jax.random.PRNGKey(0)
    pkey, xkey = jax.random.split(key)
    params = init_params(pkey)
    # view_size = 320 = 20*4*4 implies a 28x28 single-channel (MNIST-like) input
    x = jax.random.normal(xkey, (2, 1, 28, 28), jnp.float32)

    prep = prepare_params(params)            # one-time weight re-layout
    fwd = jax.jit(mynet_forward)
    out = jax.block_until_ready(fwd(prep, x))

    ref = jax.block_until_ready(jax.jit(mynet_reference)(params, x))

    assert out.shape == (2, 10)
    assert bool(jnp.all(jnp.isfinite(out)))
    # exact softmax normalization -> rows sum to 1 to f32 precision
    assert bool(jnp.allclose(jnp.sum(out, axis=1), 1.0, atol=1e-3))
    err = float(jnp.max(jnp.abs(out - ref)))
    assert err < 2e-2, f"kernel deviates from reference: max abs err {err}"
    print("KERNEL_OK")
</pallas_src>

<mosaic_0001>
module attributes {stable_mosaic.version = 11 : i64} {
  func.func @_mynet_kernel(%arg0: i32, %arg1: memref<8x28x28xbf16, #tpu.memory_space<vmem>>, %arg2: memref<140x240xbf16, #tpu.memory_space<vmem>>, %arg3: memref<1x240xf32, #tpu.memory_space<vmem>>, %arg4: memref<1200x160xbf16, #tpu.memory_space<vmem>>, %arg5: memref<1x160xf32, #tpu.memory_space<vmem>>, %arg6: memref<640x50xbf16, #tpu.memory_space<vmem>>, %arg7: memref<1x50xf32, #tpu.memory_space<vmem>>, %arg8: memref<50x128xbf16, #tpu.memory_space<vmem>>, %arg9: memref<1x128xf32, #tpu.memory_space<vmem>>, %arg10: memref<8x128xf32, #tpu.memory_space<vmem>>) attributes {dimension_semantics = [#tpu.dimension_semantics<parallel>], iteration_bounds = array<i64: 1>, scalar_prefetch = 0 : i64, scratch_operands = 0 : i64, tpu.core_type = #tpu.core_type<tc>, window_params = [{transform_indices = @transform_0, window_bounds = array<i64: 8, 28, 28>}, {pipeline_mode = #tpu.pipeline_mode<synchronous>, transform_indices = @transform_1, window_bounds = array<i64: 140, 240>}, {pipeline_mode = #tpu.pipeline_mode<synchronous>, transform_indices = @transform_2, window_bounds = array<i64: 1, 240>}, {pipeline_mode = #tpu.pipeline_mode<synchronous>, transform_indices = @transform_3, window_bounds = array<i64: 1200, 160>}, {pipeline_mode = #tpu.pipeline_mode<synchronous>, transform_indices = @transform_4, window_bounds = array<i64: 1, 160>}, {pipeline_mode = #tpu.pipeline_mode<synchronous>, transform_indices = @transform_5, window_bounds = array<i64: 640, 50>}, {pipeline_mode = #tpu.pipeline_mode<synchronous>, transform_indices = @transform_6, window_bounds = array<i64: 1, 50>}, {pipeline_mode = #tpu.pipeline_mode<synchronous>, transform_indices = @transform_7, window_bounds = array<i64: 50, 128>}, {pipeline_mode = #tpu.pipeline_mode<synchronous>, transform_indices = @transform_8, window_bounds = array<i64: 1, 128>}, {transform_indices = @transform_9, window_bounds = array<i64: 8, 128>}]} {
    %c0 = arith.constant 0 : index
    %c0_0 = arith.constant 0 : index
    %c0_1 = arith.constant 0 : index
    %0 = vector.load %arg1[%c0, %c0_0, %c0_1] : memref<8x28x28xbf16, #tpu.memory_space<vmem>>, vector<8x28x28xbf16>
    %1 = vector.extract_strided_slice %0 {offsets = [0, 0, 0], sizes = [8, 24, 28], strides = [1, 1, 1]} : vector<8x28x28xbf16> to vector<8x24x28xbf16>
    %2 = vector.extract_strided_slice %0 {offsets = [0, 1, 0], sizes = [8, 24, 28], strides = [1, 1, 1]} : vector<8x28x28xbf16> to vector<8x24x28xbf16>
    %3 = vector.extract_strided_slice %0 {offsets = [0, 2, 0], sizes = [8, 24, 28], strides = [1, 1, 1]} : vector<8x28x28xbf16> to vector<8x24x28xbf16>
    %4 = vector.extract_strided_slice %0 {offsets = [0, 3, 0], sizes = [8, 24, 28], strides = [1, 1, 1]} : vector<8x28x28xbf16> to vector<8x24x28xbf16>
    %5 = vector.extract_strided_slice %0 {offsets = [0, 4, 0], sizes = [8, 24, 28], strides = [1, 1, 1]} : vector<8x28x28xbf16> to vector<8x24x28xbf16>
    %6 = tpu.concatenate %1, %2, %3, %4, %5 in 2 : vector<8x24x28xbf16>, vector<8x24x28xbf16>, vector<8x24x28xbf16>, vector<8x24x28xbf16>, vector<8x24x28xbf16> -> vector<8x24x140xbf16>
    %7 = vector.shape_cast %6 : vector<8x24x140xbf16> to vector<192x140xbf16>
    %c0_2 = arith.constant 0 : index
    %c0_3 = arith.constant 0 : index
    %8 = vector.load %arg2[%c0_2, %c0_3] : memref<140x240xbf16, #tpu.memory_space<vmem>>, vector<140x240xbf16>
    %cst = arith.constant dense<0.000000e+00> : vector<192x240xf32>
    %9 = tpu.matmul %7, %8, %cst {dimension_numbers = #tpu.dot_dimension_numbers<[1], [0], [0], [1], [0, 0, 1, 1], [], []>} : vector<192x140xbf16>, vector<140x240xbf16>, vector<192x240xf32> -> vector<192x240xf32>
    %c0_4 = arith.constant 0 : index
    %c0_5 = arith.constant 0 : index
    %10 = vector.load %arg3[%c0_4, %c0_5] : memref<1x240xf32, #tpu.memory_space<vmem>>, vector<1x240xf32>
    %11 = vector.broadcast %10 : vector<1x240xf32> to vector<192x240xf32>
    %12 = arith.addf %9, %11 : vector<192x240xf32>
    %13 = vector.shape_cast %12 : vector<192x240xf32> to vector<96x2x240xf32>
    %14 = vector.extract_strided_slice %13 {offsets = [0, 0, 0], sizes = [96, 1, 240], strides = [1, 1, 1]} : vector<96x2x240xf32> to vector<96x1x240xf32>
    %15 = vector.shape_cast %14 : vector<96x1x240xf32> to vector<96x240xf32>
    %16 = vector.extract_strided_slice %13 {offsets = [0, 1, 0], sizes = [96, 1, 240], strides = [1, 1, 1]} : vector<96x2x240xf32> to vector<96x1x240xf32>
    %17 = vector.shape_cast %16 : vector<96x1x240xf32> to vector<96x240xf32>
    %18 = arith.maximumf %15, %17 : vector<96x240xf32>
    %19 = vector.shape_cast %18 : vector<96x240xf32> to vector<8x12x240xf32>
    %20 = vector.extract_strided_slice %19 {offsets = [0, 0, 10], sizes = [8, 12, 230], strides = [1, 1, 1]} : vector<8x12x240xf32> to vector<8x12x230xf32>
    %21 = vector.extract_strided_slice %19 {offsets = [0, 0, 0], sizes = [8, 12, 10], strides = [1, 1, 1]} : vector<8x12x240xf32> to vector<8x12x10xf32>
    %22 = tpu.concatenate %20, %21 in 2 : vector<8x12x230xf32>, vector<8x12x10xf32> -> vector<8x12x240xf32>
    %23 = arith.maximumf %19, %22 : vector<8x12x240xf32>
    %cst_6 = arith.constant 0.000000e+00 : f32
    %24 = vector.broadcast %cst_6 : f32 to vector<8x12x240xf32>
    %25 = arith.maximumf %23, %24 : vector<8x12x240xf32>
    %26 = arith.truncf %25 : vector<8x12x240xf32> to vector<8x12x240xbf16>
    %27 = vector.extract_strided_slice %26 {offsets = [0, 0, 0], sizes = [8, 8, 240], strides = [1, 1, 1]} : vector<8x12x240xbf16> to vector<8x8x240xbf16>
    %28 = vector.extract_strided_slice %26 {offsets = [0, 1, 0], sizes = [8, 8, 240], strides = [1, 1, 1]} : vector<8x12x240xbf16> to vector<8x8x240xbf16>
    %29 = vector.extract_strided_slice %26 {offsets = [0, 2, 0], sizes = [8, 8, 240], strides = [1, 1, 1]} : vector<8x12x240xbf16> to vector<8x8x240xbf16>
    %30 = vector.extract_strided_slice %26 {offsets = [0, 3, 0], sizes = [8, 8, 240], strides = [1, 1, 1]} : vector<8x12x240xbf16> to vector<8x8x240xbf16>
    %31 = vector.extract_strided_slice %26 {offsets = [0, 4, 0], sizes = [8, 8, 240], strides = [1, 1, 1]} : vector<8x12x240xbf16> to vector<8x8x240xbf16>
    %32 = tpu.concatenate %27, %28, %29, %30, %31 in 2 : vector<8x8x240xbf16>, vector<8x8x240xbf16>, vector<8x8x240xbf16>, vector<8x8x240xbf16>, vector<8x8x240xbf16> -> vector<8x8x1200xbf16>
    %33 = vector.shape_cast %32 : vector<8x8x1200xbf16> to vector<64x1200xbf16>
    %c0_7 = arith.constant 0 : index
    %c0_8 = arith.constant 0 : index
    %34 = vector.load %arg4[%c0_7, %c0_8] : memref<1200x160xbf16, #tpu.memory_space<vmem>>, vector<1200x160xbf16>
    %cst_9 = arith.constant dense<0.000000e+00> : vector<64x160xf32>
    %35 = tpu.matmul %33, %34, %cst_9 {dimension_numbers = #tpu.dot_dimension_numbers<[1], [0], [0], [1], [0, 0, 1, 1], [], []>} : vector<64x1200xbf16>, vector<1200x160xbf16>, vector<64x160xf32> -> vector<64x160xf32>
    %c0_10 = arith.constant 0 : index
    %c0_11 = arith.constant 0 : index
    %36 = vector.load %arg5[%c0_10, %c0_11] : memref<1x160xf32, #tpu.memory_space<vmem>>, vector<1x160xf32>
    %37 = vector.broadcast %36 : vector<1x160xf32> to vector<64x160xf32>
    %38 = arith.addf %35, %37 : vector<64x160xf32>
    %39 = vector.shape_cast %38 : vector<64x160xf32> to vector<32x2x160xf32>
    %40 = vector.extract_strided_slice %39 {offsets = [0, 0, 0], sizes = [32, 1, 160], strides = [1, 1, 1]} : vector<32x2x160xf32> to vector<32x1x160xf32>
    %41 = vector.shape_cast %40 : vector<32x1x160xf32> to vector<32x160xf32>
    %42 = vector.extract_strided_slice %39 {offsets = [0, 1, 0], sizes = [32, 1, 160], strides = [1, 1, 1]} : vector<32x2x160xf32> to vector<32x1x160xf32>
    %43 = vector.shape_cast %42 : vector<32x1x160xf32> to vector<32x160xf32>
    %44 = arith.maximumf %41, %43 : vector<32x160xf32>
    %45 = vector.shape_cast %44 : vector<32x160xf32> to vector<8x4x160xf32>
    %46 = vector.extract_strided_slice %45 {offsets = [0, 0, 20], sizes = [8, 4, 140], strides = [1, 1, 1]} : vector<8x4x160xf32> to vector<8x4x140xf32>
    %47 = vector.extract_strided_slice %45 {offsets = [0, 0, 0], sizes = [8, 4, 20], strides = [1, 1, 1]} : vector<8x4x160xf32> to vector<8x4x20xf32>
    %48 = tpu.concatenate %46, %47 in 2 : vector<8x4x140xf32>, vector<8x4x20xf32> -> vector<8x4x160xf32>
    %49 = arith.maximumf %45, %48 : vector<8x4x160xf32>
    %cst_12 = arith.constant 0.000000e+00 : f32
    %50 = vector.broadcast %cst_12 : f32 to vector<8x4x160xf32>
    %51 = arith.maximumf %49, %50 : vector<8x4x160xf32>
    %52 = arith.truncf %51 : vector<8x4x160xf32> to vector<8x4x160xbf16>
    %53 = vector.extract_strided_slice %52 {offsets = [0, 0, 0], sizes = [8, 1, 160], strides = [1, 1, 1]} : vector<8x4x160xbf16> to vector<8x1x160xbf16>
    %54 = vector.shape_cast %53 : vector<8x1x160xbf16> to vector<8x160xbf16>
    %55 = vector.extract_strided_slice %52 {offsets = [0, 1, 0], sizes = [8, 1, 160], strides = [1, 1, 1]} : vector<8x4x160xbf16> to vector<8x1x160xbf16>
    %56 = vector.shape_cast %55 : vector<8x1x160xbf16> to vector<8x160xbf16>
    %57 = vector.extract_strided_slice %52 {offsets = [0, 2, 0], sizes = [8, 1, 160], strides = [1, 1, 1]} : vector<8x4x160xbf16> to vector<8x1x160xbf16>
    %58 = vector.shape_cast %57 : vector<8x1x160xbf16> to vector<8x160xbf16>
    %59 = vector.extract_strided_slice %52 {offsets = [0, 3, 0], sizes = [8, 1, 160], strides = [1, 1, 1]} : vector<8x4x160xbf16> to vector<8x1x160xbf16>
    %60 = vector.shape_cast %59 : vector<8x1x160xbf16> to vector<8x160xbf16>
    %61 = tpu.concatenate %54, %56, %58, %60 in 1 : vector<8x160xbf16>, vector<8x160xbf16>, vector<8x160xbf16>, vector<8x160xbf16> -> vector<8x640xbf16>
    %c0_13 = arith.constant 0 : index
    %c0_14 = arith.constant 0 : index
    %62 = vector.load %arg6[%c0_13, %c0_14] : memref<640x50xbf16, #tpu.memory_space<vmem>>, vector<640x50xbf16>
    %cst_15 = arith.constant dense<0.000000e+00> : vector<8x50xf32>
    %63 = tpu.matmul %61, %62, %cst_15 {dimension_numbers = #tpu.dot_dimension_numbers<[1], [0], [0], [1], [0, 0, 1, 1], [], []>} : vector<8x640xbf16>, vector<640x50xbf16>, vector<8x50xf32> -> vector<8x50xf32>
    %c0_16 = arith.constant 0 : index
    %c0_17 = arith.constant 0 : index
    %64 = vector.load %arg7[%c0_16, %c0_17] : memref<1x50xf32, #tpu.memory_space<vmem>>, vector<1x50xf32>
    %65 = vector.broadcast %64 : vector<1x50xf32> to vector<8x50xf32>
    %66 = arith.addf %63, %65 : vector<8x50xf32>
    %cst_18 = arith.constant 0.000000e+00 : f32
    %67 = vector.broadcast %cst_18 : f32 to vector<8x50xf32>
    %68 = arith.maximumf %66, %67 : vector<8x50xf32>
    %69 = arith.truncf %68 : vector<8x50xf32> to vector<8x50xbf16>
    %c0_19 = arith.constant 0 : index
    %c0_20 = arith.constant 0 : index
    %70 = vector.load %arg8[%c0_19, %c0_20] : memref<50x128xbf16, #tpu.memory_space<vmem>>, vector<50x128xbf16>
    %cst_21 = arith.constant dense<0.000000e+00> : vector<8x128xf32>
    %71 = tpu.matmul %69, %70, %cst_21 {dimension_numbers = #tpu.dot_dimension_numbers<[1], [0], [0], [1], [0, 0, 1, 1], [], []>} : vector<8x50xbf16>, vector<50x128xbf16>, vector<8x128xf32> -> vector<8x128xf32>
    %c0_22 = arith.constant 0 : index
    %c0_23 = arith.constant 0 : index
    %72 = vector.load %arg9[%c0_22, %c0_23] : memref<1x128xf32, #tpu.memory_space<vmem>>, vector<1x128xf32>
    %73 = vector.broadcast %72 : vector<1x128xf32> to vector<8x128xf32>
    %74 = arith.addf %71, %73 : vector<8x128xf32>
    %cst_24 = arith.constant dense<0xFF800000> : vector<8xf32>
    %75 = vector.multi_reduction <maximumf>, %74, %cst_24 [1] : vector<8x128xf32> to vector<8xf32>
    %76 = vector.shape_cast %75 : vector<8xf32> to vector<8x1xf32>
    %77 = vector.broadcast %76 : vector<8x1xf32> to vector<8x128xf32>
    %78 = arith.subf %74, %77 : vector<8x128xf32>
    %79 = math.exp %78 : vector<8x128xf32>
    %cst_25 = arith.constant dense<0.000000e+00> : vector<8xf32>
    %80 = vector.multi_reduction <add>, %79, %cst_25 [1] : vector<8x128xf32> to vector<8xf32>
    %81 = vector.shape_cast %80 : vector<8xf32> to vector<8x1xf32>
    %82 = vector.broadcast %81 : vector<8x1xf32> to vector<8x128xf32>
    %83 = arith.divf %79, %82 : vector<8x128xf32>
    %c0_26 = arith.constant 0 : index
    %c0_27 = arith.constant 0 : index
    %84 = vector.load %arg10[%c0_26, %c0_27] : memref<8x128xf32, #tpu.memory_space<vmem>>, vector<8x128xf32>
    tpu.vector_store %arg10[%c0_26, %c0_27], %83 {strides = array<i32>} : memref<8x128xf32, #tpu.memory_space<vmem>>, vector<8x128xf32>,
    return
  }
  func.func @transform_0(%arg0: i32) -> (i32, i32, i32) {
    %c0_i32 = arith.constant 0 : i32
    %c0_i32_0 = arith.constant 0 : i32
    %c0_i32_1 = arith.constant 0 : i32
    return %arg0, %c0_i32, %c0_i32_0 : i32, i32, i32
  }
  func.func @transform_1(%arg0: i32) -> (i32, i32) {
    %c0_i32 = arith.constant 0 : i32
    %c0_i32_0 = arith.constant 0 : i32
    %c0_i32_1 = arith.constant 0 : i32
    return %c0_i32, %c0_i32_0 : i32, i32
  }
  func.func @transform_2(%arg0: i32) -> (i32, i32) {
    %c0_i32 = arith.constant 0 : i32
    %c0_i32_0 = arith.constant 0 : i32
    %c0_i32_1 = arith.constant 0 : i32
    return %c0_i32, %c0_i32_0 : i32, i32
  }
  func.func @transform_3(%arg0: i32) -> (i32, i32) {
    %c0_i32 = arith.constant 0 : i32
    %c0_i32_0 = arith.constant 0 : i32
    %c0_i32_1 = arith.constant 0 : i32
    return %c0_i32, %c0_i32_0 : i32, i32
  }
  func.func @transform_4(%arg0: i32) -> (i32, i32) {
    %c0_i32 = arith.constant 0 : i32
    %c0_i32_0 = arith.constant 0 : i32
    %c0_i32_1 = arith.constant 0 : i32
    return %c0_i32, %c0_i32_0 : i32, i32
  }
  func.func @transform_5(%arg0: i32) -> (i32, i32) {
    %c0_i32 = arith.constant 0 : i32
    %c0_i32_0 = arith.constant 0 : i32
    %c0_i32_1 = arith.constant 0 : i32
    return %c0_i32, %c0_i32_0 : i32, i32
  }
  func.func @transform_6(%arg0: i32) -> (i32, i32) {
    %c0_i32 = arith.constant 0 : i32
    %c0_i32_0 = arith.constant 0 : i32
    %c0_i32_1 = arith.constant 0 : i32
    return %c0_i32, %c0_i32_0 : i32, i32
  }
  func.func @transform_7(%arg0: i32) -> (i32, i32) {
    %c0_i32 = arith.constant 0 : i32
    %c0_i32_0 = arith.constant 0 : i32
    %c0_i32_1 = arith.constant 0 : i32
    return %c0_i32, %c0_i32_0 : i32, i32
  }
  func.func @transform_8(%arg0: i32) -> (i32, i32) {
    %c0_i32 = arith.constant 0 : i32
    %c0_i32_0 = arith.constant 0 : i32
    %c0_i32_1 = arith.constant 0 : i32
    return %c0_i32, %c0_i32_0 : i32, i32
  }
  func.func @transform_9(%arg0: i32) -> (i32, i32) {
    %c0_i32 = arith.constant 0 : i32
    %c0_i32_0 = arith.constant 0 : i32
    return %arg0, %c0_i32 : i32, i32
  }
}

</mosaic_0001>

<bundles_post_ra>
// kernel: mynet_forward.1
= control target key start
LH: loop header
LB: loop body
LE: loop exit
PB: predicated region body
PF: predicated region fallthrough
CT: control target
= control target key end

     0   :  { %vm452_vm0 = vcmask 1045504   ;;  %vm306_vm1 = vcmask 1046528   ;;  %vm363_vm2 = vsmask.f32 6400  ;;  %s11369_s21 = smov 112   ;;  %s11370_s22 = smov 56   ;;  %s17183_s0 = inlined_call_operand.vmem [shape: bf16[8,28,28], index: 0, kind: input, shape index: {}]   ;;  %s17184_s1 = inlined_call_operand.vmem [shape: bf16[140,240], index: 1, kind: input, shape index: {}]   ;;  %s17185_s2 = inlined_call_operand.vmem [shape: f32[1,240], index: 2, kind: input, shape index: {}]   ;;  %s17186_s3 = inlined_call_operand.vmem [shape: bf16[1200,160], index: 3, kind: input, shape index: {}]   ;;  %s17187_s4 = inlined_call_operand.vmem [shape: f32[1,160], index: 4, kind: input, shape index: {}]   ;;  %s17188_s5 = inlined_call_operand.vmem [shape: bf16[640,50], index: 5, kind: input, shape index: {}]   ;;  %s17189_s7 = inlined_call_operand.vmem [shape: bf16[50,128], index: 7, kind: input, shape index: {}]   ;;  %s17190_s6 = inlined_call_operand.vmem [shape: f32[1,50], index: 6, kind: input, shape index: {}]   ;;  %s17191_s8 = inlined_call_operand.vmem [shape: f32[1,128], index: 8, kind: input, shape index: {}]   ;;  %s17192_s9 = inlined_call_operand.vmem [shape: f32[8,128], index: 9, kind: output, shape index: {}]  }
   0x1   :  { %v11437_v0 = vld [vmem:[%s17183_s0 + $0x8] sm:$0xf]  ;;  %v36_v1 = vld [vmem:[%s17183_s0 + $0xc] sm:$0x3]  ;;  %v11445_v2 = vld [vmem:[%s17183_s0] sm:$0xff]   ;;  %s11371_s23 = smov 28  }
   0x2   :  { %v11450_v3 = vld [vmem:[%s17183_s0 + $0x10] sm:$0xff]   ;;  %v11453_v4 = vcombine.low %v11437_v0, %v36_v1  ;;  %v11458_v5 = vld [vmem:[%s17183_s0 + $0x18] sm:$0xf]  ;;  %v453_v6 = vrot.slane %v11445_v2, 2  ;;  %v307_v7 = vrot.slane %v11445_v2, 1  ;;  %v155_v8 = vshrl.u32 %v11445_v2, 16 }
   0x3   :  { %v157_v9 = vshll.u32 %v11445_v2, 16  ;;  %v40_v10 = vld [vmem:[%s17183_s0 + $0x1c] sm:$0x3]  ;;  %v170_v24 = vshrl.u32 %v11450_v3, 16  ;;  %v172_v25 = vshll.u32 %v11450_v3, 16  ;;  %v310_v34 = vrot.slane %v11450_v3, 1 }
   0x4   :  { %v454_v11 = vrot.slane %v11453_v4, 2  ;;  %v308_v12 = vrot.slane %v11453_v4, 1  ;;  %v162_v13 = vshll.u32 %v11453_v4, 16  ;;  %v166_v14 = vshrl.u32 %v11453_v4, 16  ;;  %v11493_v38 = vld [vmem:[%s17183_s0 + $0x28] sm:$0xf] }
   0x5   :  { %v364_v15 = vrot.slane %v155_v8, 1  ;;  %v365_v16 = vrot.slane %v157_v9, 2  ;;  %v11472_v17 = vcombine.low %v11458_v5, %v40_v10  ;;  %v159_v28 = vrot.slane %v157_v9, 1  ;;  %s11372_s26 = smov 84   ;;  %v44_v43 = vld [vmem:[%s17183_s0 + $0x2c] sm:$0x3] }
   0x6   :  { %v455_v18 = vsel %vm452_vm0, %v453_v6, %v454_v11  ;;  %v309_v19 = vsel %vm306_vm1, %v307_v7, %v308_v12  ;;  %v164_v20 = vrot.slane %v162_v13, 1  ;;  %v367_v21 = vrot.slane %v166_v14, 1  ;;  %v11505_v44 = vld [vmem:[%s17183_s0 + $0x20] sm:$0xff]   ;;  %v11057_v48 = vld [vmem:[%s17184_s1 + $0x74] ss:$8 sps:$4 sm:$0xff]   ;;  %s11377_s11 = smov 80  }
   0x7   :  { %477 = vrot.lane.b32.xlu1 %v455_v18, %s11369_s21  ;;  %331 = vrot.lane.b32.xlu0 %v309_v19, %s11370_s22  ;;  %v366_v22 = vor.u32 %v365_v16, %v364_v15  ;;  %v368_v23 = vrot.slane %v162_v13, 2  ;;  %v177_v27 = vshll.u32 %v11472_v17, 16  ;;  %vm153_vm3 = vsmask.f32 7424  ;;  %v11059_v53 = vld [vmem:[%s17184_s1 + $0x70] ss:$8 sps:$4 sm:$0xff]  }
   0x8   :  { %v168_v26 = vor.u32 %v166_v14, %v164_v20  ;;  %v174_v30 = vrot.slane %v172_v25, 1  ;;  %v181_v31 = vshrl.u32 %v11472_v17, 16  ;;  %v160_v33 = vor.u32 %v159_v28, %v155_v8  ;;  %v11530_v55 = vld [vmem:[%s17183_s0 + $0x38] sm:$0xf]  ;;  %911 = vmatprep.subr.bf16.mxu0 %v11057_v48  ;;  %v11060_v56 = vld [vmem:[%s17184_s1 + $0x64] ss:$8 sps:$4 sm:$0xff]  }
   0x9   :  { %v369_v29 = vor.u32 %v368_v23, %v367_v21  ;;  %v11484_v32 = vrot.slane %v177_v27, 1  ;;  %v311_v37 = vrot.slane %v11472_v17, 1  ;;  %v371_v40 = vrot.slane %v170_v24, 1  ;;  %912 = vmatpush1.bf16.msra.mxu0 %v11059_v53  ;;  %v11062_v57 = vld [vmem:[%s17184_s1 + $0x60] ss:$8 sps:$4 sm:$0xff]   ;;  %v11548_v61 = vld [vmem:[%s17183_s0 + $0x30] sm:$0xff]  }
   0xa   :  { %v175_v36 = vor.u32 %v174_v30, %v170_v24  ;;  %v165_v39 = vsel %vm153_vm3, %v160_v33, %v164_v20  ;;  %v372_v41 = vrot.slane %v172_v25, 2  ;;  %v374_v42 = vrot.slane %v181_v31, 1  ;;  %v48_v60 = vld [vmem:[%s17183_s0 + $0x3c] sm:$0x3]  ;;  %913 = vmatprep.subr.bf16.mxu0 %v11060_v56  ;;  %v11067_v15 = vld [vmem:[%s17184_s1 + $0x50] ss:$8 sps:$4 sm:$0xff]  }
   0xb   :  { %276 = vrot.lane.b32.xlu0 %v168_v26, %s11371_s23  ;;  %v370_v35 = vsel %vm363_vm2, %v366_v22, %v369_v29  ;;  %v375_v46 = vrot.slane %v177_v27, 2  ;;  %v11512_v47 = vcombine.low %v11493_v38, %v44_v43  ;;  %v312_v49 = vsel %vm306_vm1, %v310_v34, %v311_v37  ;;  %v11065_v7 = vld [vmem:[%s17184_s1 + $0x54] ss:$8 sps:$4 sm:$0xff]   ;;  %v11068_v20 = vld [vmem:[%s17184_s1 + $0x44] ss:$8 sps:$4 sm:$0xff]   ;;  %s11378_s28 = smov 64  }
   0xc   :  { %420 = vrot.lane.b32.xlu1 %v370_v35, %s11372_s26  ;;  %v180_v45 = vsel %vm153_vm3, %v175_v36, %v11484_v32  ;;  %v373_v50 = vor.u32 %v372_v41, %v371_v40  ;;  %v187_v52 = vshll.u32 %v11505_v44, 16  ;;  %v456_v58 = vrot.slane %v11450_v3, 2  ;;  %v11583_v25 = vld [vmem:[%s17183_s0 + $0x58] sm:$0xf]  ;;  %v11603_v4 = vld [vmem:[%s17183_s0 + $0x50] sm:$0xff]   ;;  %v11646_v53 = vld [vmem:[%s17183_s0 + $0x60] sm:$0xff]  }
   0xd   :  { %v11520_v51 = vor.u32 %v375_v46, %v374_v42  ;;  %v196_v54 = vshrl.u32 %v11512_v47, 16  ;;  %v457_v59 = vrot.slane %v11472_v17, 2  ;;  %v185_v63 = vshrl.u32 %v11505_v44, 16  ;;  %914 = vmatpush1.bf16.msra.mxu0 %v11062_v57  ;;  %v11073_v34 = vld [vmem:[%s17184_s1 + $0x34] ss:$8 sps:$4 sm:$0xff]   ;;  %s11381_s25 = smov 32  }
   0xe   :  { %v189_v1 = vrot.slane %v187_v52, 1  ;;  %v192_v6 = vshll.u32 %v11512_v47, 16  ;;  %v313_v8 = vrot.slane %v11505_v44, 1  ;;  %v314_v9 = vrot.slane %v11512_v47, 1  ;;  %915 = vmatprep.subr.bf16.mxu0 %v11065_v7  ;;  %v11075_v56 = vld [vmem:[%s17184_s1 + $0x30] ss:$8 sps:$4 sm:$0xff]  }
   0xf   :  { %274 = vrot.lane.b32.xlu0 %v165_v39, %s11371_s23  ;;  %v377_v62 = vsel %vm363_vm2, %v373_v50, %v11520_v51  ;;  %v378_v10 = vrot.slane %v185_v63, 1  ;;  %v381_v13 = vrot.slane %v196_v54, 1  ;;  %v11563_v14 = vcombine.low %v11530_v55, %v48_v60 }
  0x10   :  { %278 = vrot.lane.b32.xlu1 %v180_v45, %s11371_s23  ;;  %v458_v16 = vsel %vm452_vm0, %v456_v58, %v457_v59  ;;  %v382_v18 = vrot.slane %v192_v6, 2  ;;  %v202_v19 = vshll.u32 %v11548_v61, 16  ;;  %v190_v21 = vor.u32 %v189_v1, %v185_v63  ;;  %v11076_v63 = vld [vmem:[%s17184_s1 + $0x24] ss:$8 sps:$4 sm:$0xff]  }
  0x11   :  { %v11576_v22 = vrot.slane %v192_v6, 1  ;;  %v459_v23 = vrot.slane %v11505_v44, 2  ;;  %v460_v24 = vrot.slane %v11512_v47, 2  ;;  %v183_v26 = vor.u32 %v181_v31, %v11484_v32  ;;  %916 = vmatpush1.bf16.msra.mxu0 %v11067_v15 }
  0x12   :  { %v11594_v27 = vsel %vm306_vm1, %v313_v8, %v314_v9  ;;  %v207_v28 = vshll.u32 %v11563_v14, 16  ;;  %v11609_v31 = vor.u32 %v382_v18, %v381_v13  ;;  %v200_v32 = vshrl.u32 %v11548_v61, 16  ;;  %917 = vmatprep.subr.bf16.mxu0 %v11068_v20 }
  0x13   :  { %333 = vrot.lane.b32.xlu0 %v308_v12, %s11370_s22  ;;  %v379_v12 = vrot.slane %v187_v52, 2  ;;  %v204_v33 = vrot.slane %v202_v19, 1  ;;  %v195_v35 = vsel %vm153_vm3, %v190_v21, %v11576_v22  ;;  %v11620_v36 = vsel %vm452_vm0, %v459_v23, %v460_v24  ;;  %v11641_v52 = vld [vmem:[%s17183_s0 + $0x68] sm:$0xf] }
  0x14   :  { %335 = vrot.lane.b32.xlu1 %v312_v49, %s11370_s22  ;;  %v316_v39 = vrot.slane %v11548_v61, 1  ;;  %v317_v40 = vrot.slane %v11563_v14, 1  ;;  %v211_v41 = vshrl.u32 %v11563_v14, 16  ;;  %v11625_v42 = vrot.slane %v200_v32, 1  ;;  %v11078_v21 = vld [vmem:[%s17184_s1 + $0x20] ss:$8 sps:$4 sm:$0xff]  }
  0x15   :  { %v380_v30 = vor.u32 %v379_v12, %v378_v10  ;;  %v11627_v43 = vrot.slane %v202_v19, 2  ;;  %v11633_v46 = vrot.slane %v207_v28, 1  ;;  %v230_v48 = vshrl.u32 %v11603_v4, 16 }
  0x16   :  { %v232_v49 = vshll.u32 %v11603_v4, 16  ;;  %v322_v50 = vrot.slane %v11603_v4, 1  ;;  %v11656_v58 = vor.u32 %v204_v33, %v200_v32  ;;  %v11669_v10 = vrot.slane %v211_v41, 1  ;;  %v11710_v32 = vld [vmem:[%s17183_s0 + $0x78] sm:$0xf] }
  0x17   :  { %422 = vrot.lane.b32.xlu0 %v369_v29, %s11372_s26  ;;  %v56_v29 = vld [vmem:[%s17183_s0 + $0x5c] sm:$0x3]  ;;  %v384_v57 = vsel %vm363_vm2, %v380_v30, %v11609_v31  ;;  %v399_v7 = vrot.slane %v230_v48, 1  ;;  %v468_v20 = vrot.slane %v11603_v4, 2  ;;  %v11689_v23 = vrot.slane %v207_v28, 2 }
  0x18   :  { %424 = vrot.lane.b32.xlu1 %v377_v62, %s11372_s26  ;;  %v11630_v45 = vcombine.low %v11583_v25, %v56_v29  ;;  %v234_v1 = vrot.slane %v232_v49, 1  ;;  %v400_v8 = vrot.slane %v232_v49, 2  ;;  %v325_v29 = vrot.slane %v11646_v53, 1 }
  0x19   :  { %v247_v28 = vshll.u32 %v11646_v53, 16  ;;  %v471_v49 = vrot.slane %v11646_v53, 2  ;;  %vm867_vm4 = vcmask 97280   ;;  %vm550_vm5 = vcmask 457728  }
  0x1a   :  { %v237_v60 = vshll.u32 %v11630_v45, 16  ;;  %v17197_v62 = vrot.slane %v11630_v45, 1  ;;  %v241_v6 = vshrl.u32 %v11630_v45, 16  ;;  %v401_v18 = vor.u32 %v400_v8, %v399_v7  ;;  %v11081_v8 = vld [vmem:[%s17184_s1 + $0x10] ss:$8 sps:$4 sm:$0xff]  }
  0x1b   :  { %479 = vrot.lane.b32.xlu0 %v454_v11, %s11369_s21  ;;  %v11070_v11 = vld [vmem:[%s17184_s1 + $0x40] ss:$8 sps:$4 sm:$0xff]   ;;  %vm509_vm6 = vcmask 228352   ;;  %vm583_vm7 = vcmask 687104   ;;  %vm616_vm8 = vcmask 916480   ;;  %vm2888_vm9 = vcmask 1041409  }
  0x1c   :  { %481 = vrot.lane.b32.xlu1 %v458_v16, %s11369_s21  ;;  %918 = vmatpush1.bf16.msra.mxu0 %v11070_v11  ;;  %v11671_v12 = vrot.slane %v237_v60, 1  ;;  %v11676_v13 = vsel %vm306_vm1, %v322_v50, %v17197_v62  ;;  %v403_v15 = vrot.slane %v237_v60, 2  ;;  %v235_v16 = vor.u32 %v234_v1, %v230_v48  ;;  %v11079_v11 = vld [vmem:[%s17184_s1 + $0x14] ss:$8 sps:$4 sm:$0xff]  }
  0x1d   :  { %919 = vmatprep.subr.bf16.mxu0 %v11073_v34  ;;  %v402_v19 = vrot.slane %v241_v6, 1  ;;  %v64_v50 = vld [vmem:[%s17183_s0 + $0x7c] sm:$0x3]  ;;  %vm2890_vm10 = vcmask 1042434   ;;  %vm2892_vm11 = vcmask 1043459   ;;  %vm2894_vm12 = vcmask 1044484  }
  0x1e   :  { %v11701_v30 = vsel %vm153_vm3, %v235_v16, %v11671_v12  ;;  %v407_v16 = vrot.slane %v247_v28, 2  ;;  %vm2896_vm13 = vcmask 1045509   ;;  %vm2898_vm14 = vcmask 1046534  }
  0x1f   :  { %280 = vrot.lane.b32.xlu0 %v183_v26, %s11371_s23  ;;  %v11703_v17 = vor.u32 %v403_v15, %v402_v19  ;;  %vm2900_vm15 = vcmask 1047559  }
  0x20   :  { %337 = vrot.lane.b32.xlu1 %v311_v37, %s11370_s22  ;;  %v60_v37 = vld [vmem:[%s17183_s0 + $0x6c] sm:$0x3]  ;;  %920 = vmatpush1.bf16.msra.mxu0 %v11075_v56  ;;  %v11726_v56 = vld [vmem:[%s17183_s0 + $0x70] sm:$0xff]  }
  0x21   :  { %v11693_v26 = vcombine.low %v11641_v52, %v60_v37  ;;  %921 = vmatprep.subr.bf16.mxu0 %v11076_v63  ;;  %v11731_v60 = vsel %vm363_vm2, %v401_v18, %v11703_v17  ;;  %v249_v63 = vrot.slane %v247_v28, 1  ;;  %v11083_v18 = vld [vmem:[%s17184_s1 + $0x4] ss:$8 sps:$4 sm:$0xff]   ;;  %v262_v28 = vshll.u32 %v11726_v56, 16 }
  0x23   :  { %426 = vrot.lane.b32.xlu0 %v11520_v51, %s11372_s26  ;;  %v17196_v51 = vrot.slane %v11630_v45, 2  ;;  %v17193_v34 = vrot.slane %v11693_v26, 1  ;;  %v252_v48 = vshll.u32 %v11693_v26, 16  ;;  %v17194_v1 = vrot.slane %v11693_v26, 2 }
  0x24   :  { %483 = vrot.lane.b32.xlu1 %v457_v59, %s11369_s21  ;;  %v245_v59 = vshrl.u32 %v11646_v53, 16  ;;  %v17195_v7 = vshrl.u32 %v11693_v26, 16  ;;  %922 = vmatpush1.bf16.msra.mxu0 %v11078_v21 }
  0x25   :  { %v11715_v33 = vsel %vm452_vm0, %v468_v20, %v17196_v51  ;;  %v11745_v37 = vrot.slane %v252_v48, 1  ;;  %923 = vmatprep.subr.bf16.mxu0 %v11079_v11  ;;  %v11753_v20 = vsel %vm452_vm0, %v471_v49, %v17194_v1  ;;  %v410_v21 = vrot.slane %v252_v48, 2 }
  0x26   :  { %v406_v15 = vrot.slane %v245_v59, 1  ;;  %v250_v19 = vor.u32 %v249_v63, %v245_v59  ;;  %v260_v11 = vshrl.u32 %v11726_v56, 16  ;;  %v198_v59 = vor.u32 %v196_v54, %v11576_v22 }
  0x27   :  { %282 = vrot.lane.b32.xlu0 %v195_v35, %s11371_s23  ;;  %v11743_v35 = vsel %vm306_vm1, %v325_v29, %v17193_v34  ;;  %v11758_v34 = vcombine.low %v11710_v32, %v64_v50  ;;  %v328_v48 = vrot.slane %v11726_v56, 1  ;;  %v11085_v50 = vld [vmem:[%s17184_s1] ss:$8 sps:$4 sm:$0xff]   ;;  %v264_v54 = vrot.slane %v262_v28, 1 }
  0x28   :  { %339 = vrot.lane.b32.xlu1 %v11594_v27, %s11370_s22  ;;  %v409_v27 = vrot.slane %v17195_v7, 1  ;;  %v408_v29 = vor.u32 %v407_v16, %v406_v15  ;;  %v11768_v49 = vsel %vm153_vm3, %v250_v19, %v11745_v37  ;;  %924 = vmatpush1.bf16.msra.mxu0 %v11081_v8  ;;  %v210_v8 = vsel %vm153_vm3, %v11656_v58, %v11633_v46 }
  0x29   :  { %v267_v22 = vshll.u32 %v11758_v34, 16  ;;  %v329_v15 = vrot.slane %v11758_v34, 1  ;;  %v271_v16 = vshrl.u32 %v11758_v34, 16  ;;  %925 = vmatprep.subr.bf16.mxu0 %v11083_v18  ;;  %v265_v1 = vor.u32 %v264_v54, %v260_v11 }
  0x2a   :  { %v11770_v63 = vor.u32 %v410_v21, %v409_v27  ;;  %v413_v27 = vrot.slane %v260_v11, 1  ;;  %v414_v21 = vrot.slane %v262_v28, 2  ;;  %v474_v28 = vrot.slane %v11726_v56, 2 }
  0x2b   :  { %428 = vrot.lane.b32.xlu0 %v384_v57, %s11372_s26  ;;  %v11086_v57 = vld [vmem:[%s17184_s1 + $0x84] ss:$8 sps:$4 sm:$0x3f]   ;;  %v11794_v7 = vrot.slane %v267_v22, 1  ;;  %v11799_v18 = vsel %vm306_vm1, %v328_v48, %v329_v15  ;;  %v416_v58 = vrot.slane %v271_v16, 1  ;;  %v417_v51 = vrot.slane %v267_v22, 2 }
  0x2c   :  { %485 = vrot.lane.b32.xlu1 %v11620_v36, %s11369_s21  ;;  %v11789_v19 = vsel %vm363_vm2, %v408_v29, %v11770_v63  ;;  %v11088_v36 = vld [vmem:[%s17184_s1 + $0x80] ss:$8 sps:$4 sm:$0x3f]   ;;  %v415_v29 = vor.u32 %v414_v21, %v413_v27  ;;  %v475_v62 = vrot.slane %v11758_v34, 2  ;;  %926 = vmatpush1.bf16.msra.mxu0 %v11085_v50  ;;  %v318_v11 = vsel %vm306_vm1, %v316_v39, %v317_v40 }
  0x2d   :  { %v387_v48 = vor.u32 %v11627_v43, %v11625_v42  ;;  %10562 = vmatprep.subr.msk.bf16.mxu0 %vm452_vm0, %v11086_v57  ;;  %v390_v50 = vor.u32 %v11689_v23, %v11669_v10  ;;  %v11821_v54 = vor.u32 %v417_v51, %v416_v58  ;;  %v906_v39 = vsel %vm452_vm0, %v11088_v36, 0  ;;  %v11840_v43 = vld [vmem:[%s17183_s0 + $0x48] sm:$0xf]  ;;  %v52_v10 = vld [vmem:[%s17183_s0 + $0x4c] sm:$0x3] }
  0x2e   :  { %v11826_v22 = vsel %vm452_vm0, %v474_v28, %v475_v62  ;;  %v462_v51 = vrot.slane %v11548_v61, 2  ;;  %v10532_v57 = vcombine.low %v11840_v43, %v52_v10  ;;  %v213_v21 = vor.u32 %v211_v41, %v11633_v46 }
  0x2f   :  { %284 = vrot.lane.b32.xlu0 %v198_v59, %s11371_s23  ;;  %v11816_v59 = vsel %vm153_vm3, %v265_v1, %v11794_v7  ;;  %v11834_v42 = vsel %vm363_vm2, %v415_v29, %v11821_v54  ;;  %v391_v23 = vsel %vm363_vm2, %v387_v48, %v390_v50  ;;  %v463_v1 = vrot.slane %v11563_v14, 2 }
  0x30   :  { %286 = vrot.lane.b32.xlu1 %v210_v8, %s11371_s23  ;;  %942 = vmatpush2.bf16.msra.mxu0 %v906_v39  ;;  %v222_v36 = vshll.u32 %v10532_v57, 16  ;;  %v226_v29 = vshrl.u32 %v10532_v57, 16  ;;  %v320_v46 = vrot.slane %v10532_v57, 1 }
  0x31   :  { %v464_v27 = vsel %vm452_vm0, %v462_v51, %v463_v1 }
  0x32   :  { %v224_v28 = vrot.slane %v222_v36, 1  ;;  %v395_v48 = vrot.slane %v226_v29, 1  ;;  %v396_v39 = vrot.slane %v222_v36, 2 }
  0x33   :  { %341 = vrot.lane.b32.xlu0 %v314_v9, %s11370_s22  ;;  %v11848_v9 = vld [vmem:[%s17183_s0 + $0x40] sm:$0xff]   ;;  %s11376_s0 = smov 96  }
  0x34   :  { %343 = vrot.lane.b32.xlu1 %v318_v11, %s11370_s22  ;;  %v217_v8 = vshll.u32 %v11848_v9, 16  ;;  %v319_v41 = vrot.slane %v11848_v9, 1  ;;  %v397_v51 = vor.u32 %v396_v39, %v395_v48  ;;  %v465_v14 = vrot.slane %v11848_v9, 2 }
  0x36   :  { %v219_v58 = vrot.slane %v217_v8, 1 }
  0x37   :  { %430 = vrot.lane.b32.xlu0 %v11609_v31, %s11372_s26  ;;  %v215_v31 = vshrl.u32 %v11848_v9, 16 }
  0x38   :  { %432 = vrot.lane.b32.xlu1 %v391_v23, %s11372_s26 }
  0x39   :  { %v392_v11 = vrot.slane %v215_v31, 1  ;;  %v220_v47 = vor.u32 %v219_v58, %v215_v31 }
  0x3b   :  { %487 = vrot.lane.b32.xlu0 %v460_v24, %s11369_s21  ;;  %v393_v24 = vrot.slane %v217_v8, 2  ;;  %v225_v10 = vsel %vm153_vm3, %v220_v47, %v224_v28  ;;  %vm6451_vm3 = vcmask 654336  }
  0x3c   :  { %489 = vrot.lane.b32.xlu1 %v464_v27, %s11369_s21  ;;  %v321_v27 = vsel %vm306_vm1, %v319_v41, %v320_v46  ;;  %vm3200_vm1 = vcmask 834560  }
  0x3d   :  { %v394_v23 = vor.u32 %v393_v24, %v392_v11 }
  0x3f   :  { %288 = vrot.lane.b32.xlu0 %v213_v21, %s11371_s23  ;;  %v398_v8 = vsel %vm363_vm2, %v394_v23, %v397_v51  ;;  %vm6138_vm2 = vcmask 785408  }
  0x40   :  { %345 = vrot.lane.b32.xlu1 %v317_v40, %s11370_s22  ;;  %v466_v40 = vrot.slane %v10532_v57, 2 }
  0x42   :  { %v467_v21 = vsel %vm452_vm0, %v465_v14, %v466_v40  ;;  %vm3119_vm0 = vcmask 965632  }
  0x43   :  { %434 = vrot.lane.b32.xlu0 %v390_v50, %s11372_s26  ;;  %v228_v50 = vor.u32 %v226_v29, %v224_v28 }
  0x44   :  { %491 = vrot.lane.b32.xlu1 %v463_v1, %s11369_s21  ;;  %v243_v1 = vor.u32 %v241_v6, %v11671_v12  ;;  %v17586_v6 = vshrl.u32 %v11693_v26, 16 }
  0x46   :  { %v258_v12 = vor.u32 %v17586_v6, %v11745_v37 }
  0x47   :  { %290 = vrot.lane.b32.xlu0 %v225_v10, %s11371_s23 }
  0x48   :  { %347 = vrot.lane.b32.xlu1 %v321_v27, %s11370_s22 }
  0x4b   :  { %436 = vrot.lane.b32.xlu0 %v398_v8, %s11372_s26 }
  0x4c   :  { %493 = vrot.lane.b32.xlu1 %v467_v21, %s11369_s21 }
  0x4f   :  { %292 = vrot.lane.b32.xlu0 %v228_v50, %s11371_s23 }
  0x50   :  { %294 = vrot.lane.b32.xlu1 %v11701_v30, %s11371_s23  ;;  %v17584_v30 = vrot.slane %v11630_v45, 1 }
  0x53   :  { %349 = vrot.lane.b32.xlu0 %v320_v46, %s11370_s22 }
  0x54   :  { %351 = vrot.lane.b32.xlu1 %v11676_v13, %s11370_s22  ;;  %v17585_v13 = vrot.slane %v11630_v45, 2  ;;  %v17587_v45 = vrot.slane %v11693_v26, 1 }
  0x57   :  { %438 = vrot.lane.b32.xlu0 %v397_v51, %s11372_s26 }
  0x58   :  { %440 = vrot.lane.b32.xlu1 %v11731_v60, %s11372_s26  ;;  %v17588_v60 = vrot.slane %v11693_v26, 2 }
  0x5b   :  { %495 = vrot.lane.b32.xlu0 %v466_v40, %s11369_s21 }
  0x5c   :  { %497 = vrot.lane.b32.xlu1 %v11715_v33, %s11369_s21 }
  0x5f   :  { %296 = vrot.lane.b32.xlu0 %v243_v1, %s11371_s23 }
  0x60   :  { %353 = vrot.lane.b32.xlu1 %v17584_v30, %s11370_s22 }
  0x63   :  { %442 = vrot.lane.b32.xlu0 %v11703_v17, %s11372_s26 }
  0x64   :  { %499 = vrot.lane.b32.xlu1 %v17585_v13, %s11369_s21 }
  0x67   :  { %298 = vrot.lane.b32.xlu0 %v11768_v49, %s11371_s23 }
  0x68   :  { %355 = vrot.lane.b32.xlu1 %v11743_v35, %s11370_s22  ;;  %v273_v35 = vor.u32 %v271_v16, %v11794_v7 }
  0x6b   :  { %444 = vrot.lane.b32.xlu0 %v11789_v19, %s11372_s26 }
  0x6c   :  { %501 = vrot.lane.b32.xlu1 %v11753_v20, %s11369_s21 }
  0x6f   :  { %300 = vrot.lane.b32.xlu0 %v258_v12, %s11371_s23 }
  0x70   :  { %302 = vrot.lane.b32.xlu1 %v11816_v59, %s11371_s23 }
  0x73   :  { %357 = vrot.lane.b32.xlu0 %v17587_v45, %s11370_s22 }
  0x74   :  { %359 = vrot.lane.b32.xlu1 %v11799_v18, %s11370_s22 }
  0x77   :  { %446 = vrot.lane.b32.xlu0 %v11770_v63, %s11372_s26 }
  0x78   :  { %448 = vrot.lane.b32.xlu1 %v11834_v42, %s11372_s26 }
  0x79   :  { %v478_v17 = vpop.permute.xlu1 %477  ;;  %v332_v33 = vpop.permute.xlu0 %331 }
  0x7a   :  { %10563 = vmatprep.mubr.msk.bf16.mxu0 %vm867_vm4, %v478_v17 }
  0x7b   :  { %503 = vrot.lane.b32.xlu0 %v17588_v60, %s11369_s21 }
  0x7c   :  { %505 = vrot.lane.b32.xlu1 %v11826_v22, %s11369_s21 }
  0x7d   :  { %v277_v37 = vpop.permute.xlu0 %276 }
  0x7e   :  { %v421_v20 = vpop.permute.xlu1 %420 }
  0x7f   :  { %304 = vrot.lane.b32.xlu0 %v273_v35, %s11371_s23  ;;  %s11375_s23 = smov 102  }
  0x80   :  { %361 = vrot.lane.b32.xlu1 %v329_v15, %s11370_s22 }
  0x81   :  { %v275_v49 = vpop.permute.xlu0 %274 }
  0x82   :  { %v279_v26 = vpop.permute.xlu1 %278  ;;  %v511_v63 = vsel %vm509_vm6, %v11445_v2, %v275_v49  ;;  %v10513_v2 = vcombine.low %v11437_v0, %v11437_v0  ;;  %v10515_v0 = vcombine.low %v11458_v5, %v11458_v5 }
  0x83   :  { %v552_v7 = vsel %vm550_vm5, %v511_v63, %v332_v33  ;;  %450 = vrot.lane.b32.xlu0 %v11821_v54, %s11372_s26  ;;  %v516_v54 = vsel %vm509_vm6, %v11450_v3, %v279_v26  ;;  %s11380_s26 = smov 12  }
  0x84   :  { %507 = vrot.lane.b32.xlu1 %v475_v62, %s11369_s21  ;;  %v585_v15 = vsel %vm583_vm7, %v552_v7, %v421_v20  ;;  %v514_v42 = vsel %vm509_vm6, %v10513_v2, %v277_v37  ;;  %v10517_v37 = vcombine.low %v11493_v38, %v11493_v38  ;;  %v10519_v38 = vcombine.low %v11530_v55, %v11530_v55 }
  0x85   :  { %v334_v16 = vpop.permute.xlu0 %333  ;;  %v618_v19 = vsel %vm616_vm8, %v585_v15, %v478_v17 }
  0x86   :  { %v336_v18 = vpop.permute.xlu1 %335  ;;  %944 = vmatmul.mubr.bf16.vlgmr.msra.gmra.mxu0 %v618_v19  ;;  %v554_v34 = vsel %vm550_vm5, %v514_v42, %v334_v16 }
  0x87   :  { %v556_v62 = vsel %vm550_vm5, %v516_v54, %v336_v18 }
  0x89   :  { %v423_v59 = vpop.permute.xlu0 %422 }
  0x8a   :  { %v425_v22 = vpop.permute.xlu1 %424  ;;  %v587_v57 = vsel %vm583_vm7, %v554_v34, %v423_v59 }
  0x8b   :  { %v589_v31 = vsel %vm583_vm7, %v556_v62, %v425_v22 }
  0x8d   :  { %v480_v36 = vpop.permute.xlu0 %479 }
  0x8e   :  { %v482_v58 = vpop.permute.xlu1 %481  ;;  %v620_v29 = vsel %vm616_vm8, %v587_v57, %v480_v36 }
  0x8f   :  { %v10537_v28 = vcombine.low %v480_v36, %v482_v58  ;;  %v622_v11 = vsel %vm616_vm8, %v589_v31, %v482_v58  ;;  %v674_v23 = vunpack.c.h.b16 %v482_v58 }
  0x90   :  { %v10536_v47 = vcombine.low %v620_v29, %v622_v11  ;;  %v673_v14 = vunpack.c.h.b16 %v622_v11 }
  0x91   :  { %10564 = vmatprep.mubr.msk.bf16.mxu0 %vm867_vm4, %v10537_v28  ;;  %v281_v3 = vpop.permute.xlu0 %280 }
  0x92   :  { %v338_v24 = vpop.permute.xlu1 %337  ;;  %954 = vmatmul.mubr.bf16.gmra.mxu0 %v10536_v47  ;;  %v519_v48 = vsel %vm509_vm6, %v10515_v0, %v281_v3 }
  0x93   :  { %v558_v39 = vsel %vm550_vm5, %v519_v48, %v338_v24 }
  0x95   :  { %v427_v41 = vpop.permute.xlu0 %426 }
  0x96   :  { %v484_v46 = vpop.permute.xlu1 %483  ;;  %v591_v10 = vsel %vm583_vm7, %v558_v39, %v427_v41 }
  0x97   :  { %v676_v51 = vunpack.c.l.b16 %v484_v46  ;;  %v624_v5 = vsel %vm616_vm8, %v591_v10, %v484_v46 }
  0x98   :  { %v675_v27 = vunpack.c.l.b16 %v624_v5 }
  0x99   :  { %v748_v40 = vpack.c.b16 %v676_v51, %v674_v23  ;;  %v283_v8 = vpop.permute.xlu0 %282 }
  0x9a   :  { %v340_v21 = vpop.permute.xlu1 %339  ;;  %v747_v50 = vpack.c.b16 %v675_v27, %v673_v14  ;;  %v521_v1 = vsel %vm509_vm6, %v11505_v44, %v283_v8 }
  0x9b   :  { %10565 = vmatprep.mubr.msk.bf16.mxu0 %vm867_vm4, %v748_v40  ;;  %v560_v6 = vsel %vm550_vm5, %v521_v1, %v340_v21  ;;  %v10521_v40 = vcombine.low %v11840_v43, %v11840_v43  ;;  %v10523_v43 = vcombine.low %v11583_v25, %v11583_v25 }
  0x9c   :  { %964 = vmatmul.mubr.bf16.gmra.mxu0 %v747_v50 }
  0x9d   :  { %v429_v30 = vpop.permute.xlu0 %428 }
  0x9e   :  { %v486_v13 = vpop.permute.xlu1 %485  ;;  %v593_v12 = vsel %vm583_vm7, %v560_v6, %v429_v30 }
  0x9f   :  { %10566 = vmatprep.mubr.msk.bf16.mxu0 %vm867_vm4, %v486_v13  ;;  %v626_v33 = vsel %vm616_vm8, %v593_v12, %v486_v13 }
  0xa1   :  { %v285_v45 = vpop.permute.xlu0 %284 }
  0xa2   :  { %v287_v17 = vpop.permute.xlu1 %286  ;;  %v524_v49 = vsel %vm509_vm6, %v10517_v37, %v285_v45 }
  0xa3   :  { %v526_v26 = vsel %vm509_vm6, %v11548_v61, %v287_v17 }
  0xa4   :  { %974 = vmatmul.mubr.bf16.gmra.mxu0 %v626_v33 }
  0xa5   :  { %v342_v60 = vpop.permute.xlu0 %341 }
  0xa6   :  { %v344_v35 = vpop.permute.xlu1 %343  ;;  %v562_v63 = vsel %vm550_vm5, %v524_v49, %v342_v60 }
  0xa7   :  { %v564_v7 = vsel %vm550_vm5, %v526_v26, %v344_v35 }
  0xa9   :  { %v431_v44 = vpop.permute.xlu0 %430 }
  0xaa   :  { %v433_v20 = vpop.permute.xlu1 %432  ;;  %v595_v15 = vsel %vm583_vm7, %v562_v63, %v431_v44 }
  0xab   :  { %v597_v19 = vsel %vm583_vm7, %v564_v7, %v433_v20 }
  0xad   :  { %v488_v16 = vpop.permute.xlu0 %487 }
  0xae   :  { %v490_v18 = vpop.permute.xlu1 %489  ;;  %v628_v2 = vsel %vm616_vm8, %v595_v15, %v488_v16 }
  0xaf   :  { %v10539_v59 = vcombine.low %v488_v16, %v490_v18  ;;  %v630_v22 = vsel %vm616_vm8, %v597_v19, %v490_v18  ;;  %v686_v58 = vunpack.c.h.b16 %v490_v18 }
  0xb0   :  { %v10538_v42 = vcombine.low %v628_v2, %v630_v22  ;;  %v685_v28 = vunpack.c.h.b16 %v630_v22 }
  0xb1   :  { %10567 = vmatprep.mubr.msk.bf16.mxu0 %vm867_vm4, %v10539_v59  ;;  %v289_v61 = vpop.permute.xlu0 %288 }
  0xb2   :  { %v346_v54 = vpop.permute.xlu1 %345  ;;  %984 = vmatmul.mubr.bf16.gmra.mxu0 %v10538_v42  ;;  %v529_v34 = vsel %vm509_vm6, %v10519_v38, %v289_v61 }
  0xb3   :  { %v566_v62 = vsel %vm550_vm5, %v529_v34, %v346_v54 }
  0xb5   :  { %v435_v57 = vpop.permute.xlu0 %434 }
  0xb6   :  { %v492_v36 = vpop.permute.xlu1 %491  ;;  %v599_v31 = vsel %vm583_vm7, %v566_v62, %v435_v57 }
  0xb7   :  { %v688_v29 = vunpack.c.l.b16 %v492_v36  ;;  %v632_v55 = vsel %vm616_vm8, %v599_v31, %v492_v36 }
  0xb8   :  { %v687_v0 = vunpack.c.l.b16 %v632_v55 }
  0xb9   :  { %v754_v11 = vpack.c.b16 %v688_v29, %v686_v58  ;;  %v291_v47 = vpop.permute.xlu0 %290  ;;  %v10525_v29 = vcombine.low %v11641_v52, %v11641_v52  ;;  %v10527_v52 = vcombine.low %v11710_v32, %v11710_v32 }
  0xba   :  { %v348_v3 = vpop.permute.xlu1 %347  ;;  %v753_v24 = vpack.c.b16 %v687_v0, %v685_v28  ;;  %v531_v48 = vsel %vm509_vm6, %v11848_v9, %v291_v47 }
  0xbb   :  { %10568 = vmatprep.mubr.msk.bf16.mxu0 %vm867_vm4, %v754_v11  ;;  %v568_v46 = vsel %vm550_vm5, %v531_v48, %v348_v3 }
  0xbc   :  { %994 = vmatmul.mubr.bf16.gmra.mxu0 %v753_v24 }
  0xbd   :  { %v437_v39 = vpop.permute.xlu0 %436 }
  0xbe   :  { %v494_v41 = vpop.permute.xlu1 %493  ;;  %v601_v10 = vsel %vm583_vm7, %v568_v46, %v437_v39 }
  0xbf   :  { %10569 = vmatprep.mubr.msk.bf16.mxu0 %vm867_vm4, %v494_v41  ;;  %v634_v5 = vsel %vm616_vm8, %v601_v10, %v494_v41 }
  0xc1   :  { %v293_v23 = vpop.permute.xlu0 %292 }
  0xc2   :  { %v295_v51 = vpop.permute.xlu1 %294  ;;  %v534_v21 = vsel %vm509_vm6, %v10521_v40, %v293_v23 }
  0xc3   :  { %v536_v50 = vsel %vm509_vm6, %v11603_v4, %v295_v51 }
  0xc4   :  { %1004 = vmatmul.mubr.bf16.gmra.mxu0 %v634_v5 }
  0xc5   :  { %v350_v27 = vpop.permute.xlu0 %349 }
  0xc6   :  { %v352_v14 = vpop.permute.xlu1 %351  ;;  %v570_v1 = vsel %vm550_vm5, %v534_v21, %v350_v27 }
  0xc7   :  { %v572_v30 = vsel %vm550_vm5, %v536_v50, %v352_v14 }
  0xc9   :  { %v439_v9 = vpop.permute.xlu0 %438 }
  0xca   :  { %v441_v8 = vpop.permute.xlu1 %440  ;;  %v603_v13 = vsel %vm583_vm7, %v570_v1, %v439_v9 }
  0xcb   :  { %v605_v12 = vsel %vm583_vm7, %v572_v30, %v441_v8 }
  0xcd   :  { %v496_v6 = vpop.permute.xlu0 %495 }
  0xce   :  { %v498_v45 = vpop.permute.xlu1 %497  ;;  %v636_v17 = vsel %vm616_vm8, %v603_v13, %v496_v6 }
  0xcf   :  { %v10541_v33 = vcombine.low %v496_v6, %v498_v45  ;;  %v638_v60 = vsel %vm616_vm8, %v605_v12, %v498_v45  ;;  %v698_v7 = vunpack.c.h.b16 %v498_v45  ;;  %v733_v6 = vlaneseq }
  0xd0   :  { %v10540_v35 = vcombine.low %v636_v17, %v638_v60  ;;  %v697_v19 = vunpack.c.h.b16 %v638_v60  ;;  %v731_v60 = vld [vmem:[%s17185_s2] sm:$0x3]  ;;  %s11374_s2 = smov 118  }
  0xd1   :  { %10570 = vmatprep.mubr.msk.bf16.mxu0 %vm867_vm4, %v10541_v33  ;;  %v297_v4 = vpop.permute.xlu0 %296  ;;  %v12047_v12 = vshrl.u32 %v733_v6, 7 }
  0xd2   :  { %v354_v37 = vpop.permute.xlu1 %353  ;;  %1014 = vmatmul.mubr.bf16.gmra.mxu0 %v10540_v35  ;;  %v539_v44 = vsel %vm509_vm6, %v10523_v43, %v297_v4  ;;  %v11373_v43 = vmov 1983009808  }
  0xd3   :  { %v574_v20 = vsel %vm550_vm5, %v539_v44, %v354_v37  ;;  %17589 = vst [vmem:[#allocation2_spill] sm:$0xff] %v12047_v12  ;;  %v12050_v45 = vsub.s32 0, %v12047_v12  ;;  %v17198_v17 = vsub.s32 1, %v12047_v12  ;;  %v1115_v33 = vunpack.c.l.s4 %v11373_v43 }
  0xd5   :  { %v443_v49 = vpop.permute.xlu0 %442  ;;  %17590 = vst [vmem:[#allocation3_spill] sm:$0xff] %v12050_v45  ;;  %v12057_v35 = vrot.slane %v731_v60, %v12050_v45  ;;  %v12061_v4 = vrot.slane %v731_v60, %v17198_v17  ;;  %v1116_v37 = vunpack.c.0.s8 %v1115_v33 }
  0xd6   :  { %v500_v26 = vpop.permute.xlu1 %499  ;;  %v607_v63 = vsel %vm583_vm7, %v574_v20, %v443_v49 }
  0xd7   :  { %v700_v15 = vunpack.c.l.b16 %v500_v26  ;;  %v640_v25 = vsel %vm616_vm8, %v607_v63, %v500_v26  ;;  %v12066_v63 = vsub.s32 %v1116_v37, %v12047_v12 }
  0xd8   :  { %v699_v16 = vunpack.c.l.b16 %v640_v25 }
  0xd9   :  { %v760_v18 = vpack.c.b16 %v700_v15, %v698_v7  ;;  %v299_v2 = vpop.permute.xlu0 %298  ;;  %17591 = vst [vmem:[#allocation4_spill] sm:$0xff] %v12066_v63 }
  0xda   :  { %v356_v38 = vpop.permute.xlu1 %355  ;;  %v759_v59 = vpack.c.b16 %v699_v16, %v697_v19  ;;  %v541_v22 = vsel %vm509_vm6, %v11646_v53, %v299_v2 }
  0xdb   :  { %10571 = vmatprep.mubr.msk.bf16.mxu0 %vm867_vm4, %v760_v18  ;;  %v576_v54 = vsel %vm550_vm5, %v541_v22, %v356_v38 }
  0xdc   :  { %1024 = vmatmul.mubr.bf16.gmra.mxu0 %v759_v59 }
  0xdd   :  { %v445_v42 = vpop.permute.xlu0 %444 }
  0xde   :  { %v502_v61 = vpop.permute.xlu1 %501  ;;  %v609_v34 = vsel %vm583_vm7, %v576_v54, %v445_v42 }
  0xdf   :  { %10572 = vmatprep.mubr.msk.bf16.mxu0 %vm867_vm4, %v502_v61  ;;  %v642_v36 = vsel %vm616_vm8, %v609_v34, %v502_v61 }
  0xe1   :  { %v301_v62 = vpop.permute.xlu0 %300 }
  0xe2   :  { %v303_v57 = vpop.permute.xlu1 %302  ;;  %v544_v0 = vsel %vm509_vm6, %v10525_v29, %v301_v62 }
  0xe3   :  { %v546_v28 = vsel %vm509_vm6, %v11726_v56, %v303_v57  ;;  %v12073_v57 = vsub.s32 2, %v12047_v12 }
  0xe4   :  { %1034 = vmatmul.mubr.bf16.gmra.mxu0 %v642_v36 }
  0xe5   :  { %v358_v31 = vpop.permute.xlu0 %357  ;;  %17592 = vst [vmem:[#allocation5_spill] sm:$0xff] %v12073_v57 }
  0xe6   :  { %v360_v58 = vpop.permute.xlu1 %359  ;;  %v578_v11 = vsel %vm550_vm5, %v544_v0, %v358_v31 }
  0xe7   :  { %v580_v47 = vsel %vm550_vm5, %v546_v28, %v360_v58 }
  0xe9   :  { %v447_v53 = vpop.permute.xlu0 %446 }
  0xea   :  { %v449_v55 = vpop.permute.xlu1 %448  ;;  %v611_v3 = vsel %vm583_vm7, %v578_v11, %v447_v53 }
  0xeb   :  { %v613_v48 = vsel %vm583_vm7, %v580_v47, %v449_v55 }
  0xed   :  { %v504_v24 = vpop.permute.xlu0 %503 }
  0xee   :  { %v506_v39 = vpop.permute.xlu1 %505  ;;  %v644_v41 = vsel %vm616_vm8, %v611_v3, %v504_v24 }
  0xef   :  { %v10543_v46 = vcombine.low %v504_v24, %v506_v39  ;;  %v646_v10 = vsel %vm616_vm8, %v613_v48, %v506_v39  ;;  %v710_v8 = vunpack.c.h.b16 %v506_v39 }
  0xf0   :  { %v10542_v23 = vcombine.low %v644_v41, %v646_v10  ;;  %v709_v1 = vunpack.c.h.b16 %v646_v10 }
  0xf1   :  { %10573 = vmatprep.mubr.msk.bf16.mxu0 %vm867_vm4, %v10543_v46  ;;  %v305_v56 = vpop.permute.xlu0 %304 }
  0xf2   :  { %v362_v51 = vpop.permute.xlu1 %361  ;;  %1044 = vmatmul.mubr.bf16.gmra.mxu0 %v10542_v23  ;;  %v549_v5 = vsel %vm509_vm6, %v10527_v52, %v305_v56  ;;  %vm6764_vm6 = vcmask 523264  }
  0xf3   :  { %v582_v27 = vsel %vm550_vm5, %v549_v5, %v362_v51  ;;  %vm7964_vm5 = vcmask 392192  }
  0xf5   :  { %v451_v14 = vpop.permute.xlu0 %450 }
  0xf6   :  { %v508_v40 = vpop.permute.xlu1 %507  ;;  %v615_v9 = vsel %vm583_vm7, %v582_v27, %v451_v14  ;;  %vm9030_vm7 = vcmask 883712  }
  0xf7   :  { %v712_v21 = vunpack.c.l.b16 %v508_v40  ;;  %v648_v32 = vsel %vm616_vm8, %v615_v9, %v508_v40 }
  0xf8   :  { %v711_v50 = vunpack.c.l.b16 %v648_v32 }
  0xf9   :  { %v766_v30 = vpack.c.b16 %v712_v21, %v710_v8 }
  0xfa   :  { %v765_v13 = vpack.c.b16 %v711_v50, %v709_v1 }
  0xfb   :  { %10574 = vmatprep.mubr.msk.bf16.mxu0 %vm867_vm4, %v766_v30 }
  0xfc   :  { %1054 = vmatmul.mubr.bf16.gmra.mxu0 %v765_v13 }
 0x146   :  { %v945_v44 = vpop.f32.mrf.mxu0 }
 0x147   :  { %v946_v49 = vadd.f32 %v945_v44, %v12057_v35 }
 0x148   :  { %v947_v20 = vpop.f32.mrf.mxu0 }
 0x149   :  { %v948_v26 = vadd.f32 %v947_v20, %v12061_v4 }
 0x14a   :  { %v949_v7 = vpop.f32.mrf.mxu0 }
 0x14b   :  { %v1112_v15 = vcombine.low %v946_v49, %v948_v26  ;;  %v1113_v25 = vcombine.high %v946_v49, %v948_v26  ;;  %v950_v38 = vadd.f32 %v949_v7, %v12057_v35 }
 0x14c   :  { %v951_v16 = vpop.f32.mrf.mxu0 }
 0x14d   :  { %v1120_v19 = vrot.slane %v1112_v15, %v12066_v63  ;;  %v1127_v18 = vrot.slane %v1113_v25, %v12066_v63  ;;  %v952_v2 = vadd.f32 %v951_v16, %v12061_v4 }
 0x14f   :  { %v1128_v59 = vcombine.high %v1120_v19, %v1120_v19  ;;  %v1129_v22 = vcombine.high %v1127_v18, %v1127_v18  ;;  %v10575_v42 = vrot.slane %v1120_v19, 9  ;;  %v1130_v61 = vcombine.low %v950_v38, %v952_v2 }
 0x150   :  { %v1131_v54 = vcombine.high %v950_v38, %v952_v2  ;;  %v10577_v62 = vrot.slane %v1127_v18, 9 }
 0x151   :  { %v10576_v34 = vrot.slane %v1128_v59, 9  ;;  %v1138_v36 = vrot.slane %v1130_v61, %v12066_v63  ;;  %v10578_v29 = vrot.slane %v1129_v22, 9  ;;  %v12077_v53 = vmax.f32 %v1120_v19, %v10575_v42 }
 0x152   :  { %v1145_v31 = vrot.slane %v1131_v54, %v12066_v63  ;;  %v955_v58 = vpop.f32.mrf.mxu0  ;;  %v12081_v47 = vmax.f32 %v1127_v18, %v10577_v62 }
 0x153   :  { %v12079_v55 = vmax.f32 %v1128_v59, %v10576_v34  ;;  %v1146_v0 = vcombine.high %v1138_v36, %v1138_v36  ;;  %v10579_v24 = vrot.slane %v1138_v36, 9  ;;  %v956_v41 = vadd.f32 %v955_v58, %v12057_v35 }
 0x154   :  { %v1147_v28 = vcombine.high %v1145_v31, %v1145_v31  ;;  %v957_v11 = vpop.f32.mrf.mxu0  ;;  %v10581_v39 = vrot.slane %v1145_v31, 9  ;;  %v12087_v10 = vmax.f32 %v1129_v22, %v10578_v29  ;;  %v2123_v23 = vrot.slane %v12077_v53, %v12050_v45 }
 0x155   :  { %v2135_v3 = vrot.slane %v12079_v55, %v12073_v57  ;;  %v10580_v48 = vrot.slane %v1146_v0, 9  ;;  %v958_v52 = vadd.f32 %v957_v11, %v12061_v4  ;;  %v2127_v56 = vrot.slane %v12077_v53, %v12073_v57 }
 0x156   :  { %v959_v46 = vpop.f32.mrf.mxu0  ;;  %v10582_v51 = vrot.slane %v1147_v28, 9  ;;  %v12093_v5 = vmax.f32 %v1138_v36, %v10579_v24  ;;  %v2143_v9 = vrot.slane %v12081_v47, %v12073_v57  ;;  %v12102_v1 = vmax.f32 %v1145_v31, %v10581_v39 }
 0x157   :  { %v1148_v27 = vcombine.low %v956_v41, %v958_v52  ;;  %v1149_v14 = vcombine.high %v956_v41, %v958_v52  ;;  %v960_v8 = vadd.f32 %v959_v46, %v12057_v35  ;;  %v2902_v32 = vsel %vm2888_vm9, %v2135_v3, %v2127_v56 }
 0x158   :  { %v961_v40 = vpop.f32.mrf.mxu0  ;;  %v12100_v50 = vmax.f32 %v1146_v0, %v10580_v48  ;;  %v2151_v33 = vrot.slane %v12087_v10, %v12073_v57  ;;  %v2903_v60 = vsel %vm2890_vm10, %v2143_v9, %v2902_v32  ;;  %v12111_v49 = vmax.f32 %v1147_v28, %v10582_v51 }
 0x159   :  { %v962_v21 = vadd.f32 %v961_v40, %v12061_v4  ;;  %v1156_v30 = vrot.slane %v1148_v27, %v12066_v63  ;;  %v1163_v13 = vrot.slane %v1149_v14, %v12066_v63  ;;  %v2159_v26 = vrot.slane %v12093_v5, %v12073_v57 }
 0x15a   :  { %v2904_v16 = vsel %vm2892_vm11, %v2151_v33, %v2903_v60  ;;  %v2131_v19 = vrot.slane %v12079_v55, %v12050_v45  ;;  %v2139_v18 = vrot.slane %v12081_v47, %v12050_v45  ;;  %v2167_v38 = vrot.slane %v12100_v50, %v12073_v57 }
 0x15b   :  { %v1166_v6 = vcombine.low %v960_v8, %v962_v21  ;;  %v1167_v43 = vcombine.high %v960_v8, %v962_v21  ;;  %v1164_v37 = vcombine.high %v1156_v30, %v1156_v30  ;;  %v12109_v44 = vcombine.high %v1163_v13, %v1163_v13 }
 0x15c   :  { %v965_v20 = vpop.f32.mrf.mxu0  ;;  %v10583_v7 = vrot.slane %v1156_v30, 9  ;;  %v10585_v2 = vrot.slane %v1163_v13, 9  ;;  %v2175_v54 = vrot.slane %v12102_v1, %v12073_v57  ;;  %v2183_v36 = vrot.slane %v12111_v49, %v12073_v57 }
 0x15d   :  { %v1174_v15 = vrot.slane %v1166_v6, %v12066_v63  ;;  %v1181_v25 = vrot.slane %v1167_v43, %v12066_v63  ;;  %v10584_v34 = vrot.slane %v1164_v37, 9  ;;  %v2905_v31 = vsel %vm2894_vm12, %v2159_v26, %v2904_v16 }
 0x15e   :  { %v967_v59 = vpop.f32.mrf.mxu0  ;;  %v10586_v29 = vrot.slane %v12109_v44, 9  ;;  %v12130_v0 = vmax.f32 %v1156_v30, %v10583_v7  ;;  %v966_v28 = vadd.f32 %v965_v20, %v12057_v35  ;;  %v2147_v11 = vrot.slane %v12087_v10, %v12050_v45 }
 0x15f   :  { %v1182_v22 = vcombine.high %v1174_v15, %v1174_v15  ;;  %v1183_v42 = vcombine.high %v1181_v25, %v1181_v25  ;;  %v10587_v61 = vrot.slane %v1174_v15, 9  ;;  %v10589_v62 = vrot.slane %v1181_v25, 9 }
 0x160   :  { %v969_v58 = vpop.f32.mrf.mxu0  ;;  %v12135_v3 = vmax.f32 %v1163_v13, %v10585_v2  ;;  %v2906_v24 = vsel %vm2896_vm13, %v2167_v38, %v2905_v31  ;;  %v2155_v48 = vrot.slane %v12093_v5, %v12050_v45  ;;  %v2889_v39 = vsel %vm2888_vm9, %v2131_v19, %v2123_v23 }
 0x161   :  { %v10588_v52 = vrot.slane %v1182_v22, 9  ;;  %v10590_v46 = vrot.slane %v1183_v42, 9  ;;  %v12141_v56 = vmax.f32 %v1174_v15, %v10587_v61  ;;  %v2163_v51 = vrot.slane %v12100_v50, %v12050_v45 }
 0x162   :  { %v971_v41 = vpop.f32.mrf.mxu0  ;;  %v12145_v27 = vmax.f32 %v1164_v37, %v10584_v34  ;;  %v12147_v14 = vmax.f32 %v1181_v25, %v10589_v62  ;;  %v2907_v40 = vsel %vm2898_vm14, %v2175_v54, %v2906_v24  ;;  %v2891_v9 = vsel %vm2890_vm10, %v2139_v18, %v2889_v39 }
 0x163   :  { %v2908_v21 = vsel %vm2900_vm15, %v2183_v36, %v2907_v40  ;;  %v2171_v23 = vrot.slane %v12102_v1, %v12050_v45  ;;  %v2179_v32 = vrot.slane %v12111_v49, %v12050_v45  ;;  %v2893_v30 = vsel %vm2892_vm11, %v2147_v11, %v2891_v9 }
 0x164   :  { %v975_v8 = vpop.f32.mrf.mxu0  ;;  %3057 = vrot.lane.b32.xlu1 %v2908_v21, %s11374_s2  ;;  %v2895_v13 = vsel %vm2894_vm12, %v2155_v48, %v2893_v30  ;;  %v968_v6 = vadd.f32 %v967_v59, %v12061_v4  ;;  %v970_v43 = vadd.f32 %v969_v58, %v12057_v35  ;;  %v972_v33 = vadd.f32 %v971_v41, %v12061_v4 }
 0x165   :  { %v12162_v60 = vmax.f32 %v1182_v22, %v10588_v52  ;;  %v12164_v37 = vmax.f32 %v1183_v42, %v10590_v46  ;;  %v2219_v20 = vrot.slane %v12141_v56, %v12050_v45  ;;  %v2897_v26 = vsel %vm2896_vm13, %v2163_v51, %v2895_v13 }
 0x166   :  { %v977_v7 = vpop.f32.mrf.mxu0  ;;  %v2899_v15 = vsel %vm2898_vm14, %v2171_v23, %v2897_v26  ;;  %v1184_v25 = vcombine.low %v966_v28, %v968_v6  ;;  %v1185_v16 = vcombine.high %v966_v28, %v968_v6  ;;  %v1202_v19 = vcombine.low %v970_v43, %v972_v33 }
 0x167   :  { %v2223_v18 = vrot.slane %v12141_v56, %v12073_v57  ;;  %v2901_v2 = vsel %vm2900_vm15, %v2179_v32, %v2899_v15  ;;  %v1203_v38 = vcombine.high %v970_v43, %v972_v33  ;;  %v2199_v59 = vrot.slane %v12145_v27, %v12073_v57 }
 0x168   :  { %3055 = vrot.lane.b32.xlu0 %v2901_v2, %s11374_s2  ;;  %v1192_v42 = vrot.slane %v1184_v25, %v12066_v63  ;;  %v1199_v61 = vrot.slane %v1185_v16, %v12066_v63  ;;  %v12181_v54 = vmax.f32 %v12109_v44, %v10586_v29  ;;  %v2239_v34 = vrot.slane %v12147_v14, %v12073_v57  ;;  %v979_v58 = vpop.f32.mrf.mxu0 }
 0x169   :  { %v1210_v62 = vrot.slane %v1202_v19, %v12066_v63  ;;  %v1217_v36 = vrot.slane %v1203_v38, %v12066_v63  ;;  %v2191_v31 = vrot.slane %v12130_v0, %v12073_v57  ;;  %v2227_v28 = vrot.slane %v12162_v60, %v12050_v45 }
 0x16a   :  { %v2231_v11 = vrot.slane %v12162_v60, %v12073_v57  ;;  %v1200_v24 = vcombine.high %v1192_v42, %v1192_v42  ;;  %v1201_v44 = vcombine.high %v1199_v61, %v1199_v61  ;;  %v976_v29 = vadd.f32 %v975_v8, %v12057_v35  ;;  %v981_v32 = vpop.f32.mrf.mxu0 }
 0x16b   :  { %v2207_v48 = vrot.slane %v12135_v3, %v12073_v57  ;;  %v2912_v39 = vsel %vm2888_vm9, %v2199_v59, %v2191_v31  ;;  %v2195_v41 = vrot.slane %v12145_v27, %v12050_v45  ;;  %v10591_v52 = vrot.slane %v1192_v42, 9 }
 0x16c   :  { %v10593_v46 = vrot.slane %v1199_v61, 9  ;;  %3152 = vrot.lane.b32.xlu0 %v2901_v2, %s11375_s23  ;;  %v2215_v51 = vrot.slane %v12181_v54, %v12073_v57  ;;  %v2187_v40 = vrot.slane %v12130_v0, %v12050_v45  ;;  %v1218_v9 = vcombine.high %v1210_v62, %v1210_v62 }
 0x16d   :  { %v12204_v8 = vcombine.high %v1217_v36, %v1217_v36  ;;  %v10595_v21 = vrot.slane %v1210_v62, 9  ;;  %v10597_v23 = vrot.slane %v1217_v36, 9  ;;  %v10592_v30 = vrot.slane %v1200_v24, 9 }
 0x16e   :  { %v10594_v13 = vrot.slane %v1201_v44, 9  ;;  %v2913_v6 = vsel %vm2890_vm10, %v2207_v48, %v2912_v39  ;;  %v2203_v43 = vrot.slane %v12135_v3, %v12050_v45  ;;  %v2211_v26 = vrot.slane %v12181_v54, %v12050_v45 }
 0x16f   :  { %v2914_v33 = vsel %vm2892_vm11, %v2215_v51, %v2913_v6  ;;  %v2909_v15 = vsel %vm2888_vm9, %v2195_v41, %v2187_v40  ;;  %v978_v25 = vadd.f32 %v977_v7, %v12061_v4  ;;  %v12214_v16 = vmax.f32 %v1192_v42, %v10591_v52 }
 0x170   :  { %3061 = vrot.lane.b32.xlu1 %v2914_v33, %s11374_s2  ;;  %v2910_v19 = vsel %vm2890_vm10, %v2203_v43, %v2909_v15  ;;  %v980_v2 = vadd.f32 %v979_v58, %v12057_v35  ;;  %v982_v38 = vadd.f32 %v981_v32, %v12061_v4  ;;  %v12220_v59 = vmax.f32 %v1199_v61, %v10593_v46 }
 0x171   :  { %17593 = vst [vmem:[#allocation6_spill] sm:$0xff] %v12214_v16  ;;  %v2911_v31 = vsel %vm2892_vm11, %v2211_v26, %v2910_v19  ;;  %v1220_v48 = vcombine.low %v976_v29, %v978_v25  ;;  %v1221_v39 = vcombine.high %v976_v29, %v978_v25  ;;  %v10596_v41 = vrot.slane %v1218_v9, 9 }
 0x172   :  { %17594 = vst [vmem:[#allocation7_spill] sm:$0xff] %v12220_v59  ;;  %v985_v51 = vpop.f32.mrf.mxu0  ;;  %v10598_v7 = vrot.slane %v12204_v8, 9  ;;  %3059 = vrot.lane.b32.xlu0 %v2911_v31, %s11374_s2  ;;  %v1238_v42 = vcombine.low %v980_v2, %v982_v38  ;;  %v1239_v52 = vcombine.high %v980_v2, %v982_v38  ;;  %v12225_v40 = vmax.f32 %v1210_v62, %v10595_v21 }
 0x173   :  { %v12227_v6 = vmax.f32 %v1217_v36, %v10597_v23  ;;  %v1228_v58 = vrot.slane %v1220_v48, %v12066_v63  ;;  %v1235_v61 = vrot.slane %v1221_v39, %v12066_v63  ;;  %v12231_v46 = vmax.f32 %v1200_v24, %v10592_v30 }
 0x174   :  { %17595 = vst [vmem:[#allocation8_spill] sm:$0xff] %v12225_v40  ;;  %v1246_v29 = vrot.slane %v1238_v42, %v12066_v63  ;;  %v1253_v32 = vrot.slane %v1239_v52, %v12066_v63  ;;  %v12235_v43 = vmax.f32 %v1201_v44, %v10594_v13  ;;  %v987_v62 = vpop.f32.mrf.mxu0  ;;  %v12237_v21 = vmax.f32 %v1218_v9, %v10596_v41 }
 0x175   :  { %17596 = vst [vmem:[#allocation9_spill] sm:$0xff] %v12227_v6  ;;  %17597 = vst [vmem:[#allocation10_spill] sm:$0xff] %v12231_v46  ;;  %v1236_v33 = vcombine.high %v1228_v58, %v1228_v58  ;;  %v1237_v26 = vcombine.high %v1235_v61, %v1235_v61  ;;  %v10599_v15 = vrot.slane %v1228_v58, 9  ;;  %v10601_v25 = vrot.slane %v1235_v61, 9 }
 0x176   :  { %17598 = vst [vmem:[#allocation11_spill] sm:$0xff] %v12235_v43  ;;  %17599 = vst [vmem:[#allocation12_spill] sm:$0xff] %v12237_v21  ;;  %3154 = vrot.lane.b32.xlu0 %v2911_v31, %s11375_s23  ;;  %v12240_v36 = vcombine.high %v1246_v29, %v1246_v29  ;;  %v10603_v23 = vrot.slane %v1246_v29, 9  ;;  %v10605_v24 = vrot.slane %v1253_v32, 9  ;;  %v2922_v44 = vsel %vm2888_vm9, %v2231_v11, %v2223_v18  ;;  %v989_v11 = vpop.f32.mrf.mxu0 }
 0x177   :  { %v10600_v30 = vrot.slane %v1236_v33, 9  ;;  %v10602_v19 = vrot.slane %v1237_v26, 9  ;;  %v12242_v2 = vmax.f32 %v1228_v58, %v10599_v15  ;;  %v2247_v9 = vrot.slane %v12164_v37, %v12073_v57 }
 0x178   :  { %v2255_v13 = vrot.slane %v12214_v16, %v12073_v57  ;;  %v2263_v38 = vrot.slane %v12231_v46, %v12073_v57  ;;  %v2271_v31 = vrot.slane %v12220_v59, %v12073_v57  ;;  %v12259_v48 = vmax.f32 %v1235_v61, %v10601_v25 }
 0x179   :  { %17600 = vst [vmem:[#allocation13_spill] sm:$0xff] %v12242_v2  ;;  %v12261_v39 = vcombine.high %v1253_v32, %v1253_v32  ;;  %v2279_v41 = vrot.slane %v12235_v43, %v12073_v57  ;;  %v2243_v18 = vrot.slane %v12164_v37, %v12050_v45  ;;  %v10604_v42 = vrot.slane %v12240_v36, 9 }
 0x17a   :  { %17601 = vst [vmem:[#allocation14_spill] sm:$0xff] %v12259_v48  ;;  %v12268_v52 = vmax.f32 %v1246_v29, %v10603_v23  ;;  %v12270_v58 = vmax.f32 %v1253_v32, %v10605_v24  ;;  %v2923_v61 = vsel %vm2890_vm10, %v2239_v34, %v2922_v44  ;;  %v12276_v15 = vmax.f32 %v1236_v33, %v10600_v30  ;;  %v991_v30 = vpop.f32.mrf.mxu0 }
 0x17b   :  { %v12278_v25 = vmax.f32 %v1237_v26, %v10602_v19  ;;  %v2924_v22 = vsel %vm2892_vm11, %v2247_v9, %v2923_v61  ;;  %v2251_v23 = vrot.slane %v12214_v16, %v12050_v45  ;;  %v2259_v34 = vrot.slane %v12231_v46, %v12050_v45 }
 0x17c   :  { %17602 = vst [vmem:[#allocation15_spill] sm:$0xff] %v12268_v52  ;;  %17603 = vst [vmem:[#allocation16_spill] sm:$0xff] %v12270_v58  ;;  %v2925_v32 = vsel %vm2894_vm12, %v2255_v13, %v2924_v22  ;;  %v2915_v26 = vsel %vm2888_vm9, %v2227_v28, %v2219_v20  ;;  %v986_v24 = vadd.f32 %v985_v51, %v12057_v35  ;;  %v12312_v61 = vpop.f32.mrf.mxu0 }
 0x17d   :  { %17604 = vst [vmem:[#allocation17_spill] sm:$0xff] %v12276_v15  ;;  %17605 = vst [vmem:[#allocation18_spill] sm:$0xff] %v12278_v25  ;;  %v2926_v33 = vsel %vm2896_vm13, %v2263_v38, %v2925_v32  ;;  %v988_v22 = vadd.f32 %v987_v62, %v12061_v4  ;;  %v2267_v44 = vrot.slane %v12220_v59, %v12050_v45 }
 0x17e   :  { %v2927_v19 = vsel %vm2898_vm14, %v2271_v31, %v2926_v33  ;;  %v17606_v9 = vrot.slane %v12147_v14, %v12050_v45  ;;  %v12308_v38 = vmax.f32 %v12204_v8, %v10598_v7  ;;  %v2275_v31 = vrot.slane %v12235_v43, %v12050_v45 }
 0x17f   :  { %v2928_v20 = vsel %vm2900_vm15, %v2279_v41, %v2927_v19  ;;  %v1256_v51 = vcombine.low %v986_v24, %v988_v22  ;;  %v1257_v62 = vcombine.high %v986_v24, %v988_v22  ;;  %v2283_v33 = vrot.slane %v12225_v40, %v12050_v45 }
 0x180   :  { %v2916_v13 = vsel %vm2890_vm10, %v17606_v9, %v2915_v26  ;;  %17607 = vst [vmem:[#allocation19_spill] sm:$0xff] %v12308_v38  ;;  %3065 = vrot.lane.b32.xlu1 %v2928_v20, %s11374_s2  ;;  %v2291_v8 = vrot.slane %v12237_v21, %v12050_v45  ;;  %v2299_v26 = vrot.slane %v12227_v6, %v12050_v45 }
 0x181   :  { %v2917_v28 = vsel %vm2892_vm11, %v2243_v18, %v2916_v13  ;;  %v1264_v41 = vrot.slane %v1256_v51, %v12066_v63  ;;  %v1271_v18 = vrot.slane %v1257_v62, %v12066_v63  ;;  %v992_v19 = vadd.f32 %v991_v30, %v12061_v4 }
 0x182   :  { %v2918_v32 = vsel %vm2894_vm12, %v2251_v23, %v2917_v28  ;;  %v2929_v22 = vsel %vm2888_vm9, %v2291_v8, %v2283_v33  ;;  %v990_v23 = vadd.f32 %v989_v11, %v12057_v35  ;;  %v997_v28 = vpop.f32.mrf.mxu0  ;;  %v10606_v51 = vrot.slane %v12261_v39, 9 }
 0x183   :  { %v2919_v7 = vsel %vm2896_vm13, %v2259_v34, %v2918_v32  ;;  %v1272_v13 = vcombine.high %v1264_v41, %v1264_v41  ;;  %v12332_v20 = vcombine.high %v1271_v18, %v1271_v18  ;;  %v2307_v34 = vrot.slane %v12308_v38, %v12050_v45 }
 0x184   :  { %v2920_v24 = vsel %vm2898_vm14, %v2267_v44, %v2919_v7  ;;  %v2930_v44 = vsel %vm2890_vm10, %v2299_v26, %v2929_v22  ;;  %v1274_v11 = vcombine.low %v990_v23, %v992_v19  ;;  %v1275_v62 = vcombine.high %v990_v23, %v992_v19 }
 0x185   :  { %v2921_v9 = vsel %vm2900_vm15, %v2275_v31, %v2920_v24  ;;  %v2331_v30 = vrot.slane %v12259_v48, %v12050_v45  ;;  %v2335_v31 = vrot.slane %v12259_v48, %v12073_v57  ;;  %v12345_v32 = vmax.f32 %v12240_v36, %v10604_v42  ;;  %v999_v42 = vpop.f32.mrf.mxu0 }
 0x186   :  { %3063 = vrot.lane.b32.xlu0 %v2921_v9, %s11374_s2  ;;  %3156 = vrot.lane.b32.xlu1 %v2921_v9, %s11375_s23  ;;  %v2931_v33 = vsel %vm2892_vm11, %v2307_v34, %v2930_v44  ;;  %v10607_v8 = vrot.slane %v1264_v41, 9  ;;  %v1282_v7 = vrot.slane %v1274_v11, %v12066_v63  ;;  %v1289_v24 = vrot.slane %v1275_v62, %v12066_v63 }
 0x187   :  { %17608 = vst [vmem:[#allocation20_spill] sm:$0xff] %v12345_v32  ;;  %v2295_v26 = vrot.slane %v12237_v21, %v12073_v57  ;;  %v2323_v22 = vrot.slane %v12276_v15, %v12050_v45  ;;  %v2327_v23 = vrot.slane %v12276_v15, %v12073_v57  ;;  %v10609_v19 = vrot.slane %v1271_v18, 9 }
 0x188   :  { %v2287_v36 = vrot.slane %v12225_v40, %v12073_v57  ;;  %v10608_v9 = vrot.slane %v1272_v13, 9  ;;  %v1290_v44 = vcombine.high %v1282_v7, %v1282_v7  ;;  %v1291_v11 = vcombine.high %v1289_v24, %v1289_v24 }
 0x189   :  { %v10611_v62 = vrot.slane %v1282_v7, 9  ;;  %v10613_v29 = vrot.slane %v1289_v24, 9  ;;  %v2303_v17 = vrot.slane %v12227_v6, %v12073_v57  ;;  %v12363_v48 = vmax.f32 %v1264_v41, %v10607_v8  ;;  %v1001_v41 = vpop.f32.mrf.mxu0 }
 0x18a   :  { %3067 = vrot.lane.b32.xlu0 %v2931_v33, %s11374_s2  ;;  %v2932_v12 = vsel %vm2888_vm9, %v2295_v26, %v2287_v36  ;;  %v10612_v15 = vrot.slane %v1290_v44, 9  ;;  %v2311_v21 = vrot.slane %v12308_v38, %v12073_v57  ;;  %v12368_v40 = vmax.f32 %v12261_v39, %v10606_v51 }
 0x18b   :  { %17609 = vst [vmem:[#allocation21_spill] sm:$0xff] %v12363_v48  ;;  %v10614_v34 = vrot.slane %v1291_v11, 9  ;;  %v2933_v43 = vsel %vm2890_vm10, %v2303_v17, %v2932_v12  ;;  %v2347_v59 = vrot.slane %v12268_v52, %v12050_v45  ;;  %v17611_v6 = vrot.slane %v12242_v2, %v12050_v45 }
 0x18c   :  { %17610 = vst [vmem:[#allocation22_spill] sm:$0xff] %v12368_v40  ;;  %v12377_v8 = vmax.f32 %v1272_v13, %v10608_v9  ;;  %v12379_v36 = vmax.f32 %v1271_v18, %v10609_v19  ;;  %v2339_v39 = vrot.slane %v12278_v25, %v12050_v45  ;;  %v2355_v51 = vrot.slane %v12345_v32, %v12050_v45 }
 0x18d   :  { %v2935_v26 = vsel %vm2888_vm9, %v2323_v22, %v17611_v6  ;;  %v12385_v12 = vmax.f32 %v1282_v7, %v10611_v62  ;;  %v12387_v17 = vmax.f32 %v1289_v24, %v10613_v29  ;;  %v2934_v38 = vsel %vm2892_vm11, %v2311_v21, %v2933_v43 }
 0x18e   :  { %17612 = vst [vmem:[#allocation23_spill] sm:$0xff] %v12377_v8  ;;  %17613 = vst [vmem:[#allocation24_spill] sm:$0xff] %v12379_v36  ;;  %v2936_v46 = vsel %vm2890_vm10, %v2331_v30, %v2935_v26  ;;  %v12391_v6 = vmax.f32 %v1290_v44, %v10612_v15  ;;  %3069 = vrot.lane.b32.xlu1 %v2934_v38, %s11374_s2  ;;  %v2363_v18 = vrot.slane %v12270_v58, %v12050_v45  ;;  %v1005_v15 = vpop.f32.mrf.mxu0 }
 0x18f   :  { %17614 = vst [vmem:[#allocation25_spill] sm:$0xff] %v12387_v17  ;;  %v2371_v13 = vrot.slane %v12368_v40, %v12050_v45  ;;  %v2937_v22 = vsel %vm2892_vm11, %v2339_v39, %v2936_v46  ;;  %v12399_v7 = vmax.f32 %v1291_v11, %v10614_v34  ;;  %v996_v43 = vadd.f32 %v12312_v61, %v12057_v35 }
 0x190   :  { %17615 = vst [vmem:[#allocation26_spill] sm:$0xff] %v12391_v6  ;;  %v2938_v29 = vsel %vm2894_vm12, %v2347_v59, %v2937_v22  ;;  %v998_v21 = vadd.f32 %v997_v28, %v12061_v4  ;;  %v2343_v30 = vrot.slane %v12278_v25, %v12073_v57  ;;  %v2351_v24 = vrot.slane %v12268_v52, %v12073_v57 }
 0x191   :  { %17616 = vst [vmem:[#allocation27_spill] sm:$0xff] %v12399_v7  ;;  %v2939_v38 = vsel %vm2896_vm13, %v2355_v51, %v2938_v29  ;;  %v2359_v46 = vrot.slane %v12345_v32, %v12073_v57  ;;  %v17617_v61 = vrot.slane %v12242_v2, %v12073_v57  ;;  %v1000_v11 = vadd.f32 %v999_v42, %v12057_v35 }
 0x192   :  { %v2940_v19 = vsel %vm2898_vm14, %v2363_v18, %v2939_v38  ;;  %v1292_v59 = vcombine.low %v996_v43, %v998_v21  ;;  %v1293_v9 = vcombine.high %v996_v43, %v998_v21  ;;  %3158 = vrot.lane.b32.xlu1 %v2931_v33, %s11375_s23  ;;  %v1002_v62 = vadd.f32 %v1001_v41, %v12061_v4  ;;  %v1007_v33 = vpop.f32.mrf.mxu0 }
 0x193   :  { %v2942_v28 = vsel %vm2888_vm9, %v2327_v23, %v17617_v61  ;;  %v2941_v34 = vsel %vm2900_vm15, %v2371_v13, %v2940_v19  ;;  %v2367_v43 = vrot.slane %v12270_v58, %v12073_v57  ;;  %v17618_v61 = vrot.slane %v12332_v20, 9 }
 0x194   :  { %v2943_v44 = vsel %vm2890_vm10, %v2335_v31, %v2942_v28  ;;  %3071 = vrot.lane.b32.xlu0 %v2941_v34, %s11374_s2  ;;  %v1300_v39 = vrot.slane %v1292_v59, %v12066_v63  ;;  %v1307_v51 = vrot.slane %v1293_v9, %v12066_v63  ;;  %v1310_v42 = vcombine.low %v1000_v11, %v1002_v62 }
 0x195   :  { %v2944_v23 = vsel %vm2892_vm11, %v2343_v30, %v2943_v44  ;;  %v1311_v13 = vcombine.high %v1000_v11, %v1002_v62  ;;  %v12446_v28 = vmax.f32 %v12332_v20, %v17618_v61  ;;  %v1009_v44 = vpop.f32.mrf.mxu0  ;;  %v2391_v20 = vrot.slane %v12377_v8, %v12073_v57 }
 0x196   :  { %v2945_v31 = vsel %vm2894_vm12, %v2351_v24, %v2944_v23  ;;  %v1308_v29 = vcombine.high %v1300_v39, %v1300_v39  ;;  %v1309_v21 = vcombine.high %v1307_v51, %v1307_v51  ;;  %v10615_v38 = vrot.slane %v1300_v39, 9 }
 0x197   :  { %v10617_v30 = vrot.slane %v1307_v51, 9  ;;  %v2946_v19 = vsel %vm2896_vm13, %v2359_v46, %v2945_v31  ;;  %v2375_v24 = vrot.slane %v12368_v40, %v12073_v57  ;;  %v1318_v59 = vrot.slane %v1310_v42, %v12066_v63  ;;  %17619 = vst [vmem:[#allocation28_spill] sm:$0xff] %v12446_v28  ;;  %v1011_v11 = vpop.f32.mrf.mxu0 }
 0x198   :  { %3160 = vrot.lane.b32.xlu0 %v2941_v34, %s11375_s23  ;;  %v1325_v9 = vrot.slane %v1311_v13, %v12066_v63  ;;  %v2423_v46 = vrot.slane %v12391_v6, %v12073_v57  ;;  %v2947_v62 = vsel %vm2898_vm14, %v2367_v43, %v2946_v19  ;;  %v1006_v34 = vadd.f32 %v1005_v15, %v12057_v35 }
 0x199   :  { %v10616_v23 = vrot.slane %v1308_v29, 9  ;;  %v2948_v31 = vsel %vm2900_vm15, %v2375_v24, %v2947_v62  ;;  %v2383_v42 = vrot.slane %v12363_v48, %v12073_v57  ;;  %v10618_v13 = vrot.slane %v1309_v21, 9 }
 0x19a   :  { %v12459_v61 = vmax.f32 %v1300_v39, %v10615_v38  ;;  %v12461_v41 = vmax.f32 %v1307_v51, %v10617_v30  ;;  %3073 = vrot.lane.b32.xlu1 %v2948_v31, %s11374_s2  ;;  %v2399_v43 = vrot.slane %v12379_v36, %v12073_v57  ;;  %v1326_v15 = vcombine.high %v1318_v59, %v1318_v59 }
 0x19b   :  { %v12466_v19 = vcombine.high %v1325_v9, %v1325_v9  ;;  %v2407_v24 = vrot.slane %v12446_v28, %v12073_v57  ;;  %v2952_v62 = vsel %vm2888_vm9, %v2391_v20, %v2383_v42  ;;  %v10619_v26 = vrot.slane %v1318_v59, 9 }
 0x19c   :  { %17620 = vst [vmem:[#allocation29_spill] sm:$0xff] %v12459_v61  ;;  %17621 = vst [vmem:[#allocation30_spill] sm:$0xff] %v12461_v41  ;;  %v2953_v39 = vsel %vm2890_vm10, %v2399_v43, %v2952_v62  ;;  %v2379_v51 = vrot.slane %v12363_v48, %v12050_v45  ;;  %v2387_v38 = vrot.slane %v12377_v8, %v12050_v45  ;;  %v10621_v30 = vrot.slane %v1325_v9, 9 }
 0x19d   :  { %v2954_v31 = vsel %vm2892_vm11, %v2407_v24, %v2953_v39  ;;  %v2395_v22 = vrot.slane %v12379_v36, %v12050_v45  ;;  %v1008_v18 = vadd.f32 %v1007_v33, %v12061_v4  ;;  %v2403_v42 = vrot.slane %v12446_v28, %v12050_v45  ;;  %v1015_v36 = vpop.f32.mrf.mxu0 }
 0x19e   :  { %3077 = vrot.lane.b32.xlu1 %v2954_v31, %s11374_s2  ;;  %v2949_v20 = vsel %vm2888_vm9, %v2387_v38, %v2379_v51  ;;  %v1010_v43 = vadd.f32 %v1009_v44, %v12057_v35  ;;  %v1012_v62 = vadd.f32 %v1011_v11, %v12061_v4  ;;  %v12486_v8 = vmax.f32 %v1308_v29, %v10616_v23 }
 0x19f   :  { %v2950_v24 = vsel %vm2890_vm10, %v2395_v22, %v2949_v20  ;;  %v1328_v39 = vcombine.low %v1006_v34, %v1008_v18  ;;  %v1329_v48 = vcombine.high %v1006_v34, %v1008_v18  ;;  %v10620_v40 = vrot.slane %v1326_v15, 9 }
 0x1a0   :  { %17622 = vst [vmem:[#allocation31_spill] sm:$0xff] %v12486_v8  ;;  %v2951_v33 = vsel %vm2892_vm11, %v2403_v42, %v2950_v24  ;;  %v1346_v31 = vcombine.low %v1010_v43, %v1012_v62  ;;  %v1347_v58 = vcombine.high %v1010_v43, %v1012_v62  ;;  %v10622_v28 = vrot.slane %v12466_v19, 9 }
 0x1a1   :  { %v12491_v32 = vmax.f32 %v1318_v59, %v10619_v26  ;;  %3075 = vrot.lane.b32.xlu0 %v2951_v33, %s11374_s2  ;;  %v1336_v44 = vrot.slane %v1328_v39, %v12066_v63  ;;  %v1343_v29 = vrot.slane %v1329_v48, %v12066_v63  ;;  %v12496_v11 = vmax.f32 %v1325_v9, %v10621_v30  ;;  %v1017_v26 = vpop.f32.mrf.mxu0 }
 0x1a2   :  { %v1354_v18 = vrot.slane %v1346_v31, %v12066_v63  ;;  %v1361_v22 = vrot.slane %v1347_v58, %v12066_v63  ;;  %v12500_v34 = vmax.f32 %v1309_v21, %v10618_v13  ;;  %v12502_v59 = vmax.f32 %v1326_v15, %v10620_v40 }
 0x1a3   :  { %17623 = vst [vmem:[#allocation32_spill] sm:$0xff] %v12491_v32  ;;  %17624 = vst [vmem:[#allocation33_spill] sm:$0xff] %v12496_v11  ;;  %v1344_v23 = vcombine.high %v1336_v44, %v1336_v44  ;;  %v1345_v51 = vcombine.high %v1343_v29, %v1343_v29  ;;  %v10623_v38 = vrot.slane %v1336_v44, 9  ;;  %v10625_v42 = vrot.slane %v1343_v29, 9 }
 0x1a4   :  { %17625 = vst [vmem:[#allocation34_spill] sm:$0xff] %v12500_v34  ;;  %17626 = vst [vmem:[#allocation35_spill] sm:$0xff] %v12502_v59  ;;  %v12504_v20 = vcombine.high %v1354_v18, %v1354_v18  ;;  %v10627_v43 = vrot.slane %v1354_v18, 9  ;;  %v10629_v62 = vrot.slane %v1361_v22, 9  ;;  %v17628_v58 = vrot.slane %v12385_v12, %v12073_v57 }
 0x1a5   :  { %v10624_v48 = vrot.slane %v1344_v23, 9  ;;  %v10626_v9 = vrot.slane %v1345_v51, 9  ;;  %v12506_v30 = vmax.f32 %v1336_v44, %v10623_v38  ;;  %3162 = vrot.lane.b32.xlu0 %v2951_v33, %s11375_s23  ;;  %v2439_v13 = vrot.slane %v12399_v7, %v12073_v57  ;;  %v1019_v44 = vpop.f32.mrf.mxu0 }
 0x1a6   :  { %v2962_v21 = vsel %vm2888_vm9, %v2423_v46, %v17628_v58  ;;  %v2447_v40 = vrot.slane %v12459_v61, %v12073_v57  ;;  %v2455_v15 = vrot.slane %v12486_v8, %v12073_v57  ;;  %v2463_v24 = vrot.slane %v12461_v41, %v12073_v57 }
 0x1a7   :  { %17627 = vst [vmem:[#allocation36_spill] sm:$0xff] %v12506_v30  ;;  %v12521_v39 = vmax.f32 %v1343_v29, %v10625_v42  ;;  %v12523_v33 = vcombine.high %v1361_v22, %v1361_v22  ;;  %v2471_v31 = vrot.slane %v12500_v34, %v12073_v57  ;;  %v2435_v46 = vrot.slane %v12399_v7, %v12050_v45 }
 0x1a8   :  { %v10628_v38 = vrot.slane %v12504_v20, 9  ;;  %v12530_v58 = vmax.f32 %v1354_v18, %v10627_v43  ;;  %v12532_v52 = vmax.f32 %v1361_v22, %v10629_v62  ;;  %v17632_v25 = vrot.slane %v12387_v17, %v12073_v57 }
 0x1a9   :  { %17629 = vst [vmem:[#allocation37_spill] sm:$0xff] %v12521_v39  ;;  %v12538_v42 = vmax.f32 %v1344_v23, %v10624_v48  ;;  %v12540_v2 = vmax.f32 %v1345_v51, %v10626_v9  ;;  %v2443_v43 = vrot.slane %v12459_v61, %v12050_v45  ;;  %v17635_v51 = vrot.slane %v12385_v12, %v12050_v45 }
 0x1aa   :  { %17630 = vst [vmem:[#allocation38_spill] sm:$0xff] %v12530_v58  ;;  %17631 = vst [vmem:[#allocation39_spill] sm:$0xff] %v12532_v52  ;;  %v2963_v29 = vsel %vm2890_vm10, %v17632_v25, %v2962_v21  ;;  %v2451_v25 = vrot.slane %v12486_v8, %v12050_v45  ;;  %v17636_v62 = vrot.slane %v12391_v6, %v12050_v45  ;;  %v1021_v21 = vpop.f32.mrf.mxu0 }
 0x1ab   :  { %17633 = vst [vmem:[#allocation40_spill] sm:$0xff] %v12538_v42  ;;  %17634 = vst [vmem:[#allocation41_spill] sm:$0xff] %v12540_v2  ;;  %v2964_v7 = vsel %vm2892_vm11, %v2439_v13, %v2963_v29  ;;  %v1016_v9 = vadd.f32 %v1015_v36, %v12057_v35 }
 0x1ac   :  { %v2965_v22 = vsel %vm2894_vm12, %v2447_v40, %v2964_v7  ;;  %v2955_v48 = vsel %vm2888_vm9, %v17636_v62, %v17635_v51  ;;  %v1018_v7 = vadd.f32 %v1017_v26, %v12061_v4  ;;  %v2459_v40 = vrot.slane %v12461_v41, %v12050_v45  ;;  %v12574_v18 = vpop.f32.mrf.mxu0 }
 0x1ad   :  { %v2966_v23 = vsel %vm2896_vm13, %v2455_v15, %v2965_v22  ;;  %v17637_v15 = vrot.slane %v12387_v17, %v12050_v45  ;;  %v12570_v22 = vmax.f32 %v12466_v19, %v10622_v28  ;;  %v2483_v28 = vrot.slane %v12502_v59, %v12050_v45 }
 0x1ae   :  { %v2967_v13 = vsel %vm2898_vm14, %v2463_v24, %v2966_v23  ;;  %v1364_v62 = vcombine.low %v1016_v9, %v1018_v7  ;;  %v1365_v26 = vcombine.high %v1016_v9, %v1018_v7  ;;  %v2467_v24 = vrot.slane %v12500_v34, %v12050_v45 }
 0x1af   :  { %v2956_v29 = vsel %vm2890_vm10, %v17637_v15, %v2955_v48  ;;  %17638 = vst [vmem:[#allocation42_spill] sm:$0xff] %v12570_v22  ;;  %v2968_v51 = vsel %vm2900_vm15, %v2471_v31, %v2967_v13  ;;  %v2475_v48 = vrot.slane %v12491_v32, %v12050_v45  ;;  %v2491_v9 = vrot.slane %v12496_v11, %v12050_v45 }
 0x1b0   :  { %v2957_v36 = vsel %vm2892_vm11, %v2435_v46, %v2956_v29  ;;  %3081 = vrot.lane.b32.xlu1 %v2968_v51, %s11374_s2  ;;  %v1372_v31 = vrot.slane %v1364_v62, %v12066_v63  ;;  %v1379_v46 = vrot.slane %v1365_v26, %v12066_v63  ;;  %v1022_v15 = vadd.f32 %v1021_v21, %v12061_v4  ;;  %v1027_v62 = vpop.f32.mrf.mxu0 }
 0x1b1   :  { %v2958_v23 = vsel %vm2894_vm12, %v2443_v43, %v2957_v36  ;;  %v2969_v13 = vsel %vm2888_vm9, %v2483_v28, %v2475_v48  ;;  %v1020_v43 = vadd.f32 %v1019_v44, %v12057_v35  ;;  %v10630_v26 = vrot.slane %v12523_v33, 9 }
 0x1b2   :  { %v2959_v19 = vsel %vm2896_vm13, %v2451_v25, %v2958_v23  ;;  %v1380_v51 = vcombine.high %v1372_v31, %v1372_v31  ;;  %v12594_v36 = vcombine.high %v1379_v46, %v1379_v46  ;;  %v2499_v25 = vrot.slane %v12570_v22, %v12050_v45 }
 0x1b3   :  { %v2960_v7 = vsel %vm2898_vm14, %v2459_v40, %v2959_v19  ;;  %v2970_v40 = vsel %vm2890_vm10, %v2491_v9, %v2969_v13  ;;  %v1382_v44 = vcombine.low %v1020_v43, %v1022_v15  ;;  %v1383_v23 = vcombine.high %v1020_v43, %v1022_v15 }
 0x1b4   :  { %v2961_v29 = vsel %vm2900_vm15, %v2467_v24, %v2960_v7  ;;  %v2523_v21 = vrot.slane %v12521_v39, %v12050_v45  ;;  %v2527_v24 = vrot.slane %v12521_v39, %v12073_v57  ;;  %v12607_v48 = vmax.f32 %v12504_v20, %v10628_v38  ;;  %v1029_v38 = vpop.f32.mrf.mxu0 }
 0x1b5   :  { %3079 = vrot.lane.b32.xlu0 %v2961_v29, %s11374_s2  ;;  %3164 = vrot.lane.b32.xlu1 %v2961_v29, %s11375_s23  ;;  %v2971_v28 = vsel %vm2892_vm11, %v2499_v25, %v2970_v40  ;;  %v10631_v19 = vrot.slane %v1372_v31, 9  ;;  %v1390_v7 = vrot.slane %v1382_v44, %v12066_v63  ;;  %v1397_v29 = vrot.slane %v1383_v23, %v12066_v63 }
 0x1b6   :  { %17639 = vst [vmem:[#allocation43_spill] sm:$0xff] %v12607_v48  ;;  %v2487_v9 = vrot.slane %v12502_v59, %v12073_v57  ;;  %v2515_v13 = vrot.slane %v12538_v42, %v12050_v45  ;;  %v2519_v43 = vrot.slane %v12538_v42, %v12073_v57  ;;  %v10633_v15 = vrot.slane %v1379_v46, 9 }
 0x1b7   :  { %v2479_v20 = vrot.slane %v12491_v32, %v12073_v57  ;;  %v10632_v25 = vrot.slane %v1380_v51, 9  ;;  %v1398_v44 = vcombine.high %v1390_v7, %v1390_v7  ;;  %v1399_v23 = vcombine.high %v1397_v29, %v1397_v29 }
 0x1b8   :  { %v10635_v16 = vrot.slane %v1390_v7, 9  ;;  %v10637_v39 = vrot.slane %v1397_v29, 9  ;;  %v2495_v59 = vrot.slane %v12496_v11, %v12073_v57  ;;  %v12625_v42 = vmax.f32 %v1372_v31, %v10631_v19  ;;  %v1031_v31 = vpop.f32.mrf.mxu0 }
 0x1b9   :  { %3083 = vrot.lane.b32.xlu0 %v2971_v28, %s11374_s2  ;;  %v2972_v34 = vsel %vm2888_vm9, %v2487_v9, %v2479_v20  ;;  %v10636_v41 = vrot.slane %v1398_v44, 9  ;;  %v2503_v32 = vrot.slane %v12570_v22, %v12073_v57  ;;  %v12630_v8 = vmax.f32 %v12523_v33, %v10630_v26 }
 0x1ba   :  { %17640 = vst [vmem:[#allocation44_spill] sm:$0xff] %v12625_v42  ;;  %v10638_v40 = vrot.slane %v1399_v23, 9  ;;  %v2973_v61 = vsel %vm2890_vm10, %v2495_v59, %v2972_v34  ;;  %v2539_v17 = vrot.slane %v12530_v58, %v12050_v45  ;;  %v17642_v11 = vrot.slane %v12506_v30, %v12050_v45 }
 0x1bb   :  { %17641 = vst [vmem:[#allocation45_spill] sm:$0xff] %v12630_v8  ;;  %v12639_v19 = vmax.f32 %v1380_v51, %v10632_v25  ;;  %v12641_v20 = vmax.f32 %v1379_v46, %v10633_v15  ;;  %v2531_v33 = vrot.slane %v12540_v2, %v12050_v45  ;;  %v2547_v26 = vrot.slane %v12607_v48, %v12050_v45 }
 0x1bc   :  { %v2975_v9 = vsel %vm2888_vm9, %v2515_v13, %v17642_v11  ;;  %v12647_v34 = vmax.f32 %v1390_v7, %v10635_v16  ;;  %v12649_v59 = vmax.f32 %v1397_v29, %v10637_v39  ;;  %v2974_v22 = vsel %vm2892_vm11, %v2503_v32, %v2973_v61  ;;  %v1035_v61 = vpop.f32.mrf.mxu0 }
 0x1bd   :  { %17643 = vst [vmem:[#allocation46_spill] sm:$0xff] %v12639_v19  ;;  %17644 = vst [vmem:[#allocation47_spill] sm:$0xff] %v12641_v20  ;;  %v2976_v6 = vsel %vm2890_vm10, %v2523_v21, %v2975_v9  ;;  %v12653_v11 = vmax.f32 %v1398_v44, %v10636_v41  ;;  %3085 = vrot.lane.b32.xlu1 %v2974_v22, %s11374_s2  ;;  %v2555_v46 = vrot.slane %v12532_v52, %v12050_v45 }
 0x1be   :  { %17645 = vst [vmem:[#allocation48_spill] sm:$0xff] %v12647_v34  ;;  %17646 = vst [vmem:[#allocation49_spill] sm:$0xff] %v12649_v59  ;;  %v2563_v51 = vrot.slane %v12630_v8, %v12050_v45  ;;  %v2977_v13 = vsel %vm2892_vm11, %v2531_v33, %v2976_v6  ;;  %v12661_v16 = vmax.f32 %v1399_v23, %v10638_v40 }
 0x1bf   :  { %17647 = vst [vmem:[#allocation50_spill] sm:$0xff] %v12653_v11  ;;  %v2978_v39 = vsel %vm2894_vm12, %v2539_v17, %v2977_v13  ;;  %v1026_v32 = vadd.f32 %v12574_v18, %v12057_v35  ;;  %v1028_v41 = vadd.f32 %v1027_v62, %v12061_v4  ;;  %v2535_v21 = vrot.slane %v12540_v2, %v12073_v57 }
 0x1c0   :  { %17648 = vst [vmem:[#allocation51_spill] sm:$0xff] %v12661_v16  ;;  %v2979_v22 = vsel %vm2896_vm13, %v2547_v26, %v2978_v39  ;;  %v2543_v7 = vrot.slane %v12530_v58, %v12073_v57  ;;  %v2551_v6 = vrot.slane %v12607_v48, %v12073_v57  ;;  %v17649_v18 = vrot.slane %v12506_v30, %v12073_v57 }
 0x1c1   :  { %v2980_v29 = vsel %vm2898_vm14, %v2555_v46, %v2979_v22  ;;  %v1400_v17 = vcombine.low %v1026_v32, %v1028_v41  ;;  %v1401_v15 = vcombine.high %v1026_v32, %v1028_v41  ;;  %3166 = vrot.lane.b32.xlu1 %v2971_v28, %s11375_s23  ;;  %v1030_v44 = vadd.f32 %v1029_v38, %v12057_v35  ;;  %v1037_v28 = vpop.f32.mrf.mxu0 }
 0x1c2   :  { %v2982_v62 = vsel %vm2888_vm9, %v2519_v43, %v17649_v18  ;;  %v2981_v25 = vsel %vm2900_vm15, %v2563_v51, %v2980_v29  ;;  %v1032_v23 = vadd.f32 %v1031_v31, %v12061_v4  ;;  %v2559_v32 = vrot.slane %v12532_v52, %v12073_v57 }
 0x1c3   :  { %v2983_v40 = vsel %vm2890_vm10, %v2527_v24, %v2982_v62  ;;  %3087 = vrot.lane.b32.xlu0 %v2981_v25, %s11374_s2  ;;  %v1408_v33 = vrot.slane %v1400_v17, %v12066_v63  ;;  %v1415_v26 = vrot.slane %v1401_v15, %v12066_v63  ;;  %v17650_v18 = vrot.slane %v12594_v36, 9 }
 0x1c4   :  { %v2984_v43 = vsel %vm2892_vm11, %v2535_v21, %v2983_v40  ;;  %v1418_v38 = vcombine.low %v1030_v44, %v1032_v23  ;;  %v1419_v51 = vcombine.high %v1030_v44, %v1032_v23  ;;  %v1039_v40 = vpop.f32.mrf.mxu0  ;;  %v17672_v30 = vrot.slane %v12649_v59, %v12050_v45 }
 0x1c5   :  { %v2985_v24 = vsel %vm2894_vm12, %v2543_v7, %v2984_v43  ;;  %v1416_v39 = vcombine.high %v1408_v33, %v1408_v33  ;;  %v1417_v41 = vcombine.high %v1415_v26, %v1415_v26  ;;  %v10639_v22 = vrot.slane %v1408_v33, 9 }
 0x1c6   :  { %v10641_v21 = vrot.slane %v1415_v26, 9  ;;  %v2986_v29 = vsel %vm2896_vm13, %v2551_v6, %v2985_v24  ;;  %v2567_v7 = vrot.slane %v12630_v8, %v12073_v57  ;;  %v1426_v17 = vrot.slane %v1418_v38, %v12066_v63  ;;  %v1041_v44 = vpop.f32.mrf.mxu0 }
 0x1c7   :  { %3168 = vrot.lane.b32.xlu0 %v2981_v25, %s11375_s23  ;;  %v1433_v15 = vrot.slane %v1419_v51, %v12066_v63  ;;  %v12708_v62 = vmax.f32 %v12594_v36, %v17650_v18  ;;  %v2987_v23 = vsel %vm2898_vm14, %v2559_v32, %v2986_v29  ;;  %v1036_v25 = vadd.f32 %v1035_v61, %v12057_v35 }
 0x1c8   :  { %v10640_v43 = vrot.slane %v1416_v39, 9  ;;  %v2988_v24 = vsel %vm2900_vm15, %v2567_v7, %v2987_v23  ;;  %v2575_v38 = vrot.slane %v12625_v42, %v12073_v57  ;;  %v2583_v36 = vrot.slane %v12639_v19, %v12073_v57 }
 0x1c9   :  { %17651 = vst [vmem:[#allocation52_spill] sm:$0xff] %v12708_v62  ;;  %v10642_v51 = vrot.slane %v1417_v41, 9  ;;  %v12721_v18 = vmax.f32 %v1408_v33, %v10639_v22  ;;  %v12723_v31 = vmax.f32 %v1415_v26, %v10641_v21  ;;  %3089 = vrot.lane.b32.xlu1 %v2988_v24, %s11374_s2  ;;  %v2591_v32 = vrot.slane %v12641_v20, %v12073_v57 }
 0x1ca   :  { %v1434_v61 = vcombine.high %v1426_v17, %v1426_v17  ;;  %v1435_v29 = vcombine.high %v1433_v15, %v1433_v15  ;;  %v2599_v7 = vrot.slane %v12708_v62, %v12073_v57  ;;  %v2992_v23 = vsel %vm2888_vm9, %v2583_v36, %v2575_v38 }
 0x1cb   :  { %17652 = vst [vmem:[#allocation53_spill] sm:$0xff] %v12721_v18  ;;  %17653 = vst [vmem:[#allocation54_spill] sm:$0xff] %v12723_v31  ;;  %v10643_v9 = vrot.slane %v1426_v17, 9  ;;  %v2993_v13 = vsel %vm2890_vm10, %v2591_v32, %v2992_v23  ;;  %v2571_v33 = vrot.slane %v12625_v42, %v12050_v45  ;;  %v2579_v26 = vrot.slane %v12639_v19, %v12050_v45 }
 0x1cc   :  { %v10645_v22 = vrot.slane %v1433_v15, 9  ;;  %v2994_v21 = vsel %vm2892_vm11, %v2599_v7, %v2993_v13  ;;  %v2587_v24 = vrot.slane %v12641_v20, %v12050_v45  ;;  %v1038_v6 = vadd.f32 %v1037_v28, %v12061_v4 }
 0x1cd   :  { %3093 = vrot.lane.b32.xlu1 %v2994_v21, %s11374_s2  ;;  %v2595_v38 = vrot.slane %v12708_v62, %v12050_v45  ;;  %v2989_v36 = vsel %vm2888_vm9, %v2579_v26, %v2571_v33  ;;  %v1040_v32 = vadd.f32 %v1039_v40, %v12057_v35  ;;  %v1042_v23 = vadd.f32 %v1041_v44, %v12061_v4 }
 0x1ce   :  { %v12746_v46 = vmax.f32 %v1416_v39, %v10640_v43  ;;  %v2990_v13 = vsel %vm2890_vm10, %v2587_v24, %v2989_v36  ;;  %v1436_v7 = vcombine.low %v1036_v25, %v1038_v6  ;;  %v1437_v19 = vcombine.high %v1036_v25, %v1038_v6 }
 0x1cf   :  { %v10644_v20 = vrot.slane %v1434_v61, 9  ;;  %v2991_v28 = vsel %vm2892_vm11, %v2595_v38, %v2990_v13  ;;  %v1454_v42 = vcombine.low %v1040_v32, %v1042_v23  ;;  %v1455_v21 = vcombine.high %v1040_v32, %v1042_v23 }
 0x1d0   :  { %17654 = vst [vmem:[#allocation55_spill] sm:$0xff] %v12746_v46  ;;  %v10646_v8 = vrot.slane %v1435_v29, 9  ;;  %v12750_v52 = vmax.f32 %v1426_v17, %v10643_v9  ;;  %3091 = vrot.lane.b32.xlu0 %v2991_v28, %s11374_s2  ;;  %v1444_v40 = vrot.slane %v1436_v7, %v12066_v63  ;;  %v1451_v44 = vrot.slane %v1437_v19, %v12066_v63  ;;  %v1045_v9 = vpop.f32.mrf.mxu0 }
 0x1d1   :  { %v12755_v39 = vmax.f32 %v1433_v15, %v10645_v22  ;;  %v1462_v43 = vrot.slane %v1454_v42, %v12066_v63  ;;  %v1469_v6 = vrot.slane %v1455_v21, %v12066_v63  ;;  %v12759_v25 = vmax.f32 %v1417_v41, %v10642_v51 }
 0x1d2   :  { %17655 = vst [vmem:[#allocation56_spill] sm:$0xff] %v12750_v52  ;;  %v1452_v33 = vcombine.high %v1444_v40, %v1444_v40  ;;  %v1453_v26 = vcombine.high %v1451_v44, %v1451_v44  ;;  %v10647_v24 = vrot.slane %v1444_v40, 9  ;;  %v10649_v38 = vrot.slane %v1451_v44, 9 }
 0x1d3   :  { %17656 = vst [vmem:[#allocation57_spill] sm:$0xff] %v12755_v39  ;;  %17657 = vst [vmem:[#allocation58_spill] sm:$0xff] %v12759_v25  ;;  %v1470_v17 = vcombine.high %v1462_v43, %v1462_v43  ;;  %v1471_v36 = vcombine.high %v1469_v6, %v1469_v6  ;;  %v10651_v32 = vrot.slane %v1462_v43, 9  ;;  %v10653_v23 = vrot.slane %v1469_v6, 9 }
 0x1d4   :  { %v12761_v13 = vmax.f32 %v1434_v61, %v10644_v20  ;;  %v10648_v19 = vrot.slane %v1452_v33, 9  ;;  %v10650_v15 = vrot.slane %v1453_v26, 9  ;;  %v12763_v22 = vmax.f32 %v1444_v40, %v10647_v24  ;;  %3170 = vrot.lane.b32.xlu0 %v2991_v28, %s11375_s23  ;;  %v1047_v40 = vpop.f32.mrf.mxu0 }
 0x1d5   :  { %v12766_v42 = vmax.f32 %v1435_v29, %v10646_v8  ;;  %v12768_v41 = vmax.f32 %v1451_v44, %v10649_v38  ;;  %v10652_v51 = vrot.slane %v1470_v17, 9  ;;  %v2631_v7 = vrot.slane %v12661_v16, %v12073_v57 }
 0x1d6   :  { %17658 = vst [vmem:[#allocation59_spill] sm:$0xff] %v12761_v13  ;;  %17659 = vst [vmem:[#allocation60_spill] sm:$0xff] %v12763_v22  ;;  %v2639_v21 = vrot.slane %v12721_v18, %v12073_v57  ;;  %v2647_v20 = vrot.slane %v12746_v46, %v12073_v57  ;;  %v2655_v61 = vrot.slane %v12723_v31, %v12073_v57  ;;  %v10654_v44 = vrot.slane %v1471_v36, 9 }
 0x1d7   :  { %17660 = vst [vmem:[#allocation61_spill] sm:$0xff] %v12766_v42  ;;  %17661 = vst [vmem:[#allocation62_spill] sm:$0xff] %v12768_v41  ;;  %v17662_v28 = vrot.slane %v12647_v34, %v12073_v57  ;;  %v17663_v8 = vrot.slane %v12653_v11, %v12073_v57  ;;  %v12785_v24 = vmax.f32 %v1462_v43, %v10651_v32 }
 0x1d8   :  { %v12787_v38 = vmax.f32 %v1469_v6, %v10653_v23  ;;  %v2663_v62 = vrot.slane %v12759_v25, %v12073_v57  ;;  %v12791_v48 = vmax.f32 %v1452_v33, %v10648_v19  ;;  %v12793_v58 = vmax.f32 %v1453_v26, %v10650_v15 }
 0x1d9   :  { %v3002_v29 = vsel %vm2888_vm9, %v17663_v8, %v17662_v28  ;;  %17664 = vst [vmem:[#allocation63_spill] sm:$0xff] %v12785_v24  ;;  %v12803_v6 = vmax.f32 %v1470_v17, %v10652_v51  ;;  %v17669_v33 = vrot.slane %v12649_v59, %v12073_v57  ;;  %v2627_v23 = vrot.slane %v12661_v16, %v12050_v45  ;;  %v1049_v8 = vpop.f32.mrf.mxu0  ;;  %v17752_v59 = vld [vmem:[#allocation16_spill] sm:$0xff] }
 0x1da   :  { %17665 = vst [vmem:[#allocation64_spill] sm:$0xff] %v12787_v38  ;;  %17666 = vst [vmem:[#allocation65_spill] sm:$0xff] %v12791_v48  ;;  %v2635_v19 = vrot.slane %v12721_v18, %v12050_v45  ;;  %v2643_v15 = vrot.slane %v12746_v46, %v12050_v45  ;;  %v2651_v51 = vrot.slane %v12723_v31, %v12050_v45 }
 0x1db   :  { %17667 = vst [vmem:[#allocation66_spill] sm:$0xff] %v12793_v58  ;;  %17668 = vst [vmem:[#allocation67_spill] sm:$0xff] %v12803_v6  ;;  %v3003_v26 = vsel %vm2890_vm10, %v17669_v33, %v3002_v29  ;;  %v17670_v29 = vrot.slane %v12647_v34, %v12050_v45  ;;  %v2667_v28 = vrot.slane %v12750_v52, %v12050_v45 }
 0x1dc   :  { %v3004_v32 = vsel %vm2892_vm11, %v2631_v7, %v3003_v26  ;;  %v17671_v7 = vrot.slane %v12653_v11, %v12050_v45  ;;  %v1046_v26 = vadd.f32 %v1045_v9, %v12057_v35  ;;  %v2683_v9 = vrot.slane %v12755_v39, %v12050_v45  ;;  %v17753_v11 = vld [vmem:[#allocation22_spill] sm:$0xff] }
 0x1dd   :  { %v3005_v17 = vsel %vm2894_vm12, %v2639_v21, %v3004_v32  ;;  %v1048_v32 = vadd.f32 %v1047_v40, %v12061_v4  ;;  %v1051_v40 = vpop.f32.mrf.mxu0 }
 0x1de   :  { %v2995_v33 = vsel %vm2888_vm9, %v17671_v7, %v17670_v29  ;;  %v3006_v43 = vsel %vm2896_vm13, %v2647_v20, %v3005_v17  ;;  %v2675_v29 = vrot.slane %v12761_v13, %v12050_v45 }
 0x1df   :  { %v2996_v21 = vsel %vm2890_vm10, %v17672_v30, %v2995_v33  ;;  %v3007_v2 = vsel %vm2898_vm14, %v2655_v61, %v3006_v43  ;;  %v1472_v30 = vcombine.low %v1046_v26, %v1048_v32  ;;  %v1473_v7 = vcombine.high %v1046_v26, %v1048_v32 }
 0x1e0   :  { %v2997_v31 = vsel %vm2892_vm11, %v2627_v23, %v2996_v21  ;;  %v3008_v20 = vsel %vm2900_vm15, %v2663_v62, %v3007_v2  ;;  %v12843_v33 = vmax.f32 %v1471_v36, %v10654_v44  ;;  %v2659_v61 = vrot.slane %v12759_v25, %v12050_v45 }
 0x1e1   :  { %v2998_v17 = vsel %vm2894_vm12, %v2635_v19, %v2997_v31  ;;  %3097 = vrot.lane.b32.xlu1 %v3008_v20, %s11374_s2  ;;  %v3009_v23 = vsel %vm2888_vm9, %v2675_v29, %v2667_v28  ;;  %v1480_v2 = vrot.slane %v1472_v30, %v12066_v63  ;;  %v2691_v31 = vrot.slane %v12766_v42, %v12050_v45  ;;  %v1055_v29 = vpop.f32.mrf.mxu0 }
 0x1e2   :  { %17673 = vst [vmem:[#allocation68_spill] sm:$0xff] %v12843_v33  ;;  %v2999_v43 = vsel %vm2896_vm13, %v2643_v15, %v2998_v17  ;;  %v3010_v62 = vsel %vm2890_vm10, %v2683_v9, %v3009_v23  ;;  %v1487_v44 = vrot.slane %v1473_v7, %v12066_v63  ;;  %v1050_v19 = vadd.f32 %v1049_v8, %v12057_v35 }
 0x1e3   :  { %v3000_v21 = vsel %vm2898_vm14, %v2651_v51, %v2999_v43  ;;  %v1052_v26 = vadd.f32 %v1051_v40, %v12061_v4  ;;  %v2707_v28 = vrot.slane %v12791_v48, %v12050_v45  ;;  %v2723_v51 = vrot.slane %v12793_v58, %v12050_v45  ;;  %v1057_v30 = vpop.f32.mrf.mxu0 }
 0x1e4   :  { %v3001_v36 = vsel %vm2900_vm15, %v2659_v61, %v3000_v21  ;;  %v3011_v32 = vsel %vm2892_vm11, %v2691_v31, %v3010_v62  ;;  %v2671_v20 = vrot.slane %v12750_v52, %v12073_v57  ;;  %v2679_v17 = vrot.slane %v12761_v13, %v12073_v57 }
 0x1e5   :  { %3095 = vrot.lane.b32.xlu0 %v3001_v36, %s11374_s2  ;;  %3172 = vrot.lane.b32.xlu1 %v3001_v36, %s11375_s23  ;;  %v1490_v9 = vcombine.low %v1050_v19, %v1052_v26  ;;  %v1491_v8 = vcombine.high %v1050_v19, %v1052_v26  ;;  %v2731_v7 = vrot.slane %v12785_v24, %v12050_v45  ;;  %v10655_v36 = vrot.slane %v1480_v2, 9 }
 0x1e6   :  { %v12876_v40 = vcombine.high %v1480_v2, %v1480_v2  ;;  %v2687_v61 = vrot.slane %v12755_v39, %v12073_v57  ;;  %v12880_v43 = vcombine.high %v1487_v44, %v1487_v44  ;;  %v3012_v31 = vsel %vm2888_vm9, %v2679_v17, %v2671_v20 }
 0x1e7   :  { %v1498_v23 = vrot.slane %v1490_v9, %v12066_v63  ;;  %v1505_v21 = vrot.slane %v1491_v8, %v12066_v63  ;;  %v2695_v19 = vrot.slane %v12766_v42, %v12073_v57  ;;  %v10657_v52 = vrot.slane %v1487_v44, 9 }
 0x1e8   :  { %v3013_v26 = vsel %vm2890_vm10, %v2687_v61, %v3012_v31  ;;  %v17674_v17 = vrot.slane %v12763_v22, %v12050_v45  ;;  %v17677_v8 = vrot.slane %v12768_v41, %v12050_v45  ;;  %v1058_v18 = vadd.f32 %v1057_v30, %v12061_v4 }
 0x1e9   :  { %3099 = vrot.lane.b32.xlu0 %v3011_v32, %s11374_s2  ;;  %v1506_v15 = vcombine.high %v1498_v23, %v1498_v23  ;;  %v1507_v39 = vcombine.high %v1505_v21, %v1505_v21  ;;  %v10659_v13 = vrot.slane %v1498_v23, 9  ;;  %v10661_v9 = vrot.slane %v1505_v21, 9 }
 0x1ea   :  { %v3014_v20 = vsel %vm2892_vm11, %v2695_v19, %v3013_v26  ;;  %v3015_v62 = vsel %vm2888_vm9, %v2707_v28, %v17674_v17  ;;  %v1056_v26 = vadd.f32 %v1055_v29, %v12057_v35  ;;  %v1059_v28 = vpop.f32.mrf.mxu0  ;;  %v12909_v17 = vmax.f32 %v1480_v2, %v10655_v36 }
 0x1eb   :  { %v10660_v42 = vrot.slane %v1506_v15, 9  ;;  %v10662_v46 = vrot.slane %v1507_v39, 9  ;;  %v12898_v61 = vmax.f32 %v1498_v23, %v10659_v13  ;;  %3101 = vrot.lane.b32.xlu1 %v3014_v20, %s11374_s2  ;;  %v12901_v31 = vmax.f32 %v1505_v21, %v10661_v9 }
 0x1ec   :  { %v3016_v19 = vsel %vm2890_vm10, %v17677_v8, %v3015_v62  ;;  %17678 = vst [vmem:[#allocation71_spill] sm:$0xff] %v12909_v17  ;;  %v2739_v23 = vrot.slane %v12803_v6, %v12050_v45  ;;  %v12917_v21 = vmax.f32 %v1487_v44, %v10657_v52  ;;  %v2747_v9 = vrot.slane %v12787_v38, %v12050_v45 }
 0x1ed   :  { %17675 = vst [vmem:[#allocation69_spill] sm:$0xff] %v12898_v61  ;;  %17676 = vst [vmem:[#allocation70_spill] sm:$0xff] %v12901_v31  ;;  %v12911_v25 = vmax.f32 %v1506_v15, %v10660_v42  ;;  %v12913_v13 = vmax.f32 %v1507_v39, %v10662_v46  ;;  %v3017_v62 = vsel %vm2892_vm11, %v2723_v51, %v3016_v19  ;;  %v1061_v51 = vpop.f32.mrf.mxu0 }
 0x1ee   :  { %17681 = vst [vmem:[#allocation74_spill] sm:$0xff] %v12917_v21  ;;  %v1508_v29 = vcombine.low %v1056_v26, %v1058_v18  ;;  %v2799_v30 = vrot.slane %v12898_v61, %v12073_v57  ;;  %v2755_v46 = vrot.slane %v12843_v33, %v12050_v45  ;;  %v2743_v52 = vrot.slane %v12803_v6, %v12073_v57 }
 0x1ef   :  { %17679 = vst [vmem:[#allocation72_spill] sm:$0xff] %v12911_v25  ;;  %17680 = vst [vmem:[#allocation73_spill] sm:$0xff] %v12913_v13  ;;  %v2807_v42 = vrot.slane %v12911_v25, %v12073_v57  ;;  %3174 = vrot.lane.b32.xlu1 %v3011_v32, %s11375_s23  ;;  %v2815_v39 = vrot.slane %v12901_v31, %v12073_v57  ;;  %v3018_v2 = vsel %vm2894_vm12, %v2731_v7, %v3017_v62 }
 0x1f0   :  { %v1509_v44 = vcombine.high %v1056_v26, %v1058_v18  ;;  %v1516_v15 = vrot.slane %v1508_v29, %v12066_v63  ;;  %v2823_v36 = vrot.slane %v12913_v13, %v12073_v57  ;;  %v3019_v32 = vsel %vm2896_vm13, %v2739_v23, %v3018_v2 }
 0x1f1   :  { %v17682_v8 = vrot.slane %v12763_v22, %v12073_v57  ;;  %v17683_v20 = vrot.slane %v12791_v48, %v12073_v57  ;;  %v1060_v6 = vadd.f32 %v1059_v28, %v12057_v35  ;;  %v3020_v18 = vsel %vm2898_vm14, %v2747_v9, %v3019_v32 }
 0x1f2   :  { %v1523_v7 = vrot.slane %v1509_v44, %v12066_v63  ;;  %v1524_v26 = vcombine.high %v1516_v15, %v1516_v15  ;;  %v10663_v62 = vrot.slane %v1516_v15, 9  ;;  %v3021_v29 = vsel %vm2900_vm15, %v2755_v46, %v3020_v18 }
 0x1f3   :  { %v3022_v19 = vsel %vm2888_vm9, %v17683_v20, %v17682_v8  ;;  %v17684_v23 = vrot.slane %v12768_v41, %v12073_v57  ;;  %v1062_v22 = vadd.f32 %v1061_v51, %v12061_v4  ;;  %v3042_v48 = vsel %vm2888_vm9, %v2807_v42, %v2799_v30  ;;  %3103 = vrot.lane.b32.xlu0 %v3021_v29, %s11374_s2 }
 0x1f4   :  { %v1525_v35 = vcombine.high %v1523_v7, %v1523_v7  ;;  %v10664_v28 = vrot.slane %v1524_v26, 9  ;;  %v10665_v9 = vrot.slane %v1523_v7, 9  ;;  %v12956_v32 = vmax.f32 %v1516_v15, %v10663_v62 }
 0x1f5   :  { %v3023_v2 = vsel %vm2890_vm10, %v17684_v23, %v3022_v19  ;;  %v2751_v44 = vrot.slane %v12787_v38, %v12073_v57  ;;  %v17686_v46 = vrot.slane %v12793_v58, %v12073_v57  ;;  %v1526_v20 = vcombine.low %v1060_v6, %v1062_v22 }
 0x1f6   :  { %17685 = vst [vmem:[#allocation75_spill] sm:$0xff] %v12956_v32  ;;  %v1527_v19 = vcombine.high %v1060_v6, %v1062_v22  ;;  %v10666_v4 = vrot.slane %v1525_v35, 9  ;;  %v12964_v51 = vmax.f32 %v1524_v26, %v10664_v28  ;;  %v2759_v30 = vrot.slane %v12843_v33, %v12073_v57 }
 0x1f7   :  { %v3024_v8 = vsel %vm2892_vm11, %v17686_v46, %v3023_v2  ;;  %v3043_v42 = vsel %vm2890_vm10, %v2815_v39, %v3042_v48  ;;  %v12969_v15 = vmax.f32 %v1523_v7, %v10665_v9  ;;  %v2831_v18 = vrot.slane %v12956_v32, %v12073_v57  ;;  %3176 = vrot.lane.b32.xlu0 %v3021_v29, %s11375_s23  ;;  %v3056_v7 = vpop.permute.xlu0 %3055 }
 0x1f8   :  { %17687 = vst [vmem:[#allocation76_spill] sm:$0xff] %v12964_v51  ;;  %v17689_v62 = vrot.slane %v12785_v24, %v12073_v57  ;;  %v1534_v22 = vrot.slane %v1526_v20, %v12066_v63  ;;  %v12978_v6 = vmax.f32 %v1525_v35, %v10666_v4  ;;  %v12983_v48 = vrot.slane %v1527_v19, %v12066_v63 }
 0x1f9   :  { %17688 = vst [vmem:[#allocation77_spill] sm:$0xff] %v12969_v15  ;;  %v2839_v39 = vrot.slane %v12964_v51, %v12073_v57  ;;  %v17691_v2 = vrot.slane %v12876_v40, 9  ;;  %v17693_v9 = vrot.slane %v12880_v43, 9  ;;  %v2803_v46 = vrot.slane %v12911_v25, %v12050_v45 }
 0x1fa   :  { %v3025_v23 = vsel %vm2894_vm12, %v17689_v62, %v3024_v8  ;;  %17690 = vst [vmem:[#allocation78_spill] sm:$0xff] %v12978_v6  ;;  %v2811_v8 = vrot.slane %v12901_v31, %v12050_v45  ;;  %v2819_v19 = vrot.slane %v12913_v13, %v12050_v45  ;;  %v1542_v62 = vcombine.high %v1534_v22, %v1534_v22 }
 0x1fb   :  { %v3026_v26 = vsel %vm2896_vm13, %v2743_v52, %v3025_v23  ;;  %v12990_v28 = vmax.f32 %v12876_v40, %v17691_v2  ;;  %v12995_v35 = vmax.f32 %v12880_v43, %v17693_v9  ;;  %v2795_v52 = vrot.slane %v12898_v61, %v12050_v45  ;;  %v3058_v2 = vpop.permute.xlu1 %3057  ;;  %v3153_v13 = vpop.permute.xlu0 %3152 }
 0x1fc   :  { %v3027_v29 = vsel %vm2898_vm14, %v2751_v44, %v3026_v26  ;;  %v3044_v40 = vsel %vm2892_vm11, %v2823_v36, %v3043_v42  ;;  %v2827_v43 = vrot.slane %v12956_v32, %v12050_v45  ;;  %v2847_v44 = vrot.slane %v12969_v15, %v12073_v57 }
 0x1fd   :  { %17692 = vst [vmem:[#allocation79_spill] sm:$0xff] %v12990_v28  ;;  %17694 = vst [vmem:[#allocation80_spill] sm:$0xff] %v12995_v35  ;;  %v3028_v20 = vsel %vm2900_vm15, %v2759_v30, %v3027_v29  ;;  %v3045_v4 = vsel %vm2894_vm12, %v2831_v18, %v3044_v40  ;;  %v13016_v23 = vcombine.high %v12983_v48, %v12983_v48  ;;  %v10667_v42 = vrot.slane %v1534_v22, 9 }
 0x1fe   :  { %3105 = vrot.lane.b32.xlu1 %v3028_v20, %s11374_s2  ;;  %v2855_v36 = vrot.slane %v12978_v6, %v12073_v57  ;;  %v3046_v30 = vsel %vm2896_vm13, %v2839_v39, %v3045_v4  ;;  %v10669_v26 = vrot.slane %v12983_v48, 9  ;;  %v2835_v29 = vrot.slane %v12964_v51, %v12050_v45 }
 0x1ff   :  { %v3047_v9 = vsel %vm2898_vm14, %v2847_v44, %v3046_v30  ;;  %v2843_v20 = vrot.slane %v12969_v15, %v12050_v45  ;;  %v3035_v40 = vsel %vm2888_vm9, %v2803_v46, %v2795_v52  ;;  %v2851_v39 = vrot.slane %v12978_v6, %v12050_v45 }
 0x200   :  { %v3048_v18 = vsel %vm2900_vm15, %v2855_v36, %v3047_v9  ;;  %v3036_v4 = vsel %vm2890_vm10, %v2811_v8, %v3035_v40  ;;  %v2763_v44 = vrot.slane %v12909_v17, %v12050_v45  ;;  %v2771_v36 = vrot.slane %v12990_v28, %v12050_v45 }
 0x201   :  { %v3037_v30 = vsel %vm2892_vm11, %v2819_v19, %v3036_v4  ;;  %v3120_v9 = vsel %vm3119_vm0, %v3056_v7, %v3058_v2  ;;  %v2779_v52 = vrot.slane %v12917_v21, %v12050_v45  ;;  %v3201_v8 = vsel %vm3200_vm1, %v3058_v2, %v3153_v13 }
 0x202   :  { %3113 = vrot.lane.b32.xlu1 %v3048_v18, %s11374_s2  ;;  %v3038_v46 = vsel %vm2894_vm12, %v2827_v43, %v3037_v30  ;;  %v3029_v18 = vsel %vm2888_vm9, %v2771_v36, %v2763_v44  ;;  %v2775_v40 = vrot.slane %v12990_v28, %v12073_v57  ;;  %v3233_v15 = vcombine.low %v3120_v9, %v3201_v8 }
 0x203   :  { %v3039_v6 = vsel %vm2896_vm13, %v2835_v29, %v3038_v46  ;;  %v3234_v51 = vcombine.high %v3120_v9, %v3201_v8  ;;  %v2767_v7 = vrot.slane %v12909_v17, %v12073_v57  ;;  %v13049_v19 = vmax.f32 %v1534_v22, %v10667_v42 }
 0x204   :  { %v3040_v4 = vsel %vm2898_vm14, %v2843_v20, %v3039_v6  ;;  %v3030_v43 = vsel %vm2890_vm10, %v2779_v52, %v3029_v18  ;;  %v2783_v44 = vrot.slane %v12917_v21, %v12073_v57  ;;  %v3241_v2 = vrot.slane %v3233_v15, %v12066_v63  ;;  %v13073_v18 = vpop.permute.xlu1 %3061 }
 0x205   :  { %17695 = vst [vmem:[#allocation81_spill] sm:$0xff] %v13049_v19  ;;  %v3041_v13 = vsel %vm2900_vm15, %v2851_v39, %v3040_v4  ;;  %v3248_v29 = vrot.slane %v3234_v51, %v12066_v63  ;;  %v3032_v36 = vsel %vm2888_vm9, %v2775_v40, %v2767_v7  ;;  %v10668_v30 = vrot.slane %v1542_v62, 9 }
 0x206   :  { %3111 = vrot.lane.b32.xlu0 %v3041_v13, %s11374_s2  ;;  %3180 = vrot.lane.b32.xlu1 %v3041_v13, %s11375_s23  ;;  %v2787_v22 = vrot.slane %v12995_v35, %v12050_v45  ;;  %v2791_v6 = vrot.slane %v12995_v35, %v12073_v57  ;;  %v3033_v42 = vsel %vm2890_vm10, %v2783_v44, %v3032_v36  ;;  %v3449_v15 = vrot.slane %v3241_v2, 1 }
 0x207   :  { %v3249_v20 = vcombine.high %v3241_v2, %v3241_v2  ;;  %v3250_v39 = vcombine.high %v3248_v29, %v3248_v29  ;;  %v3451_v9 = vrot.slane %v3248_v29, 1  ;;  %v13067_v51 = vmax.f32 %v12983_v48, %v10669_v26 }
 0x208   :  { %v13070_v52 = vsel %vm2892_vm11, %v2787_v22, %v3030_v43  ;;  %v3593_v46 = vmax.f32 %v12077_v53, %v3241_v2  ;;  %v3034_v8 = vsel %vm2892_vm11, %v2791_v6, %v3033_v42  ;;  %v3594_v4 = vmax.f32 %v12079_v55, %v3449_v15 }
 0x209   :  { %17696 = vst [vmem:[#allocation82_spill] sm:$0xff] %v13067_v51  ;;  %v3450_v40 = vrot.slane %v3249_v20, 1  ;;  %v3452_v7 = vrot.slane %v3250_v39, 1  ;;  %v3595_v44 = vmax.f32 %v12081_v47, %v3249_v20  ;;  %v10670_v13 = vrot.slane %v13016_v23, 9 }
 0x20a   :  { %v13079_v36 = vmax.f32 %v1542_v62, %v10668_v30  ;;  %3107 = vrot.lane.b32.xlu0 %v13070_v52, %s11374_s2  ;;  %v3597_v48 = vmax.f32 %v12093_v5, %v3248_v29  ;;  %v3598_v53 = vmax.f32 %v12100_v50, %v3451_v9  ;;  %3109 = vrot.lane.b32.xlu1 %v3034_v8, %s11374_s2  ;;  %v3690_v47 = vmax.f32 %v3594_v4, 0.0  ;;  %v13089_v62 = vpop.permute.xlu1 %3065 }
 0x20b   :  { %v3596_v26 = vmax.f32 %v12087_v10, %v3450_v40  ;;  %v3599_v43 = vmax.f32 %v12102_v1, %v3250_v39  ;;  %v3600_v55 = vmax.f32 %v12111_v49, %v3452_v7  ;;  %v3689_v2 = vmax.f32 %v3593_v46, 0.0 }
 0x20c   :  { %17697 = vst [vmem:[#allocation83_spill] sm:$0xff] %v13079_v36  ;;  %v3691_v22 = vmax.f32 %v3595_v44, 0.0  ;;  %v3892_v6 = vrot.slane %v3690_v47, %v12050_v45  ;;  %v3896_v5 = vrot.slane %v3690_v47, %v12073_v57  ;;  %v13094_v50 = vmax.f32 %v13016_v23, %v10670_v13 }
 0x20d   :  { %v3692_v30 = vmax.f32 %v3596_v26, 0.0  ;;  %v3693_v29 = vmax.f32 %v3597_v48, 0.0  ;;  %v3694_v42 = vmax.f32 %v3598_v53, 0.0  ;;  %v3695_v1 = vmax.f32 %v3599_v43, 0.0  ;;  %v3060_v26 = vpop.permute.xlu0 %3059 }
 0x20e   :  { %17698 = vst [vmem:[#allocation84_spill] sm:$0xff] %v13094_v50  ;;  %v3696_v49 = vmax.f32 %v3600_v55, 0.0  ;;  %v2867_v20 = vrot.slane %v13079_v36, %v12050_v45  ;;  %v3884_v15 = vrot.slane %v3689_v2, %v12050_v45  ;;  %v3888_v9 = vrot.slane %v3689_v2, %v12073_v57  ;;  %v3157_v43 = vpop.permute.xlu1 %3156 }
 0x20f   :  { %v3900_v23 = vrot.slane %v3691_v22, %v12050_v45  ;;  %v3904_v46 = vrot.slane %v3691_v22, %v12073_v57  ;;  %v3908_v8 = vrot.slane %v3692_v30, %v12050_v45  ;;  %v3912_v40 = vrot.slane %v3692_v30, %v12073_v57 }
 0x210   :  { %v4843_v7 = vpack.c.bf16 %v3892_v6, %v3892_v6  ;;  %v4844_v4 = vpack.c.bf16 %v3896_v5, %v3896_v5  ;;  %v3916_v44 = vrot.slane %v3693_v29, %v12050_v45  ;;  %v3920_v13 = vrot.slane %v3693_v29, %v12073_v57 }
 0x211   :  { %v3924_v48 = vrot.slane %v3694_v42, %v12050_v45  ;;  %v3928_v53 = vrot.slane %v3694_v42, %v12073_v57  ;;  %v3932_v55 = vrot.slane %v3695_v1, %v12050_v45  ;;  %v3936_v47 = vrot.slane %v3695_v1, %v12073_v57 }
 0x212   :  { %v3940_v2 = vrot.slane %v3696_v49, %v12050_v45  ;;  %v3944_v22 = vrot.slane %v3696_v49, %v12073_v57  ;;  %v4841_v30 = vpack.c.bf16 %v3884_v15, %v3884_v15  ;;  %v4842_v6 = vpack.c.bf16 %v3888_v9, %v3888_v9  ;;  %v3155_v9 = vpop.permute.xlu0 %3154 }
 0x213   :  { %v4845_v5 = vpack.c.bf16 %v3900_v23, %v3900_v23  ;;  %v4846_v39 = vpack.c.bf16 %v3904_v46, %v3904_v46  ;;  %v4847_v10 = vpack.c.bf16 %v3908_v8, %v3908_v8  ;;  %v4848_v29 = vpack.c.bf16 %v3912_v40, %v3912_v40  ;;  %v13122_v23 = vpop.permute.xlu1 %3069 }
 0x214   :  { %v5163_v35 = vunpack.c.l.b16 %v4843_v7  ;;  %v13116_v21 = vunpack.c.l.b16 %v4844_v4  ;;  %v4849_v42 = vpack.c.bf16 %v3916_v44, %v3916_v44  ;;  %v4850_v28 = vpack.c.bf16 %v3920_v13, %v3920_v13 }
 0x215   :  { %v4851_v17 = vpack.c.bf16 %v3924_v48, %v3924_v48  ;;  %v4852_v32 = vpack.c.bf16 %v3928_v53, %v3928_v53  ;;  %v4853_v31 = vpack.c.bf16 %v3932_v55, %v3932_v55  ;;  %v4854_v25 = vpack.c.bf16 %v3936_v47, %v3936_v47 }
 0x216   :  { %v4855_v1 = vpack.c.bf16 %v3940_v2, %v3940_v2  ;;  %v4856_v61 = vpack.c.bf16 %v3944_v22, %v3944_v22  ;;  %v5161_v33 = vunpack.c.l.b16 %v4841_v30  ;;  %v5162_v38 = vunpack.c.l.b16 %v4842_v6 }
 0x217   :  { %v13118_v49 = vunpack.c.l.b16 %v4845_v5  ;;  %v13120_v15 = vunpack.c.l.b16 %v4846_v39  ;;  %v13124_v46 = vunpack.c.l.b16 %v4847_v10  ;;  %v13126_v8 = vunpack.c.l.b16 %v4848_v29  ;;  %v3159_v29 = vpop.permute.xlu1 %3158 }
 0x218   :  { %v5289_v40 = vrot.slane %v5163_v35, 7  ;;  %v5303_v7 = vrot.slane %v13116_v21, 7  ;;  %v13129_v4 = vunpack.c.l.b16 %v4849_v42  ;;  %v13131_v44 = vunpack.c.l.b16 %v4850_v28 }
 0x219   :  { %17699 = vst [vmem:[#allocation85_spill] sm:$0xff] %v13118_v49  ;;  %17700 = vst [vmem:[#allocation86_spill] sm:$0xff] %v13120_v15  ;;  %v13133_v13 = vunpack.c.l.b16 %v4851_v17  ;;  %v13135_v48 = vunpack.c.l.b16 %v4852_v32  ;;  %v13137_v39 = vunpack.c.l.b16 %v4853_v31  ;;  %v13139_v53 = vunpack.c.l.b16 %v4854_v25  ;;  %v3064_v32 = vpop.permute.xlu0 %3063 }
 0x21a   :  { %17701 = vst [vmem:[#allocation87_spill] sm:$0xff] %v13124_v46  ;;  %17702 = vst [vmem:[#allocation88_spill] sm:$0xff] %v13126_v8  ;;  %v13142_v10 = vsel %vm2888_vm9, %v5289_v40, %v5161_v33  ;;  %v13145_v55 = vsel %vm2888_vm9, %v5303_v7, %v5162_v38  ;;  %v13147_v47 = vunpack.c.l.b16 %v4855_v1  ;;  %v13149_v2 = vunpack.c.l.b16 %v4856_v61 }
 0x21b   :  { %17703 = vst [vmem:[#allocation89_spill] sm:$0xff] %v13129_v4  ;;  %17704 = vst [vmem:[#allocation90_spill] sm:$0xff] %v13133_v13  ;;  %v5553_v17 = vrot.slane %v13118_v49, 7  ;;  %v2883_v31 = vrot.slane %v13094_v50, %v12050_v45  ;;  %v17710_v25 = vrot.slane %v13049_v19, %v12050_v45  ;;  %v3121_v38 = vsel %vm3119_vm0, %v3060_v26, %v13073_v18 }
 0x21c   :  { %17705 = vst [vmem:[#allocation91_spill] sm:$0xff] %v13137_v39  ;;  %17706 = vst [vmem:[#allocation92_spill] sm:$0xff] %v13142_v10  ;;  %v2863_v61 = vrot.slane %v13049_v19, %v12073_v57  ;;  %v17711_v22 = vrot.slane %v13067_v51, %v12050_v45  ;;  %v2871_v6 = vrot.slane %v13079_v36, %v12073_v57 }
 0x21d   :  { %17707 = vst [vmem:[#allocation93_spill] sm:$0xff] %v13145_v55  ;;  %17708 = vst [vmem:[#allocation94_spill] sm:$0xff] %v13147_v47  ;;  %v3049_v33 = vsel %vm2888_vm9, %v2867_v20, %v17710_v25  ;;  %v2879_v5 = vrot.slane %v13067_v51, %v12073_v57  ;;  %v2887_v20 = vrot.slane %v13094_v50, %v12073_v57 }
 0x21e   :  { %17709 = vst [vmem:[#allocation95_spill] sm:$0xff] %v13149_v2  ;;  %v3050_v30 = vsel %vm2890_vm10, %v17711_v22, %v3049_v33  ;;  %v3202_v42 = vsel %vm3200_vm1, %v13073_v18, %v3155_v9  ;;  %v3122_v1 = vsel %vm3119_vm0, %v3064_v32, %v13089_v62  ;;  %v3203_v40 = vsel %vm3200_vm1, %v13089_v62, %v3157_v43 }
 0x21f   :  { %v3051_v26 = vsel %vm2892_vm11, %v2883_v31, %v3050_v30  ;;  %v3052_v7 = vsel %vm2888_vm9, %v2871_v6, %v2863_v61  ;;  %v3251_v25 = vcombine.low %v3121_v38, %v3202_v42  ;;  %v3260_v33 = vcombine.low %v3122_v1, %v3203_v40  ;;  %v3068_v38 = vpop.permute.xlu0 %3067 }
 0x220   :  { %3115 = vrot.lane.b32.xlu0 %v3051_v26, %s11374_s2  ;;  %v3261_v22 = vcombine.high %v3122_v1, %v3203_v40  ;;  %v5567_v31 = vrot.slane %v13120_v15, 7  ;;  %v5866_v30 = vrot.slane %v13124_v46, 7  ;;  %v3053_v18 = vsel %vm2890_vm10, %v2879_v5, %v3052_v7 }
 0x221   :  { %v3054_v9 = vsel %vm2892_vm11, %v2887_v20, %v3053_v18  ;;  %v3258_v32 = vrot.slane %v3251_v25, %v12066_v63  ;;  %v3268_v62 = vrot.slane %v3260_v33, %v12066_v63  ;;  %v13193_v61 = vsel %vm2888_vm9, %v5553_v17, %v5163_v35  ;;  %v13202_v25 = vpop.permute.xlu1 %3073 }
 0x222   :  { %v13190_v43 = vrot.slane %v3261_v22, %v12066_v63  ;;  %v5880_v6 = vrot.slane %v13126_v8, 7  ;;  %3117 = vrot.lane.b32.xlu1 %v3054_v9, %s11374_s2  ;;  %v13206_v35 = vsel %vm2888_vm9, %v5567_v31, %v13116_v21  ;;  %v13210_v17 = vsel %vm2888_vm9, %v5866_v30, %v13118_v49 }
 0x223   :  { %v3259_v5 = vcombine.high %v3258_v32, %v3258_v32  ;;  %v3453_v20 = vrot.slane %v3258_v32, 1  ;;  %v3601_v40 = vmax.f32 %v12130_v0, %v3258_v32  ;;  %v3276_v7 = vcombine.high %v3268_v62, %v3268_v62  ;;  %v3072_v32 = vpop.permute.xlu0 %3071 }
 0x224   :  { %3178 = vrot.lane.b32.xlu0 %v13070_v52, %s11375_s23  ;;  %v3277_v33 = vcombine.high %v13190_v43, %v13190_v43  ;;  %v13216_v52 = vsel %vm3200_vm1, %v13122_v23, %v3159_v29  ;;  %v3455_v9 = vrot.slane %v3268_v62, 1  ;;  %v13222_v21 = vsel %vm2888_vm9, %v5880_v6, %v13120_v15 }
 0x225   :  { %v3602_v0 = vmax.f32 %v12145_v27, %v3453_v20  ;;  %v3603_v22 = vmax.f32 %v12135_v3, %v3259_v5  ;;  %v3697_v18 = vmax.f32 %v3601_v40, 0.0  ;;  %17712 = vst [vmem:[#allocation96_spill] sm:$0xff] %v13222_v21  ;;  %v3454_v31 = vrot.slane %v3259_v5, 1 }
 0x226   :  { %3182 = vrot.lane.b32.xlu1 %v3051_v26, %s11375_s23  ;;  %v13227_v30 = vsel %vm3119_vm0, %v3068_v38, %v13122_v23  ;;  %v13231_v29 = vsel %vm3119_vm0, %v3072_v32, %v13202_v25  ;;  %v3456_v20 = vrot.slane %v3276_v7, 1  ;;  %v3457_v26 = vrot.slane %v13190_v43, 1 }
 0x227   :  { %v3698_v27 = vmax.f32 %v3602_v0, 0.0  ;;  %v3699_v3 = vmax.f32 %v3603_v22, 0.0  ;;  %v3948_v6 = vrot.slane %v3697_v18, %v12050_v45  ;;  %v3952_v5 = vrot.slane %v3697_v18, %v12073_v57 }
 0x228   :  { %v3458_v38 = vrot.slane %v3277_v33, 1  ;;  %v3606_v32 = vmax.f32 %v12162_v60, %v3455_v9  ;;  %v13243_v22 = vmax.f32 %v12181_v54, %v3454_v31  ;;  %v3605_v42 = vmax.f32 %v12141_v56, %v3268_v62  ;;  %v17716_v54 = vld [vmem:[#allocation6_spill] sm:$0xff]  ;;  %v17718_v62 = vld [vmem:[#allocation7_spill] sm:$0xff] }
 0x229   :  { %v3956_v23 = vrot.slane %v3698_v27, %v12050_v45  ;;  %v3960_v28 = vrot.slane %v3698_v27, %v12073_v57  ;;  %v3607_v18 = vmax.f32 %v12147_v14, %v3276_v7  ;;  %v13249_v40 = vrot.slane %v3699_v3, %v12050_v45  ;;  %v17717_v27 = vld [vmem:[#allocation10_spill] sm:$0xff]  ;;  %v17719_v7 = vld [vmem:[#allocation11_spill] sm:$0xff] }
 0x22a   :  { %17713 = vst [vmem:[#allocation97_spill] sm:$0xff] %v13243_v22  ;;  %v13252_v1 = vrot.slane %v3699_v3, %v12073_v57  ;;  %v3608_v49 = vmax.f32 %v12164_v37, %v3456_v20  ;;  %v4857_v9 = vpack.c.bf16 %v3948_v6, %v3948_v6  ;;  %v4858_v0 = vpack.c.bf16 %v3952_v5, %v3952_v5 }
 0x22b   :  { %17714 = vst [vmem:[#allocation98_spill] sm:$0xff] %v13249_v40  ;;  %v3609_v31 = vmax.f32 %v17716_v54, %v13190_v43  ;;  %v3610_v10 = vmax.f32 %v17717_v27, %v3457_v26  ;;  %v4859_v56 = vpack.c.bf16 %v3956_v23, %v3956_v23  ;;  %v3611_v14 = vmax.f32 %v17718_v62, %v3277_v33 }
 0x22c   :  { %17715 = vst [vmem:[#allocation99_spill] sm:$0xff] %v13252_v1  ;;  %v3612_v15 = vmax.f32 %v17719_v7, %v3458_v38  ;;  %v3702_v55 = vmax.f32 %v3606_v32, 0.0  ;;  %v4860_v50 = vpack.c.bf16 %v3960_v28, %v3960_v28  ;;  %v3701_v51 = vmax.f32 %v3605_v42, 0.0 }
 0x22d   :  { %v3703_v37 = vmax.f32 %v3607_v18, 0.0  ;;  %v3704_v43 = vmax.f32 %v3608_v49, 0.0  ;;  %v13267_v26 = vunpack.c.l.b16 %v4857_v9  ;;  %v3705_v33 = vmax.f32 %v3609_v31, 0.0 }
 0x22e   :  { %v3988_v5 = vrot.slane %v3702_v55, %v12050_v45  ;;  %v3706_v23 = vmax.f32 %v3610_v10, 0.0  ;;  %v3992_v38 = vrot.slane %v3702_v55, %v12073_v57  ;;  %v13270_v32 = vunpack.c.l.b16 %v4858_v0 }
 0x22f   :  { %17720 = vst [vmem:[#allocation6_spill] sm:$0xff] %v13267_v26  ;;  %v13272_v28 = vunpack.c.l.b16 %v4859_v56  ;;  %v3707_v42 = vmax.f32 %v3611_v14, 0.0  ;;  %v3708_v18 = vmax.f32 %v3612_v15, 0.0  ;;  %v13274_v54 = vunpack.c.l.b16 %v4860_v50 }
 0x230   :  { %17721 = vst [vmem:[#allocation10_spill] sm:$0xff] %v13270_v32  ;;  %v3980_v27 = vrot.slane %v3701_v51, %v12050_v45  ;;  %v3984_v49 = vrot.slane %v3701_v51, %v12073_v57  ;;  %v3996_v62 = vrot.slane %v3703_v37, %v12050_v45  ;;  %v4000_v9 = vrot.slane %v3703_v37, %v12073_v57 }
 0x231   :  { %17722 = vst [vmem:[#allocation7_spill] sm:$0xff] %v13272_v28  ;;  %17723 = vst [vmem:[#allocation11_spill] sm:$0xff] %v13274_v54  ;;  %v4004_v10 = vrot.slane %v3704_v43, %v12050_v45  ;;  %v4008_v55 = vrot.slane %v3704_v43, %v12073_v57  ;;  %v4867_v0 = vpack.c.bf16 %v3988_v5, %v3988_v5 }
 0x232   :  { %v4012_v31 = vrot.slane %v3705_v33, %v12050_v45  ;;  %v4016_v56 = vrot.slane %v3705_v33, %v12073_v57  ;;  %v4020_v50 = vrot.slane %v3706_v23, %v12050_v45  ;;  %v4868_v15 = vpack.c.bf16 %v3992_v38, %v3992_v38 }
 0x233   :  { %v4024_v14 = vrot.slane %v3706_v23, %v12073_v57  ;;  %v4028_v51 = vrot.slane %v3707_v42, %v12050_v45  ;;  %v4032_v7 = vrot.slane %v3707_v42, %v12073_v57  ;;  %v4036_v37 = vrot.slane %v3708_v18, %v12050_v45 }
 0x234   :  { %v4040_v3 = vrot.slane %v3708_v18, %v12073_v57  ;;  %v4865_v6 = vpack.c.bf16 %v3980_v27, %v3980_v27  ;;  %v4866_v43 = vpack.c.bf16 %v3984_v49, %v3984_v49  ;;  %v4869_v5 = vpack.c.bf16 %v3996_v62, %v3996_v62 }
 0x235   :  { %v4870_v20 = vpack.c.bf16 %v4000_v9, %v4000_v9  ;;  %v4871_v60 = vpack.c.bf16 %v4004_v10, %v4004_v10  ;;  %v4872_v22 = vpack.c.bf16 %v4008_v55, %v4008_v55  ;;  %v13290_v33 = vunpack.c.l.b16 %v4867_v0 }
 0x236   :  { %v4873_v1 = vpack.c.bf16 %v4012_v31, %v4012_v31  ;;  %v4874_v38 = vpack.c.bf16 %v4016_v56, %v4016_v56  ;;  %v4875_v40 = vpack.c.bf16 %v4020_v50, %v4020_v50  ;;  %v5180_v23 = vunpack.c.l.b16 %v4868_v15  ;;  %v3161_v56 = vpop.permute.xlu0 %3160 }
 0x237   :  { %v4876_v36 = vpack.c.bf16 %v4024_v14, %v4024_v14  ;;  %v4877_v19 = vpack.c.bf16 %v4028_v51, %v4028_v51  ;;  %v4878_v54 = vpack.c.bf16 %v4032_v7, %v4032_v7  ;;  %v4879_v42 = vpack.c.bf16 %v4036_v37, %v4036_v37 }
 0x238   :  { %v4880_v24 = vpack.c.bf16 %v4040_v3, %v4040_v3  ;;  %v5177_v58 = vunpack.c.l.b16 %v4865_v6  ;;  %v5178_v41 = vunpack.c.l.b16 %v4866_v43  ;;  %v13292_v18 = vunpack.c.l.b16 %v4869_v5 }
 0x239   :  { %v13294_v27 = vunpack.c.l.b16 %v4870_v20  ;;  %v13296_v49 = vunpack.c.l.b16 %v4871_v60  ;;  %v5317_v62 = vrot.slane %v13290_v33, 7  ;;  %v5331_v9 = vrot.slane %v5180_v23, 7 }
 0x23a   :  { %17724 = vst [vmem:[#allocation100_spill] sm:$0xff] %v13292_v18  ;;  %v13299_v10 = vunpack.c.l.b16 %v4872_v22  ;;  %v13301_v55 = vunpack.c.l.b16 %v4873_v1  ;;  %v13303_v0 = vunpack.c.l.b16 %v4874_v38  ;;  %v13305_v31 = vunpack.c.l.b16 %v4875_v40 }
 0x23b   :  { %17725 = vst [vmem:[#allocation101_spill] sm:$0xff] %v13294_v27  ;;  %17726 = vst [vmem:[#allocation102_spill] sm:$0xff] %v13296_v49  ;;  %v13307_v3 = vunpack.c.l.b16 %v4876_v36  ;;  %v13309_v6 = vunpack.c.l.b16 %v4877_v19  ;;  %v13312_v20 = vsel %vm2888_vm9, %v5317_v62, %v5177_v58  ;;  %v13315_v60 = vsel %vm2888_vm9, %v5331_v9, %v5178_v41 }
 0x23c   :  { %17727 = vst [vmem:[#allocation103_spill] sm:$0xff] %v13299_v10  ;;  %17728 = vst [vmem:[#allocation104_spill] sm:$0xff] %v13301_v55  ;;  %v13317_v50 = vunpack.c.l.b16 %v4878_v54  ;;  %v13319_v22 = vunpack.c.l.b16 %v4879_v42  ;;  %v13321_v1 = vunpack.c.l.b16 %v4880_v24  ;;  %v5581_v36 = vrot.slane %v13292_v18, 7 }
 0x23d   :  { %17729 = vst [vmem:[#allocation105_spill] sm:$0xff] %v13307_v3  ;;  %17730 = vst [vmem:[#allocation106_spill] sm:$0xff] %v13312_v20  ;;  %v5595_v19 = vrot.slane %v13294_v27, 7  ;;  %v17733_v58 = vcombine.low %v13227_v30, %v13216_v52  ;;  %v17734_v41 = vrot.slane %v13124_v46, 6  ;;  %v17735_v14 = vrot.slane %v13129_v4, 5  ;;  %v17736_v52 = vld [vmem:[#allocation8_spill] sm:$0xff] }
 0x23e   :  { %17731 = vst [vmem:[#allocation107_spill] sm:$0xff] %v13315_v60  ;;  %17732 = vst [vmem:[#allocation108_spill] sm:$0xff] %v13317_v50  ;;  %v5561_v51 = vrot.slane %v13137_v39, 3  ;;  %v5563_v7 = vrot.slane %v13147_v47, 2  ;;  %v3205_v37 = vsel %vm3200_vm1, %v13202_v25, %v3161_v56  ;;  %v17737_v38 = vrot.slane %v13133_v13, 4  ;;  %v17739_v56 = vld [vmem:[#allocation9_spill] sm:$0xff] }
 0x23f   :  { %v3285_v15 = vrot.slane %v17733_v58, %v12066_v63  ;;  %v5556_v54 = vsel %vm2890_vm10, %v17734_v41, %v13193_v61  ;;  %v5565_v62 = vrot.slane %v13267_v26, 1  ;;  %v3287_v9 = vcombine.low %v13231_v29, %v3205_v37  ;;  %v17749_v60 = vld [vmem:[#allocation18_spill] sm:$0xff] }
 0x240   :  { %v5558_v24 = vsel %vm2892_vm11, %v17735_v14, %v5556_v54  ;;  %v3288_v58 = vcombine.high %v13231_v29, %v3205_v37  ;;  %v5894_v41 = vrot.slane %v13296_v49, 7  ;;  %v17738_v54 = vld [vmem:[#allocation12_spill] sm:$0xff]  ;;  %v5569_v37 = vrot.slane %v13126_v8, 6 }
 0x241   :  { %v3286_v43 = vcombine.high %v3285_v15, %v3285_v15  ;;  %v3459_v5 = vrot.slane %v3285_v15, 1  ;;  %v3613_v30 = vmax.f32 %v17736_v52, %v3285_v15  ;;  %v5560_v42 = vsel %vm2894_vm12, %v17737_v38, %v5558_v24 }
 0x242   :  { %v5562_v61 = vsel %vm2896_vm13, %v5561_v51, %v5560_v42  ;;  %v5908_v15 = vrot.slane %v13299_v10, 7  ;;  %v3295_v24 = vrot.slane %v3287_v9, %v12066_v63  ;;  %v3302_v51 = vrot.slane %v3288_v58, %v12066_v63 }
 0x243   :  { %v3614_v25 = vmax.f32 %v17738_v54, %v3459_v5  ;;  %v3615_v14 = vmax.f32 %v17739_v56, %v3286_v43  ;;  %v3709_v40 = vmax.f32 %v3613_v30, 0.0  ;;  %v5564_v52 = vsel %vm2898_vm14, %v5563_v7, %v5562_v61 }
 0x244   :  { %v3460_v20 = vrot.slane %v3286_v43, 1  ;;  %v5566_v54 = vsel %vm2900_vm15, %v5565_v62, %v5564_v52  ;;  %v3303_v30 = vcombine.high %v3295_v24, %v3295_v24  ;;  %v13362_v56 = vsel %vm2888_vm9, %v5581_v36, %v13290_v33 }
 0x245   :  { %v3710_v29 = vmax.f32 %v3614_v25, 0.0  ;;  %v3711_v5 = vmax.f32 %v3615_v14, 0.0  ;;  %v13365_v7 = vsel %vm2888_vm9, %v5595_v19, %v5180_v23  ;;  %v4044_v61 = vrot.slane %v3709_v40, %v12050_v45  ;;  %v17742_v14 = vld [vmem:[#allocation19_spill] sm:$0xff] }
 0x246   :  { %v3304_v9 = vcombine.high %v3302_v51, %v3302_v51  ;;  %v13370_v58 = vsel %vm2888_vm9, %v5894_v41, %v13292_v18  ;;  %v13374_v43 = vsel %vm2888_vm9, %v5908_v15, %v13294_v27  ;;  %v5777_v25 = vpack.c.b16 %v5566_v54, %v5566_v54  ;;  %v17746_v18 = vld [vmem:[#allocation13_spill] sm:$0xff] }
 0x247   :  { %17740 = vst [vmem:[#allocation8_spill] sm:$0xff] %v13370_v58  ;;  %17741 = vst [vmem:[#allocation12_spill] sm:$0xff] %v13374_v43  ;;  %v4048_v33 = vrot.slane %v3709_v40, %v12073_v57  ;;  %v4052_v36 = vrot.slane %v3710_v29, %v12050_v45  ;;  %v3461_v23 = vrot.slane %v3295_v24, 1  ;;  %v13381_v19 = vsel %vm2890_vm10, %v5569_v37, %v13206_v35  ;;  %v17747_v37 = vld [vmem:[#allocation17_spill] sm:$0xff]  ;;  %v17750_v43 = vld [vmem:[#allocation15_spill] sm:$0xff] }
 0x248   :  { %v13384_v52 = vmax.f32 %v17742_v14, %v3460_v20  ;;  %v4056_v41 = vrot.slane %v3710_v29, %v12073_v57  ;;  %v13388_v15 = vrot.slane %v3711_v5, %v12050_v45  ;;  %5793 = vrot.lane.b32.xlu0 %v5777_v25, %s11369_s21  ;;  %v3462_v54 = vrot.slane %v3303_v30, 1  ;;  %v17748_v20 = vld [vmem:[#allocation14_spill] sm:$0xff]  ;;  %v17751_v25 = vld [vmem:[#allocation20_spill] sm:$0xff] }
 0x249   :  { %v13392_v40 = vrot.slane %v3711_v5, %v12073_v57  ;;  %v4881_v62 = vpack.c.bf16 %v4044_v61, %v4044_v61  ;;  %v3463_v38 = vrot.slane %v3302_v51, 1  ;;  %v3464_v42 = vrot.slane %v3304_v9, 1 }
 0x24a   :  { %17743 = vst [vmem:[#allocation9_spill] sm:$0xff] %v13384_v52  ;;  %17744 = vst [vmem:[#allocation19_spill] sm:$0xff] %v13388_v15  ;;  %v3617_v35 = vmax.f32 %v17746_v18, %v3295_v24  ;;  %v3618_v27 = vmax.f32 %v17747_v37, %v3461_v23  ;;  %v3619_v14 = vmax.f32 %v17748_v20, %v3303_v30 }
 0x24b   :  { %17745 = vst [vmem:[#allocation109_spill] sm:$0xff] %v13392_v40  ;;  %v3620_v29 = vmax.f32 %v17749_v60, %v3462_v54  ;;  %v4882_v8 = vpack.c.bf16 %v4048_v33, %v4048_v33  ;;  %v4883_v46 = vpack.c.bf16 %v4052_v36, %v4052_v36  ;;  %v3621_v21 = vmax.f32 %v17750_v43, %v3302_v51 }
 0x24c   :  { %v3622_v16 = vmax.f32 %v17751_v25, %v3463_v38  ;;  %v3623_v5 = vmax.f32 %v17752_v59, %v3304_v9  ;;  %v3624_v61 = vmax.f32 %v17753_v11, %v3464_v42  ;;  %v3714_v34 = vmax.f32 %v3618_v27, 0.0 }
 0x24d   :  { %v3715_v58 = vmax.f32 %v3619_v14, 0.0  ;;  %v4884_v24 = vpack.c.bf16 %v4056_v41, %v4056_v41  ;;  %v3713_v23 = vmax.f32 %v3617_v35, 0.0  ;;  %v3716_v33 = vmax.f32 %v3620_v29, 0.0 }
 0x24e   :  { %v4084_v51 = vrot.slane %v3714_v34, %v12050_v45  ;;  %v4088_v38 = vrot.slane %v3714_v34, %v12073_v57  ;;  %v13409_v59 = vunpack.c.l.b16 %v4881_v62  ;;  %v3717_v11 = vmax.f32 %v3621_v21, 0.0 }
 0x24f   :  { %v3718_v27 = vmax.f32 %v3622_v16, 0.0  ;;  %v4096_v42 = vrot.slane %v3715_v58, %v12073_v57  ;;  %v13412_v9 = vunpack.c.l.b16 %v4882_v8  ;;  %v13414_v43 = vunpack.c.l.b16 %v4883_v46 }
 0x250   :  { %17754 = vst [vmem:[#allocation13_spill] sm:$0xff] %v13409_v59  ;;  %v3719_v36 = vmax.f32 %v3623_v5, 0.0  ;;  %v3720_v41 = vmax.f32 %v3624_v61, 0.0  ;;  %v13416_v54 = vunpack.c.l.b16 %v4884_v24  ;;  %v4076_v35 = vrot.slane %v3713_v23, %v12050_v45  ;;  %v3076_v24 = vpop.permute.xlu0 %3075 }
 0x251   :  { %17755 = vst [vmem:[#allocation17_spill] sm:$0xff] %v13412_v9  ;;  %17756 = vst [vmem:[#allocation14_spill] sm:$0xff] %v13414_v43  ;;  %v4080_v37 = vrot.slane %v3713_v23, %v12073_v57  ;;  %v4092_v34 = vrot.slane %v3715_v58, %v12050_v45  ;;  %v4100_v62 = vrot.slane %v3716_v33, %v12050_v45 }
 0x252   :  { %17757 = vst [vmem:[#allocation18_spill] sm:$0xff] %v13416_v54  ;;  %v4104_v16 = vrot.slane %v3716_v33, %v12073_v57  ;;  %v4891_v21 = vpack.c.bf16 %v4084_v51, %v4084_v51  ;;  %v4892_v20 = vpack.c.bf16 %v4088_v38, %v4088_v38  ;;  %v4108_v8 = vrot.slane %v3717_v11, %v12050_v45 }
 0x253   :  { %v4112_v46 = vrot.slane %v3717_v11, %v12073_v57  ;;  %v4116_v14 = vrot.slane %v3718_v27, %v12050_v45  ;;  %v4894_v29 = vpack.c.bf16 %v4096_v42, %v4096_v42  ;;  %v4120_v25 = vrot.slane %v3718_v27, %v12073_v57  ;;  %v3078_v42 = vpop.permute.xlu1 %3077 }
 0x254   :  { %v4124_v5 = vrot.slane %v3719_v36, %v12050_v45  ;;  %v4128_v61 = vrot.slane %v3719_v36, %v12073_v57  ;;  %v4132_v58 = vrot.slane %v3720_v41, %v12050_v45  ;;  %v4136_v23 = vrot.slane %v3720_v41, %v12073_v57 }
 0x255   :  { %v4889_v33 = vpack.c.bf16 %v4076_v35, %v4076_v35  ;;  %v4890_v51 = vpack.c.bf16 %v4080_v37, %v4080_v37  ;;  %v4893_v38 = vpack.c.bf16 %v4092_v34, %v4092_v34  ;;  %v4895_v18 = vpack.c.bf16 %v4100_v62, %v4100_v62 }
 0x256   :  { %v4896_v60 = vpack.c.bf16 %v4104_v16, %v4104_v16  ;;  %v13431_v11 = vunpack.c.l.b16 %v4891_v21  ;;  %v5196_v30 = vunpack.c.l.b16 %v4892_v20  ;;  %v4897_v52 = vpack.c.bf16 %v4108_v8, %v4108_v8  ;;  %v3163_v20 = vpop.permute.xlu0 %3162 }
 0x257   :  { %v4898_v27 = vpack.c.bf16 %v4112_v46, %v4112_v46  ;;  %v4899_v40 = vpack.c.bf16 %v4116_v14, %v4116_v14  ;;  %v13433_v15 = vunpack.c.l.b16 %v4894_v29  ;;  %v4900_v36 = vpack.c.bf16 %v4120_v25, %v4120_v25  ;;  %v3082_v8 = vpop.permute.xlu1 %3081 }
 0x258   :  { %v4901_v54 = vpack.c.bf16 %v4124_v5, %v4124_v5  ;;  %v4902_v43 = vpack.c.bf16 %v4128_v61, %v4128_v61  ;;  %v4903_v28 = vpack.c.bf16 %v4132_v58, %v4132_v58  ;;  %v4904_v26 = vpack.c.bf16 %v4136_v23, %v4136_v23 }
 0x259   :  { %17758 = vst [vmem:[#allocation15_spill] sm:$0xff] %v13433_v15  ;;  %v5193_v41 = vunpack.c.l.b16 %v4889_v33  ;;  %v5194_v35 = vunpack.c.l.b16 %v4890_v51  ;;  %v13435_v37 = vunpack.c.l.b16 %v4893_v38  ;;  %v13437_v34 = vunpack.c.l.b16 %v4895_v18 }
 0x25a   :  { %v13439_v62 = vunpack.c.l.b16 %v4896_v60  ;;  %v5345_v16 = vrot.slane %v13431_v11, 7  ;;  %v5359_v21 = vrot.slane %v5196_v30, 7  ;;  %v13442_v46 = vunpack.c.l.b16 %v4897_v52 }
 0x25b   :  { %17759 = vst [vmem:[#allocation20_spill] sm:$0xff] %v13435_v37  ;;  %17760 = vst [vmem:[#allocation16_spill] sm:$0xff] %v13437_v34  ;;  %v13444_v14 = vunpack.c.l.b16 %v4898_v27  ;;  %v13446_v29 = vunpack.c.l.b16 %v4899_v40  ;;  %v5623_v25 = vrot.slane %v13433_v15, 7  ;;  %v13449_v5 = vunpack.c.l.b16 %v4900_v36  ;;  %v3080_v27 = vpop.permute.xlu0 %3079 }
 0x25c   :  { %17761 = vst [vmem:[#allocation22_spill] sm:$0xff] %v13439_v62  ;;  %17762 = vst [vmem:[#allocation110_spill] sm:$0xff] %v13442_v46  ;;  %v13451_v61 = vunpack.c.l.b16 %v4901_v54  ;;  %v13454_v18 = vsel %vm2888_vm9, %v5345_v16, %v5193_v41  ;;  %v13457_v60 = vsel %vm2888_vm9, %v5359_v21, %v5194_v35  ;;  %v13459_v58 = vunpack.c.l.b16 %v4902_v43  ;;  %v3165_v21 = vpop.permute.xlu1 %3164 }
 0x25d   :  { %17763 = vst [vmem:[#allocation111_spill] sm:$0xff] %v13444_v14  ;;  %17764 = vst [vmem:[#allocation112_spill] sm:$0xff] %v13446_v29  ;;  %v13461_v52 = vunpack.c.l.b16 %v4903_v28  ;;  %v13463_v23 = vunpack.c.l.b16 %v4904_v26  ;;  %v13466_v40 = vsel %vm2888_vm9, %v5623_v25, %v5196_v30  ;;  %v5609_v33 = vrot.slane %v13435_v37, 7 }
 0x25e   :  { %17765 = vst [vmem:[#allocation113_spill] sm:$0xff] %v13449_v5  ;;  %17766 = vst [vmem:[#allocation114_spill] sm:$0xff] %v13451_v61  ;;  %v5922_v54 = vrot.slane %v13437_v34, 7  ;;  %v5936_v51 = vrot.slane %v13439_v62, 7  ;;  %v5571_v38 = vrot.slane %v13131_v44, 5  ;;  %v5573_v36 = vrot.slane %v13135_v48, 4 }
 0x25f   :  { %17767 = vst [vmem:[#allocation115_spill] sm:$0xff] %v13454_v18  ;;  %17768 = vst [vmem:[#allocation116_spill] sm:$0xff] %v13457_v60  ;;  %v5575_v43 = vrot.slane %v13139_v53, 3  ;;  %v3125_v28 = vsel %vm3119_vm0, %v3076_v24, %v3078_v42  ;;  %v3206_v26 = vsel %vm3200_vm1, %v3078_v42, %v3163_v20  ;;  %v5579_v41 = vrot.slane %v13270_v32, 1  ;;  %v17774_v5 = vld [vmem:[#allocation23_spill] sm:$0xff] }
 0x260   :  { %17769 = vst [vmem:[#allocation117_spill] sm:$0xff] %v13459_v58  ;;  %17770 = vst [vmem:[#allocation118_spill] sm:$0xff] %v13461_v52  ;;  %v5572_v30 = vsel %vm2892_vm11, %v5571_v38, %v13381_v19  ;;  %v3305_v35 = vcombine.low %v3125_v28, %v3206_v26  ;;  %v5583_v16 = vrot.slane %v13296_v49, 6  ;;  %v5577_v18 = vrot.slane %v13149_v2, 2 }
 0x261   :  { %17771 = vst [vmem:[#allocation119_spill] sm:$0xff] %v13463_v23  ;;  %17772 = vst [vmem:[#allocation120_spill] sm:$0xff] %v13466_v40  ;;  %v5574_v25 = vsel %vm2894_vm12, %v5573_v36, %v5572_v30  ;;  %v3126_v60 = vsel %vm3119_vm0, %v3080_v27, %v3082_v8  ;;  %v5585_v23 = vrot.slane %v13301_v55, 5  ;;  %v5587_v20 = vrot.slane %v13305_v31, 4 }
 0x262   :  { %v5576_v24 = vsel %vm2896_vm13, %v5575_v43, %v5574_v25  ;;  %v3312_v42 = vrot.slane %v3305_v35, %v12066_v63  ;;  %v5584_v19 = vsel %vm2890_vm10, %v5583_v16, %v13362_v56  ;;  %v5589_v36 = vrot.slane %v13309_v6, 3  ;;  %v17773_v43 = vld [vmem:[#allocation21_spill] sm:$0xff] }
 0x263   :  { %v5578_v38 = vsel %vm2898_vm14, %v5577_v18, %v5576_v24  ;;  %v5586_v28 = vsel %vm2892_vm11, %v5585_v23, %v5584_v19  ;;  %v3207_v26 = vsel %vm3200_vm1, %v3082_v8, %v3165_v21  ;;  %v17775_v18 = vld [vmem:[#allocation24_spill] sm:$0xff]  ;;  %v5591_v19 = vrot.slane %v13319_v22, 2 }
 0x264   :  { %v5580_v27 = vsel %vm2900_vm15, %v5579_v41, %v5578_v38  ;;  %v3313_v30 = vcombine.high %v3312_v42, %v3312_v42  ;;  %v3465_v40 = vrot.slane %v3312_v42, 1  ;;  %v3625_v25 = vmax.f32 %v17773_v43, %v3312_v42  ;;  %v17784_v38 = vld [vmem:[#allocation27_spill] sm:$0xff] }
 0x265   :  { %v5778_v35 = vpack.c.b16 %v5580_v27, %v5580_v27  ;;  %v5588_v58 = vsel %vm2894_vm12, %v5587_v20, %v5586_v28  ;;  %v3314_v56 = vcombine.low %v3126_v60, %v3207_v26  ;;  %v3315_v16 = vcombine.high %v3126_v60, %v3207_v26 }
 0x266   :  { %v3626_v62 = vmax.f32 %v17774_v5, %v3465_v40  ;;  %v3627_v24 = vmax.f32 %v17775_v18, %v3313_v30  ;;  %v3721_v23 = vmax.f32 %v3625_v25, 0.0  ;;  %v5590_v8 = vsel %vm2896_vm13, %v5589_v36, %v5588_v58 }
 0x267   :  { %5795 = vrot.lane.b32.xlu0 %v5778_v35, %s11369_s21  ;;  %v5593_v41 = vrot.slane %v13409_v59, 1  ;;  %v3322_v21 = vrot.slane %v3314_v56, %v12066_v63  ;;  %v3329_v42 = vrot.slane %v3315_v16, %v12066_v63  ;;  %v5597_v40 = vrot.slane %v13299_v10, 6 }
 0x268   :  { %v3722_v5 = vmax.f32 %v3626_v62, 0.0  ;;  %v3466_v28 = vrot.slane %v3313_v30, 1  ;;  %v3723_v26 = vmax.f32 %v3627_v24, 0.0  ;;  %v5592_v27 = vsel %vm2898_vm14, %v5591_v19, %v5590_v8  ;;  %v17778_v24 = vld [vmem:[#allocation28_spill] sm:$0xff] }
 0x269   :  { %v13511_v58 = vsel %vm2888_vm9, %v5609_v33, %v13431_v11  ;;  %v4140_v43 = vrot.slane %v3721_v23, %v12050_v45  ;;  %v3330_v25 = vcombine.high %v3322_v21, %v3322_v21  ;;  %v13517_v62 = vsel %vm2888_vm9, %v5922_v54, %v13435_v37 }
 0x26a   :  { %17776 = vst [vmem:[#allocation21_spill] sm:$0xff] %v13517_v62  ;;  %v13521_v35 = vsel %vm2888_vm9, %v5936_v51, %v13433_v15  ;;  %v5594_v30 = vsel %vm2900_vm15, %v5593_v41, %v5592_v27  ;;  %v3331_v56 = vcombine.high %v3329_v42, %v3329_v42  ;;  %v4144_v16 = vrot.slane %v3721_v23, %v12073_v57  ;;  %v17785_v15 = vld [vmem:[#allocation29_spill] sm:$0xff] }
 0x26b   :  { %17777 = vst [vmem:[#allocation23_spill] sm:$0xff] %v13521_v35  ;;  %v4148_v11 = vrot.slane %v3722_v5, %v12050_v45  ;;  %v5779_v33 = vpack.c.b16 %v5594_v30, %v5594_v30  ;;  %v13528_v18 = vsel %vm2890_vm10, %v5597_v40, %v13365_v7  ;;  %v13531_v19 = vmax.f32 %v17778_v24, %v3466_v28  ;;  %v17782_v40 = vld [vmem:[#allocation26_spill] sm:$0xff]  ;;  %v17783_v24 = vld [vmem:[#allocation25_spill] sm:$0xff] }
 0x26c   :  { %v4152_v54 = vrot.slane %v3722_v5, %v12073_v57  ;;  %v13535_v51 = vrot.slane %v3723_v26, %v12050_v45  ;;  %v3467_v8 = vrot.slane %v3322_v21, 1  ;;  %v13538_v41 = vrot.slane %v3723_v26, %v12073_v57  ;;  %v17786_v26 = vld [vmem:[#allocation31_spill] sm:$0xff] }
 0x26d   :  { %17779 = vst [vmem:[#allocation24_spill] sm:$0xff] %v13531_v19  ;;  %v4905_v23 = vpack.c.bf16 %v4140_v43, %v4140_v43  ;;  %5797 = vrot.lane.b32.xlu1 %v5779_v33, %s11369_s21  ;;  %v3468_v27 = vrot.slane %v3330_v25, 1  ;;  %v3469_v30 = vrot.slane %v3329_v42, 1  ;;  %v3470_v36 = vrot.slane %v3331_v56, 1  ;;  %v17787_v43 = vld [vmem:[#allocation30_spill] sm:$0xff] }
 0x26e   :  { %17780 = vst [vmem:[#allocation28_spill] sm:$0xff] %v13535_v51  ;;  %17781 = vst [vmem:[#allocation121_spill] sm:$0xff] %v13538_v41  ;;  %v3629_v7 = vmax.f32 %v12385_v12, %v3322_v21  ;;  %v3630_v28 = vmax.f32 %v17782_v40, %v3467_v8  ;;  %v3631_v20 = vmax.f32 %v17783_v24, %v3330_v25  ;;  %v17788_v12 = vld [vmem:[#allocation34_spill] sm:$0xff] }
 0x26f   :  { %v4906_v5 = vpack.c.bf16 %v4144_v16, %v4144_v16  ;;  %v4907_v60 = vpack.c.bf16 %v4148_v11, %v4148_v11  ;;  %v3632_v37 = vmax.f32 %v17784_v38, %v3468_v27  ;;  %v3633_v10 = vmax.f32 %v17785_v15, %v3329_v42  ;;  %v3084_v38 = vpop.permute.xlu0 %3083 }
 0x270   :  { %v3634_v35 = vmax.f32 %v17786_v26, %v3469_v30  ;;  %v3635_v62 = vmax.f32 %v17787_v43, %v3331_v56  ;;  %v3726_v33 = vmax.f32 %v3630_v28, 0.0  ;;  %v3727_v14 = vmax.f32 %v3631_v20, 0.0 }
 0x271   :  { %v4908_v32 = vpack.c.bf16 %v4152_v54, %v4152_v54  ;;  %v3636_v21 = vmax.f32 %v17788_v12, %v3470_v36  ;;  %v3725_v8 = vmax.f32 %v3629_v7, 0.0  ;;  %v3728_v16 = vmax.f32 %v3632_v37, 0.0 }
 0x272   :  { %v4180_v15 = vrot.slane %v3726_v33, %v12050_v45  ;;  %v13555_v42 = vunpack.c.l.b16 %v4905_v23  ;;  %v3729_v56 = vmax.f32 %v3633_v10, 0.0  ;;  %v4184_v20 = vrot.slane %v3726_v33, %v12073_v57 }
 0x273   :  { %v4192_v11 = vrot.slane %v3727_v14, %v12073_v57  ;;  %v13559_v54 = vunpack.c.l.b16 %v4906_v5  ;;  %v13561_v36 = vunpack.c.l.b16 %v4907_v60  ;;  %v3730_v27 = vmax.f32 %v3634_v35, 0.0 }
 0x274   :  { %17789 = vst [vmem:[#allocation26_spill] sm:$0xff] %v13555_v42  ;;  %v3731_v30 = vmax.f32 %v3635_v62, 0.0  ;;  %v3732_v7 = vmax.f32 %v3636_v21, 0.0  ;;  %v4172_v40 = vrot.slane %v3725_v8, %v12050_v45  ;;  %v4176_v37 = vrot.slane %v3725_v8, %v12073_v57 }
 0x275   :  { %17790 = vst [vmem:[#allocation25_spill] sm:$0xff] %v13559_v54  ;;  %17791 = vst [vmem:[#allocation27_spill] sm:$0xff] %v13561_v36  ;;  %v4188_v28 = vrot.slane %v3727_v14, %v12050_v45  ;;  %v13566_v23 = vunpack.c.l.b16 %v4908_v32  ;;  %v4196_v10 = vrot.slane %v3728_v16, %v12050_v45  ;;  %v4200_v24 = vrot.slane %v3728_v16, %v12073_v57  ;;  %v3086_v14 = vpop.permute.xlu1 %3085 }
 0x276   :  { %v4915_v26 = vpack.c.bf16 %v4180_v15, %v4180_v15  ;;  %v4204_v5 = vrot.slane %v3729_v56, %v12050_v45  ;;  %v4208_v60 = vrot.slane %v3729_v56, %v12073_v57  ;;  %v4916_v35 = vpack.c.bf16 %v4184_v20, %v4184_v20 }
 0x277   :  { %17792 = vst [vmem:[#allocation29_spill] sm:$0xff] %v13566_v23  ;;  %v4918_v62 = vpack.c.bf16 %v4192_v11, %v4192_v11  ;;  %v4212_v43 = vrot.slane %v3730_v27, %v12050_v45  ;;  %v4216_v33 = vrot.slane %v3730_v27, %v12073_v57  ;;  %v4220_v12 = vrot.slane %v3731_v30, %v12050_v45 }
 0x278   :  { %v4224_v32 = vrot.slane %v3731_v30, %v12073_v57  ;;  %v4228_v21 = vrot.slane %v3732_v7, %v12050_v45  ;;  %v4913_v8 = vpack.c.bf16 %v4172_v40, %v4172_v40  ;;  %v4914_v16 = vpack.c.bf16 %v4176_v37, %v4176_v37  ;;  %v11096_v40 = vld [vmem:[%s17186_s3 + $0x74] ss:$8 sps:$4 sm:$0xff]  }
 0x279   :  { %v4917_v15 = vpack.c.bf16 %v4188_v28, %v4188_v28  ;;  %v13578_v49 = vrot.slane %v3732_v7, %v12073_v57  ;;  %v4919_v56 = vpack.c.bf16 %v4196_v10, %v4196_v10  ;;  %v4920_v20 = vpack.c.bf16 %v4200_v24, %v4200_v24  ;;  %v11098_v24 = vld [vmem:[%s17186_s3 + $0x70] ss:$8 sps:$4 sm:$0xff]   ;;  %7977 = vmatprep.subr.bf16.mxu1 %v11096_v40 }
 0x27a   :  { %v13580_v11 = vunpack.c.l.b16 %v4915_v26  ;;  %v4921_v25 = vpack.c.bf16 %v4204_v5, %v4204_v5  ;;  %v4922_v27 = vpack.c.bf16 %v4208_v60, %v4208_v60  ;;  %v5212_v19 = vunpack.c.l.b16 %v4916_v35  ;;  %7978 = vmatpush1.bf16.msra.mxu1 %v11098_v24 }
 0x27b   :  { %v13582_v41 = vunpack.c.l.b16 %v4918_v62  ;;  %v4923_v30 = vpack.c.bf16 %v4212_v43, %v4212_v43  ;;  %v4924_v51 = vpack.c.bf16 %v4216_v33, %v4216_v33  ;;  %v4925_v23 = vpack.c.bf16 %v4220_v12, %v4220_v12  ;;  %v3167_v62 = vpop.permute.xlu1 %3166  ;;  %v3088_v43 = vpop.permute.xlu0 %3087  ;;  %v11099_v33 = vld [vmem:[%s17186_s3 + $0x64] ss:$8 sps:$4 sm:$0xff]  }
 0x27c   :  { %v4926_v36 = vpack.c.bf16 %v4224_v32, %v4224_v32  ;;  %v4927_v7 = vpack.c.bf16 %v4228_v21, %v4228_v21  ;;  %v5209_v37 = vunpack.c.l.b16 %v4913_v8  ;;  %v5210_v28 = vunpack.c.l.b16 %v4914_v16  ;;  %v11101_v16 = vld [vmem:[%s17186_s3 + $0x60] ss:$8 sps:$4 sm:$0xff]   ;;  %7979 = vmatprep.subr.bf16.mxu1 %v11099_v33 }
 0x27d   :  { %17793 = vst [vmem:[#allocation31_spill] sm:$0xff] %v13582_v41  ;;  %v13587_v10 = vunpack.c.l.b16 %v4917_v15  ;;  %v13592_v26 = vunpack.c.l.b16 %v4919_v56  ;;  %v13594_v5 = vunpack.c.l.b16 %v4920_v20  ;;  %v5373_v60 = vrot.slane %v13580_v11, 7 }
 0x27e   :  { %v5387_v35 = vrot.slane %v5212_v19, 7  ;;  %v13602_v32 = vunpack.c.l.b16 %v4921_v25  ;;  %v13604_v21 = vunpack.c.l.b16 %v4922_v27  ;;  %v5651_v8 = vrot.slane %v13582_v41, 7  ;;  %v11102_v25 = vld [vmem:[%s17186_s3 + $0x54] ss:$8 sps:$4 sm:$0xff]   ;;  %7980 = vmatpush1.bf16.msra.mxu1 %v11101_v16 }
 0x27f   :  { %17794 = vst [vmem:[#allocation30_spill] sm:$0xff] %v13587_v10  ;;  %17795 = vst [vmem:[#allocation34_spill] sm:$0xff] %v13592_v26  ;;  %v13610_v15 = vunpack.c.l.b16 %v4923_v30  ;;  %v13612_v56 = vunpack.c.l.b16 %v4924_v51  ;;  %v13615_v20 = vsel %vm2888_vm9, %v5373_v60, %v5209_v37  ;;  %v13623_v27 = vunpack.c.l.b16 %v4925_v23  ;;  %v11104_v37 = vld [vmem:[%s17186_s3 + $0x50] ss:$8 sps:$4 sm:$0xff]   ;;  %7981 = vmatprep.subr.bf16.mxu1 %v11102_v25 }
 0x280   :  { %17796 = vst [vmem:[#allocation122_spill] sm:$0xff] %v13594_v5  ;;  %17797 = vst [vmem:[#allocation123_spill] sm:$0xff] %v13602_v32  ;;  %v13618_v40 = vsel %vm2888_vm9, %v5387_v35, %v5210_v28  ;;  %v13625_v24 = vunpack.c.l.b16 %v4926_v36  ;;  %v5637_v30 = vrot.slane %v13587_v10, 7  ;;  %v13629_v51 = vsel %vm2888_vm9, %v5651_v8, %v5212_v19 }
 0x281   :  { %17798 = vst [vmem:[#allocation124_spill] sm:$0xff] %v13604_v21  ;;  %17799 = vst [vmem:[#allocation125_spill] sm:$0xff] %v13610_v15  ;;  %v13634_v28 = vunpack.c.l.b16 %v4927_v7  ;;  %v5950_v60 = vrot.slane %v13592_v26, 7  ;;  %v5964_v35 = vrot.slane %v13594_v5, 7  ;;  %v5599_v23 = vrot.slane %v13303_v0, 5 }
 0x282   :  { %17800 = vst [vmem:[#allocation126_spill] sm:$0xff] %v13612_v56  ;;  %17801 = vst [vmem:[#allocation127_spill] sm:$0xff] %v13615_v20  ;;  %v5601_v36 = vrot.slane %v13307_v3, 4  ;;  %v5603_v33 = vrot.slane %v13317_v50, 3  ;;  %v3127_v12 = vsel %vm3119_vm0, %v3084_v38, %v3086_v14  ;;  %v3208_v19 = vsel %vm3200_vm1, %v3086_v14, %v3167_v62  ;;  %7982 = vmatpush1.bf16.msra.mxu1 %v11104_v37 }
 0x283   :  { %17802 = vst [vmem:[#allocation128_spill] sm:$0xff] %v13618_v40  ;;  %17803 = vst [vmem:[#allocation129_spill] sm:$0xff] %v13623_v27  ;;  %v5600_v8 = vsel %vm2892_vm11, %v5599_v23, %v13528_v18  ;;  %v5607_v7 = vrot.slane %v13412_v9, 1  ;;  %v3332_v20 = vcombine.low %v3127_v12, %v3208_v19  ;;  %v5611_v40 = vrot.slane %v13437_v34, 6 }
 0x284   :  { %17804 = vst [vmem:[#allocation130_spill] sm:$0xff] %v13625_v24  ;;  %17805 = vst [vmem:[#allocation131_spill] sm:$0xff] %v13629_v51  ;;  %v3090_v51 = vpop.permute.xlu1 %3089  ;;  %v3169_v24 = vpop.permute.xlu0 %3168  ;;  %v5602_v56 = vsel %vm2894_vm12, %v5601_v36, %v5600_v8  ;;  %v5605_v5 = vrot.slane %v13321_v1, 2  ;;  %v5613_v38 = vrot.slane %v13442_v46, 5  ;;  %v5615_v14 = vrot.slane %v13446_v29, 4  ;;  %v17808_v46 = vld [vmem:[#allocation35_spill] sm:$0xff] }
 0x285   :  { %17806 = vst [vmem:[#allocation132_spill] sm:$0xff] %v13634_v28  ;;  %v5604_v62 = vsel %vm2896_vm13, %v5603_v33, %v5602_v56  ;;  %v3339_v18 = vrot.slane %v3332_v20, %v12066_v63  ;;  %v5612_v12 = vsel %vm2890_vm10, %v5611_v40, %v13511_v58  ;;  %v5617_v16 = vrot.slane %v13451_v61, 3  ;;  %v17807_v33 = vld [vmem:[#allocation32_spill] sm:$0xff] }
 0x286   :  { %v5606_v23 = vsel %vm2898_vm14, %v5605_v5, %v5604_v62  ;;  %v5614_v25 = vsel %vm2892_vm11, %v5613_v38, %v5612_v12  ;;  %v3128_v36 = vsel %vm3119_vm0, %v3088_v43, %v3090_v51  ;;  %v3209_v19 = vsel %vm3200_vm1, %v3090_v51, %v3169_v24  ;;  %v17809_v62 = vld [vmem:[#allocation33_spill] sm:$0xff] }
 0x287   :  { %v5608_v8 = vsel %vm2900_vm15, %v5607_v7, %v5606_v23  ;;  %v3340_v34 = vcombine.high %v3339_v18, %v3339_v18  ;;  %v3471_v56 = vrot.slane %v3339_v18, 1  ;;  %v3637_v20 = vmax.f32 %v17807_v33, %v3339_v18 }
 0x288   :  { %v5780_v29 = vpack.c.b16 %v5608_v8, %v5608_v8  ;;  %v5616_v58 = vsel %vm2894_vm12, %v5615_v14, %v5614_v25  ;;  %v3341_v40 = vcombine.low %v3128_v36, %v3209_v19  ;;  %v3342_v61 = vcombine.high %v3128_v36, %v3209_v19 }
 0x289   :  { %v3638_v5 = vmax.f32 %v17808_v46, %v3471_v56  ;;  %v3639_v38 = vmax.f32 %v17809_v62, %v3340_v34  ;;  %v3733_v12 = vmax.f32 %v3637_v20, 0.0  ;;  %v5619_v43 = vrot.slane %v13461_v52, 2  ;;  %v17814_v62 = vld [vmem:[#allocation42_spill] sm:$0xff]  ;;  %v17818_v46 = vld [vmem:[#allocation36_spill] sm:$0xff] }
 0x28a   :  { %5799 = vrot.lane.b32.xlu1 %v5780_v29, %s11369_s21  ;;  %v5618_v24 = vsel %vm2896_vm13, %v5617_v16, %v5616_v58  ;;  %v5621_v51 = vrot.slane %v13555_v42, 1  ;;  %v3349_v37 = vrot.slane %v3341_v40, %v12066_v63  ;;  %v3356_v7 = vrot.slane %v3342_v61, %v12066_v63  ;;  %v17824_v42 = vld [vmem:[#allocation39_spill] sm:$0xff] }
 0x28b   :  { %v17810_v14 = vpack.c.bf16 %v13578_v49, %v13578_v49  ;;  %v3734_v25 = vmax.f32 %v3638_v5, 0.0  ;;  %v3472_v36 = vrot.slane %v3340_v34, 1  ;;  %v3735_v16 = vmax.f32 %v3639_v38, 0.0 }
 0x28c   :  { %v5620_v19 = vsel %vm2898_vm14, %v5619_v43, %v5618_v24  ;;  %v13682_v8 = vsel %vm2888_vm9, %v5637_v30, %v13580_v11  ;;  %v13686_v49 = vsel %vm2888_vm9, %v5950_v60, %v13587_v10  ;;  %v4236_v61 = vrot.slane %v3733_v12, %v12050_v45  ;;  %v11105_v11 = vld [vmem:[%s17186_s3 + $0x44] ss:$8 sps:$4 sm:$0xff]   ;;  %v11107_v30 = vld [vmem:[%s17186_s3 + $0x40] ss:$8 sps:$4 sm:$0xff]  }
 0x28d   :  { %v13674_v18 = vunpack.c.l.b16 %v17810_v14  ;;  %17812 = vst [vmem:[#allocation35_spill] sm:$0xff] %v13686_v49  ;;  %v3357_v56 = vcombine.high %v3349_v37, %v3349_v37  ;;  %v13691_v33 = vsel %vm2888_vm9, %v5964_v35, %v13582_v41  ;;  %v5622_v20 = vsel %vm2900_vm15, %v5621_v51, %v5620_v19  ;;  %7983 = vmatprep.subr.bf16.mxu1 %v11105_v11  ;;  %v17821_v41 = vld [vmem:[#allocation41_spill] sm:$0xff]  ;;  %v17823_v49 = vld [vmem:[#allocation43_spill] sm:$0xff] }
 0x28e   :  { %17813 = vst [vmem:[#allocation33_spill] sm:$0xff] %v13691_v33  ;;  %v3358_v58 = vcombine.high %v3356_v7, %v3356_v7  ;;  %v4240_v60 = vrot.slane %v3733_v12, %v12073_v57  ;;  %v4244_v40 = vrot.slane %v3734_v25, %v12050_v45  ;;  %v5781_v5 = vpack.c.b16 %v5622_v20, %v5622_v20  ;;  %v17822_v33 = vld [vmem:[#allocation38_spill] sm:$0xff] }
 0x28f   :  { %17811 = vst [vmem:[#allocation32_spill] sm:$0xff] %v13674_v18  ;;  %v13705_v38 = vmax.f32 %v17814_v62, %v3472_v36  ;;  %v4248_v43 = vrot.slane %v3734_v25, %v12073_v57  ;;  %v13709_v24 = vrot.slane %v3735_v16, %v12050_v45  ;;  %v3473_v51 = vrot.slane %v3349_v37, 1  ;;  %7984 = vmatpush1.bf16.msra.mxu1 %v11107_v30  ;;  %v17819_v62 = vld [vmem:[#allocation40_spill] sm:$0xff]  ;;  %v17820_v25 = vld [vmem:[#allocation37_spill] sm:$0xff] }
 0x290   :  { %v13712_v14 = vrot.slane %v3735_v16, %v12073_v57  ;;  %v4929_v19 = vpack.c.bf16 %v4236_v61, %v4236_v61  ;;  %5801 = vrot.lane.b32.xlu0 %v5781_v5, %s11369_s21  ;;  %v3474_v12 = vrot.slane %v3357_v56, 1  ;;  %v3475_v20 = vrot.slane %v3356_v7, 1 }
 0x291   :  { %17815 = vst [vmem:[#allocation42_spill] sm:$0xff] %v13705_v38  ;;  %17816 = vst [vmem:[#allocation133_spill] sm:$0xff] %v13709_v24  ;;  %v3476_v34 = vrot.slane %v3358_v58, 1  ;;  %v3641_v36 = vmax.f32 %v17818_v46, %v3349_v37  ;;  %v3642_v23 = vmax.f32 %v17819_v62, %v3473_v51  ;;  %v3643_v29 = vmax.f32 %v17820_v25, %v3357_v56  ;;  %v17825_v37 = vld [vmem:[#allocation45_spill] sm:$0xff] }
 0x292   :  { %17817 = vst [vmem:[#allocation134_spill] sm:$0xff] %v13712_v14  ;;  %v4930_v35 = vpack.c.bf16 %v4240_v60, %v4240_v60  ;;  %v4931_v10 = vpack.c.bf16 %v4244_v40, %v4244_v40  ;;  %v3644_v11 = vmax.f32 %v17821_v41, %v3474_v12  ;;  %v3645_v16 = vmax.f32 %v17822_v33, %v3356_v7  ;;  %v3094_v14 = vpop.permute.xlu1 %3093 }
 0x293   :  { %v3646_v61 = vmax.f32 %v17823_v49, %v3475_v20  ;;  %v3647_v5 = vmax.f32 %v17824_v42, %v3358_v58  ;;  %v3738_v52 = vmax.f32 %v3642_v23, 0.0  ;;  %v3739_v18 = vmax.f32 %v3643_v29, 0.0  ;;  %v11108_v42 = vld [vmem:[%s17186_s3 + $0x34] ss:$8 sps:$4 sm:$0xff]   ;;  %v11110_v23 = vld [vmem:[%s17186_s3 + $0x30] ss:$8 sps:$4 sm:$0xff]  }
 0x294   :  { %v4932_v21 = vpack.c.bf16 %v4248_v43, %v4248_v43  ;;  %v3648_v46 = vmax.f32 %v17825_v37, %v3476_v34  ;;  %v3737_v51 = vmax.f32 %v3641_v36, 0.0  ;;  %v3740_v60 = vmax.f32 %v3644_v11, 0.0  ;;  %7985 = vmatprep.subr.bf16.mxu1 %v11108_v42 }
 0x295   :  { %v4276_v7 = vrot.slane %v3738_v52, %v12050_v45  ;;  %v13735_v29 = vunpack.c.l.b16 %v4929_v19  ;;  %v3741_v49 = vmax.f32 %v3645_v16, 0.0  ;;  %v4280_v33 = vrot.slane %v3738_v52, %v12073_v57  ;;  %7986 = vmatpush1.bf16.msra.mxu1 %v11110_v23  ;;  %v3092_v23 = vpop.permute.xlu0 %3091 }
 0x296   :  { %v4288_v34 = vrot.slane %v3739_v18, %v12073_v57  ;;  %v13739_v58 = vunpack.c.l.b16 %v4930_v35  ;;  %v13741_v40 = vunpack.c.l.b16 %v4931_v10  ;;  %v3742_v43 = vmax.f32 %v3646_v61, 0.0 }
 0x297   :  { %17826 = vst [vmem:[#allocation36_spill] sm:$0xff] %v13735_v29  ;;  %v3743_v12 = vmax.f32 %v3647_v5, 0.0  ;;  %v13743_v20 = vunpack.c.l.b16 %v4932_v21  ;;  %v3744_v36 = vmax.f32 %v3648_v46, 0.0  ;;  %v4268_v62 = vrot.slane %v3737_v51, %v12050_v45 }
 0x298   :  { %17827 = vst [vmem:[#allocation40_spill] sm:$0xff] %v13739_v58  ;;  %17828 = vst [vmem:[#allocation37_spill] sm:$0xff] %v13741_v40  ;;  %v4284_v19 = vrot.slane %v3739_v18, %v12050_v45  ;;  %v4272_v25 = vrot.slane %v3737_v51, %v12073_v57  ;;  %v4292_v52 = vrot.slane %v3740_v60, %v12050_v45  ;;  %v5641_v54 = vrot.slane %v13602_v32, 5  ;;  %v17866_v32 = vld [vmem:[#allocation58_spill] sm:$0xff] }
 0x299   :  { %17829 = vst [vmem:[#allocation41_spill] sm:$0xff] %v13743_v20  ;;  %v4296_v35 = vrot.slane %v3740_v60, %v12073_v57  ;;  %v4939_v11 = vpack.c.bf16 %v4276_v7, %v4276_v7  ;;  %v4300_v10 = vrot.slane %v3741_v49, %v12050_v45  ;;  %v4304_v16 = vrot.slane %v3741_v49, %v12073_v57 }
 0x29a   :  { %v4940_v61 = vpack.c.bf16 %v4280_v33, %v4280_v33  ;;  %v4942_v21 = vpack.c.bf16 %v4288_v34, %v4288_v34  ;;  %v4308_v5 = vrot.slane %v3742_v43, %v12050_v45  ;;  %v4312_v37 = vrot.slane %v3742_v43, %v12073_v57 }
 0x29b   :  { %v4316_v18 = vrot.slane %v3743_v12, %v12050_v45  ;;  %v4320_v46 = vrot.slane %v3743_v12, %v12073_v57  ;;  %v4324_v51 = vrot.slane %v3744_v36, %v12050_v45  ;;  %v13758_v42 = vrot.slane %v3744_v36, %v12073_v57  ;;  %v11111_v12 = vld [vmem:[%s17186_s3 + $0x24] ss:$8 sps:$4 sm:$0xff]   ;;  %v11113_v36 = vld [vmem:[%s17186_s3 + $0x20] ss:$8 sps:$4 sm:$0xff]  }
 0x29c   :  { %v4937_v60 = vpack.c.bf16 %v4268_v62, %v4268_v62  ;;  %v4941_v7 = vpack.c.bf16 %v4284_v19, %v4284_v19  ;;  %v4938_v30 = vpack.c.bf16 %v4272_v25, %v4272_v25  ;;  %v4943_v49 = vpack.c.bf16 %v4292_v52, %v4292_v52  ;;  %7987 = vmatprep.subr.bf16.mxu1 %v11111_v12 }
 0x29d   :  { %v4944_v33 = vpack.c.bf16 %v4296_v35, %v4296_v35  ;;  %v13760_v34 = vunpack.c.l.b16 %v4939_v11  ;;  %v4945_v41 = vpack.c.bf16 %v4300_v10, %v4300_v10  ;;  %v4946_v56 = vpack.c.bf16 %v4304_v16, %v4304_v16  ;;  %7988 = vmatpush1.bf16.msra.mxu1 %v11113_v36 }
 0x29e   :  { %v5228_v43 = vunpack.c.l.b16 %v4940_v61  ;;  %v13762_v38 = vunpack.c.l.b16 %v4942_v21  ;;  %v4947_v62 = vpack.c.bf16 %v4308_v5, %v4308_v5  ;;  %v4948_v19 = vpack.c.bf16 %v4312_v37, %v4312_v37 }
 0x29f   :  { %v4949_v25 = vpack.c.bf16 %v4316_v18, %v4316_v18  ;;  %v4950_v52 = vpack.c.bf16 %v4320_v46, %v4320_v46  ;;  %v4951_v35 = vpack.c.bf16 %v4324_v51, %v4324_v51  ;;  %v5225_v10 = vunpack.c.l.b16 %v4937_v60  ;;  %v3171_v46 = vpop.permute.xlu0 %3170  ;;  %v3098_v51 = vpop.permute.xlu1 %3097 }
 0x2a0   :  { %17830 = vst [vmem:[#allocation38_spill] sm:$0xff] %v13762_v38  ;;  %v13772_v16 = vunpack.c.l.b16 %v4941_v7  ;;  %v5226_v61 = vunpack.c.l.b16 %v4938_v30  ;;  %v13774_v21 = vunpack.c.l.b16 %v4943_v49  ;;  %v5401_v24 = vrot.slane %v13760_v34, 7  ;;  %v11114_v30 = vld [vmem:[%s17186_s3 + $0x14] ss:$8 sps:$4 sm:$0xff]  }
 0x2a1   :  { %v5415_v20 = vrot.slane %v5228_v43, 7  ;;  %v13777_v40 = vunpack.c.l.b16 %v4944_v33  ;;  %v13779_v5 = vunpack.c.l.b16 %v4945_v41  ;;  %v13781_v37 = vunpack.c.l.b16 %v4946_v56  ;;  %v11116_v56 = vld [vmem:[%s17186_s3 + $0x10] ss:$8 sps:$4 sm:$0xff]   ;;  %v11117_v33 = vld [vmem:[%s17186_s3 + $0x4] ss:$8 sps:$4 sm:$0xff]   ;;  %7989 = vmatprep.subr.bf16.mxu1 %v11114_v30 }
 0x2a2   :  { %17831 = vst [vmem:[#allocation43_spill] sm:$0xff] %v13772_v16  ;;  %17832 = vst [vmem:[#allocation39_spill] sm:$0xff] %v13774_v21  ;;  %v5679_v18 = vrot.slane %v13762_v38, 7  ;;  %v13787_v60 = vunpack.c.l.b16 %v4947_v62  ;;  %v13789_v7 = vunpack.c.l.b16 %v4948_v19  ;;  %v13792_v49 = vsel %vm2888_vm9, %v5401_v24, %v5225_v10  ;;  %7990 = vmatpush1.bf16.msra.mxu1 %v11116_v56  ;;  %v17845_v30 = vld [vmem:[#allocation6_spill] sm:$0xff]  ;;  %v17846_v19 = vld [vmem:[#allocation7_spill] sm:$0xff] }
 0x2a3   :  { %17833 = vst [vmem:[#allocation45_spill] sm:$0xff] %v13777_v40  ;;  %17834 = vst [vmem:[#allocation135_spill] sm:$0xff] %v13779_v5  ;;  %v13795_v41 = vsel %vm2888_vm9, %v5415_v20, %v5226_v61  ;;  %v13803_v12 = vunpack.c.l.b16 %v4949_v25  ;;  %v13805_v36 = vunpack.c.l.b16 %v4950_v52  ;;  %v13811_v20 = vunpack.c.l.b16 %v4951_v35  ;;  %v11119_v52 = vld [vmem:[%s17186_s3] ss:$8 sps:$4 sm:$0xff]   ;;  %7991 = vmatprep.subr.bf16.mxu1 %v11117_v33  ;;  %v3173_v33 = vpop.permute.xlu1 %3172 }
 0x2a4   :  { %17835 = vst [vmem:[#allocation136_spill] sm:$0xff] %v13781_v37  ;;  %17836 = vst [vmem:[#allocation137_spill] sm:$0xff] %v13787_v60  ;;  %v13809_v24 = vsel %vm2888_vm9, %v5679_v18, %v5228_v43  ;;  %v17844_v10 = vrot.slane %v13129_v4, 6  ;;  %v5870_v25 = vrot.slane %v13133_v13, 5  ;;  %v11120_v43 = vld [vmem:[%s17186_s3 + $0xf4] ss:$8 sps:$4 sm:$0xff]  }
 0x2a5   :  { %17837 = vst [vmem:[#allocation138_spill] sm:$0xff] %v13789_v7  ;;  %17838 = vst [vmem:[#allocation139_spill] sm:$0xff] %v13792_v49  ;;  %v5872_v35 = vrot.slane %v13137_v39, 4  ;;  %v5874_v18 = vrot.slane %v13147_v47, 3  ;;  %v5876_v62 = vrot.slane %v17845_v30, 2  ;;  %v5878_v11 = vrot.slane %v17846_v19, 1 }
 0x2a6   :  { %17839 = vst [vmem:[#allocation140_spill] sm:$0xff] %v13795_v41  ;;  %17840 = vst [vmem:[#allocation141_spill] sm:$0xff] %v13803_v12  ;;  %v5869_v61 = vsel %vm2890_vm10, %v17844_v10, %v13210_v17  ;;  %v3096_v17 = vpop.permute.xlu0 %3095  ;;  %v3129_v10 = vsel %vm3119_vm0, %v3092_v23, %v3094_v14  ;;  %v3210_v49 = vsel %vm3200_vm1, %v3094_v14, %v3171_v46  ;;  %v5639_v41 = vrot.slane %v13592_v26, 6  ;;  %v11123_v23 = vld [vmem:[%s17186_s3 + $0xe4] ss:$8 sps:$4 sm:$0xff]  }
 0x2a7   :  { %17841 = vst [vmem:[#allocation142_spill] sm:$0xff] %v13805_v36  ;;  %17842 = vst [vmem:[#allocation143_spill] sm:$0xff] %v13809_v24  ;;  %v5871_v56 = vsel %vm2892_vm11, %v5870_v25, %v5869_v61  ;;  %v11122_v24 = vld [vmem:[%s17186_s3 + $0xf0] ss:$8 sps:$4 sm:$0xff]   ;;  %v5665_v36 = vrot.slane %v13772_v16, 7  ;;  %v3359_v58 = vcombine.low %v3129_v10, %v3210_v49  ;;  %v3130_v46 = vsel %vm3119_vm0, %v3096_v17, %v3098_v51  ;;  %v17862_v37 = vld [vmem:[#allocation51_spill] sm:$0xff] }
 0x2a8   :  { %17843 = vst [vmem:[#allocation144_spill] sm:$0xff] %v13811_v20  ;;  %v5873_v7 = vsel %vm2894_vm12, %v5872_v35, %v5871_v56  ;;  %v5640_v61 = vsel %vm2890_vm10, %v5639_v41, %v13682_v8  ;;  %v5643_v25 = vrot.slane %v13610_v15, 4  ;;  %7992 = vmatpush1.bf16.msra.mxu1 %v11119_v52  ;;  %v5645_v10 = vrot.slane %v13623_v27, 3  ;;  %v11125_v41 = vld [vmem:[%s17186_s3 + $0xe0] ss:$8 sps:$4 sm:$0xff]   ;;  %v17847_v17 = vld [vmem:[#allocation44_spill] sm:$0xff] }
 0x2a9   :  { %v5875_v14 = vsel %vm2896_vm13, %v5874_v18, %v5873_v7  ;;  %v3366_v49 = vrot.slane %v3359_v58, %v12066_v63  ;;  %v5642_v56 = vsel %vm2892_vm11, %v5641_v54, %v5640_v61  ;;  %7993 = vmatprep.subr.bf16.mxu1 %v11120_v43  ;;  %v5647_v18 = vrot.slane %v13634_v28, 2  ;;  %v11126_v43 = vld [vmem:[%s17186_s3 + $0xd4] ss:$8 sps:$4 sm:$0xff]   ;;  %v17864_v28 = vld [vmem:[#allocation55_spill] sm:$0xff] }
 0x2aa   :  { %v5877_v35 = vsel %vm2898_vm14, %v5876_v62, %v5875_v14  ;;  %v5644_v7 = vsel %vm2894_vm12, %v5643_v25, %v5642_v56  ;;  %v3211_v8 = vsel %vm3200_vm1, %v3098_v51, %v3173_v33  ;;  %v5649_v14 = vrot.slane %v13735_v29, 1 }
 0x2ab   :  { %v5879_v26 = vsel %vm2900_vm15, %v5878_v11, %v5877_v35  ;;  %v3367_v52 = vcombine.high %v3366_v49, %v3366_v49  ;;  %v3477_v58 = vrot.slane %v3366_v49, 1  ;;  %v3649_v54 = vmax.f32 %v17847_v17, %v3366_v49  ;;  %v17849_v35 = vld [vmem:[#allocation47_spill] sm:$0xff] }
 0x2ac   :  { %v6090_v62 = vpack.c.b16 %v5879_v26, %v5879_v26  ;;  %v5646_v11 = vsel %vm2896_vm13, %v5645_v10, %v5644_v7  ;;  %v3368_v61 = vcombine.low %v3130_v46, %v3211_v8  ;;  %v3369_v25 = vcombine.high %v3130_v46, %v3211_v8  ;;  %7994 = vmatpush2.bf16.msra.mxu1 %v11122_v24  ;;  %v17848_v26 = vld [vmem:[#allocation46_spill] sm:$0xff]  ;;  %v11128_v24 = vld [vmem:[%s17186_s3 + $0xd0] ss:$8 sps:$4 sm:$0xff]  }
 0x2ad   :  { %v5978_v51 = vrot.slane %v13774_v21, 7  ;;  %v3650_v33 = vmax.f32 %v17848_v26, %v3477_v58  ;;  %v3651_v49 = vmax.f32 %v17849_v35, %v3367_v52  ;;  %v3745_v56 = vmax.f32 %v3649_v54, 0.0  ;;  %7995 = vmatprep.subr.bf16.mxu1 %v11123_v23  ;;  %v17860_v23 = vld [vmem:[#allocation50_spill] sm:$0xff] }
 0x2ae   :  { %6106 = vrot.lane.b32.xlu0 %v6090_v62, %s11376_s0  ;;  %v5992_v17 = vrot.slane %v13777_v40, 7  ;;  %v5648_v10 = vsel %vm2898_vm14, %v5647_v18, %v5646_v11  ;;  %v3376_v7 = vrot.slane %v3368_v61, %v12066_v63  ;;  %v13872_v46 = vrot.slane %v3369_v25, %v12066_v63  ;;  %v11129_v18 = vld [vmem:[%s17186_s3 + $0xc4] ss:$8 sps:$4 sm:$0xff]  }
 0x2af   :  { %v17850_v8 = vpack.c.bf16 %v13758_v42, %v13758_v42  ;;  %v3746_v58 = vmax.f32 %v3650_v33, 0.0  ;;  %v5896_v54 = vrot.slane %v13301_v55, 6  ;;  %v3478_v11 = vrot.slane %v3367_v52, 1 }
 0x2b0   :  { %v3747_v61 = vmax.f32 %v3651_v49, 0.0  ;;  %v5650_v25 = vsel %vm2900_vm15, %v5649_v14, %v5648_v10  ;;  %v3384_v26 = vcombine.high %v3376_v7, %v3376_v7  ;;  %7996 = vmatpush2.bf16.msra.mxu1 %v11125_v41  ;;  %v13890_v42 = vsel %vm2888_vm9, %v5665_v36, %v13760_v34  ;;  %v17854_v49 = vld [vmem:[#allocation8_spill] sm:$0xff]  ;;  %v11131_v36 = vld [vmem:[%s17186_s3 + $0xc0] ss:$8 sps:$4 sm:$0xff]  }
 0x2b1   :  { %v13880_v62 = vunpack.c.l.b16 %v17850_v8  ;;  %v13894_v35 = vsel %vm2888_vm9, %v5978_v51, %v13772_v16  ;;  %v4332_v33 = vrot.slane %v3745_v56, %v12050_v45  ;;  %v3385_v8 = vcombine.high %v13872_v46, %v13872_v46  ;;  %7997 = vmatprep.subr.bf16.mxu1 %v11126_v43 }
 0x2b2   :  { %17852 = vst [vmem:[#allocation46_spill] sm:$0xff] %v13894_v35  ;;  %v13901_v52 = vsel %vm2888_vm9, %v5992_v17, %v13762_v38  ;;  %v5783_v14 = vpack.c.b16 %v5650_v25, %v5650_v25  ;;  %v13906_v34 = vsel %vm2890_vm10, %v5896_v54, %v17854_v49  ;;  %v4336_v51 = vrot.slane %v3745_v56, %v12073_v57  ;;  %v17855_v17 = vld [vmem:[#allocation52_spill] sm:$0xff] }
 0x2b3   :  { %17851 = vst [vmem:[#allocation44_spill] sm:$0xff] %v13880_v62  ;;  %17853 = vst [vmem:[#allocation47_spill] sm:$0xff] %v13901_v52  ;;  %v4340_v10 = vrot.slane %v3746_v58, %v12050_v45  ;;  %v3479_v43 = vrot.slane %v3376_v7, 1  ;;  %v13915_v16 = vmax.f32 %v17855_v17, %v3478_v11  ;;  %v4344_v25 = vrot.slane %v3746_v58, %v12073_v57  ;;  %v11132_v11 = vld [vmem:[%s17186_s3 + $0xb4] ss:$8 sps:$4 sm:$0xff]  }
 0x2b4   :  { %v13919_v41 = vrot.slane %v3747_v61, %v12050_v45  ;;  %5805 = vrot.lane.b32.xlu1 %v5783_v14, %s11369_s21  ;;  %v3480_v54 = vrot.slane %v3384_v26, 1  ;;  %7998 = vmatpush2.bf16.msra.mxu1 %v11128_v24  ;;  %v13923_v49 = vrot.slane %v3747_v61, %v12073_v57  ;;  %v4953_v56 = vpack.c.bf16 %v4332_v33, %v4332_v33  ;;  %v17859_v58 = vld [vmem:[#allocation48_spill] sm:$0xff]  ;;  %v17861_v62 = vld [vmem:[#allocation49_spill] sm:$0xff] }
 0x2b5   :  { %17856 = vst [vmem:[#allocation8_spill] sm:$0xff] %v13915_v16  ;;  %v3481_v38 = vrot.slane %v13872_v46, 1  ;;  %v3482_v52 = vrot.slane %v3385_v8, 1  ;;  %7999 = vmatprep.subr.bf16.mxu1 %v11129_v18  ;;  %v3653_v17 = vmax.f32 %v17859_v58, %v3376_v7  ;;  %v3654_v35 = vmax.f32 %v17860_v23, %v3479_v43  ;;  %v17863_v33 = vld [vmem:[#allocation53_spill] sm:$0xff]  ;;  %v17865_v18 = vld [vmem:[#allocation54_spill] sm:$0xff] }
 0x2b6   :  { %17857 = vst [vmem:[#allocation52_spill] sm:$0xff] %v13919_v41  ;;  %17858 = vst [vmem:[#allocation145_spill] sm:$0xff] %v13923_v49  ;;  %v3655_v14 = vmax.f32 %v17861_v62, %v3384_v26  ;;  %v3656_v24 = vmax.f32 %v17862_v37, %v3480_v54  ;;  %v4954_v40 = vpack.c.bf16 %v4336_v51, %v4336_v51  ;;  %v11134_v7 = vld [vmem:[%s17186_s3 + $0xb0] ss:$8 sps:$4 sm:$0xff]  }
 0x2b7   :  { %v4955_v61 = vpack.c.bf16 %v4340_v10, %v4340_v10  ;;  %v3657_v29 = vmax.f32 %v17863_v33, %v13872_v46  ;;  %v3658_v27 = vmax.f32 %v17864_v28, %v3481_v38  ;;  %v3659_v15 = vmax.f32 %v17865_v18, %v3385_v8  ;;  %v11135_v28 = vld [vmem:[%s17186_s3 + $0xa4] ss:$8 sps:$4 sm:$0xff]  }
 0x2b8   :  { %v3660_v55 = vmax.f32 %v17866_v32, %v3482_v52  ;;  %v3750_v19 = vmax.f32 %v3654_v35, 0.0  ;;  %v3751_v30 = vmax.f32 %v3655_v14, 0.0  ;;  %8000 = vmatpush2.bf16.msra.mxu1 %v11131_v36  ;;  %v4956_v62 = vpack.c.bf16 %v4344_v25, %v4344_v25 }
 0x2b9   :  { %v3749_v46 = vmax.f32 %v3653_v17, 0.0  ;;  %8001 = vmatprep.subr.bf16.mxu1 %v11132_v11  ;;  %v3752_v38 = vmax.f32 %v3656_v24, 0.0  ;;  %v13951_v8 = vunpack.c.l.b16 %v4953_v56  ;;  %v3753_v52 = vmax.f32 %v3657_v29, 0.0  ;;  %v11137_v11 = vld [vmem:[%s17186_s3 + $0xa0] ss:$8 sps:$4 sm:$0xff]  }
 0x2ba   :  { %v4372_v26 = vrot.slane %v3750_v19, %v12050_v45  ;;  %v4376_v35 = vrot.slane %v3750_v19, %v12073_v57  ;;  %v3754_v36 = vmax.f32 %v3658_v27, 0.0  ;;  %v4384_v51 = vrot.slane %v3751_v30, %v12073_v57 }
 0x2bb   :  { %17867 = vst [vmem:[#allocation48_spill] sm:$0xff] %v13951_v8  ;;  %v13954_v10 = vunpack.c.l.b16 %v4954_v40  ;;  %v13956_v43 = vunpack.c.l.b16 %v4955_v61  ;;  %v3755_v25 = vmax.f32 %v3659_v15, 0.0  ;;  %v3756_v54 = vmax.f32 %v3660_v55, 0.0  ;;  %v11138_v40 = vld [vmem:[%s17186_s3 + $0x94] ss:$8 sps:$4 sm:$0xff]  }
 0x2bc   :  { %8002 = vmatpush2.bf16.msra.mxu1 %v11134_v7  ;;  %v13961_v58 = vunpack.c.l.b16 %v4956_v62  ;;  %v4364_v19 = vrot.slane %v3749_v46, %v12050_v45  ;;  %v4368_v29 = vrot.slane %v3749_v46, %v12073_v57  ;;  %v4380_v27 = vrot.slane %v3751_v30, %v12050_v45  ;;  %v3102_v46 = vpop.permute.xlu1 %3101 }
 0x2bd   :  { %17868 = vst [vmem:[#allocation50_spill] sm:$0xff] %v13954_v10  ;;  %17869 = vst [vmem:[#allocation49_spill] sm:$0xff] %v13956_v43  ;;  %8003 = vmatprep.subr.bf16.mxu1 %v11135_v28  ;;  %v4388_v55 = vrot.slane %v3752_v38, %v12050_v45  ;;  %v4392_v15 = vrot.slane %v3752_v38, %v12073_v57  ;;  %v4963_v56 = vpack.c.bf16 %v4372_v26, %v4372_v26 }
 0x2be   :  { %17870 = vst [vmem:[#allocation51_spill] sm:$0xff] %v13961_v58  ;;  %v4964_v17 = vpack.c.bf16 %v4376_v35, %v4376_v35  ;;  %v4396_v14 = vrot.slane %v3753_v52, %v12050_v45  ;;  %v4400_v24 = vrot.slane %v3753_v52, %v12073_v57  ;;  %v4404_v61 = vrot.slane %v3754_v36, %v12050_v45 }
 0x2bf   :  { %v4966_v33 = vpack.c.bf16 %v4384_v51, %v4384_v51  ;;  %v4408_v30 = vrot.slane %v3754_v36, %v12073_v57  ;;  %v4412_v18 = vrot.slane %v3755_v25, %v12050_v45  ;;  %v4416_v7 = vrot.slane %v3755_v25, %v12073_v57  ;;  %v3100_v36 = vpop.permute.xlu0 %3099  ;;  %v11140_v25 = vld [vmem:[%s17186_s3 + $0x90] ss:$8 sps:$4 sm:$0xff]  }
 0x2c0   :  { %v4420_v62 = vrot.slane %v3756_v54, %v12050_v45  ;;  %8004 = vmatpush2.bf16.msra.mxu1 %v11137_v11  ;;  %v4424_v28 = vrot.slane %v3756_v54, %v12073_v57  ;;  %v4961_v38 = vpack.c.bf16 %v4364_v19, %v4364_v19  ;;  %v4962_v26 = vpack.c.bf16 %v4368_v29, %v4368_v29  ;;  %v11141_v11 = vld [vmem:[%s17186_s3 + $0x84] ss:$8 sps:$4 sm:$0xff]  }
 0x2c1   :  { %v4965_v35 = vpack.c.bf16 %v4380_v27, %v4380_v27  ;;  %8005 = vmatprep.subr.bf16.mxu1 %v11138_v40  ;;  %v4967_v52 = vpack.c.bf16 %v4388_v55, %v4388_v55  ;;  %v4968_v37 = vpack.c.bf16 %v4392_v15, %v4392_v15  ;;  %v13979_v32 = vunpack.c.l.b16 %v4963_v56 }
 0x2c2   :  { %v5244_v51 = vunpack.c.l.b16 %v4964_v17  ;;  %v4969_v23 = vpack.c.bf16 %v4396_v14, %v4396_v14  ;;  %v4970_v54 = vpack.c.bf16 %v4400_v24, %v4400_v24  ;;  %v4971_v19 = vpack.c.bf16 %v4404_v61, %v4404_v61  ;;  %v3175_v61 = vpop.permute.xlu1 %3174 }
 0x2c3   :  { %v13987_v29 = vunpack.c.l.b16 %v4966_v33  ;;  %v4972_v27 = vpack.c.bf16 %v4408_v30, %v4408_v30  ;;  %v4973_v40 = vpack.c.bf16 %v4412_v18, %v4412_v18  ;;  %v4974_v55 = vpack.c.bf16 %v4416_v7, %v4416_v7  ;;  %v3104_v33 = vpop.permute.xlu0 %3103 }
 0x2c4   :  { %v4975_v15 = vpack.c.bf16 %v4420_v62, %v4420_v62  ;;  %8006 = vmatpush2.bf16.msra.mxu1 %v11140_v25  ;;  %v4976_v56 = vpack.c.bf16 %v4424_v28, %v4424_v28  ;;  %v5241_v17 = vunpack.c.l.b16 %v4961_v38  ;;  %v5242_v16 = vunpack.c.l.b16 %v4962_v26 }
 0x2c5   :  { %17871 = vst [vmem:[#allocation53_spill] sm:$0xff] %v13987_v29  ;;  %v13989_v49 = vunpack.c.l.b16 %v4965_v35  ;;  %8007 = vmatprep.subr.bf16.mxu1 %v11141_v11  ;;  %v13991_v41 = vunpack.c.l.b16 %v4967_v52  ;;  %v13993_v58 = vunpack.c.l.b16 %v4968_v37  ;;  %v5429_v14 = vrot.slane %v13979_v32, 7  ;;  %v11143_v11 = vld [vmem:[%s17186_s3 + $0x80] ss:$8 sps:$4 sm:$0xff]  }
 0x2c6   :  { %v5443_v24 = vrot.slane %v5244_v51, 7  ;;  %v13996_v30 = vunpack.c.l.b16 %v4969_v23  ;;  %v13998_v18 = vunpack.c.l.b16 %v4970_v54  ;;  %v14000_v7 = vunpack.c.l.b16 %v4971_v19 }
 0x2c7   :  { %17872 = vst [vmem:[#allocation55_spill] sm:$0xff] %v13989_v49  ;;  %17873 = vst [vmem:[#allocation54_spill] sm:$0xff] %v13991_v41  ;;  %v5707_v62 = vrot.slane %v13987_v29, 7  ;;  %v14003_v28 = vunpack.c.l.b16 %v4972_v27  ;;  %v14005_v38 = vunpack.c.l.b16 %v4973_v40  ;;  %v14008_v37 = vsel %vm2888_vm9, %v5429_v14, %v5241_v17 }
 0x2c8   :  { %17874 = vst [vmem:[#allocation58_spill] sm:$0xff] %v13993_v58  ;;  %17875 = vst [vmem:[#allocation146_spill] sm:$0xff] %v13996_v30  ;;  %v14011_v26 = vsel %vm2888_vm9, %v5443_v24, %v5242_v16  ;;  %v14013_v35 = vunpack.c.l.b16 %v4974_v55  ;;  %v14015_v23 = vunpack.c.l.b16 %v4975_v15  ;;  %v14017_v52 = vunpack.c.l.b16 %v4976_v56  ;;  %v17887_v55 = vld [vmem:[#allocation14_spill] sm:$0xff]  ;;  %8008 = vmatpush2.bf16.msra.mxu1 %v11143_v11 }
 0x2c9   :  { %17876 = vst [vmem:[#allocation147_spill] sm:$0xff] %v13998_v18  ;;  %17877 = vst [vmem:[#allocation148_spill] sm:$0xff] %v14000_v7  ;;  %v14020_v25 = vsel %vm2888_vm9, %v5707_v62, %v5244_v51  ;;  %v17886_v54 = vrot.slane %v13305_v31, 5  ;;  %v5900_v16 = vrot.slane %v13309_v6, 4  ;;  %v5902_v27 = vrot.slane %v13319_v22, 3 }
 0x2ca   :  { %17878 = vst [vmem:[#allocation149_spill] sm:$0xff] %v14003_v28  ;;  %17879 = vst [vmem:[#allocation150_spill] sm:$0xff] %v14005_v38  ;;  %v5904_v40 = vrot.slane %v13409_v59, 2  ;;  %v5906_v15 = vrot.slane %v17887_v55, 1  ;;  %v3131_v51 = vsel %vm3119_vm0, %v3100_v36, %v3102_v46  ;;  %v3212_v56 = vsel %vm3200_vm1, %v3102_v46, %v3175_v61  ;;  %v17905_v28 = vld [vmem:[#allocation68_spill] sm:$0xff] }
 0x2cb   :  { %17880 = vst [vmem:[#allocation151_spill] sm:$0xff] %v14008_v37  ;;  %17881 = vst [vmem:[#allocation152_spill] sm:$0xff] %v14011_v26  ;;  %v5899_v19 = vsel %vm2892_vm11, %v17886_v54, %v13906_v34  ;;  %v5667_v17 = vrot.slane %v13774_v21, 6  ;;  %v5693_v14 = vrot.slane %v13989_v49, 7  ;;  %v3386_v34 = vcombine.low %v3131_v51, %v3212_v56  ;;  %v3106_v54 = vpop.permute.xlu1 %3105  ;;  %v3177_v37 = vpop.permute.xlu0 %3176 }
 0x2cc   :  { %17882 = vst [vmem:[#allocation153_spill] sm:$0xff] %v14013_v35  ;;  %17883 = vst [vmem:[#allocation154_spill] sm:$0xff] %v14015_v23  ;;  %v5901_v24 = vsel %vm2894_vm12, %v5900_v16, %v5899_v19  ;;  %v5669_v62 = vrot.slane %v13779_v5, 5  ;;  %v5671_v36 = vrot.slane %v13787_v60, 4  ;;  %v5673_v46 = vrot.slane %v13803_v12, 3  ;;  %v17888_v12 = vld [vmem:[#allocation56_spill] sm:$0xff] }
 0x2cd   :  { %17884 = vst [vmem:[#allocation155_spill] sm:$0xff] %v14017_v52  ;;  %17885 = vst [vmem:[#allocation156_spill] sm:$0xff] %v14020_v25  ;;  %v5903_v26 = vsel %vm2896_vm13, %v5902_v27, %v5901_v24  ;;  %v5668_v43 = vsel %vm2890_vm10, %v5667_v17, %v13890_v42  ;;  %v3393_v11 = vrot.slane %v3386_v34, %v12066_v63  ;;  %v5675_v16 = vrot.slane %v13811_v20, 2  ;;  %v17902_v5 = vld [vmem:[#allocation63_spill] sm:$0xff]  ;;  %v17904_v25 = vld [vmem:[#allocation64_spill] sm:$0xff] }
 0x2ce   :  { %v5905_v61 = vsel %vm2898_vm14, %v5904_v40, %v5903_v26  ;;  %v5670_v19 = vsel %vm2892_vm11, %v5669_v62, %v5668_v43  ;;  %v3132_v27 = vsel %vm3119_vm0, %v3104_v33, %v3106_v54  ;;  %v3213_v42 = vsel %vm3200_vm1, %v3106_v54, %v3177_v37  ;;  %v17890_v33 = vld [vmem:[#allocation57_spill] sm:$0xff] }
 0x2cf   :  { %v5907_v51 = vsel %vm2900_vm15, %v5906_v15, %v5905_v61  ;;  %v5672_v56 = vsel %vm2894_vm12, %v5671_v36, %v5670_v19  ;;  %v3394_v24 = vcombine.high %v3393_v11, %v3393_v11  ;;  %v3483_v21 = vrot.slane %v3393_v11, 1  ;;  %v17889_v15 = vld [vmem:[#allocation59_spill] sm:$0xff] }
 0x2d0   :  { %v6092_v17 = vpack.c.b16 %v5907_v51, %v5907_v51  ;;  %v3661_v60 = vmax.f32 %v17888_v12, %v3393_v11  ;;  %v5674_v26 = vsel %vm2896_vm13, %v5673_v46, %v5672_v56  ;;  %v5677_v40 = vrot.slane %v13951_v8, 1  ;;  %v17893_v11 = vld [vmem:[#allocation96_spill] sm:$0xff] }
 0x2d1   :  { %v3395_v43 = vcombine.low %v3132_v27, %v3213_v42  ;;  %v3396_v34 = vcombine.high %v3132_v27, %v3213_v42  ;;  %v6006_v62 = vrot.slane %v13991_v41, 7  ;;  %v3662_v36 = vmax.f32 %v17889_v15, %v3483_v21 }
 0x2d2   :  { %6110 = vrot.lane.b32.xlu1 %v6092_v17, %s11376_s0  ;;  %v3663_v61 = vmax.f32 %v17890_v33, %v3394_v24  ;;  %v3757_v37 = vmax.f32 %v3661_v60, 0.0  ;;  %v6020_v54 = vrot.slane %v13993_v58, 7  ;;  %v5676_v19 = vsel %vm2898_vm14, %v5675_v16, %v5674_v26 }
 0x2d3   :  { %v3403_v12 = vrot.slane %v3395_v43, %v12066_v63  ;;  %v3410_v46 = vrot.slane %v3396_v34, %v12066_v63  ;;  %v3758_v27 = vmax.f32 %v3662_v36, 0.0  ;;  %v3484_v42 = vrot.slane %v3394_v24, 1 }
 0x2d4   :  { %v3759_v21 = vmax.f32 %v3663_v61, 0.0  ;;  %v5678_v17 = vsel %vm2900_vm15, %v5677_v40, %v5676_v19  ;;  %v4428_v16 = vrot.slane %v3757_v37, %v12050_v45  ;;  %v5882_v43 = vrot.slane %v13131_v44, 6 }
 0x2d5   :  { %v3411_v60 = vcombine.high %v3403_v12, %v3403_v12  ;;  %v3412_v26 = vcombine.high %v3410_v46, %v3410_v46  ;;  %v14072_v34 = vsel %vm2888_vm9, %v5693_v14, %v13979_v32  ;;  %v14076_v33 = vsel %vm2888_vm9, %v6006_v62, %v13989_v49  ;;  %v17894_v32 = vld [vmem:[#allocation61_spill] sm:$0xff] }
 0x2d6   :  { %17891 = vst [vmem:[#allocation56_spill] sm:$0xff] %v14076_v33  ;;  %v14080_v24 = vsel %vm2888_vm9, %v6020_v54, %v13987_v29  ;;  %v5785_v40 = vpack.c.b16 %v5678_v17, %v5678_v17  ;;  %v4432_v36 = vrot.slane %v3757_v37, %v12073_v57  ;;  %v4436_v61 = vrot.slane %v3758_v27, %v12050_v45  ;;  %v17898_v29 = vld [vmem:[#allocation60_spill] sm:$0xff]  ;;  %v17901_v33 = vld [vmem:[#allocation66_spill] sm:$0xff] }
 0x2d7   :  { %17892 = vst [vmem:[#allocation59_spill] sm:$0xff] %v14080_v24  ;;  %v3485_v19 = vrot.slane %v3403_v12, 1  ;;  %v14086_v15 = vsel %vm2890_vm10, %v5882_v43, %v17893_v11  ;;  %v14089_v14 = vmax.f32 %v17894_v32, %v3484_v42  ;;  %v4440_v62 = vrot.slane %v3758_v27, %v12073_v57  ;;  %v17899_v43 = vld [vmem:[#allocation65_spill] sm:$0xff]  ;;  %v17900_v42 = vld [vmem:[#allocation62_spill] sm:$0xff] }
 0x2d8   :  { %v14093_v51 = vrot.slane %v3759_v21, %v12050_v45  ;;  %5809 = vrot.lane.b32.xlu0 %v5785_v40, %s11369_s21  ;;  %v3486_v54 = vrot.slane %v3411_v60, 1  ;;  %v14097_v37 = vrot.slane %v3759_v21, %v12073_v57  ;;  %v4977_v17 = vpack.c.bf16 %v4428_v16, %v4428_v16  ;;  %v17903_v40 = vld [vmem:[#allocation67_spill] sm:$0xff] }
 0x2d9   :  { %17895 = vst [vmem:[#allocation57_spill] sm:$0xff] %v14089_v14  ;;  %v3487_v56 = vrot.slane %v3410_v46, 1  ;;  %v3488_v49 = vrot.slane %v3412_v26, 1  ;;  %v3665_v11 = vmax.f32 %v17898_v29, %v3403_v12  ;;  %v3666_v24 = vmax.f32 %v17899_v43, %v3485_v19 }
 0x2da   :  { %17896 = vst [vmem:[#allocation96_spill] sm:$0xff] %v14093_v51  ;;  %17897 = vst [vmem:[#allocation61_spill] sm:$0xff] %v14097_v37  ;;  %v3667_v32 = vmax.f32 %v17900_v42, %v3411_v60  ;;  %v3668_v27 = vmax.f32 %v17901_v33, %v3486_v54  ;;  %v4978_v8 = vpack.c.bf16 %v4432_v36, %v4432_v36 }
 0x2db   :  { %v4979_v20 = vpack.c.bf16 %v4436_v61, %v4436_v61  ;;  %v3669_v52 = vmax.f32 %v17902_v5, %v3410_v46  ;;  %v3670_v35 = vmax.f32 %v17903_v40, %v3487_v56  ;;  %v3671_v21 = vmax.f32 %v17904_v25, %v3412_v26 }
 0x2dc   :  { %v3672_v16 = vmax.f32 %v17905_v28, %v3488_v49  ;;  %v3762_v18 = vmax.f32 %v3666_v24, 0.0  ;;  %v3763_v58 = vmax.f32 %v3667_v32, 0.0  ;;  %v4980_v12 = vpack.c.bf16 %v4440_v62, %v4440_v62 }
 0x2dd   :  { %v3761_v19 = vmax.f32 %v3665_v11, 0.0  ;;  %v3764_v36 = vmax.f32 %v3668_v27, 0.0  ;;  %v14114_v25 = vunpack.c.l.b16 %v4977_v17  ;;  %v3765_v49 = vmax.f32 %v3669_v52, 0.0 }
 0x2de   :  { %v4468_v5 = vrot.slane %v3762_v18, %v12050_v45  ;;  %v4472_v46 = vrot.slane %v3762_v18, %v12073_v57  ;;  %v3766_v28 = vmax.f32 %v3670_v35, 0.0  ;;  %v4480_v56 = vrot.slane %v3763_v58, %v12073_v57 }
 0x2df   :  { %17906 = vst [vmem:[#allocation60_spill] sm:$0xff] %v14114_v25  ;;  %v14117_v26 = vunpack.c.l.b16 %v4978_v8  ;;  %v14119_v24 = vunpack.c.l.b16 %v4979_v20  ;;  %v3767_v61 = vmax.f32 %v3671_v21, 0.0  ;;  %v3768_v62 = vmax.f32 %v3672_v16, 0.0 }
 0x2e0   :  { %v14121_v54 = vunpack.c.l.b16 %v4980_v12  ;;  %v4460_v11 = vrot.slane %v3761_v19, %v12050_v45  ;;  %v4464_v43 = vrot.slane %v3761_v19, %v12073_v57  ;;  %v4476_v18 = vrot.slane %v3763_v58, %v12050_v45 }
 0x2e1   :  { %17907 = vst [vmem:[#allocation65_spill] sm:$0xff] %v14117_v26  ;;  %17908 = vst [vmem:[#allocation62_spill] sm:$0xff] %v14119_v24  ;;  %v4484_v17 = vrot.slane %v3764_v36, %v12050_v45  ;;  %v4488_v35 = vrot.slane %v3764_v36, %v12073_v57  ;;  %v4987_v52 = vpack.c.bf16 %v4468_v5, %v4468_v5  ;;  %v3114_v24 = vpop.permute.xlu1 %3113 }
 0x2e2   :  { %17909 = vst [vmem:[#allocation66_spill] sm:$0xff] %v14121_v54  ;;  %v4988_v42 = vpack.c.bf16 %v4472_v46, %v4472_v46  ;;  %v4492_v8 = vrot.slane %v3765_v49, %v12050_v45  ;;  %v4496_v20 = vrot.slane %v3765_v49, %v12073_v57  ;;  %v4500_v32 = vrot.slane %v3766_v28, %v12050_v45 }
 0x2e3   :  { %v4990_v27 = vpack.c.bf16 %v4480_v56, %v4480_v56  ;;  %v4504_v40 = vrot.slane %v3766_v28, %v12073_v57  ;;  %v4508_v21 = vrot.slane %v3767_v61, %v12050_v45  ;;  %v4512_v16 = vrot.slane %v3767_v61, %v12073_v57 }
 0x2e4   :  { %v4516_v58 = vrot.slane %v3768_v62, %v12050_v45  ;;  %v4520_v12 = vrot.slane %v3768_v62, %v12073_v57  ;;  %v4985_v19 = vpack.c.bf16 %v4460_v11, %v4460_v11  ;;  %v4986_v36 = vpack.c.bf16 %v4464_v43, %v4464_v43 }
 0x2e5   :  { %v4989_v5 = vpack.c.bf16 %v4476_v18, %v4476_v18  ;;  %v4991_v46 = vpack.c.bf16 %v4484_v17, %v4484_v17  ;;  %v4992_v29 = vpack.c.bf16 %v4488_v35, %v4488_v35  ;;  %v14136_v33 = vunpack.c.l.b16 %v4987_v52 }
 0x2e6   :  { %v5260_v49 = vunpack.c.l.b16 %v4988_v42  ;;  %v4993_v60 = vpack.c.bf16 %v4492_v8, %v4492_v8  ;;  %v4994_v56 = vpack.c.bf16 %v4496_v20, %v4496_v20  ;;  %v4995_v14 = vpack.c.bf16 %v4500_v32, %v4500_v32 }
 0x2e7   :  { %v14138_v28 = vunpack.c.l.b16 %v4990_v27  ;;  %v4996_v37 = vpack.c.bf16 %v4504_v40, %v4504_v40  ;;  %v4997_v51 = vpack.c.bf16 %v4508_v21, %v4508_v21  ;;  %v4998_v61 = vpack.c.bf16 %v4512_v16, %v4512_v16  ;;  %v3112_v16 = vpop.permute.xlu0 %3111 }
 0x2e8   :  { %v4999_v54 = vpack.c.bf16 %v4516_v58, %v4516_v58  ;;  %v5000_v26 = vpack.c.bf16 %v4520_v12, %v4520_v12  ;;  %v5257_v62 = vunpack.c.l.b16 %v4985_v19  ;;  %v5258_v11 = vunpack.c.l.b16 %v4986_v36 }
 0x2e9   :  { %17910 = vst [vmem:[#allocation63_spill] sm:$0xff] %v14138_v28  ;;  %v14140_v43 = vunpack.c.l.b16 %v4989_v5  ;;  %v14142_v18 = vunpack.c.l.b16 %v4991_v46  ;;  %v14144_v17 = vunpack.c.l.b16 %v4992_v29  ;;  %v5457_v35 = vrot.slane %v14136_v33, 7  ;;  %v3181_v5 = vpop.permute.xlu1 %3180  ;;  %v17925_v46 = vld [vmem:[#allocation10_spill] sm:$0xff] }
 0x2ea   :  { %v5471_v52 = vrot.slane %v5260_v49, 7  ;;  %v14147_v42 = vunpack.c.l.b16 %v4993_v60  ;;  %v14149_v8 = vunpack.c.l.b16 %v4994_v56  ;;  %v14151_v20 = vunpack.c.l.b16 %v4995_v14 }
 0x2eb   :  { %17911 = vst [vmem:[#allocation67_spill] sm:$0xff] %v14140_v43  ;;  %17912 = vst [vmem:[#allocation64_spill] sm:$0xff] %v14142_v18  ;;  %v5735_v32 = vrot.slane %v14138_v28, 7  ;;  %v14154_v27 = vunpack.c.l.b16 %v4996_v37  ;;  %v14156_v40 = vunpack.c.l.b16 %v4997_v51  ;;  %v14159_v21 = vsel %vm2888_vm9, %v5457_v35, %v5257_v62 }
 0x2ec   :  { %17913 = vst [vmem:[#allocation68_spill] sm:$0xff] %v14144_v17  ;;  %17914 = vst [vmem:[#allocation157_spill] sm:$0xff] %v14147_v42  ;;  %v14162_v29 = vsel %vm2888_vm9, %v5471_v52, %v5258_v11  ;;  %v14164_v58 = vunpack.c.l.b16 %v4998_v61  ;;  %v14166_v60 = vunpack.c.l.b16 %v4999_v54  ;;  %v14168_v12 = vunpack.c.l.b16 %v5000_v26  ;;  %v17926_v61 = vld [vmem:[#allocation11_spill] sm:$0xff] }
 0x2ed   :  { %17915 = vst [vmem:[#allocation158_spill] sm:$0xff] %v14149_v8  ;;  %17916 = vst [vmem:[#allocation159_spill] sm:$0xff] %v14151_v20  ;;  %v14171_v14 = vsel %vm2888_vm9, %v5735_v32, %v5260_v49  ;;  %v5884_v51 = vrot.slane %v13135_v48, 5  ;;  %v5886_v19 = vrot.slane %v13139_v53, 4  ;;  %v5888_v36 = vrot.slane %v13149_v2, 3 }
 0x2ee   :  { %17917 = vst [vmem:[#allocation160_spill] sm:$0xff] %v14154_v27  ;;  %17918 = vst [vmem:[#allocation161_spill] sm:$0xff] %v14156_v40  ;;  %v5890_v56 = vrot.slane %v17925_v46, 2  ;;  %v5892_v62 = vrot.slane %v17926_v61, 1  ;;  %v3134_v54 = vsel %vm3119_vm0, %v3112_v16, %v3114_v24  ;;  %v5695_v26 = vrot.slane %v13991_v41, 6  ;;  %v17932_v27 = vld [vmem:[#allocation77_spill] sm:$0xff] }
 0x2ef   :  { %17919 = vst [vmem:[#allocation162_spill] sm:$0xff] %v14159_v21  ;;  %17920 = vst [vmem:[#allocation163_spill] sm:$0xff] %v14162_v29  ;;  %v5885_v49 = vsel %vm2892_vm11, %v5884_v51, %v14086_v15  ;;  %v5697_v11 = vrot.slane %v13996_v30, 5  ;;  %v5699_v35 = vrot.slane %v14000_v7, 4  ;;  %v5701_v52 = vrot.slane %v14005_v38, 3  ;;  %v17934_v41 = vld [vmem:[#allocation78_spill] sm:$0xff] }
 0x2f0   :  { %17921 = vst [vmem:[#allocation164_spill] sm:$0xff] %v14164_v58  ;;  %17922 = vst [vmem:[#allocation165_spill] sm:$0xff] %v14166_v60  ;;  %v5887_v32 = vsel %vm2894_vm12, %v5886_v19, %v5885_v49  ;;  %v5696_v37 = vsel %vm2890_vm10, %v5695_v26, %v14072_v34  ;;  %v5705_v21 = vrot.slane %v14114_v25, 1  ;;  %v3215_v16 = vsel %vm3200_vm1, %v3114_v24, %v3181_v5 }
 0x2f1   :  { %17923 = vst [vmem:[#allocation166_spill] sm:$0xff] %v14168_v12  ;;  %17924 = vst [vmem:[#allocation167_spill] sm:$0xff] %v14171_v14  ;;  %v5889_v29 = vsel %vm2896_vm13, %v5888_v36, %v5887_v32  ;;  %v5698_v61 = vsel %vm2892_vm11, %v5697_v11, %v5696_v37  ;;  %v3422_v15 = vcombine.low %v3134_v54, %v3215_v16  ;;  %v5703_v19 = vrot.slane %v14015_v23, 2 }
 0x2f2   :  { %v3423_v51 = vcombine.high %v3134_v54, %v3215_v16  ;;  %v5891_v12 = vsel %vm2898_vm14, %v5890_v56, %v5889_v29  ;;  %v5700_v58 = vsel %vm2894_vm12, %v5699_v35, %v5698_v61  ;;  %v5721_v37 = vrot.slane %v14140_v43, 7  ;;  %v17927_v35 = vld [vmem:[#allocation69_spill] sm:$0xff] }
 0x2f3   :  { %v5893_v34 = vsel %vm2900_vm15, %v5892_v62, %v5891_v12  ;;  %v5702_v26 = vsel %vm2896_vm13, %v5701_v52, %v5700_v58  ;;  %v3430_v24 = vrot.slane %v3422_v15, %v12066_v63  ;;  %v6034_v5 = vrot.slane %v14142_v18, 7  ;;  %v17928_v15 = vld [vmem:[#allocation72_spill] sm:$0xff] }
 0x2f4   :  { %v3437_v36 = vrot.slane %v3423_v51, %v12066_v63  ;;  %v6091_v54 = vpack.c.b16 %v5893_v34, %v5893_v34  ;;  %v5704_v49 = vsel %vm2898_vm14, %v5703_v19, %v5702_v26  ;;  %v6048_v12 = vrot.slane %v14144_v17, 7  ;;  %v17929_v34 = vld [vmem:[#allocation70_spill] sm:$0xff] }
 0x2f5   :  { %v5706_v29 = vsel %vm2900_vm15, %v5705_v21, %v5704_v49  ;;  %v3438_v56 = vcombine.high %v3430_v24, %v3430_v24  ;;  %v3491_v11 = vrot.slane %v3430_v24, 1  ;;  %v3677_v52 = vmax.f32 %v17927_v35, %v3430_v24  ;;  %v17930_v21 = vld [vmem:[#allocation75_spill] sm:$0xff]  ;;  %v17931_v49 = vld [vmem:[#allocation76_spill] sm:$0xff] }
 0x2f6   :  { %v3439_v61 = vcombine.high %v3437_v36, %v3437_v36  ;;  %6108 = vrot.lane.b32.xlu0 %v6091_v54, %s11376_s0  ;;  %v5787_v58 = vpack.c.b16 %v5706_v29, %v5706_v29  ;;  %v3493_v62 = vrot.slane %v3437_v36, 1  ;;  %v3681_v26 = vmax.f32 %v17930_v21, %v3437_v36  ;;  %v17933_v29 = vld [vmem:[#allocation73_spill] sm:$0xff] }
 0x2f7   :  { %v3492_v32 = vrot.slane %v3438_v56, 1  ;;  %v3678_v51 = vmax.f32 %v17928_v15, %v3491_v11  ;;  %v3679_v46 = vmax.f32 %v17929_v34, %v3438_v56  ;;  %v14219_v11 = vsel %vm2888_vm9, %v5721_v37, %v14136_v33  ;;  %v14234_v15 = vpop.permute.xlu0 %3107 }
 0x2f8   :  { %v3494_v16 = vrot.slane %v3439_v61, 1  ;;  %5813 = vrot.lane.b32.xlu1 %v5787_v58, %s11369_s21  ;;  %v3682_v14 = vmax.f32 %v17931_v49, %v3493_v62  ;;  %v3683_v54 = vmax.f32 %v17932_v27, %v3439_v61  ;;  %v14223_v56 = vsel %vm2888_vm9, %v6034_v5, %v14140_v43 }
 0x2f9   :  { %v3680_v17 = vmax.f32 %v17933_v29, %v3492_v32  ;;  %v3774_v35 = vmax.f32 %v3678_v51, 0.0  ;;  %v3775_v25 = vmax.f32 %v3679_v46, 0.0  ;;  %17935 = vst [vmem:[#allocation69_spill] sm:$0xff] %v14223_v56  ;;  %v3773_v58 = vmax.f32 %v3677_v52, 0.0  ;;  %v17937_v52 = vld [vmem:[#allocation12_spill] sm:$0xff] }
 0x2fa   :  { %v3684_v24 = vmax.f32 %v17934_v41, %v3494_v16  ;;  %v5910_v41 = vrot.slane %v13303_v0, 6  ;;  %v14231_v46 = vsel %vm2888_vm9, %v6048_v12, %v14138_v28  ;;  %v3777_v33 = vmax.f32 %v3681_v26, 0.0 }
 0x2fb   :  { %v3776_v62 = vmax.f32 %v3680_v17, 0.0  ;;  %v4564_v27 = vrot.slane %v3774_v35, %v12050_v45  ;;  %v4568_v61 = vrot.slane %v3774_v35, %v12073_v57  ;;  %17936 = vst [vmem:[#allocation72_spill] sm:$0xff] %v14231_v46  ;;  %v3778_v37 = vmax.f32 %v3682_v14, 0.0  ;;  %v3110_v14 = vpop.permute.xlu1 %3109  ;;  %v3116_v23 = vpop.permute.xlu0 %3115 }
 0x2fc   :  { %v4576_v32 = vrot.slane %v3775_v25, %v12073_v57  ;;  %v3779_v5 = vmax.f32 %v3683_v54, 0.0  ;;  %v3780_v16 = vmax.f32 %v3684_v24, 0.0  ;;  %v5911_v17 = vsel %vm2890_vm10, %v5910_v41, %v17937_v52 }
 0x2fd   :  { %v5912_v51 = vrot.slane %v13307_v3, 5  ;;  %v4556_v34 = vrot.slane %v3773_v58, %v12050_v45  ;;  %v4560_v21 = vrot.slane %v3773_v58, %v12073_v57  ;;  %v4572_v12 = vrot.slane %v3775_v25, %v12050_v45 }
 0x2fe   :  { %v5914_v26 = vrot.slane %v13317_v50, 4  ;;  %v4580_v49 = vrot.slane %v3776_v62, %v12050_v45  ;;  %v4584_v54 = vrot.slane %v3776_v62, %v12073_v57  ;;  %v5011_v29 = vpack.c.bf16 %v4564_v27, %v4564_v27 }
 0x2ff   :  { %v5012_v24 = vpack.c.bf16 %v4568_v61, %v4568_v61  ;;  %v4588_v35 = vrot.slane %v3777_v33, %v12050_v45  ;;  %v4592_v41 = vrot.slane %v3777_v33, %v12073_v57  ;;  %v4596_v52 = vrot.slane %v3778_v37, %v12050_v45  ;;  %v3118_v30 = vpop.permute.xlu1 %3117 }
 0x300   :  { %v5014_v36 = vpack.c.bf16 %v4576_v32, %v4576_v32  ;;  %v4600_v58 = vrot.slane %v3778_v37, %v12073_v57  ;;  %v4604_v25 = vrot.slane %v3779_v5, %v12050_v45  ;;  %v4608_v19 = vrot.slane %v3779_v5, %v12073_v57 }
 0x301   :  { %v4612_v43 = vrot.slane %v3780_v16, %v12050_v45  ;;  %v4616_v28 = vrot.slane %v3780_v16, %v12073_v57  ;;  %v5009_v62 = vpack.c.bf16 %v4556_v34, %v4556_v34  ;;  %v5010_v27 = vpack.c.bf16 %v4560_v21, %v4560_v21 }
 0x302   :  { %v5013_v61 = vpack.c.bf16 %v4572_v12, %v4572_v12  ;;  %v5015_v46 = vpack.c.bf16 %v4580_v49, %v4580_v49  ;;  %v5016_v56 = vpack.c.bf16 %v4584_v54, %v4584_v54  ;;  %v14253_v8 = vunpack.c.l.b16 %v5011_v29 }
 0x303   :  { %v5276_v33 = vunpack.c.l.b16 %v5012_v24  ;;  %v5017_v32 = vpack.c.bf16 %v4588_v35, %v4588_v35  ;;  %v5018_v38 = vpack.c.bf16 %v4592_v41, %v4592_v41  ;;  %v5019_v37 = vpack.c.bf16 %v4596_v52, %v4596_v52  ;;  %v3179_v52 = vpop.permute.xlu0 %3178 }
 0x304   :  { %v14255_v7 = vunpack.c.l.b16 %v5014_v36  ;;  %v5020_v5 = vpack.c.bf16 %v4600_v58, %v4600_v58  ;;  %v5021_v10 = vpack.c.bf16 %v4604_v25, %v4604_v25  ;;  %v5022_v50 = vpack.c.bf16 %v4608_v19, %v4608_v19 }
 0x305   :  { %v5023_v3 = vpack.c.bf16 %v4612_v43, %v4612_v43  ;;  %v5024_v16 = vpack.c.bf16 %v4616_v28, %v4616_v28  ;;  %v5273_v34 = vunpack.c.l.b16 %v5009_v62  ;;  %v5274_v21 = vunpack.c.l.b16 %v5010_v27  ;;  %v3183_v27 = vpop.permute.xlu1 %3182 }
 0x306   :  { %17938 = vst [vmem:[#allocation70_spill] sm:$0xff] %v14255_v7  ;;  %v14257_v12 = vunpack.c.l.b16 %v5013_v61  ;;  %v14259_v49 = vunpack.c.l.b16 %v5015_v46  ;;  %v14261_v54 = vunpack.c.l.b16 %v5016_v56  ;;  %v5485_v29 = vrot.slane %v14253_v8, 7 }
 0x307   :  { %v5499_v24 = vrot.slane %v5276_v33, 7  ;;  %v14264_v35 = vunpack.c.l.b16 %v5017_v32  ;;  %v14266_v36 = vunpack.c.l.b16 %v5018_v38  ;;  %v14268_v41 = vunpack.c.l.b16 %v5019_v37  ;;  %v17953_v37 = vld [vmem:[#allocation18_spill] sm:$0xff] }
 0x308   :  { %17939 = vst [vmem:[#allocation75_spill] sm:$0xff] %v14257_v12  ;;  %17940 = vst [vmem:[#allocation76_spill] sm:$0xff] %v14259_v49  ;;  %v5763_v43 = vrot.slane %v14255_v7, 7  ;;  %v14271_v28 = vunpack.c.l.b16 %v5020_v5  ;;  %v14273_v19 = vunpack.c.l.b16 %v5021_v10  ;;  %v14276_v46 = vsel %vm2888_vm9, %v5485_v29, %v5273_v34 }
 0x309   :  { %17941 = vst [vmem:[#allocation77_spill] sm:$0xff] %v14261_v54  ;;  %17942 = vst [vmem:[#allocation73_spill] sm:$0xff] %v14264_v35  ;;  %v14279_v56 = vsel %vm2888_vm9, %v5499_v24, %v5274_v21  ;;  %v14281_v58 = vunpack.c.l.b16 %v5022_v50  ;;  %v14283_v25 = vunpack.c.l.b16 %v5023_v3  ;;  %v14285_v38 = vunpack.c.l.b16 %v5024_v16  ;;  %v17956_v24 = vld [vmem:[#allocation79_spill] sm:$0xff] }
 0x30a   :  { %17943 = vst [vmem:[#allocation78_spill] sm:$0xff] %v14266_v36  ;;  %17944 = vst [vmem:[#allocation12_spill] sm:$0xff] %v14268_v41  ;;  %v14288_v62 = vsel %vm2888_vm9, %v5763_v43, %v5276_v33  ;;  %v5913_v10 = vsel %vm2892_vm11, %v5912_v51, %v5911_v17  ;;  %v5916_v61 = vrot.slane %v13321_v1, 3  ;;  %v5918_v32 = vrot.slane %v13412_v9, 2  ;;  %v17986_v36 = vld [vmem:[#allocation104_spill] sm:$0xff]  ;;  %v18004_v9 = vld [vmem:[#allocation114_spill] sm:$0xff] }
 0x30b   :  { %17945 = vst [vmem:[#allocation168_spill] sm:$0xff] %v14271_v28  ;;  %17946 = vst [vmem:[#allocation169_spill] sm:$0xff] %v14273_v19  ;;  %v5920_v5 = vrot.slane %v17953_v37, 1  ;;  %v5915_v34 = vsel %vm2894_vm12, %v5914_v26, %v5913_v10  ;;  %v3133_v3 = vsel %vm3119_vm0, %v14234_v15, %v3110_v14  ;;  %v3135_v50 = vsel %vm3119_vm0, %v3116_v23, %v3118_v30  ;;  %v17985_v28 = vld [vmem:[#allocation102_spill] sm:$0xff] }
 0x30c   :  { %17947 = vst [vmem:[#allocation170_spill] sm:$0xff] %v14276_v46  ;;  %17948 = vst [vmem:[#allocation171_spill] sm:$0xff] %v14279_v56  ;;  %v3214_v16 = vsel %vm3200_vm1, %v3110_v14, %v3179_v52  ;;  %v5917_v33 = vsel %vm2896_vm13, %v5916_v61, %v5915_v34  ;;  %v3216_v17 = vsel %vm3200_vm1, %v3118_v30, %v3183_v27  ;;  %v5723_v51 = vrot.slane %v14142_v18, 6  ;;  %v17957_v30 = vld [vmem:[#allocation74_spill] sm:$0xff]  ;;  %v17959_v46 = vld [vmem:[#allocation83_spill] sm:$0xff] }
 0x30d   :  { %17949 = vst [vmem:[#allocation172_spill] sm:$0xff] %v14281_v58  ;;  %17950 = vst [vmem:[#allocation173_spill] sm:$0xff] %v14283_v25  ;;  %v3413_v21 = vcombine.low %v3133_v3, %v3214_v16  ;;  %v5919_v26 = vsel %vm2898_vm14, %v5918_v32, %v5917_v33  ;;  %v3440_v43 = vcombine.low %v3135_v50, %v3216_v17  ;;  %v5749_v15 = vrot.slane %v14257_v12, 7  ;;  %v17954_v16 = vld [vmem:[#allocation71_spill] sm:$0xff]  ;;  %v17955_v17 = vld [vmem:[#allocation81_spill] sm:$0xff] }
 0x30e   :  { %17951 = vst [vmem:[#allocation174_spill] sm:$0xff] %v14285_v38  ;;  %17952 = vst [vmem:[#allocation175_spill] sm:$0xff] %v14288_v62  ;;  %v6062_v23 = vrot.slane %v14259_v49, 7  ;;  %v5921_v14 = vsel %vm2900_vm15, %v5920_v5, %v5919_v26  ;;  %v6076_v10 = vrot.slane %v14261_v54, 7  ;;  %v5724_v50 = vsel %vm2890_vm10, %v5723_v51, %v14219_v11  ;;  %v11146_v11 = vld [vmem:[%s17186_s3 + $0x274] ss:$8 sps:$4 sm:$0xff]  }
 0x30f   :  { %v3420_v52 = vrot.slane %v3413_v21, %v12066_v63  ;;  %v6093_v27 = vpack.c.b16 %v5921_v14, %v5921_v14  ;;  %v3447_v61 = vrot.slane %v3440_v43, %v12066_v63  ;;  %v5725_v26 = vrot.slane %v14147_v42, 5  ;;  %8123 = vmatprep.subr.bf16.mxu0 %v11146_v11  ;;  %v17964_v11 = vld [vmem:[#allocation84_spill] sm:$0xff]  ;;  %v17982_v62 = vld [vmem:[#allocation19_spill] sm:$0xff] }
 0x310   :  { %v5750_v51 = vsel %vm2888_vm9, %v5749_v15, %v14253_v8  ;;  %v5727_v8 = vrot.slane %v14151_v20, 4  ;;  %v17960_v15 = vld [vmem:[#allocation80_spill] sm:$0xff] }
 0x311   :  { %v3421_v34 = vcombine.high %v3420_v52, %v3420_v52  ;;  %v3489_v3 = vrot.slane %v3420_v52, 1  ;;  %v3673_v32 = vmax.f32 %v17954_v16, %v3420_v52  ;;  %6112 = vrot.lane.b32.xlu1 %v6093_v27, %s11376_s0  ;;  %v3448_v33 = vcombine.high %v3447_v61, %v3447_v61  ;;  %v11144_v52 = vld [vmem:[%s17186_s3 + $0x270] ss:$8 sps:$4 sm:$0xff]  }
 0x312   :  { %v3495_v5 = vrot.slane %v3447_v61, 1  ;;  %v3685_v21 = vmax.f32 %v17955_v17, %v3447_v61  ;;  %v5726_v16 = vsel %vm2892_vm11, %v5725_v26, %v5724_v50  ;;  %8124 = vmatpush1.bf16.msra.mxu0 %v11144_v52 }
 0x313   :  { %v3490_v29 = vrot.slane %v3421_v34, 1  ;;  %v3674_v14 = vmax.f32 %v17956_v24, %v3489_v3  ;;  %v3675_v43 = vmax.f32 %v17957_v30, %v3421_v34  ;;  %v3769_v63 = vmax.f32 %v3673_v32, 0.0 }
 0x314   :  { %v3496_v61 = vrot.slane %v3448_v33, 1  ;;  %v3781_v34 = vmax.f32 %v3685_v21, 0.0  ;;  %v14333_v32 = vsel %vm2888_vm9, %v6062_v23, %v14257_v12  ;;  %v3686_v56 = vmax.f32 %v17959_v46, %v3495_v5  ;;  %v17962_v21 = vld [vmem:[#allocation82_spill] sm:$0xff] }
 0x315   :  { %v3770_v24 = vmax.f32 %v3674_v14, 0.0  ;;  %v3771_v3 = vmax.f32 %v3675_v43, 0.0  ;;  %v4524_v30 = vrot.slane %v3769_v63, %v12050_v45  ;;  %17958 = vst [vmem:[#allocation71_spill] sm:$0xff] %v14333_v32  ;;  %v4528_v17 = vrot.slane %v3769_v63, %v12073_v57 }
 0x316   :  { %v14339_v27 = vmax.f32 %v17960_v15, %v3490_v29  ;;  %v3687_v14 = vmax.f32 %v17962_v21, %v3448_v33  ;;  %v14348_v63 = vmax.f32 %v17964_v11, %v3496_v61  ;;  %v5728_v46 = vsel %vm2894_vm12, %v5727_v8, %v5726_v16 }
 0x317   :  { %v4532_v50 = vrot.slane %v3770_v24, %v12050_v45  ;;  %v4536_v26 = vrot.slane %v3770_v24, %v12073_v57  ;;  %v14345_v43 = vrot.slane %v3771_v3, %v12050_v45  ;;  %v5001_v23 = vpack.c.bf16 %v4524_v30, %v4524_v30 }
 0x318   :  { %17961 = vst [vmem:[#allocation81_spill] sm:$0xff] %v14339_v27  ;;  %17965 = vst [vmem:[#allocation74_spill] sm:$0xff] %v14348_v63  ;;  %v5002_v5 = vpack.c.bf16 %v4528_v17, %v4528_v17  ;;  %v4620_v29 = vrot.slane %v3781_v34, %v12050_v45  ;;  %v5729_v15 = vrot.slane %v14156_v40, 3  ;;  %v14355_v24 = vsel %vm2888_vm9, %v6076_v10, %v14255_v7  ;;  %v17975_v7 = vld [vmem:[#allocation98_spill] sm:$0xff]  ;;  %v18010_v40 = vld [vmem:[#allocation125_spill] sm:$0xff] }
 0x319   :  { %17963 = vst [vmem:[#allocation79_spill] sm:$0xff] %v14345_v43  ;;  %v5003_v52 = vpack.c.bf16 %v4532_v50, %v4532_v50  ;;  %17966 = vst [vmem:[#allocation83_spill] sm:$0xff] %v14355_v24  ;;  %v5004_v33 = vpack.c.bf16 %v4536_v26, %v4536_v26  ;;  %v14357_v21 = vunpack.c.l.b16 %v5001_v23  ;;  %v3782_v12 = vmax.f32 %v3686_v56, 0.0  ;;  %v17995_v43 = vld [vmem:[#allocation122_spill] sm:$0xff] }
 0x31a   :  { %v3783_v61 = vmax.f32 %v3687_v14, 0.0  ;;  %v5730_v11 = vsel %vm2896_vm13, %v5729_v15, %v5728_v46  ;;  %v5731_v16 = vrot.slane %v14166_v60, 2  ;;  %v14363_v17 = vrot.slane %v3771_v3, %v12073_v57  ;;  %v18007_v60 = vld [vmem:[#allocation26_spill] sm:$0xff] }
 0x31b   :  { %17967 = vst [vmem:[#allocation80_spill] sm:$0xff] %v14357_v21  ;;  %v5025_v50 = vpack.c.bf16 %v4620_v29, %v4620_v29  ;;  %v14368_v26 = vunpack.c.l.b16 %v5002_v5  ;;  %v14370_v23 = vunpack.c.l.b16 %v5003_v52  ;;  %v14373_v56 = vrot.slane %v3781_v34, %v12073_v57 }
 0x31c   :  { %17968 = vst [vmem:[#allocation82_spill] sm:$0xff] %v14363_v17  ;;  %v5733_v14 = vrot.slane %v14357_v21, 1  ;;  %v14376_v46 = vunpack.c.l.b16 %v5004_v33  ;;  %v14379_v3 = vrot.slane %v3782_v12, %v12050_v45  ;;  %v5732_v30 = vsel %vm2898_vm14, %v5731_v16, %v5730_v11 }
 0x31d   :  { %17969 = vst [vmem:[#allocation84_spill] sm:$0xff] %v14368_v26  ;;  %17970 = vst [vmem:[#allocation176_spill] sm:$0xff] %v14370_v23  ;;  %v14381_v15 = vunpack.c.l.b16 %v5025_v50  ;;  %v14385_v29 = vrot.slane %v3782_v12, %v12073_v57  ;;  %v14388_v5 = vrot.slane %v3783_v61, %v12050_v45  ;;  %v5751_v52 = vrot.slane %v14259_v49, 6  ;;  %v17998_v45 = vld [vmem:[#allocation130_spill] sm:$0xff] }
 0x31e   :  { %17971 = vst [vmem:[#allocation177_spill] sm:$0xff] %v14376_v46  ;;  %v5734_v34 = vsel %vm2900_vm15, %v5733_v14, %v5732_v30  ;;  %v14393_v33 = vrot.slane %v3783_v61, %v12073_v57  ;;  %v5753_v8 = vrot.slane %v14264_v35, 5  ;;  %v5755_v50 = vrot.slane %v14268_v41, 4  ;;  %v11147_v57 = vld [vmem:[%s17186_s3 + $0x260] ss:$8 sps:$4 sm:$0xff]   ;;  %v18017_v35 = vld [vmem:[#allocation29_spill] sm:$0xff] }
 0x31f   :  { %17972 = vst [vmem:[#allocation178_spill] sm:$0xff] %v14381_v15  ;;  %17973 = vst [vmem:[#allocation179_spill] sm:$0xff] %v14385_v29  ;;  %v5789_v10 = vpack.c.b16 %v5734_v34, %v5734_v34  ;;  %v5752_v11 = vsel %vm2890_vm10, %v5751_v52, %v5750_v51  ;;  %v5757_v12 = vrot.slane %v14273_v19, 3  ;;  %v5759_v16 = vrot.slane %v14283_v25, 2  ;;  %v17978_v34 = vld [vmem:[#allocation87_spill] sm:$0xff]  ;;  %v18014_v25 = vld [vmem:[#allocation36_spill] sm:$0xff] }
 0x320   :  { %17974 = vst [vmem:[#allocation180_spill] sm:$0xff] %v14393_v33  ;;  %v17976_v63 = vpack.c.bf16 %v17975_v7, %v17975_v7  ;;  %v5754_v61 = vsel %vm2892_vm11, %v5753_v8, %v5752_v11  ;;  %v5761_v14 = vrot.slane %v14381_v15, 1  ;;  %v17979_v27 = vrot.slane %v13129_v4, 7  ;;  %v17981_v11 = vld [vmem:[#allocation7_spill] sm:$0xff] }
 0x321   :  { %5817 = vrot.lane.b32.xlu0 %v5789_v10, %s11369_s21  ;;  %v6181_v52 = vrot.slane %v13133_v13, 6  ;;  %v5756_v33 = vsel %vm2894_vm12, %v5755_v50, %v5754_v61  ;;  %v6183_v17 = vrot.slane %v13137_v39, 5  ;;  %v6185_v7 = vrot.slane %v13147_v47, 4  ;;  %v18013_v15 = vld [vmem:[#allocation35_spill] sm:$0xff] }
 0x322   :  { %v14403_v30 = vunpack.c.l.b16 %v17976_v63  ;;  %v6180_v51 = vsel %vm2888_vm9, %v17979_v27, %v17978_v34  ;;  %v17980_v63 = vld [vmem:[#allocation6_spill] sm:$0xff]  ;;  %v5758_v10 = vsel %vm2896_vm13, %v5757_v12, %v5756_v33  ;;  %v6189_v32 = vrot.slane %v17981_v11, 2 }
 0x323   :  { %v6187_v24 = vrot.slane %v17980_v63, 3  ;;  %v6182_v8 = vsel %vm2890_vm10, %v6181_v52, %v6180_v51  ;;  %v5760_v27 = vsel %vm2898_vm14, %v5759_v16, %v5758_v10  ;;  %v17983_v50 = vpack.c.bf16 %v17982_v62, %v17982_v62 }
 0x324   :  { %17977 = vst [vmem:[#allocation98_spill] sm:$0xff] %v14403_v30  ;;  %v6191_v38 = vrot.slane %v14403_v30, 1  ;;  %v6184_v58 = vsel %vm2892_vm11, %v6183_v17, %v6182_v8  ;;  %v17987_v63 = vrot.slane %v17986_v36, 7  ;;  %v5762_v12 = vsel %vm2900_vm15, %v5761_v14, %v5760_v27  ;;  %v17988_v27 = vld [vmem:[#allocation22_spill] sm:$0xff] }
 0x325   :  { %v14426_v61 = vunpack.c.l.b16 %v17983_v50  ;;  %v6186_v51 = vsel %vm2894_vm12, %v6185_v7, %v6184_v58  ;;  %v6209_v52 = vrot.slane %v13305_v31, 6  ;;  %v6211_v16 = vrot.slane %v13309_v6, 5 }
 0x326   :  { %v6208_v33 = vsel %vm2888_vm9, %v17987_v63, %v17985_v28  ;;  %v5791_v10 = vpack.c.b16 %v5762_v12, %v5762_v12  ;;  %v6188_v17 = vsel %vm2896_vm13, %v6187_v24, %v6186_v51  ;;  %v6213_v62 = vrot.slane %v13319_v22, 4  ;;  %v17989_v12 = vld [vmem:[#allocation111_spill] sm:$0xff] }
 0x327   :  { %17984 = vst [vmem:[#allocation87_spill] sm:$0xff] %v14426_v61  ;;  %v6215_v8 = vrot.slane %v13409_v59, 3  ;;  %v6190_v50 = vsel %vm2898_vm14, %v6189_v32, %v6188_v17  ;;  %v6210_v30 = vsel %vm2890_vm10, %v6209_v52, %v6208_v33  ;;  %v6217_v63 = vrot.slane %v17887_v55, 2  ;;  %v17990_v32 = vld [vmem:[#allocation113_spill] sm:$0xff]  ;;  %v17996_v55 = vld [vmem:[#allocation124_spill] sm:$0xff] }
 0x328   :  { %v6219_v14 = vrot.slane %v14426_v61, 1  ;;  %5821 = vrot.lane.b32.xlu1 %v5791_v10, %s11369_s21  ;;  %v6192_v58 = vsel %vm2900_vm15, %v6191_v38, %v6190_v50  ;;  %v6212_v7 = vsel %vm2892_vm11, %v6211_v16, %v6210_v30  ;;  %v5625_v24 = vrot.slane %v17988_v27, 6  ;;  %v17991_v33 = vld [vmem:[#allocation117_spill] sm:$0xff]  ;;  %v11149_v38 = vld [vmem:[%s17186_s3 + $0x264] ss:$8 sps:$4 sm:$0xff]   ;;  %v17992_v16 = vld [vmem:[#allocation120_spill] sm:$0xff] }
 0x329   :  { %v5627_v51 = vrot.slane %v17989_v12, 5  ;;  %v6403_v11 = vpack.c.b16 %v6192_v58, %v6192_v58  ;;  %v6214_v54 = vsel %vm2894_vm12, %v6213_v62, %v6212_v7  ;;  %v5629_v17 = vrot.slane %v17990_v32, 4  ;;  %v17993_v50 = vld [vmem:[#allocation119_spill] sm:$0xff]  ;;  %v17994_v62 = vld [vmem:[#allocation25_spill] sm:$0xff]  ;;  %8125 = vmatprep.subr.bf16.mxu0 %v11149_v38 }
 0x32a   :  { %v5631_v52 = vrot.slane %v17991_v33, 3  ;;  %v6216_v30 = vsel %vm2896_vm13, %v6215_v8, %v6214_v54  ;;  %v5626_v10 = vsel %vm2890_vm10, %v5625_v24, %v17992_v16  ;;  %v5633_v58 = vrot.slane %v17993_v50, 2  ;;  %v17997_v24 = vld [vmem:[#allocation126_spill] sm:$0xff]  ;;  %8126 = vmatpush1.bf16.msra.mxu0 %v11147_v57 }
 0x32b   :  { %v5635_v7 = vrot.slane %v17994_v62, 1  ;;  %6419 = vrot.lane.b32.xlu0 %v6403_v11, %s11377_s11  ;;  %v6218_v29 = vsel %vm2898_vm14, %v6217_v63, %v6216_v30  ;;  %v5628_v18 = vsel %vm2892_vm11, %v5627_v51, %v5626_v10  ;;  %v5653_v61 = vrot.slane %v17995_v43, 6  ;;  %v17999_v63 = vld [vmem:[#allocation131_spill] sm:$0xff]  ;;  %v18000_v30 = vld [vmem:[#allocation32_spill] sm:$0xff] }
 0x32c   :  { %v5655_v59 = vrot.slane %v17996_v55, 5  ;;  %v6220_v54 = vsel %vm2900_vm15, %v6219_v14, %v6218_v29  ;;  %v5630_v8 = vsel %vm2894_vm12, %v5629_v17, %v5628_v18  ;;  %v5657_v16 = vrot.slane %v17997_v24, 4  ;;  %v18001_v29 = vld [vmem:[#allocation40_spill] sm:$0xff]  ;;  %v18002_v18 = vld [vmem:[#allocation110_spill] sm:$0xff] }
 0x32d   :  { %v5659_v46 = vrot.slane %v17998_v45, 3  ;;  %v6405_v37 = vpack.c.b16 %v6220_v54, %v6220_v54  ;;  %v5632_v11 = vsel %vm2896_vm13, %v5631_v52, %v5630_v8  ;;  %v5654_v51 = vsel %vm2890_vm10, %v5653_v61, %v17999_v63  ;;  %v18003_v52 = vld [vmem:[#allocation112_spill] sm:$0xff] }
 0x32e   :  { %v5661_v10 = vrot.slane %v18000_v30, 2  ;;  %v5634_v43 = vsel %vm2898_vm14, %v5633_v58, %v5632_v11  ;;  %v5656_v38 = vsel %vm2892_vm11, %v5655_v59, %v5654_v51  ;;  %v5663_v14 = vrot.slane %v18001_v29, 1  ;;  %v18005_v58 = vld [vmem:[#allocation21_spill] sm:$0xff]  ;;  %v18006_v11 = vld [vmem:[#allocation118_spill] sm:$0xff] }
 0x32f   :  { %v5924_v17 = vrot.slane %v18002_v18, 6  ;;  %6423 = vrot.lane.b32.xlu1 %v6405_v37, %s11377_s11  ;;  %v5636_v57 = vsel %vm2900_vm15, %v5635_v7, %v5634_v43  ;;  %v5658_v54 = vsel %vm2894_vm12, %v5657_v16, %v5656_v38  ;;  %v5926_v8 = vrot.slane %v18003_v52, 5  ;;  %v18008_v7 = vld [vmem:[#allocation27_spill] sm:$0xff] }
 0x330   :  { %v5928_v61 = vrot.slane %v18004_v9, 4  ;;  %v5782_v63 = vpack.c.b16 %v5636_v57, %v5636_v57  ;;  %v5660_v23 = vsel %vm2896_vm13, %v5659_v46, %v5658_v54  ;;  %v5930_v51 = vrot.slane %v18006_v11, 3  ;;  %v18009_v46 = vld [vmem:[#allocation123_spill] sm:$0xff] }
 0x331   :  { %v5925_v59 = vsel %vm2890_vm10, %v5924_v17, %v18005_v58  ;;  %v5662_v21 = vsel %vm2898_vm14, %v5661_v10, %v5660_v23  ;;  %v5932_v43 = vrot.slane %v18007_v60, 2  ;;  %v5934_v16 = vrot.slane %v18008_v7, 1  ;;  %v18011_v23 = vld [vmem:[#allocation129_spill] sm:$0xff] }
 0x332   :  { %v5927_v37 = vsel %vm2892_vm11, %v5926_v8, %v5925_v59  ;;  %5803 = vrot.lane.b32.xlu0 %v5782_v63, %s11369_s21  ;;  %v5664_v38 = vsel %vm2900_vm15, %v5663_v14, %v5662_v21  ;;  %v5952_v54 = vrot.slane %v18009_v46, 6  ;;  %v5954_v17 = vrot.slane %v18010_v40, 5  ;;  %v18012_v8 = vld [vmem:[#allocation132_spill] sm:$0xff]  ;;  %v18015_v14 = vld [vmem:[#allocation37_spill] sm:$0xff] }
 0x333   :  { %v5929_v57 = vsel %vm2894_vm12, %v5928_v61, %v5927_v37  ;;  %v5784_v58 = vpack.c.b16 %v5664_v38, %v5664_v38  ;;  %v5956_v10 = vrot.slane %v18011_v23, 4  ;;  %v5958_v59 = vrot.slane %v18012_v8, 3  ;;  %v11152_v37 = vld [vmem:[%s17186_s3 + $0x174] ss:$8 sps:$4 sm:$0xff]  }
 0x334   :  { %v5931_v20 = vsel %vm2896_vm13, %v5930_v51, %v5929_v57  ;;  %v5953_v63 = vsel %vm2890_vm10, %v5952_v54, %v18013_v15  ;;  %v5960_v21 = vrot.slane %v18014_v25, 2  ;;  %v5962_v61 = vrot.slane %v18015_v14, 1  ;;  %v11153_v15 = vld [vmem:[%s17186_s3 + $0x250] ss:$8 sps:$4 sm:$0xff]   ;;  %8050 = vmatprep.subr.bf16.mxu1 %v11152_v37 }
 0x335   :  { %v5933_v42 = vsel %vm2898_vm14, %v5932_v43, %v5931_v20  ;;  %5807 = vrot.lane.b32.xlu1 %v5784_v58, %s11369_s21  ;;  %v5955_v38 = vsel %vm2892_vm11, %v5954_v17, %v5953_v63  ;;  %v5938_v57 = vrot.slane %v17989_v12, 6  ;;  %v5940_v20 = vrot.slane %v17990_v32, 5  ;;  %v11155_v43 = vld [vmem:[%s17186_s3 + $0x254] ss:$8 sps:$4 sm:$0xff]   ;;  %v18016_v17 = vld [vmem:[#allocation23_spill] sm:$0xff] }
 0x336   :  { %v5935_v51 = vsel %vm2900_vm15, %v5934_v16, %v5933_v42  ;;  %v5957_v19 = vsel %vm2894_vm12, %v5956_v10, %v5955_v38  ;;  %v5942_v58 = vrot.slane %v17991_v33, 4  ;;  %v5944_v42 = vrot.slane %v17993_v50, 3  ;;  %8127 = vmatprep.subr.bf16.mxu0 %v11155_v43 }
 0x337   :  { %v6094_v54 = vpack.c.b16 %v5935_v51, %v5935_v51  ;;  %v5959_v16 = vsel %vm2896_vm13, %v5958_v59, %v5957_v19  ;;  %v5939_v63 = vsel %vm2890_vm10, %v5938_v57, %v18016_v17  ;;  %v5946_v41 = vrot.slane %v17994_v62, 2  ;;  %8128 = vmatpush1.bf16.msra.mxu0 %v11153_v15 }
 0x338   :  { %v5948_v49 = vrot.slane %v18017_v35, 1  ;;  %v5961_v51 = vsel %vm2898_vm14, %v5960_v21, %v5959_v16  ;;  %v5941_v10 = vsel %vm2892_vm11, %v5940_v20, %v5939_v63  ;;  %v5966_v38 = vrot.slane %v17996_v55, 6  ;;  %v18018_v35 = vld [vmem:[#allocation33_spill] sm:$0xff] }
 0x339   :  { %6114 = vrot.lane.b32.xlu0 %v6094_v54, %s11376_s0  ;;  %v5968_v37 = vrot.slane %v17997_v24, 5  ;;  %v5963_v19 = vsel %vm2900_vm15, %v5962_v61, %v5961_v51  ;;  %v5943_v59 = vsel %vm2894_vm12, %v5942_v58, %v5941_v10  ;;  %v5970_v57 = vrot.slane %v17998_v45, 4  ;;  %v18019_v63 = vld [vmem:[#allocation41_spill] sm:$0xff]  ;;  %v18020_v51 = vld [vmem:[#allocation28_spill] sm:$0xff] }
 0x33a   :  { %v5972_v17 = vrot.slane %v18000_v30, 3  ;;  %v6096_v43 = vpack.c.b16 %v5963_v19, %v5963_v19  ;;  %v5945_v54 = vsel %vm2896_vm13, %v5944_v42, %v5943_v59  ;;  %v5967_v21 = vsel %vm2890_vm10, %v5966_v38, %v18018_v35  ;;  %v18023_v35 = vld [vmem:[#allocation16_spill] sm:$0xff] }
 0x33b   :  { %v5974_v20 = vrot.slane %v18001_v29, 2  ;;  %v5947_v16 = vsel %vm2898_vm14, %v5946_v41, %v5945_v54  ;;  %v5969_v15 = vsel %vm2892_vm11, %v5968_v37, %v5967_v21  ;;  %v5976_v61 = vrot.slane %v18019_v63, 1  ;;  %v18034_v29 = vld [vmem:[#allocation108_spill] sm:$0xff] }
 0x33c   :  { %v18021_v58 = vpack.c.bf16 %v18020_v51, %v18020_v51  ;;  %6118 = vrot.lane.b32.xlu1 %v6096_v43, %s11376_s0  ;;  %v5949_v42 = vsel %vm2900_vm15, %v5948_v49, %v5947_v16  ;;  %v5971_v19 = vsel %vm2894_vm12, %v5970_v57, %v5969_v15  ;;  %v18024_v38 = vrot.slane %v18002_v18, 7 }
 0x33d   :  { %v6237_v37 = vrot.slane %v18003_v52, 6  ;;  %v6095_v59 = vpack.c.b16 %v5949_v42, %v5949_v42  ;;  %v5973_v54 = vsel %vm2896_vm13, %v5972_v17, %v5971_v19  ;;  %v6239_v21 = vrot.slane %v18004_v9, 5 }
 0x33e   :  { %v14546_v10 = vunpack.c.l.b16 %v18021_v58  ;;  %v6236_v41 = vsel %vm2888_vm9, %v18024_v38, %v18023_v35  ;;  %v6241_v51 = vrot.slane %v18006_v11, 4  ;;  %v5975_v43 = vsel %vm2898_vm14, %v5974_v20, %v5973_v54  ;;  %v18038_v11 = vld [vmem:[#allocation34_spill] sm:$0xff]  ;;  %v18068_v35 = vld [vmem:[#allocation49_spill] sm:$0xff] }
 0x33f   :  { %v6238_v49 = vsel %vm2890_vm10, %v6237_v37, %v6236_v41  ;;  %v6243_v57 = vrot.slane %v18007_v60, 3  ;;  %v6245_v16 = vrot.slane %v18008_v7, 2  ;;  %6116 = vrot.lane.b32.xlu0 %v6095_v59, %s11376_s0  ;;  %v5977_v58 = vsel %vm2900_vm15, %v5976_v61, %v5975_v43  ;;  %v18025_v41 = vld [vmem:[#allocation93_spill] sm:$0xff]  ;;  %v18026_v37 = vld [vmem:[#allocation86_spill] sm:$0xff]  ;;  %v18028_v59 = vld [vmem:[#allocation88_spill] sm:$0xff] }
 0x340   :  { %18022 = vst [vmem:[#allocation19_spill] sm:$0xff] %v14546_v10  ;;  %v6240_v17 = vsel %vm2892_vm11, %v6239_v21, %v6238_v49  ;;  %v6247_v42 = vrot.slane %v14546_v10, 1  ;;  %v6097_v19 = vpack.c.b16 %v5977_v58, %v5977_v58  ;;  %v18027_v54 = vrot.slane %v18026_v37, 6  ;;  %v18029_v58 = vld [vmem:[#allocation107_spill] sm:$0xff] }
 0x341   :  { %v6242_v38 = vsel %vm2894_vm12, %v6241_v51, %v6240_v17  ;;  %v5307_v60 = vrot.slane %v18028_v59, 5  ;;  %v5309_v61 = vrot.slane %v13131_v44, 4  ;;  %v5311_v21 = vrot.slane %v13135_v48, 3  ;;  %v18030_v17 = vld [vmem:[#allocation101_spill] sm:$0xff] }
 0x342   :  { %v5306_v7 = vsel %vm2890_vm10, %v18027_v54, %v18025_v41  ;;  %v6244_v15 = vsel %vm2896_vm13, %v6243_v57, %v6242_v38  ;;  %6120 = vrot.lane.b32.xlu1 %v6097_v19, %s11376_s0  ;;  %v5313_v49 = vrot.slane %v13139_v53, 2  ;;  %v5315_v51 = vrot.slane %v13149_v2, 1  ;;  %v18032_v54 = vld [vmem:[#allocation103_spill] sm:$0xff] }
 0x343   :  { %v6246_v43 = vsel %vm2898_vm14, %v6245_v16, %v6244_v15  ;;  %v18031_v37 = vrot.slane %v18030_v17, 6  ;;  %v5308_v38 = vsel %vm2892_vm11, %v5307_v60, %v5306_v7  ;;  %v5335_v20 = vrot.slane %v18032_v54, 5  ;;  %v18033_v15 = vld [vmem:[#allocation105_spill] sm:$0xff]  ;;  %v11162_v17 = vld [vmem:[%s17186_s3 + $0x240] ss:$8 sps:$4 sm:$0xff]  }
 0x344   :  { %v6248_v57 = vsel %vm2900_vm15, %v6247_v42, %v6246_v43  ;;  %v5337_v10 = vrot.slane %v13303_v0, 4  ;;  %v5310_v16 = vsel %vm2894_vm12, %v5309_v61, %v5308_v38  ;;  %v5339_v63 = vrot.slane %v18033_v15, 3  ;;  %v11164_v42 = vld [vmem:[%s17186_s3 + $0x244] ss:$8 sps:$4 sm:$0xff]  }
 0x345   :  { %v5334_v41 = vsel %vm2890_vm10, %v18031_v37, %v18029_v58  ;;  %v6407_v19 = vpack.c.b16 %v6248_v57, %v6248_v57  ;;  %v5341_v62 = vrot.slane %v18034_v29, 2  ;;  %v5312_v60 = vsel %vm2896_vm13, %v5311_v21, %v5310_v16  ;;  %v18035_v58 = vld [vmem:[#allocation133_spill] sm:$0xff]  ;;  %8129 = vmatprep.subr.bf16.mxu0 %v11164_v42 }
 0x346   :  { %v5336_v7 = vsel %vm2892_vm11, %v5335_v20, %v5334_v41  ;;  %v5343_v43 = vrot.slane %v13321_v1, 1  ;;  %v18036_v61 = vpack.c.bf16 %v18035_v58, %v18035_v58  ;;  %v5314_v57 = vsel %vm2898_vm14, %v5313_v49, %v5312_v60  ;;  %v14617_v41 = vpop.permute.xlu0 %5793  ;;  %8130 = vmatpush1.bf16.msra.mxu0 %v11162_v17 }
 0x347   :  { %6427 = vrot.lane.b32.xlu0 %v6407_v19, %s11377_s11  ;;  %v5338_v38 = vsel %vm2894_vm12, %v5337_v10, %v5336_v7  ;;  %v18039_v9 = vrot.slane %v18009_v46, 7  ;;  %v6265_v20 = vrot.slane %v18010_v40, 6  ;;  %18040 = vst [vmem:[#allocation104_spill] sm:$0xff] %v14617_v41  ;;  %v5316_v16 = vsel %vm2900_vm15, %v5315_v51, %v5314_v57  ;;  %v18065_v40 = vld [vmem:[#allocation46_spill] sm:$0xff] }
 0x348   :  { %v14607_v37 = vunpack.c.l.b16 %v18036_v61  ;;  %v5340_v58 = vsel %vm2896_vm13, %v5339_v63, %v5338_v38  ;;  %v6267_v19 = vrot.slane %v18011_v23, 5  ;;  %v6269_v49 = vrot.slane %v18012_v8, 4  ;;  %v14626_v61 = vpop.permute.xlu1 %5797  ;;  %v18044_v8 = vld [vmem:[#allocation138_spill] sm:$0xff]  ;;  %v11168_v23 = vld [vmem:[%s17186_s3 + $0x230] ss:$8 sps:$4 sm:$0xff]  }
 0x349   :  { %v6264_v21 = vsel %vm2888_vm9, %v18039_v9, %v18038_v11  ;;  %v5342_v10 = vsel %vm2898_vm14, %v5341_v62, %v5340_v58  ;;  %v5513_v60 = vpack.c.b16 %v5316_v16, %v5316_v16  ;;  %v6271_v9 = vrot.slane %v18014_v25, 3  ;;  %18041 = vst [vmem:[#allocation120_spill] sm:$0xff] %v14626_v61  ;;  %v18042_v16 = vld [vmem:[#allocation45_spill] sm:$0xff]  ;;  %v18043_v58 = vld [vmem:[#allocation136_spill] sm:$0xff] }
 0x34a   :  { %18037 = vst [vmem:[#allocation102_spill] sm:$0xff] %v14607_v37  ;;  %v6266_v7 = vsel %vm2890_vm10, %v6265_v20, %v6264_v21  ;;  %v5344_v42 = vsel %vm2900_vm15, %v5343_v43, %v5342_v10  ;;  %v6273_v63 = vrot.slane %v18015_v14, 2  ;;  %v6275_v57 = vrot.slane %v14607_v37, 1  ;;  %v18045_v10 = vld [vmem:[#allocation142_spill] sm:$0xff]  ;;  %v18046_v37 = vld [vmem:[#allocation143_spill] sm:$0xff]  ;;  %v18066_v11 = vld [vmem:[#allocation144_spill] sm:$0xff] }
 0x34b   :  { %v6268_v51 = vsel %vm2892_vm11, %v6267_v19, %v6266_v7  ;;  %v5514_v38 = vpack.c.b16 %v5344_v42, %v5344_v42  ;;  %v6775_v17 = vsel %vm616_vm8, %v5513_v60, %v14617_v41  ;;  %v5681_v21 = vrot.slane %v18042_v16, 6  ;;  %v18047_v41 = vld [vmem:[#allocation44_spill] sm:$0xff] }
 0x34c   :  { %v6270_v62 = vsel %vm2894_vm12, %v6269_v49, %v6268_v51  ;;  %v5683_v25 = vrot.slane %v18043_v58, 5  ;;  %v5685_v43 = vrot.slane %v18044_v8, 4  ;;  %v5687_v19 = vrot.slane %v18045_v10, 3 }
 0x34d   :  { %v6272_v20 = vsel %vm2896_vm13, %v6271_v9, %v6270_v62  ;;  %v6778_v7 = vsel %vm616_vm8, %v5514_v38, %v14626_v61  ;;  %v5682_v60 = vsel %vm2890_vm10, %v5681_v21, %v18046_v37  ;;  %v5689_v49 = vrot.slane %v18047_v41, 2  ;;  %v18048_v62 = vld [vmem:[#allocation50_spill] sm:$0xff]  ;;  %v18049_v21 = vld [vmem:[#allocation92_spill] sm:$0xff] }
 0x34e   :  { %v6274_v42 = vsel %vm2898_vm14, %v6273_v63, %v6272_v20  ;;  %v10671_v51 = vcombine.low %v6775_v17, %v6778_v7  ;;  %v5684_v9 = vsel %vm2892_vm11, %v5683_v25, %v5682_v60  ;;  %v5691_v16 = vrot.slane %v18048_v62, 1  ;;  %v11170_v63 = vld [vmem:[%s17186_s3 + $0x234] ss:$8 sps:$4 sm:$0xff]  }
 0x34f   :  { %v6276_v14 = vsel %vm2900_vm15, %v6275_v57, %v6274_v42  ;;  %v5686_v37 = vsel %vm2894_vm12, %v5685_v43, %v5684_v9  ;;  %v18050_v20 = vld [vmem:[#allocation85_spill] sm:$0xff]  ;;  %v5293_v25 = vrot.slane %v17978_v34, 5  ;;  %v5295_v42 = vrot.slane %v13129_v4, 4  ;;  %8131 = vmatprep.subr.bf16.mxu0 %v11170_v63  ;;  %v18053_v34 = vld [vmem:[#allocation100_spill] sm:$0xff] }
 0x350   :  { %v6409_v38 = vpack.c.b16 %v6276_v14, %v6276_v14  ;;  %v18051_v17 = vrot.slane %v18050_v20, 6  ;;  %8009 = vmatprep.mubr.bf16.mxu1 %v10671_v51  ;;  %v5688_v7 = vsel %vm2896_vm13, %v5687_v19, %v5686_v37  ;;  %v5297_v60 = vrot.slane %v13133_v13, 3  ;;  %8132 = vmatpush1.bf16.msra.mxu0 %v11168_v23 }
 0x351   :  { %v5299_v61 = vrot.slane %v13137_v39, 2  ;;  %v5690_v14 = vsel %vm2898_vm14, %v5689_v49, %v5688_v7  ;;  %v5301_v9 = vrot.slane %v13147_v47, 1  ;;  %v18054_v51 = vrot.slane %v18053_v34, 6  ;;  %v18057_v34 = vld [vmem:[#allocation149_spill] sm:$0xff]  ;;  %v11174_v47 = vld [vmem:[%s17186_s3 + $0x220] ss:$8 sps:$4 sm:$0xff]  }
 0x352   :  { %v5292_v57 = vsel %vm2890_vm10, %v18051_v17, %v18049_v21  ;;  %6431 = vrot.lane.b32.xlu1 %v6409_v38, %s11377_s11  ;;  %v18052_v21 = vld [vmem:[#allocation106_spill] sm:$0xff]  ;;  %v5692_v37 = vsel %vm2900_vm15, %v5691_v16, %v5690_v14  ;;  %v5321_v63 = vrot.slane %v17985_v28, 5  ;;  %v5323_v38 = vrot.slane %v17986_v36, 4 }
 0x353   :  { %v5294_v43 = vsel %vm2892_vm11, %v5293_v25, %v5292_v57  ;;  %v5320_v19 = vsel %vm2890_vm10, %v18054_v51, %v18052_v21  ;;  %v5786_v17 = vpack.c.b16 %v5692_v37, %v5692_v37  ;;  %v5325_v57 = vrot.slane %v13305_v31, 3  ;;  %v18055_v16 = vld [vmem:[#allocation58_spill] sm:$0xff] }
 0x354   :  { %v5296_v20 = vsel %vm2894_vm12, %v5295_v42, %v5294_v43  ;;  %v5327_v25 = vrot.slane %v13309_v6, 2  ;;  %v5322_v21 = vsel %vm2892_vm11, %v5321_v63, %v5320_v19  ;;  %v5329_v23 = vrot.slane %v13319_v22, 1  ;;  %v18056_v43 = vld [vmem:[#allocation147_spill] sm:$0xff]  ;;  %v18059_v19 = vld [vmem:[#allocation153_spill] sm:$0xff] }
 0x355   :  { %v5298_v49 = vsel %vm2896_vm13, %v5297_v60, %v5296_v20  ;;  %v5709_v14 = vrot.slane %v18055_v16, 6  ;;  %5811 = vrot.lane.b32.xlu0 %v5786_v17, %s11369_s21  ;;  %v5324_v42 = vsel %vm2894_vm12, %v5323_v38, %v5322_v21  ;;  %v5711_v60 = vrot.slane %v18056_v43, 5  ;;  %v18058_v20 = vld [vmem:[#allocation156_spill] sm:$0xff]  ;;  %v18062_v38 = vld [vmem:[#allocation135_spill] sm:$0xff] }
 0x356   :  { %v5300_v7 = vsel %vm2898_vm14, %v5299_v61, %v5298_v49  ;;  %v5713_v51 = vrot.slane %v18057_v34, 4  ;;  %v5326_v37 = vsel %vm2896_vm13, %v5325_v57, %v5324_v42  ;;  %v5715_v63 = vrot.slane %v18059_v19, 3  ;;  %v18060_v49 = vld [vmem:[#allocation155_spill] sm:$0xff] }
 0x357   :  { %v5302_v28 = vsel %vm2900_vm15, %v5301_v9, %v5300_v7  ;;  %v5710_v61 = vsel %vm2890_vm10, %v5709_v14, %v18058_v20  ;;  %v5717_v4 = vrot.slane %v18060_v49, 2  ;;  %v5328_v16 = vsel %vm2898_vm14, %v5327_v25, %v5326_v37  ;;  %v18061_v9 = vld [vmem:[#allocation65_spill] sm:$0xff]  ;;  %v11176_v57 = vld [vmem:[%s17186_s3 + $0x224] ss:$8 sps:$4 sm:$0xff]  }
 0x358   :  { %v5712_v17 = vsel %vm2892_vm11, %v5711_v60, %v5710_v61  ;;  %v5719_v7 = vrot.slane %v18061_v9, 1  ;;  %v5980_v21 = vrot.slane %v18062_v38, 6  ;;  %v5330_v14 = vsel %vm2900_vm15, %v5329_v23, %v5328_v16  ;;  %v18063_v20 = vld [vmem:[#allocation137_spill] sm:$0xff]  ;;  %v11158_v23 = vld [vmem:[%s17186_s3 + $0x164] ss:$8 sps:$4 sm:$0xff]   ;;  %8133 = vmatprep.subr.bf16.mxu0 %v11176_v57 }
 0x359   :  { %v5714_v42 = vsel %vm2894_vm12, %v5713_v51, %v5712_v17  ;;  %v5982_v25 = vrot.slane %v18063_v20, 5  ;;  %v18064_v37 = vld [vmem:[#allocation141_spill] sm:$0xff]  ;;  %v7138_v39 = vpack.c.b16 %v5330_v14, %v5302_v28  ;;  %v5986_v52 = vrot.slane %v18066_v11, 3  ;;  %v18067_v17 = vld [vmem:[#allocation48_spill] sm:$0xff]  ;;  %8134 = vmatpush1.bf16.msra.mxu0 %v11174_v47  ;;  %v18070_v14 = vld [vmem:[#allocation15_spill] sm:$0xff] }
 0x35a   :  { %v5984_v60 = vrot.slane %v18064_v37, 4  ;;  %v11150_v61 = vld [vmem:[%s17186_s3 + $0x170] ss:$8 sps:$4 sm:$0xff]   ;;  %v5716_v13 = vsel %vm2896_vm13, %v5715_v63, %v5714_v42  ;;  %v5981_v46 = vsel %vm2890_vm10, %v5980_v21, %v18065_v40  ;;  %v5988_v18 = vrot.slane %v18067_v17, 2 }
 0x35b   :  { %v5718_v16 = vsel %vm2898_vm14, %v5717_v4, %v5716_v13  ;;  %v5983_v51 = vsel %vm2892_vm11, %v5982_v25, %v5981_v46  ;;  %v5990_v28 = vrot.slane %v18068_v35, 1  ;;  %8010 = vmatmul.mubr.bf16.vlgmr.msra.gmra.mxu1 %v7138_v39  ;;  %v18069_v21 = vld [vmem:[#allocation116_spill] sm:$0xff]  ;;  %v18071_v42 = vrot.slane %v18070_v14, 6  ;;  %v11156_v39 = vld [vmem:[%s17186_s3 + $0x160] ss:$8 sps:$4 sm:$0xff]  }
 0x35c   :  { %v5720_v63 = vsel %vm2900_vm15, %v5719_v7, %v5718_v16  ;;  %v5985_v40 = vsel %vm2894_vm12, %v5984_v60, %v5983_v51  ;;  %v5363_v57 = vrot.slane %v17988_v27, 5  ;;  %v5365_v47 = vrot.slane %v17989_v12, 4  ;;  %8051 = vmatpush1.bf16.msra.mxu1 %v11150_v61  ;;  %v14743_v51 = vpop.permute.xlu0 %5795  ;;  %v18083_v27 = vld [vmem:[#allocation51_spill] sm:$0xff] }
 0x35d   :  { %v5362_v2 = vsel %vm2890_vm10, %v18071_v42, %v18069_v21  ;;  %v5788_v13 = vpack.c.b16 %v5720_v63, %v5720_v63  ;;  %v5987_v46 = vsel %vm2896_vm13, %v5986_v52, %v5985_v40  ;;  %v5367_v60 = vrot.slane %v17990_v32, 3  ;;  %8052 = vmatprep.subr.bf16.mxu1 %v11158_v23  ;;  %v11161_v52 = vld [vmem:[%s17186_s3 + $0x154] ss:$8 sps:$4 sm:$0xff]   ;;  %18072 = vst [vmem:[#allocation124_spill] sm:$0xff] %v14743_v51 }
 0x35e   :  { %v5989_v7 = vsel %vm2898_vm14, %v5988_v18, %v5987_v46  ;;  %v5364_v25 = vsel %vm2892_vm11, %v5363_v57, %v5362_v2  ;;  %v5369_v16 = vrot.slane %v17991_v33, 2  ;;  %v5371_v18 = vrot.slane %v17993_v50, 1  ;;  %v18073_v2 = vld [vmem:[#allocation146_spill] sm:$0xff]  ;;  %v18074_v23 = vld [vmem:[#allocation148_spill] sm:$0xff] }
 0x35f   :  { %5815 = vrot.lane.b32.xlu1 %v5788_v13, %s11369_s21  ;;  %v5991_v61 = vsel %vm2900_vm15, %v5990_v28, %v5989_v7  ;;  %v5366_v63 = vsel %vm2894_vm12, %v5365_v47, %v5364_v25  ;;  %v6008_v40 = vrot.slane %v18073_v2, 6  ;;  %v6010_v42 = vrot.slane %v18074_v23, 5  ;;  %v18075_v57 = vld [vmem:[#allocation150_spill] sm:$0xff]  ;;  %v18076_v51 = vld [vmem:[#allocation56_spill] sm:$0xff] }
 0x360   :  { %v6098_v21 = vpack.c.b16 %v5991_v61, %v5991_v61  ;;  %v5368_v14 = vsel %vm2896_vm13, %v5367_v60, %v5366_v63  ;;  %v6012_v46 = vrot.slane %v18075_v57, 4  ;;  %v18077_v33 = vld [vmem:[#allocation154_spill] sm:$0xff]  ;;  %v18078_v7 = vld [vmem:[#allocation60_spill] sm:$0xff]  ;;  %8053 = vmatpush1.bf16.msra.mxu1 %v11156_v39  ;;  %v18080_v39 = vpack.c.bf16 %v14379_v3, %v14379_v3  ;;  %v18082_v3 = vld [vmem:[#allocation47_spill] sm:$0xff] }
 0x361   :  { %v5370_v4 = vsel %vm2898_vm14, %v5369_v16, %v5368_v14  ;;  %v6009_v13 = vsel %vm2890_vm10, %v6008_v40, %v18076_v51  ;;  %v6014_v28 = vrot.slane %v18077_v33, 3  ;;  %v6016_v47 = vrot.slane %v18078_v7, 2  ;;  %v11159_v25 = vld [vmem:[%s17186_s3 + $0x150] ss:$8 sps:$4 sm:$0xff]   ;;  %v18079_v63 = vld [vmem:[#allocation62_spill] sm:$0xff]  ;;  %8054 = vmatprep.subr.bf16.mxu1 %v11161_v52 }
 0x362   :  { %6122 = vrot.lane.b32.xlu0 %v6098_v21, %s11376_s0  ;;  %v5372_v60 = vsel %vm2900_vm15, %v5371_v18, %v5370_v4  ;;  %v6011_v61 = vsel %vm2892_vm11, %v6010_v42, %v6009_v13  ;;  %v6018_v16 = vrot.slane %v18079_v63, 1  ;;  %v5994_v14 = vrot.slane %v18043_v58, 6  ;;  %v11167_v51 = vld [vmem:[%s17186_s3 + $0x144] ss:$8 sps:$4 sm:$0xff]   ;;  %v14774_v21 = vpop.permute.xlu0 %5801  ;;  %v11180_v52 = vld [vmem:[%s17186_s3 + $0x210] ss:$8 sps:$4 sm:$0xff]  }
 0x363   :  { %v14772_v40 = vunpack.c.l.b16 %v18080_v39  ;;  %v5515_v50 = vpack.c.b16 %v5372_v60, %v5372_v60  ;;  %18081 = vst [vmem:[#allocation126_spill] sm:$0xff] %v14774_v21  ;;  %v6013_v4 = vsel %vm2894_vm12, %v6012_v46, %v6011_v61  ;;  %v5996_v18 = vrot.slane %v18044_v8, 5  ;;  %v11182_v42 = vld [vmem:[%s17186_s3 + $0x214] ss:$8 sps:$4 sm:$0xff]  }
 0x364   :  { %v6015_v13 = vsel %vm2896_vm13, %v6014_v28, %v6013_v4  ;;  %v5995_v39 = vsel %vm2890_vm10, %v5994_v14, %v18082_v3  ;;  %v5998_v60 = vrot.slane %v18045_v10, 4  ;;  %v6002_v32 = vrot.slane %v18048_v62, 2  ;;  %8055 = vmatpush1.bf16.msra.mxu1 %v11159_v25  ;;  %v11165_v28 = vld [vmem:[%s17186_s3 + $0x140] ss:$8 sps:$4 sm:$0xff]   ;;  %8135 = vmatprep.subr.bf16.mxu0 %v11182_v42  ;;  %v11173_v25 = vld [vmem:[%s17186_s3 + $0x134] ss:$8 sps:$4 sm:$0xff]  }
 0x365   :  { %v6017_v46 = vsel %vm2898_vm14, %v6016_v47, %v6015_v13  ;;  %v5997_v61 = vsel %vm2892_vm11, %v5996_v18, %v5995_v39  ;;  %v6000_v12 = vrot.slane %v18047_v41, 3  ;;  %v6004_v8 = vrot.slane %v18083_v27, 1  ;;  %8056 = vmatprep.subr.bf16.mxu1 %v11167_v51  ;;  %8136 = vmatpush1.bf16.msra.mxu0 %v11180_v52 }
 0x366   :  { %v14798_v14 = vsel %vm616_vm8, %v5515_v50, %v14774_v21  ;;  %v6019_v4 = vsel %vm2900_vm15, %v6018_v16, %v6017_v46  ;;  %v5999_v47 = vsel %vm2894_vm12, %v5998_v60, %v5997_v61  ;;  %v6022_v18 = vrot.slane %v18056_v43, 6  ;;  %v18084_v16 = vld [vmem:[#allocation59_spill] sm:$0xff] }
 0x367   :  { %v6100_v13 = vpack.c.b16 %v6019_v4, %v6019_v4  ;;  %v6001_v3 = vsel %vm2896_vm13, %v6000_v12, %v5999_v47  ;;  %v6024_v42 = vrot.slane %v18057_v34, 5  ;;  %v6026_v50 = vrot.slane %v18059_v19, 4  ;;  %v18085_v12 = vld [vmem:[#allocation66_spill] sm:$0xff]  ;;  %v18086_v47 = vld [vmem:[#allocation52_spill] sm:$0xff] }
 0x368   :  { %v6003_v39 = vsel %vm2898_vm14, %v6002_v32, %v6001_v3  ;;  %v6023_v60 = vsel %vm2890_vm10, %v6022_v18, %v18084_v16  ;;  %v6028_v46 = vrot.slane %v18060_v49, 3  ;;  %v6030_v51 = vrot.slane %v18061_v9, 2  ;;  %8057 = vmatpush1.bf16.msra.mxu1 %v11165_v28  ;;  %v11171_v32 = vld [vmem:[%s17186_s3 + $0x130] ss:$8 sps:$4 sm:$0xff]  }
 0x369   :  { %6126 = vrot.lane.b32.xlu1 %v6100_v13, %s11376_s0  ;;  %v6005_v52 = vsel %vm2900_vm15, %v6004_v8, %v6003_v39  ;;  %v6025_v61 = vsel %vm2892_vm11, %v6024_v42, %v6023_v60  ;;  %v6032_v4 = vrot.slane %v18085_v12, 1  ;;  %v18087_v21 = vpack.c.bf16 %v18086_v47, %v18086_v47  ;;  %v18089_v13 = vld [vmem:[#allocation39_spill] sm:$0xff]  ;;  %8058 = vmatprep.subr.bf16.mxu1 %v11173_v25  ;;  %v18121_v49 = vld [vmem:[#allocation17_spill] sm:$0xff] }
 0x36a   :  { %v6099_v18 = vpack.c.b16 %v6005_v52, %v6005_v52  ;;  %v6027_v3 = vsel %vm2894_vm12, %v6026_v50, %v6025_v61  ;;  %v18090_v8 = vrot.slane %v18062_v38, 7  ;;  %v6293_v39 = vrot.slane %v18063_v20, 6 }
 0x36b   :  { %v14821_v19 = vunpack.c.l.b16 %v18087_v21  ;;  %v11179_v21 = vld [vmem:[%s17186_s3 + $0x124] ss:$8 sps:$4 sm:$0xff]   ;;  %v6029_v28 = vsel %vm2896_vm13, %v6028_v46, %v6027_v3  ;;  %v6295_v16 = vrot.slane %v18064_v37, 5  ;;  %v6297_v60 = vrot.slane %v18066_v11, 4  ;;  %v18091_v3 = vld [vmem:[#allocation96_spill] sm:$0xff]  ;;  %v18118_v37 = vld [vmem:[#allocation109_spill] sm:$0xff] }
 0x36c   :  { %v6292_v42 = vsel %vm2888_vm9, %v18090_v8, %v18089_v13  ;;  %v6299_v50 = vrot.slane %v18067_v17, 3  ;;  %6124 = vrot.lane.b32.xlu0 %v6099_v18, %s11376_s0  ;;  %v6031_v52 = vsel %vm2898_vm14, %v6030_v51, %v6029_v28  ;;  %v6301_v25 = vrot.slane %v18068_v35, 2  ;;  %v18094_v17 = vld [vmem:[#allocation54_spill] sm:$0xff]  ;;  %8059 = vmatpush1.bf16.msra.mxu1 %v11171_v32 }
 0x36d   :  { %18088 = vst [vmem:[#allocation130_spill] sm:$0xff] %v14821_v19  ;;  %v6294_v61 = vsel %vm2890_vm10, %v6293_v39, %v6292_v42  ;;  %v6303_v47 = vrot.slane %v14821_v19, 1  ;;  %v6033_v8 = vsel %vm2900_vm15, %v6032_v4, %v6031_v52  ;;  %v18092_v13 = vpack.c.bf16 %v18091_v3, %v18091_v3  ;;  %v11177_v42 = vld [vmem:[%s17186_s3 + $0x120] ss:$8 sps:$4 sm:$0xff]   ;;  %8060 = vmatprep.subr.bf16.mxu1 %v11179_v21 }
 0x36e   :  { %v6296_v46 = vsel %vm2892_vm11, %v6295_v16, %v6294_v61  ;;  %v18095_v18 = vrot.slane %v18073_v2, 7  ;;  %v6101_v39 = vpack.c.b16 %v6033_v8, %v6033_v8  ;;  %v6321_v28 = vrot.slane %v18074_v23, 6  ;;  %v18110_v19 = vld [vmem:[#allocation178_spill] sm:$0xff] }
 0x36f   :  { %v14849_v38 = vunpack.c.l.b16 %v18092_v13  ;;  %v6298_v4 = vsel %vm2894_vm12, %v6297_v60, %v6296_v46  ;;  %v6323_v16 = vrot.slane %v18075_v57, 5  ;;  %v6325_v52 = vrot.slane %v18077_v33, 4  ;;  %v18096_v46 = vld [vmem:[#allocation68_spill] sm:$0xff] }
 0x370   :  { %v6320_v51 = vsel %vm2888_vm9, %v18095_v18, %v18094_v17  ;;  %v6300_v13 = vsel %vm2896_vm13, %v6299_v50, %v6298_v4  ;;  %v6327_v61 = vrot.slane %v18078_v7, 3  ;;  %v6329_v32 = vrot.slane %v18079_v63, 2  ;;  %6128 = vrot.lane.b32.xlu1 %v6101_v39, %s11376_s0  ;;  %v18097_v4 = vld [vmem:[#allocation158_spill] sm:$0xff]  ;;  %v18098_v33 = vld [vmem:[#allocation160_spill] sm:$0xff]  ;;  %8061 = vmatpush1.bf16.msra.mxu1 %v11177_v42 }
 0x371   :  { %18093 = vst [vmem:[#allocation131_spill] sm:$0xff] %v14849_v38  ;;  %v6302_v3 = vsel %vm2898_vm14, %v6301_v25, %v6300_v13  ;;  %v6322_v8 = vsel %vm2890_vm10, %v6321_v28, %v6320_v51  ;;  %v6331_v60 = vrot.slane %v14849_v38, 1  ;;  %v5737_v18 = vrot.slane %v18096_v46, 6  ;;  %v11183_v39 = vld [vmem:[%s17186_s3 + $0x110] ss:$8 sps:$4 sm:$0xff]   ;;  %v18099_v13 = vld [vmem:[#allocation167_spill] sm:$0xff] }
 0x372   :  { %v6304_v21 = vsel %vm2900_vm15, %v6303_v47, %v6302_v3  ;;  %v6324_v50 = vsel %vm2892_vm11, %v6323_v16, %v6322_v8  ;;  %v5739_v17 = vrot.slane %v18097_v4, 5  ;;  %v5741_v7 = vrot.slane %v18098_v33, 4  ;;  %v11185_v25 = vld [vmem:[%s17186_s3 + $0x114] ss:$8 sps:$4 sm:$0xff]   ;;  %v11186_v42 = vld [vmem:[%s17186_s3 + $0x200] ss:$8 sps:$4 sm:$0xff]  }
 0x373   :  { %v6411_v51 = vpack.c.b16 %v6304_v21, %v6304_v21  ;;  %v6326_v28 = vsel %vm2894_vm12, %v6325_v52, %v6324_v50  ;;  %v5738_v47 = vsel %vm2890_vm10, %v5737_v18, %v18099_v13  ;;  %v18100_v16 = vld [vmem:[#allocation164_spill] sm:$0xff]  ;;  %v11188_v8 = vld [vmem:[%s17186_s3 + $0x204] ss:$8 sps:$4 sm:$0xff]   ;;  %v5747_v52 = vrot.slane %v14368_v26, 1  ;;  %8062 = vmatprep.subr.bf16.mxu1 %v11185_v25 }
 0x374   :  { %v5743_v3 = vrot.slane %v18100_v16, 3  ;;  %v6328_v46 = vsel %vm2896_vm13, %v6327_v61, %v6326_v28  ;;  %v5740_v38 = vsel %vm2892_vm11, %v5739_v17, %v5738_v47  ;;  %v18101_v21 = vld [vmem:[#allocation166_spill] sm:$0xff]  ;;  %v18102_v13 = vpack.c.bf16 %v14388_v5, %v14388_v5  ;;  %v18104_v57 = vld [vmem:[#allocation76_spill] sm:$0xff]  ;;  %v18105_v61 = vld [vmem:[#allocation73_spill] sm:$0xff]  ;;  %8137 = vmatprep.subr.bf16.mxu0 %v11188_v8  ;;  %8063 = vmatpush1.bf16.msra.mxu1 %v11183_v39 }
 0x375   :  { %v5745_v63 = vrot.slane %v18101_v21, 2  ;;  %6435 = vrot.lane.b32.xlu0 %v6411_v51, %s11377_s11  ;;  %v6330_v18 = vsel %vm2898_vm14, %v6329_v32, %v6328_v46  ;;  %v5742_v50 = vsel %vm2894_vm12, %v5741_v7, %v5740_v38  ;;  %v18106_v28 = vrot.slane %v18105_v61, 7  ;;  %v18107_v51 = vld [vmem:[#allocation12_spill] sm:$0xff]  ;;  %v18108_v32 = vld [vmem:[#allocation169_spill] sm:$0xff]  ;;  %8138 = vmatpush1.bf16.msra.mxu0 %v11186_v42 }
 0x376   :  { %v14900_v2 = vunpack.c.l.b16 %v18102_v13  ;;  %v6332_v47 = vsel %vm2900_vm15, %v6331_v60, %v6330_v18  ;;  %v5744_v25 = vsel %vm2896_vm13, %v5743_v3, %v5742_v50  ;;  %v6377_v23 = vrot.slane %v18107_v51, 6  ;;  %v18109_v7 = vld [vmem:[#allocation173_spill] sm:$0xff] }
 0x377   :  { %v6376_v17 = vsel %vm2888_vm9, %v18106_v28, %v18104_v57  ;;  %v6379_v46 = vrot.slane %v18108_v32, 5  ;;  %v6413_v38 = vpack.c.b16 %v6332_v47, %v6332_v47  ;;  %v5746_v5 = vsel %vm2898_vm14, %v5745_v63, %v5744_v25  ;;  %v18111_v42 = vld [vmem:[#allocation157_spill] sm:$0xff]  ;;  %v18112_v63 = vld [vmem:[#allocation159_spill] sm:$0xff] }
 0x378   :  { %18103 = vst [vmem:[#allocation32_spill] sm:$0xff] %v14900_v2  ;;  %v6381_v13 = vrot.slane %v18109_v7, 4  ;;  %v6383_v35 = vrot.slane %v18110_v19, 3  ;;  %v5748_v28 = vsel %vm2900_vm15, %v5747_v52, %v5746_v5  ;;  %v6378_v8 = vsel %vm2890_vm10, %v6377_v23, %v6376_v17  ;;  %v18113_v57 = vld [vmem:[#allocation161_spill] sm:$0xff]  ;;  %v18115_v23 = vld [vmem:[#allocation80_spill] sm:$0xff] }
 0x379   :  { %v6385_v60 = vrot.slane %v14772_v40, 2  ;;  %v6387_v3 = vrot.slane %v14900_v2, 1  ;;  %6439 = vrot.lane.b32.xlu1 %v6413_v38, %s11377_s11  ;;  %v5790_v18 = vpack.c.b16 %v5748_v28, %v5748_v28  ;;  %v6380_v39 = vsel %vm2892_vm11, %v6379_v46, %v6378_v8  ;;  %v18114_v52 = vld [vmem:[#allocation165_spill] sm:$0xff]  ;;  %v18117_v46 = vld [vmem:[#allocation176_spill] sm:$0xff] }
 0x37a   :  { %v6036_v50 = vrot.slane %v18111_v42, 6  ;;  %v6038_v47 = vrot.slane %v18112_v63, 5  ;;  %v6382_v25 = vsel %vm2894_vm12, %v6381_v13, %v6380_v39  ;;  %v6040_v11 = vrot.slane %v18113_v57, 4  ;;  %v18116_v38 = vld [vmem:[#allocation69_spill] sm:$0xff]  ;;  %v11189_v13 = vld [vmem:[%s17186_s3 + $0x100] ss:$8 sps:$4 sm:$0xff]  }
 0x37b   :  { %v6042_v5 = vrot.slane %v18114_v52, 3  ;;  %v6044_v17 = vrot.slane %v18115_v23, 2  ;;  %5819 = vrot.lane.b32.xlu0 %v5790_v18, %s11369_s21  ;;  %v6384_v2 = vsel %vm2896_vm13, %v6383_v35, %v6382_v25  ;;  %v6046_v8 = vrot.slane %v18117_v46, 1  ;;  %v11191_v18 = vld [vmem:[%s17186_s3 + $0x104] ss:$8 sps:$4 sm:$0xff]  }
 0x37c   :  { %v6037_v28 = vsel %vm2890_vm10, %v6036_v50, %v18116_v38  ;;  %v18119_v20 = vpack.c.bf16 %v18118_v37, %v18118_v37  ;;  %v6386_v35 = vsel %vm2898_vm14, %v6385_v60, %v6384_v2  ;;  %v18120_v50 = vrot.slane %v13303_v0, 7  ;;  %v11192_v37 = vld [vmem:[%s17186_s3 + $0x2f0] ss:$8 sps:$4 sm:$0xff]   ;;  %v11194_v38 = vld [vmem:[%s17186_s3 + $0x2f4] ss:$8 sps:$4 sm:$0xff]   ;;  %8064 = vmatprep.subr.bf16.mxu1 %v11191_v18 }
 0x37d   :  { %v6039_v39 = vsel %vm2892_vm11, %v6038_v47, %v6037_v28  ;;  %v6388_v9 = vsel %vm2900_vm15, %v6387_v3, %v6386_v35  ;;  %v6225_v60 = vrot.slane %v18034_v29, 5  ;;  %v6227_v47 = vrot.slane %v13321_v1, 4  ;;  %8065 = vmatpush1.bf16.msra.mxu1 %v11189_v13  ;;  %8139 = vmatprep.subr.bf16.mxu0 %v11194_v38  ;;  %v18122_v35 = vld [vmem:[#allocation18_spill] sm:$0xff] }
 0x37e   :  { %v14933_v12 = vunpack.c.l.b16 %v18119_v20  ;;  %v6222_v25 = vsel %vm2888_vm9, %v18120_v50, %v18032_v54  ;;  %v6223_v20 = vrot.slane %v18033_v15, 6  ;;  %v6041_v2 = vsel %vm2894_vm12, %v6040_v11, %v6039_v39  ;;  %8140 = vmatpush2.bf16.msra.mxu0 %v11192_v37  ;;  %v18123_v37 = vld [vmem:[#allocation72_spill] sm:$0xff] }
 0x37f   :  { %v6417_v54 = vpack.c.b16 %v6388_v9, %v6388_v9  ;;  %v6043_v28 = vsel %vm2896_vm13, %v6042_v5, %v6041_v2  ;;  %v6229_v34 = vrot.slane %v18121_v49, 3  ;;  %v6231_v11 = vrot.slane %v18122_v35, 2 }
 0x380   :  { %v6224_v50 = vsel %vm2890_vm10, %v6223_v20, %v6222_v25  ;;  %v6045_v43 = vsel %vm2898_vm14, %v6044_v17, %v6043_v28  ;;  %v6233_v39 = vrot.slane %v14933_v12, 1  ;;  %v6050_v18 = vrot.slane %v18097_v4, 6  ;;  %v18178_v4 = vld [vmem:[#allocation94_spill] sm:$0xff] }
 0x381   :  { %v6226_v3 = vsel %vm2892_vm11, %v6225_v60, %v6224_v50  ;;  %6447 = vrot.lane.b32.xlu1 %v6417_v54, %s11377_s11  ;;  %v6047_v9 = vsel %vm2900_vm15, %v6046_v8, %v6045_v43  ;;  %v6052_v13 = vrot.slane %v18098_v33, 5  ;;  %v6054_v20 = vrot.slane %v18100_v16, 4  ;;  %v18124_v8 = vld [vmem:[#allocation177_spill] sm:$0xff]  ;;  %v18126_v50 = vld [vmem:[#allocation31_spill] sm:$0xff] }
 0x382   :  { %v6228_v5 = vsel %vm2894_vm12, %v6227_v47, %v6226_v3  ;;  %v6102_v25 = vpack.c.b16 %v6047_v9, %v6047_v9  ;;  %v6056_v38 = vrot.slane %v18101_v21, 3  ;;  %v6051_v60 = vsel %vm2890_vm10, %v6050_v18, %v18123_v37  ;;  %v11195_v18 = vld [vmem:[%s17186_s3 + $0x1f0] ss:$8 sps:$4 sm:$0xff]   ;;  %v11198_v37 = vld [vmem:[%s17186_s3 + $0x2e0] ss:$8 sps:$4 sm:$0xff]  }
 0x383   :  { %v6230_v17 = vsel %vm2896_vm13, %v6229_v34, %v6228_v5  ;;  %v6058_v43 = vrot.slane %v14368_v26, 2  ;;  %v6060_v47 = vrot.slane %v18124_v8, 1  ;;  %v6053_v28 = vsel %vm2892_vm11, %v6052_v13, %v6051_v60  ;;  %v18125_v34 = vld [vmem:[#allocation128_spill] sm:$0xff]  ;;  %v18128_v5 = vld [vmem:[#allocation122_spill] sm:$0xff]  ;;  %v18130_v26 = vld [vmem:[#allocation3_spill] sm:$0xff] }
 0x384   :  { %v6232_v2 = vsel %vm2898_vm14, %v6231_v11, %v6230_v17  ;;  %6130 = vrot.lane.b32.xlu0 %v6102_v25, %s11376_s0  ;;  %v18127_v3 = vrot.slane %v18126_v50, 6  ;;  %v5391_v11 = vrot.slane %v18128_v5, 5  ;;  %v11197_v17 = vld [vmem:[%s17186_s3 + $0x1f4] ss:$8 sps:$4 sm:$0xff]   ;;  %v5393_v13 = vrot.slane %v17996_v55, 4 }
 0x385   :  { %v6234_v54 = vsel %vm2900_vm15, %v6233_v39, %v6232_v2  ;;  %v6055_v39 = vsel %vm2894_vm12, %v6054_v20, %v6053_v28  ;;  %v5395_v2 = vrot.slane %v17997_v24, 3  ;;  %v11200_v60 = vld [vmem:[%s17186_s3 + $0x2e4] ss:$8 sps:$4 sm:$0xff]   ;;  %v5397_v20 = vrot.slane %v17998_v45, 2  ;;  %8066 = vmatprep.subr.bf16.mxu1 %v11197_v17  ;;  %v18131_v21 = vld [vmem:[#allocation9_spill] sm:$0xff] }
 0x386   :  { %v5390_v9 = vsel %vm2890_vm10, %v18127_v3, %v18125_v34  ;;  %v6406_v25 = vpack.c.b16 %v6234_v54, %v6234_v54  ;;  %v15001_v34 = vpop.permute.xlu1 %5799  ;;  %v6057_v50 = vsel %vm2896_vm13, %v6056_v38, %v6055_v39  ;;  %v5399_v28 = vrot.slane %v18000_v30, 1  ;;  %8067 = vmatpush2.bf16.msra.mxu1 %v11195_v18  ;;  %8141 = vmatprep.subr.bf16.mxu0 %v11200_v60 }
 0x387   :  { %18129 = vst [vmem:[#allocation21_spill] sm:$0xff] %v15001_v34  ;;  %v5392_v54 = vsel %vm2892_vm11, %v5391_v11, %v5390_v9  ;;  %v6059_v3 = vsel %vm2898_vm14, %v6058_v43, %v6057_v50  ;;  %v18132_v16 = vmax.f32 %v18131_v21, 0.0  ;;  %v6520_v34 = vrot.slane %v13305_v31, 7  ;;  %8142 = vmatpush2.bf16.msra.mxu0 %v11198_v37  ;;  %v18136_v50 = vld [vmem:[#allocation87_spill] sm:$0xff] }
 0x388   :  { %6425 = vrot.lane.b32.xlu1 %v6406_v25, %s11377_s11  ;;  %v5394_v8 = vsel %vm2894_vm12, %v5393_v13, %v5392_v54  ;;  %v6061_v38 = vsel %vm2900_vm15, %v6060_v47, %v6059_v3  ;;  %v6522_v11 = vrot.slane %v13309_v6, 6  ;;  %v6524_v17 = vrot.slane %v13319_v22, 5  ;;  %v18135_v6 = vld [vmem:[#allocation14_spill] sm:$0xff]  ;;  %v18137_v37 = vld [vmem:[#allocation79_spill] sm:$0xff] }
 0x389   :  { %v4068_v33 = vrot.slane %v18132_v16, %v18130_v26  ;;  %v5396_v9 = vsel %vm2896_vm13, %v5395_v2, %v5394_v8  ;;  %v6103_v25 = vpack.c.b16 %v6061_v38, %v6061_v38  ;;  %v6521_v13 = vsel %vm2888_vm9, %v6520_v34, %v17986_v36  ;;  %v18134_v8 = vld [vmem:[#allocation13_spill] sm:$0xff] }
 0x38a   :  { %v5398_v43 = vsel %vm2898_vm14, %v5397_v20, %v5396_v9  ;;  %v15022_v16 = vpop.permute.xlu1 %5805  ;;  %v6523_v47 = vsel %vm2890_vm10, %v6522_v11, %v6521_v13  ;;  %v6526_v18 = vrot.slane %v18134_v8, 4  ;;  %v6528_v2 = vrot.slane %v18135_v6, 3  ;;  %v11203_v13 = vld [vmem:[%s17186_s3 + $0x1e4] ss:$8 sps:$4 sm:$0xff]   ;;  %v11204_v6 = vld [vmem:[%s17186_s3 + $0x2d0] ss:$8 sps:$4 sm:$0xff]  }
 0x38b   :  { %v4887_v39 = vpack.c.bf16 %v4068_v33, %v4068_v33  ;;  %v5400_v31 = vsel %vm2900_vm15, %v5399_v28, %v5398_v43  ;;  %18133 = vst [vmem:[#allocation35_spill] sm:$0xff] %v15022_v16  ;;  %6132 = vrot.lane.b32.xlu0 %v6103_v25, %s11376_s0  ;;  %v6525_v33 = vsel %vm2892_vm11, %v6524_v17, %v6523_v47  ;;  %v6530_v54 = vrot.slane %v18136_v50, 2  ;;  %v18140_v28 = vld [vmem:[#allocation64_spill] sm:$0xff]  ;;  %v18142_v50 = vld [vmem:[#allocation179_spill] sm:$0xff] }
 0x38c   :  { %v5516_v22 = vpack.c.b16 %v5400_v31, %v5400_v31  ;;  %v6527_v36 = vsel %vm2894_vm12, %v6526_v18, %v6525_v33  ;;  %v18138_v34 = vpack.c.bf16 %v18137_v37, %v18137_v37  ;;  %v18141_v3 = vrot.slane %v18111_v42, 7  ;;  %8068 = vmatprep.subr.bf16.mxu1 %v11203_v13  ;;  %v11207_v13 = vld [vmem:[%s17186_s3 + $0x1d0] ss:$8 sps:$4 sm:$0xff]  }
 0x38d   :  { %v6478_v60 = vunpack.c.l.b16 %v4887_v39  ;;  %v6349_v9 = vrot.slane %v18112_v63, 6  ;;  %v6529_v17 = vsel %vm2896_vm13, %v6528_v2, %v6527_v36  ;;  %v6351_v43 = vrot.slane %v18113_v57, 5  ;;  %v11201_v39 = vld [vmem:[%s17186_s3 + $0x1e0] ss:$8 sps:$4 sm:$0xff]   ;;  %v11206_v2 = vld [vmem:[%s17186_s3 + $0x2d4] ss:$8 sps:$4 sm:$0xff]  }
 0x38e   :  { %v15034_v20 = vunpack.c.l.b16 %v18138_v34  ;;  %v6348_v38 = vsel %vm2888_vm9, %v18141_v3, %v18140_v28  ;;  %v6784_v11 = vsel %vm616_vm8, %v5516_v22, %v15022_v16  ;;  %v6531_v47 = vsel %vm2898_vm14, %v6530_v54, %v6529_v17  ;;  %8069 = vmatpush2.bf16.msra.mxu1 %v11201_v39  ;;  %8143 = vmatprep.subr.bf16.mxu0 %v11206_v2  ;;  %v11209_v39 = vld [vmem:[%s17186_s3 + $0x1d4] ss:$8 sps:$4 sm:$0xff]   ;;  %v18176_v63 = vld [vmem:[#allocation90_spill] sm:$0xff] }
 0x38f   :  { %v6532_v25 = vrot.slane %v6478_v60, 1  ;;  %v10680_v31 = vcombine.low %v14798_v14, %v6784_v11  ;;  %v6350_v8 = vsel %vm2890_vm10, %v6349_v9, %v6348_v38  ;;  %v6353_v18 = vrot.slane %v18114_v52, 4  ;;  %v18144_v11 = vld [vmem:[#allocation5_spill] sm:$0xff]  ;;  %8144 = vmatpush2.bf16.msra.mxu0 %v11204_v6  ;;  %8070 = vmatprep.subr.bf16.mxu1 %v11209_v39  ;;  %v18172_v42 = vld [vmem:[#allocation172_spill] sm:$0xff]  ;;  %v18173_v52 = vld [vmem:[#allocation174_spill] sm:$0xff] }
 0x390   :  { %18139 = vst [vmem:[#allocation23_spill] sm:$0xff] %v15034_v20  ;;  %v6352_v60 = vsel %vm2892_vm11, %v6351_v43, %v6350_v8  ;;  %v6355_v14 = vrot.slane %v18115_v23, 3  ;;  %v6357_v33 = vrot.slane %v18117_v46, 2  ;;  %v6359_v34 = vrot.slane %v15034_v20, 1  ;;  %v18166_v28 = vld [vmem:[#allocation129_spill] sm:$0xff] }
 0x391   :  { %v6533_v22 = vsel %vm2900_vm15, %v6532_v25, %v6531_v47  ;;  %v6354_v37 = vsel %vm2894_vm12, %v6353_v18, %v6352_v60  ;;  %8019 = vmatprep.mubr.bf16.mxu1 %v10680_v31  ;;  %v18143_v3 = vpack.c.bf16 %v14373_v56, %v14373_v56  ;;  %v18145_v17 = vmax.f32 %v18131_v21, 0.0  ;;  %v11210_v47 = vld [vmem:[%s17186_s3 + $0x2c0] ss:$8 sps:$4 sm:$0xff]  }
 0x392   :  { %v6718_v36 = vpack.c.b16 %v6533_v22, %v6533_v22  ;;  %v6356_v9 = vsel %vm2896_vm13, %v6355_v14, %v6354_v37  ;;  %v6534_v43 = vrot.slane %v18033_v15, 7  ;;  %v6536_v31 = vrot.slane %v18034_v29, 6  ;;  %v18146_v60 = vld [vmem:[#allocation99_spill] sm:$0xff]  ;;  %8071 = vmatpush2.bf16.msra.mxu1 %v11207_v13 }
 0x393   :  { %v15072_v38 = vunpack.c.l.b16 %v18143_v3  ;;  %v4072_v25 = vrot.slane %v18145_v17, %v18144_v11  ;;  %v6358_v56 = vsel %vm2898_vm14, %v6357_v33, %v6356_v9  ;;  %v6538_v21 = vrot.slane %v13321_v1, 5  ;;  %v11212_v1 = vld [vmem:[%s17186_s3 + $0x2c4] ss:$8 sps:$4 sm:$0xff]   ;;  %v11216_v9 = vld [vmem:[%s17186_s3 + $0x2b0] ss:$8 sps:$4 sm:$0xff]  }
 0x394   :  { %6736 = vrot.lane.b32.xlu1 %v6718_v36, %s11378_s28  ;;  %v6540_v15 = vrot.slane %v18121_v49, 4  ;;  %v6360_v8 = vsel %vm2900_vm15, %v6359_v34, %v6358_v56  ;;  %v6535_v2 = vsel %vm2888_vm9, %v6534_v43, %v13303_v0  ;;  %v6542_v22 = vrot.slane %v18122_v35, 3  ;;  %v11213_v0 = vld [vmem:[%s17186_s3 + $0x1c0] ss:$8 sps:$4 sm:$0xff]   ;;  %v11215_v35 = vld [vmem:[%s17186_s3 + $0x1c4] ss:$8 sps:$4 sm:$0xff]   ;;  %8145 = vmatprep.subr.bf16.mxu0 %v11212_v1 }
 0x395   :  { %v4888_v18 = vpack.c.bf16 %v4072_v25, %v4072_v25  ;;  %v6415_v29 = vpack.c.b16 %v6360_v8, %v6360_v8  ;;  %v6537_v49 = vsel %vm2890_vm10, %v6536_v31, %v6535_v2  ;;  %v6544_v6 = vrot.slane %v14933_v12, 2  ;;  %v11218_v17 = vld [vmem:[%s17186_s3 + $0x2b4] ss:$8 sps:$4 sm:$0xff]   ;;  %v18149_v13 = vld [vmem:[#allocation95_spill] sm:$0xff]  ;;  %8146 = vmatpush2.bf16.msra.mxu0 %v11210_v47  ;;  %8072 = vmatprep.subr.bf16.mxu1 %v11215_v35  ;;  %v11219_v35 = vld [vmem:[%s17186_s3 + $0x1b0] ss:$8 sps:$4 sm:$0xff]  }
 0x396   :  { %v18147_v14 = vpack.c.bf16 %v18146_v60, %v18146_v60  ;;  %v6539_v37 = vsel %vm2892_vm11, %v6538_v21, %v6537_v49  ;;  %v18148_v12 = vrot.slane %v13131_v44, 7  ;;  %v6195_v3 = vrot.slane %v13135_v48, 6  ;;  %v11221_v31 = vld [vmem:[%s17186_s3 + $0x1b4] ss:$8 sps:$4 sm:$0xff]   ;;  %v18151_v2 = vld [vmem:[#allocation11_spill] sm:$0xff]  ;;  %8147 = vmatprep.subr.bf16.mxu0 %v11218_v17  ;;  %8073 = vmatpush2.bf16.msra.mxu1 %v11213_v0 }
 0x397   :  { %v6479_v36 = vunpack.c.l.b16 %v4888_v18  ;;  %6443 = vrot.lane.b32.xlu0 %v6415_v29, %s11377_s11  ;;  %v6541_v25 = vsel %vm2894_vm12, %v6540_v15, %v6539_v37  ;;  %v6197_v43 = vrot.slane %v13139_v53, 5  ;;  %v6199_v39 = vrot.slane %v18149_v13, 4  ;;  %v11224_v15 = vld [vmem:[%s17186_s3 + $0x2a4] ss:$8 sps:$4 sm:$0xff]   ;;  %8074 = vmatprep.subr.bf16.mxu1 %v11221_v31 }
 0x398   :  { %v15105_v33 = vunpack.c.l.b16 %v18147_v14  ;;  %v6194_v34 = vsel %vm2888_vm9, %v18148_v12, %v18028_v59  ;;  %v18150_v59 = vld [vmem:[#allocation10_spill] sm:$0xff]  ;;  %v6543_v21 = vsel %vm2896_vm13, %v6542_v22, %v6541_v25  ;;  %v6203_v1 = vrot.slane %v18151_v2, 2  ;;  %v18152_v60 = vld [vmem:[#allocation115_spill] sm:$0xff]  ;;  %v18153_v14 = vld [vmem:[#allocation20_spill] sm:$0xff] }
 0x399   :  { %v6201_v56 = vrot.slane %v18150_v59, 3  ;;  %v6546_v8 = vrot.slane %v6479_v36, 1  ;;  %v6196_v18 = vsel %vm2890_vm10, %v6195_v3, %v6194_v34  ;;  %v6545_v29 = vsel %vm2898_vm14, %v6544_v6, %v6543_v21  ;;  %v18155_v34 = vld [vmem:[#allocation16_spill] sm:$0xff]  ;;  %v18156_v3 = vld [vmem:[#allocation110_spill] sm:$0xff]  ;;  %8148 = vmatpush2.bf16.msra.mxu0 %v11216_v9 }
 0x39a   :  { %v6198_v47 = vsel %vm2892_vm11, %v6197_v43, %v6196_v18  ;;  %v6205_v49 = vrot.slane %v15105_v33, 1  ;;  %v18154_v22 = vrot.slane %v18153_v14, 6  ;;  %v5349_v6 = vrot.slane %v18155_v34, 5  ;;  %v11227_v25 = vld [vmem:[%s17186_s3 + $0x1a4] ss:$8 sps:$4 sm:$0xff]   ;;  %v18157_v21 = vld [vmem:[#allocation112_spill] sm:$0xff]  ;;  %8149 = vmatprep.subr.bf16.mxu0 %v11224_v15  ;;  %8075 = vmatpush2.bf16.msra.mxu1 %v11219_v35 }
 0x39b   :  { %v6547_v37 = vsel %vm2900_vm15, %v6546_v8, %v6545_v29  ;;  %v6200_v12 = vsel %vm2894_vm12, %v6199_v39, %v6198_v47  ;;  %v5351_v17 = vrot.slane %v18156_v3, 4  ;;  %v5353_v18 = vrot.slane %v18157_v21, 3  ;;  %v11222_v39 = vld [vmem:[%s17186_s3 + $0x2a0] ss:$8 sps:$4 sm:$0xff]   ;;  %v11230_v9 = vld [vmem:[%s17186_s3 + $0x294] ss:$8 sps:$4 sm:$0xff]   ;;  %8076 = vmatprep.subr.bf16.mxu1 %v11227_v25 }
 0x39c   :  { %v5348_v36 = vsel %vm2890_vm10, %v18154_v22, %v18152_v60  ;;  %v6719_v43 = vpack.c.b16 %v6547_v37, %v6547_v37  ;;  %v6202_v0 = vsel %vm2896_vm13, %v6201_v56, %v6200_v12  ;;  %v18158_v60 = vld [vmem:[#allocation114_spill] sm:$0xff]  ;;  %v18160_v22 = vld [vmem:[#allocation127_spill] sm:$0xff]  ;;  %v6496_v27 = vrot.slane %v18178_v4, 5 }
 0x39d   :  { %v5355_v14 = vrot.slane %v18158_v60, 2  ;;  %v6204_v8 = vsel %vm2898_vm14, %v6203_v1, %v6202_v0  ;;  %v5350_v31 = vsel %vm2892_vm11, %v5349_v6, %v5348_v36  ;;  %v18159_v29 = vld [vmem:[#allocation118_spill] sm:$0xff]  ;;  %v18164_v6 = vld [vmem:[#allocation123_spill] sm:$0xff]  ;;  %8150 = vmatpush2.bf16.msra.mxu0 %v11222_v39 }
 0x39e   :  { %v5357_v47 = vrot.slane %v18159_v29, 1  ;;  %v18161_v34 = vld [vmem:[#allocation30_spill] sm:$0xff]  ;;  %6738 = vrot.lane.b32.xlu1 %v6719_v43, %s11378_s28  ;;  %v6206_v12 = vsel %vm2900_vm15, %v6205_v49, %v6204_v8  ;;  %v5352_v1 = vsel %vm2894_vm12, %v5351_v17, %v5350_v31  ;;  %v5379_v54 = vrot.slane %v18164_v6, 4  ;;  %v11233_v49 = vld [vmem:[%s17186_s3 + $0x194] ss:$8 sps:$4 sm:$0xff]   ;;  %8151 = vmatprep.subr.bf16.mxu0 %v11230_v9 }
 0x39f   :  { %v18162_v37 = vrot.slane %v18161_v34, 6  ;;  %v18163_v0 = vld [vmem:[#allocation34_spill] sm:$0xff]  ;;  %v6404_v15 = vpack.c.b16 %v6206_v12, %v6206_v12  ;;  %v5354_v34 = vsel %vm2896_vm13, %v5353_v18, %v5352_v1  ;;  %v5383_v43 = vrot.slane %v18166_v28, 2  ;;  %v18167_v8 = vld [vmem:[#allocation132_spill] sm:$0xff] }
 0x3a0   :  { %v5377_v36 = vrot.slane %v18163_v0, 5  ;;  %v5356_v17 = vsel %vm2898_vm14, %v5355_v14, %v5354_v34  ;;  %v5385_v31 = vrot.slane %v18167_v8, 1  ;;  %v18168_v0 = vld [vmem:[#allocation77_spill] sm:$0xff]  ;;  %v18169_v1 = vld [vmem:[#allocation78_spill] sm:$0xff]  ;;  %v18170_v14 = vld [vmem:[#allocation168_spill] sm:$0xff] }
 0x3a1   :  { %v5376_v56 = vsel %vm2890_vm10, %v18162_v37, %v18160_v22  ;;  %v11225_v22 = vld [vmem:[%s17186_s3 + $0x1a0] ss:$8 sps:$4 sm:$0xff]   ;;  %v18165_v37 = vld [vmem:[#allocation125_spill] sm:$0xff]  ;;  %v5765_v20 = vrot.slane %v18168_v0, 6  ;;  %6421 = vrot.lane.b32.xlu0 %v6404_v15, %s11377_s11  ;;  %v5358_v25 = vsel %vm2900_vm15, %v5357_v47, %v5356_v17  ;;  %v5767_v46 = vrot.slane %v18169_v1, 5 }
 0x3a2   :  { %v5381_v16 = vrot.slane %v18165_v37, 3  ;;  %v5378_v35 = vsel %vm2892_vm11, %v5377_v36, %v5376_v56  ;;  %v11228_v18 = vld [vmem:[%s17186_s3 + $0x290] ss:$8 sps:$4 sm:$0xff]   ;;  %v5769_v34 = vrot.slane %v18170_v14, 4  ;;  %v11236_v56 = vld [vmem:[%s17186_s3 + $0x284] ss:$8 sps:$4 sm:$0xff]   ;;  %8077 = vmatpush2.bf16.msra.mxu1 %v11225_v22 }
 0x3a3   :  { %v5380_v12 = vsel %vm2894_vm12, %v5379_v54, %v5378_v35  ;;  %v18171_v36 = vld [vmem:[#allocation175_spill] sm:$0xff]  ;;  %v5771_v15 = vrot.slane %v18172_v42, 3  ;;  %v5773_v47 = vrot.slane %v18173_v52, 2  ;;  %v11231_v54 = vld [vmem:[%s17186_s3 + $0x190] ss:$8 sps:$4 sm:$0xff]   ;;  %v5775_v35 = vrot.slane %v15072_v38, 1  ;;  %8078 = vmatprep.subr.bf16.mxu1 %v11233_v49  ;;  %8152 = vmatpush2.bf16.msra.mxu0 %v11228_v18 }
 0x3a4   :  { %v5382_v39 = vsel %vm2896_vm13, %v5381_v16, %v5380_v12  ;;  %v5766_v23 = vsel %vm2890_vm10, %v5765_v20, %v18171_v36  ;;  %v18174_v16 = vld [vmem:[#allocation97_spill] sm:$0xff]  ;;  %v11239_v20 = vld [vmem:[%s17186_s3 + $0x184] ss:$8 sps:$4 sm:$0xff]   ;;  %v6492_v0 = vrot.slane %v18176_v63, 7  ;;  %8153 = vmatprep.subr.bf16.mxu0 %v11236_v56 }
 0x3a5   :  { %v5384_v9 = vsel %vm2898_vm14, %v5383_v43, %v5382_v39  ;;  %v5768_v17 = vsel %vm2892_vm11, %v5767_v46, %v5766_v23  ;;  %v18175_v12 = vmax.f32 %v18174_v16, 0.0  ;;  %v18177_v43 = vld [vmem:[#allocation91_spill] sm:$0xff]  ;;  %v18180_v63 = vld [vmem:[#allocation6_spill] sm:$0xff] }
 0x3a6   :  { %v5386_v22 = vsel %vm2900_vm15, %v5385_v31, %v5384_v9  ;;  %v5770_v36 = vsel %vm2894_vm12, %v5769_v34, %v5768_v17  ;;  %v6494_v39 = vrot.slane %v18177_v43, 6  ;;  %v11234_v23 = vld [vmem:[%s17186_s3 + $0x280] ss:$8 sps:$4 sm:$0xff]   ;;  %v18179_v9 = vld [vmem:[#allocation89_spill] sm:$0xff]  ;;  %v6498_v17 = vrot.slane %v18180_v63, 4  ;;  %8079 = vmatpush2.bf16.msra.mxu1 %v11231_v54 }
 0x3a7   :  { %v3972_v57 = vrot.slane %v18175_v12, %v18130_v26  ;;  %v7148_v46 = vpack.c.b16 %v5386_v22, %v5358_v25  ;;  %v5772_v49 = vsel %vm2896_vm13, %v5771_v15, %v5770_v36  ;;  %v6493_v34 = vsel %vm2888_vm9, %v6492_v0, %v18179_v9  ;;  %v18181_v43 = vld [vmem:[#allocation7_spill] sm:$0xff]  ;;  %v18182_v56 = vld [vmem:[#allocation98_spill] sm:$0xff]  ;;  %8080 = vmatprep.subr.bf16.mxu1 %v11239_v20  ;;  %v11242_v0 = vld [vmem:[%s17186_s3 + $0x374] ss:$8 sps:$4 sm:$0xff]  }
 0x3a8   :  { %v5774_v31 = vsel %vm2898_vm14, %v5773_v47, %v5772_v49  ;;  %v6500_v18 = vrot.slane %v18181_v43, 3  ;;  %v11237_v25 = vld [vmem:[%s17186_s3 + $0x180] ss:$8 sps:$4 sm:$0xff]   ;;  %v6495_v4 = vsel %vm2890_vm10, %v6494_v39, %v6493_v34  ;;  %v6502_v47 = vrot.slane %v18182_v56, 2  ;;  %v18183_v36 = vld [vmem:[#allocation140_spill] sm:$0xff]  ;;  %v18186_v63 = vld [vmem:[#allocation45_spill] sm:$0xff]  ;;  %8154 = vmatpush2.bf16.msra.mxu0 %v11234_v23 }
 0x3a9   :  { %v4863_v12 = vpack.c.bf16 %v3972_v57, %v3972_v57  ;;  %8020 = vmatmul.mubr.bf16.gmra.mxu1 %v7148_v46  ;;  %v5776_v57 = vsel %vm2900_vm15, %v5775_v35, %v5774_v31  ;;  %v6497_v54 = vsel %vm2892_vm11, %v6496_v27, %v6495_v4  ;;  %v18184_v49 = vld [vmem:[#allocation38_spill] sm:$0xff]  ;;  %v5419_v35 = vrot.slane %v18186_v63, 5 }
 0x3aa   :  { %v5792_v22 = vpack.c.b16 %v5776_v57, %v5776_v57  ;;  %v18185_v9 = vrot.slane %v18184_v49, 6  ;;  %v6499_v39 = vsel %vm2894_vm12, %v6498_v17, %v6497_v54  ;;  %v5421_v20 = vrot.slane %v18043_v58, 4  ;;  %v18187_v31 = vld [vmem:[#allocation138_spill] sm:$0xff]  ;;  %8081 = vmatpush2.bf16.msra.mxu1 %v11237_v25  ;;  %v15259_v54 = vpop.permute.xlu0 %6106 }
 0x3ab   :  { %v6476_v15 = vunpack.c.l.b16 %v4863_v12  ;;  %v5423_v34 = vrot.slane %v18187_v31, 3  ;;  %v6501_v43 = vsel %vm2896_vm13, %v6500_v18, %v6499_v39  ;;  %v5425_v57 = vrot.slane %v18045_v10, 2  ;;  %8196 = vmatprep.subr.bf16.mxu1 %v11242_v0 }
 0x3ac   :  { %v5418_v46 = vsel %vm2890_vm10, %v18185_v9, %v18183_v36  ;;  %5823 = vrot.lane.b32.xlu1 %v5792_v22, %s11369_s21  ;;  %v5427_v4 = vrot.slane %v18047_v41, 1  ;;  %v6503_v23 = vsel %vm2898_vm14, %v6502_v47, %v6501_v43  ;;  %v6066_v56 = vrot.slane %v18107_v51, 5  ;;  %v18188_v9 = vld [vmem:[#allocation71_spill] sm:$0xff] }
 0x3ad   :  { %v6504_v12 = vrot.slane %v6476_v15, 1  ;;  %v5420_v27 = vsel %vm2892_vm11, %v5419_v35, %v5418_v46  ;;  %v6064_v15 = vrot.slane %v18105_v61, 6  ;;  %v6068_v36 = vrot.slane %v18108_v32, 4 }
 0x3ae   :  { %v5422_v17 = vsel %vm2894_vm12, %v5421_v20, %v5420_v27  ;;  %v6070_v49 = vrot.slane %v18109_v7, 3  ;;  %v6072_v35 = vrot.slane %v18110_v19, 2  ;;  %v18189_v20 = vmax.f32 %v18174_v16, 0.0 }
 0x3af   :  { %v6505_v18 = vsel %vm2900_vm15, %v6504_v12, %v6503_v23  ;;  %v5424_v22 = vsel %vm2896_vm13, %v5423_v34, %v5422_v17  ;;  %v6065_v46 = vsel %vm2890_vm10, %v6064_v15, %v18188_v9  ;;  %v6074_v12 = vrot.slane %v14772_v40, 1  ;;  %v15284_v17 = vpop.permute.xlu0 %5809 }
 0x3b0   :  { %v6716_v25 = vpack.c.b16 %v6505_v18, %v6505_v18  ;;  %v5426_v47 = vsel %vm2898_vm14, %v5425_v57, %v5424_v22  ;;  %v6067_v39 = vsel %vm2892_vm11, %v6066_v56, %v6065_v46  ;;  %v3976_v34 = vrot.slane %v18189_v20, %v18144_v11  ;;  %18191 = vst [vmem:[#allocation33_spill] sm:$0xff] %v15284_v17 }
 0x3b1   :  { %v5428_v0 = vsel %vm2900_vm15, %v5427_v4, %v5426_v47  ;;  %v18190_v43 = vpack.c.bf16 %v18142_v50, %v18142_v50  ;;  %v6069_v57 = vsel %vm2894_vm12, %v6068_v36, %v6067_v39  ;;  %v6506_v23 = vrot.slane %v13135_v48, 7  ;;  %v18192_v39 = vld [vmem:[#allocation83_spill] sm:$0xff] }
 0x3b2   :  { %6732 = vrot.lane.b32.xlu0 %v6716_v25, %s11378_s28  ;;  %v6508_v4 = vrot.slane %v13139_v53, 6  ;;  %v6071_v15 = vsel %vm2896_vm13, %v6070_v49, %v6069_v57  ;;  %v4864_v56 = vpack.c.bf16 %v3976_v34, %v3976_v34  ;;  %v6510_v16 = vrot.slane %v18149_v13, 5 }
 0x3b3   :  { %v15278_v27 = vunpack.c.l.b16 %v18190_v43  ;;  %v6512_v18 = vrot.slane %v18150_v59, 4  ;;  %v5517_v50 = vpack.c.b16 %v5428_v0, %v5428_v0  ;;  %v6073_v22 = vsel %vm2898_vm14, %v6072_v35, %v6071_v15 }
 0x3b4   :  { %v6507_v25 = vsel %vm2888_vm9, %v6506_v23, %v13131_v44  ;;  %v6514_v36 = vrot.slane %v18151_v2, 3  ;;  %v6075_v48 = vsel %vm2900_vm15, %v6074_v12, %v6073_v22  ;;  %v6477_v53 = vunpack.c.l.b16 %v4864_v56  ;;  %v18196_v22 = vld [vmem:[#allocation111_spill] sm:$0xff] }
 0x3b5   :  { %v6509_v47 = vsel %vm2890_vm10, %v6508_v4, %v6507_v25  ;;  %v6516_v49 = vrot.slane %v15105_v33, 2  ;;  %v15298_v13 = vsel %vm616_vm8, %v5517_v50, %v15284_v17  ;;  %v6104_v59 = vpack.c.b16 %v6075_v48, %v6075_v48  ;;  %v18193_v4 = vld [vmem:[#allocation121_spill] sm:$0xff]  ;;  %v18195_v50 = vld [vmem:[#allocation22_spill] sm:$0xff] }
 0x3b6   :  { %v6511_v9 = vsel %vm2892_vm11, %v6510_v16, %v6509_v47  ;;  %v6078_v46 = vrot.slane %v18169_v1, 6  ;;  %v6518_v35 = vrot.slane %v6477_v53, 1  ;;  %v6080_v2 = vrot.slane %v18170_v14, 5  ;;  %v18198_v48 = vld [vmem:[#allocation113_spill] sm:$0xff] }
 0x3b7   :  { %v6513_v44 = vsel %vm2894_vm12, %v6512_v18, %v6511_v9  ;;  %v6082_v0 = vrot.slane %v18172_v42, 4  ;;  %6134 = vrot.lane.b32.xlu1 %v6104_v59, %s11376_s0  ;;  %v6084_v20 = vrot.slane %v18173_v52, 3  ;;  %v6086_v34 = vrot.slane %v15072_v38, 2  ;;  %v18199_v59 = vld [vmem:[#allocation117_spill] sm:$0xff] }
 0x3b8   :  { %v6515_v33 = vsel %vm2896_vm13, %v6514_v36, %v6513_v44  ;;  %v6079_v12 = vsel %vm2890_vm10, %v6078_v46, %v18192_v39  ;;  %v6088_v23 = vrot.slane %v15278_v27, 1  ;;  %v18194_v15 = vpack.c.bf16 %v18193_v4, %v18193_v4  ;;  %v18200_v46 = vld [vmem:[#allocation119_spill] sm:$0xff]  ;;  %v18202_v39 = vld [vmem:[#allocation29_spill] sm:$0xff]  ;;  %v18203_v4 = vld [vmem:[#allocation134_spill] sm:$0xff] }
 0x3b9   :  { %v6517_v43 = vsel %vm2898_vm14, %v6516_v49, %v6515_v33  ;;  %v6081_v57 = vsel %vm2892_vm11, %v6080_v2, %v6079_v12  ;;  %v18197_v25 = vrot.slane %v18196_v22, 7  ;;  %v6251_v53 = vrot.slane %v18198_v48, 6  ;;  %v18201_v33 = vld [vmem:[#allocation25_spill] sm:$0xff] }
 0x3ba   :  { %v15317_v56 = vunpack.c.l.b16 %v18194_v15  ;;  %v6519_v16 = vsel %vm2900_vm15, %v6518_v35, %v6517_v43  ;;  %v6083_v18 = vsel %vm2894_vm12, %v6082_v0, %v6081_v57  ;;  %v6253_v9 = vrot.slane %v18199_v59, 5 }
 0x3bb   :  { %v6250_v36 = vsel %vm2888_vm9, %v18197_v25, %v18195_v50  ;;  %v6717_v47 = vpack.c.b16 %v6519_v16, %v6519_v16  ;;  %v6085_v49 = vsel %vm2896_vm13, %v6084_v20, %v6083_v18  ;;  %v6255_v44 = vrot.slane %v18200_v46, 4 }
 0x3bc   :  { %v6087_v2 = vsel %vm2898_vm14, %v6086_v34, %v6085_v49  ;;  %v6252_v35 = vsel %vm2890_vm10, %v6251_v53, %v6250_v36  ;;  %v6257_v0 = vrot.slane %v18201_v33, 3  ;;  %v6259_v12 = vrot.slane %v18202_v39, 2  ;;  %v18206_v49 = vld [vmem:[#allocation40_spill] sm:$0xff] }
 0x3bd   :  { %6734 = vrot.lane.b32.xlu0 %v6717_v47, %s11378_s28  ;;  %v6089_v43 = vsel %vm2900_vm15, %v6088_v23, %v6087_v2  ;;  %v6254_v57 = vsel %vm2892_vm11, %v6253_v9, %v6252_v35  ;;  %v6261_v20 = vrot.slane %v15317_v56, 1  ;;  %v18204_v15 = vpack.c.bf16 %v18203_v4, %v18203_v4  ;;  %v18207_v35 = vld [vmem:[#allocation41_spill] sm:$0xff]  ;;  %v18208_v4 = vld [vmem:[#allocation24_spill] sm:$0xff] }
 0x3be   :  { %v6105_v34 = vpack.c.b16 %v6089_v43, %v6089_v43  ;;  %v6256_v18 = vsel %vm2894_vm12, %v6255_v44, %v6254_v57  ;;  %v18205_v50 = vrot.slane %v17996_v55, 7  ;;  %v6279_v36 = vrot.slane %v17997_v24, 6 }
 0x3bf   :  { %v15340_v16 = vunpack.c.l.b16 %v18204_v15  ;;  %v6258_v23 = vsel %vm2896_vm13, %v6257_v0, %v6256_v18  ;;  %v6281_v53 = vrot.slane %v17998_v45, 5  ;;  %v6283_v47 = vrot.slane %v18000_v30, 4 }
 0x3c0   :  { %v6278_v25 = vsel %vm2888_vm9, %v18205_v50, %v18128_v5  ;;  %v6285_v9 = vrot.slane %v18206_v49, 3  ;;  %6136 = vrot.lane.b32.xlu1 %v6105_v34, %s11376_s0  ;;  %v6260_v2 = vsel %vm2898_vm14, %v6259_v12, %v6258_v23  ;;  %v6287_v43 = vrot.slane %v18207_v35, 2  ;;  %v11260_v12 = vld [vmem:[%s17186_s3 + $0x474] ss:$8 sps:$4 sm:$0xff]  }
 0x3c1   :  { %v6280_v44 = vsel %vm2890_vm10, %v6279_v36, %v6278_v25  ;;  %v6289_v5 = vrot.slane %v15340_v16, 1  ;;  %v6262_v57 = vsel %vm2900_vm15, %v6261_v20, %v6260_v2  ;;  %v18209_v15 = vmax.f32 %v18208_v4, 0.0  ;;  %8269 = vmatprep.subr.bf16.mxu0 %v11260_v12 }
 0x3c2   :  { %v6282_v0 = vsel %vm2892_vm11, %v6281_v53, %v6280_v44  ;;  %v6548_v50 = vrot.slane %v18157_v21, 7  ;;  %v6408_v34 = vpack.c.b16 %v6262_v57, %v6262_v57  ;;  %v6550_v36 = vrot.slane %v18158_v60, 6  ;;  %v18210_v44 = vld [vmem:[#allocation26_spill] sm:$0xff]  ;;  %v15373_v21 = vpop.permute.xlu1 %6110  ;;  %v18211_v60 = vld [vmem:[#allocation27_spill] sm:$0xff] }
 0x3c3   :  { %v4164_v18 = vrot.slane %v18209_v15, %v18130_v26  ;;  %v6284_v25 = vsel %vm2894_vm12, %v6283_v47, %v6282_v0  ;;  %v6552_v23 = vrot.slane %v18159_v29, 5  ;;  %v6554_v15 = vrot.slane %v18210_v44, 4  ;;  %v18212_v29 = vld [vmem:[#allocation19_spill] sm:$0xff] }
 0x3c4   :  { %v6286_v20 = vsel %vm2896_vm13, %v6285_v9, %v6284_v25  ;;  %v6549_v2 = vsel %vm2888_vm9, %v6548_v50, %v18156_v3  ;;  %6429 = vrot.lane.b32.xlu0 %v6408_v34, %s11377_s11  ;;  %v6556_v0 = vrot.slane %v18211_v60, 3  ;;  %v6558_v17 = vrot.slane %v18212_v29, 2  ;;  %v18213_v50 = vld [vmem:[#allocation42_spill] sm:$0xff] }
 0x3c5   :  { %v4911_v53 = vpack.c.bf16 %v4164_v18, %v4164_v18  ;;  %v6288_v57 = vsel %vm2898_vm14, %v6287_v43, %v6286_v20  ;;  %v6551_v47 = vsel %vm2890_vm10, %v6550_v36, %v6549_v2  ;;  %v18214_v12 = vmax.f32 %v18213_v50, 0.0 }
 0x3c6   :  { %v6290_v9 = vsel %vm2900_vm15, %v6289_v5, %v6288_v57  ;;  %v6553_v3 = vsel %vm2892_vm11, %v6552_v23, %v6551_v47  ;;  %v6576_v43 = vrot.slane %v18165_v37, 7  ;;  %v6578_v36 = vrot.slane %v18166_v28, 6  ;;  %v18215_v57 = vld [vmem:[#allocation36_spill] sm:$0xff]  ;;  %v15396_v37 = vpop.permute.xlu1 %5813 }
 0x3c7   :  { %v6480_v18 = vunpack.c.l.b16 %v4911_v53  ;;  %v4260_v25 = vrot.slane %v18214_v12, %v18130_v26  ;;  %v6410_v44 = vpack.c.b16 %v6290_v9, %v6290_v9  ;;  %v6555_v34 = vsel %vm2894_vm12, %v6554_v15, %v6553_v3  ;;  %v18216_v15 = vld [vmem:[#allocation37_spill] sm:$0xff]  ;;  %18217 = vst [vmem:[#allocation28_spill] sm:$0xff] %v15396_v37 }
 0x3c8   :  { %v6557_v20 = vsel %vm2896_vm13, %v6556_v0, %v6555_v34  ;;  %v6580_v5 = vrot.slane %v18167_v8, 5  ;;  %v6577_v53 = vsel %vm2888_vm9, %v6576_v43, %v18164_v6  ;;  %v6582_v47 = vrot.slane %v18215_v57, 4 }
 0x3c9   :  { %v6560_v2 = vrot.slane %v6480_v18, 1  ;;  %v4935_v60 = vpack.c.bf16 %v4260_v25, %v4260_v25  ;;  %6433 = vrot.lane.b32.xlu1 %v6410_v44, %s11377_s11  ;;  %v6559_v23 = vsel %vm2898_vm14, %v6558_v17, %v6557_v20  ;;  %v6584_v29 = vrot.slane %v18216_v15, 3  ;;  %v18218_v18 = vld [vmem:[#allocation102_spill] sm:$0xff] }
 0x3ca   :  { %v6579_v9 = vsel %vm2890_vm10, %v6578_v36, %v6577_v53  ;;  %v6586_v8 = vrot.slane %v18218_v18, 2  ;;  %v18219_v17 = vmax.f32 %v18208_v4, 0.0  ;;  %v6562_v25 = vrot.slane %v18198_v48, 7 }
 0x3cb   :  { %v6561_v28 = vsel %vm2900_vm15, %v6560_v2, %v6559_v23  ;;  %v6482_v0 = vunpack.c.l.b16 %v4935_v60  ;;  %v6581_v12 = vsel %vm2892_vm11, %v6580_v5, %v6579_v9  ;;  %v6564_v43 = vrot.slane %v18199_v59, 6 }
 0x3cc   :  { %v6720_v3 = vpack.c.b16 %v6561_v28, %v6561_v28  ;;  %v4168_v6 = vrot.slane %v18219_v17, %v18144_v11  ;;  %v6583_v44 = vsel %vm2894_vm12, %v6582_v47, %v6581_v12  ;;  %v6566_v20 = vrot.slane %v18200_v46, 5 }
 0x3cd   :  { %v6588_v34 = vrot.slane %v6482_v0, 1  ;;  %v6585_v36 = vsel %vm2896_vm13, %v6584_v29, %v6583_v44  ;;  %v6563_v60 = vsel %vm2888_vm9, %v6562_v25, %v18196_v22  ;;  %v6568_v4 = vrot.slane %v18201_v33, 4  ;;  %v15423_v22 = vpop.permute.xlu1 %6112  ;;  %v15428_v0 = vpop.permute.xlu0 %6108 }
 0x3ce   :  { %6740 = vrot.lane.b32.xlu0 %v6720_v3, %s11378_s28  ;;  %v4912_v2 = vpack.c.bf16 %v4168_v6, %v4168_v6  ;;  %v6587_v5 = vsel %vm2898_vm14, %v6586_v8, %v6585_v36  ;;  %v6565_v48 = vsel %vm2890_vm10, %v6564_v43, %v6563_v60  ;;  %v6570_v23 = vrot.slane %v18202_v39, 3  ;;  %v18222_v43 = vld [vmem:[#allocation145_spill] sm:$0xff] }
 0x3cf   :  { %v6572_v59 = vrot.slane %v15317_v56, 2  ;;  %v6589_v46 = vsel %vm2900_vm15, %v6588_v34, %v6587_v5  ;;  %v6567_v57 = vsel %vm2892_vm11, %v6566_v20, %v6565_v48  ;;  %v18220_v47 = vmax.f32 %v18213_v50, 0.0 }
 0x3d0   :  { %v6481_v53 = vunpack.c.l.b16 %v4912_v2  ;;  %v6722_v33 = vpack.c.b16 %v6589_v46, %v6589_v46  ;;  %v6569_v29 = vsel %vm2894_vm12, %v6568_v4, %v6567_v57  ;;  %v6590_v28 = vrot.slane %v17997_v24, 7 }
 0x3d1   :  { %v4264_v15 = vrot.slane %v18220_v47, %v18144_v11  ;;  %v6592_v39 = vrot.slane %v17998_v45, 6  ;;  %v6571_v56 = vsel %vm2896_vm13, %v6570_v23, %v6569_v29  ;;  %v6594_v8 = vrot.slane %v18000_v30, 5  ;;  %v15441_v44 = vpop.permute.xlu1 %5821  ;;  %v15456_v4 = vpop.permute.xlu0 %5817  ;;  %v18227_v47 = vld [vmem:[#allocation152_spill] sm:$0xff] }
 0x3d2   :  { %v6574_v9 = vrot.slane %v6481_v53, 1  ;;  %6744 = vrot.lane.b32.xlu1 %v6722_v33, %s11378_s28  ;;  %v6573_v50 = vsel %vm2898_vm14, %v6572_v59, %v6571_v56  ;;  %v6591_v3 = vsel %vm2888_vm9, %v6590_v28, %v17996_v55  ;;  %v6596_v12 = vrot.slane %v18206_v49, 4  ;;  %18221 = vst [vmem:[#allocation93_spill] sm:$0xff] %v15441_v44  ;;  %18225 = vst [vmem:[#allocation86_spill] sm:$0xff] %v15456_v4  ;;  %v18226_v59 = vld [vmem:[#allocation51_spill] sm:$0xff]  ;;  %v18230_v56 = vld [vmem:[#allocation58_spill] sm:$0xff] }
 0x3d3   :  { %v4936_v18 = vpack.c.bf16 %v4264_v15, %v4264_v15  ;;  %v6598_v24 = vrot.slane %v18207_v35, 3  ;;  %v6593_v6 = vsel %vm2890_vm10, %v6592_v39, %v6591_v3  ;;  %v6600_v25 = vrot.slane %v15340_v16, 2  ;;  %v18228_v15 = vld [vmem:[#allocation53_spill] sm:$0xff] }
 0x3d4   :  { %v6575_v45 = vsel %vm2900_vm15, %v6574_v9, %v6573_v50  ;;  %v6595_v34 = vsel %vm2892_vm11, %v6594_v8, %v6593_v6  ;;  %v18223_v20 = vpack.c.bf16 %v18222_v43, %v18222_v43  ;;  %v18224_v49 = vrot.slane %v18043_v58, 7 }
 0x3d5   :  { %v6483_v17 = vunpack.c.l.b16 %v4936_v18  ;;  %v6721_v30 = vpack.c.b16 %v6575_v45, %v6575_v45  ;;  %v6597_v36 = vsel %vm2894_vm12, %v6596_v12, %v6595_v34  ;;  %v6307_v16 = vrot.slane %v18187_v31, 6  ;;  %v18231_v18 = vld [vmem:[#allocation147_spill] sm:$0xff]  ;;  %v18232_v12 = vld [vmem:[#allocation149_spill] sm:$0xff]  ;;  %v15477_v6 = vpop.permute.xlu1 %6423 }
 0x3d6   :  { %v15447_v55 = vunpack.c.l.b16 %v18223_v20  ;;  %v6306_v35 = vsel %vm2888_vm9, %v18224_v49, %v18186_v63  ;;  %v6309_v60 = vrot.slane %v18045_v10, 5  ;;  %v6599_v5 = vsel %vm2896_vm13, %v6598_v24, %v6597_v36  ;;  %v18233_v45 = vld [vmem:[#allocation153_spill] sm:$0xff]  ;;  %18234 = vst [vmem:[#allocation88_spill] sm:$0xff] %v15477_v6  ;;  %v18235_v34 = vld [vmem:[#allocation155_spill] sm:$0xff] }
 0x3d7   :  { %v6602_v2 = vrot.slane %v6483_v17, 1  ;;  %6742 = vrot.lane.b32.xlu0 %v6721_v30, %s11378_s28  ;;  %v6311_v48 = vrot.slane %v18047_v41, 4  ;;  %v6313_v23 = vrot.slane %v18048_v62, 3  ;;  %v6315_v46 = vrot.slane %v18226_v59, 2  ;;  %v18236_v20 = vld [vmem:[#allocation61_spill] sm:$0xff] }
 0x3d8   :  { %v6601_v63 = vsel %vm2898_vm14, %v6600_v25, %v6599_v5  ;;  %v6308_v53 = vsel %vm2890_vm10, %v6307_v16, %v6306_v35  ;;  %v6317_v57 = vrot.slane %v15447_v55, 1  ;;  %v18229_v33 = vrot.slane %v18228_v15, 6 }
 0x3d9   :  { %v6603_v28 = vsel %vm2900_vm15, %v6602_v2, %v6601_v63  ;;  %v6310_v39 = vsel %vm2892_vm11, %v6309_v60, %v6308_v53  ;;  %v5447_v9 = vrot.slane %v18230_v56, 5  ;;  %v5449_v8 = vrot.slane %v18231_v18, 4 }
 0x3da   :  { %v5446_v29 = vsel %vm2890_vm10, %v18229_v33, %v18227_v47  ;;  %v6723_v50 = vpack.c.b16 %v6603_v28, %v6603_v28  ;;  %v6312_v3 = vsel %vm2894_vm12, %v6311_v48, %v6310_v39  ;;  %v5451_v24 = vrot.slane %v18232_v12, 3  ;;  %v15495_v48 = vpop.permute.xlu0 %6419 }
 0x3db   :  { %v5453_v17 = vrot.slane %v18233_v45, 2  ;;  %v6314_v25 = vsel %vm2896_vm13, %v6313_v23, %v6312_v3  ;;  %v5448_v30 = vsel %vm2892_vm11, %v5447_v9, %v5446_v29  ;;  %v5455_v43 = vrot.slane %v18235_v34, 1  ;;  %18239 = vst [vmem:[#allocation107_spill] sm:$0xff] %v15495_v48  ;;  %v18240_v29 = vld [vmem:[#allocation65_spill] sm:$0xff]  ;;  %v18241_v9 = vld [vmem:[#allocation66_spill] sm:$0xff] }
 0x3dc   :  { %v18237_v49 = vpack.c.bf16 %v18236_v20, %v18236_v20  ;;  %6746 = vrot.lane.b32.xlu1 %v6723_v50, %s11378_s28  ;;  %v6316_v36 = vsel %vm2898_vm14, %v6315_v46, %v6314_v25  ;;  %v5450_v2 = vsel %vm2894_vm12, %v5449_v8, %v5448_v30  ;;  %v18238_v16 = vrot.slane %v18231_v18, 7  ;;  %v18244_v30 = vld [vmem:[#allocation137_spill] sm:$0xff] }
 0x3dd   :  { %v6335_v5 = vrot.slane %v18232_v12, 6  ;;  %v6318_v23 = vsel %vm2900_vm15, %v6317_v57, %v6316_v36  ;;  %v5452_v63 = vsel %vm2896_vm13, %v5451_v24, %v5450_v2  ;;  %v6337_v53 = vrot.slane %v18233_v45, 5  ;;  %v18242_v24 = vld [vmem:[#allocation8_spill] sm:$0xff]  ;;  %v18246_v36 = vld [vmem:[#allocation141_spill] sm:$0xff] }
 0x3de   :  { %v15485_v35 = vunpack.c.l.b16 %v18237_v49  ;;  %v6334_v60 = vsel %vm2888_vm9, %v18238_v16, %v18230_v56  ;;  %v6339_v47 = vrot.slane %v18235_v34, 4  ;;  %v6412_v46 = vpack.c.b16 %v6318_v23, %v6318_v23  ;;  %v15514_v49 = vpop.permute.xlu1 %5807  ;;  %v18247_v16 = vld [vmem:[#allocation144_spill] sm:$0xff] }
 0x3df   :  { %v5454_v15 = vsel %vm2898_vm14, %v5453_v17, %v5452_v63  ;;  %v6336_v33 = vsel %vm2890_vm10, %v6335_v5, %v6334_v60  ;;  %v6341_v28 = vrot.slane %v18240_v29, 3  ;;  %v6343_v8 = vrot.slane %v18241_v9, 2  ;;  %18245 = vst [vmem:[#allocation101_spill] sm:$0xff] %v15514_v49  ;;  %v18248_v5 = vld [vmem:[#allocation48_spill] sm:$0xff] }
 0x3e0   :  { %v5456_v39 = vsel %vm2900_vm15, %v5455_v43, %v5454_v15  ;;  %v6338_v56 = vsel %vm2892_vm11, %v6337_v53, %v6336_v33  ;;  %v6345_v57 = vrot.slane %v15485_v35, 1  ;;  %6437 = vrot.lane.b32.xlu0 %v6412_v46, %s11377_s11  ;;  %v18243_v17 = vmax.f32 %v18242_v24, 0.0  ;;  %v18249_v46 = vld [vmem:[#allocation135_spill] sm:$0xff]  ;;  %v15525_v33 = vpop.permute.xlu0 %5803 }
 0x3e1   :  { %v5518_v50 = vpack.c.b16 %v5456_v39, %v5456_v39  ;;  %v6340_v3 = vsel %vm2894_vm12, %v6339_v47, %v6338_v56  ;;  %v6604_v20 = vrot.slane %v18244_v30, 7  ;;  %v6606_v2 = vrot.slane %v18246_v36, 6  ;;  %18250 = vst [vmem:[#allocation103_spill] sm:$0xff] %v15525_v33 }
 0x3e2   :  { %v4356_v25 = vrot.slane %v18243_v17, %v18130_v26  ;;  %v6342_v43 = vsel %vm2896_vm13, %v6341_v28, %v6340_v3  ;;  %v6608_v60 = vrot.slane %v18247_v16, 5  ;;  %v6610_v23 = vrot.slane %v18248_v5, 4  ;;  %v18251_v3 = vld [vmem:[#allocation49_spill] sm:$0xff] }
 0x3e3   :  { %v6790_v63 = vsel %vm616_vm8, %v5518_v50, %v15396_v37  ;;  %v6344_v53 = vsel %vm2898_vm14, %v6343_v8, %v6342_v43  ;;  %v6605_v15 = vsel %vm2888_vm9, %v6604_v20, %v18249_v46  ;;  %v6612_v17 = vrot.slane %v18251_v3, 3  ;;  %v18252_v37 = vld [vmem:[#allocation130_spill] sm:$0xff]  ;;  %v15545_v3 = vpop.permute.xlu1 %6118 }
 0x3e4   :  { %v4959_v47 = vpack.c.bf16 %v4356_v25, %v4356_v25  ;;  %v10689_v39 = vcombine.low %v15298_v13, %v6790_v63  ;;  %v6346_v28 = vsel %vm2900_vm15, %v6345_v57, %v6344_v53  ;;  %v6607_v56 = vsel %vm2890_vm10, %v6606_v2, %v6605_v15  ;;  %v18253_v25 = vld [vmem:[#allocation82_spill] sm:$0xff]  ;;  %v18254_v13 = vld [vmem:[#allocation57_spill] sm:$0xff]  ;;  %v18256_v53 = vld [vmem:[#allocation148_spill] sm:$0xff]  ;;  %18259 = vst [vmem:[#allocation105_spill] sm:$0xff] %v15545_v3 }
 0x3e5   :  { %v6414_v5 = vpack.c.b16 %v6346_v28, %v6346_v28  ;;  %v6609_v50 = vsel %vm2892_vm11, %v6608_v60, %v6607_v56  ;;  %v6614_v8 = vrot.slane %v18252_v37, 2  ;;  %v18255_v63 = vmax.f32 %v18254_v13, 0.0  ;;  %v18257_v15 = vld [vmem:[#allocation180_spill] sm:$0xff]  ;;  %v18261_v43 = vld [vmem:[#allocation154_spill] sm:$0xff] }
 0x3e6   :  { %v6484_v49 = vunpack.c.l.b16 %v4959_v47  ;;  %v6611_v20 = vsel %vm2894_vm12, %v6610_v23, %v6609_v50  ;;  %8029 = vmatprep.mubr.bf16.mxu1 %v10689_v39  ;;  %v6632_v2 = vrot.slane %v18256_v53, 7  ;;  %v18258_v47 = vld [vmem:[#allocation150_spill] sm:$0xff]  ;;  %v6636_v33 = vrot.slane %v18261_v43, 5 }
 0x3e7   :  { %v4452_v57 = vrot.slane %v18255_v63, %v18130_v26  ;;  %6441 = vrot.lane.b32.xlu1 %v6414_v5, %s11377_s11  ;;  %v6613_v60 = vsel %vm2896_vm13, %v6612_v17, %v6611_v20  ;;  %v6634_v56 = vrot.slane %v18258_v47, 6  ;;  %v18260_v50 = vld [vmem:[#allocation146_spill] sm:$0xff]  ;;  %v18262_v5 = vld [vmem:[#allocation60_spill] sm:$0xff]  ;;  %v15555_v20 = vpop.permute.xlu0 %6114  ;;  %v18265_v48 = vmax.f32 %v18242_v24, 0.0 }
 0x3e8   :  { %v6616_v37 = vrot.slane %v6484_v49, 1  ;;  %v6615_v23 = vsel %vm2898_vm14, %v6614_v8, %v6613_v60  ;;  %v6633_v63 = vsel %vm2888_vm9, %v6632_v2, %v18260_v50  ;;  %v6638_v4 = vrot.slane %v18262_v5, 4  ;;  %v18263_v17 = vld [vmem:[#allocation62_spill] sm:$0xff]  ;;  %v18266_v5 = vld [vmem:[#allocation139_spill] sm:$0xff] }
 0x3e9   :  { %v4983_v39 = vpack.c.bf16 %v4452_v57, %v4452_v57  ;;  %v6635_v28 = vsel %vm2890_vm10, %v6634_v56, %v6633_v63  ;;  %v6640_v49 = vrot.slane %v18263_v17, 3  ;;  %v18264_v57 = vld [vmem:[#allocation131_spill] sm:$0xff]  ;;  %v6618_v56 = vrot.slane %v18187_v31, 7  ;;  %v15573_v31 = vpop.permute.xlu1 %6120 }
 0x3ea   :  { %v6617_v44 = vsel %vm2900_vm15, %v6616_v37, %v6615_v23  ;;  %v6637_v8 = vsel %vm2892_vm11, %v6636_v33, %v6635_v28  ;;  %v6642_v60 = vrot.slane %v18264_v57, 2  ;;  %v4360_v37 = vrot.slane %v18265_v48, %v18144_v11 }
 0x3eb   :  { %v6724_v6 = vpack.c.b16 %v6617_v44, %v6617_v44  ;;  %v6486_v3 = vunpack.c.l.b16 %v4983_v39  ;;  %v6639_v2 = vsel %vm2894_vm12, %v6638_v4, %v6637_v8  ;;  %v6620_v23 = vrot.slane %v18045_v10, 6 }
 0x3ec   :  { %v6641_v63 = vsel %vm2896_vm13, %v6640_v49, %v6639_v2  ;;  %v6622_v39 = vrot.slane %v18047_v41, 5  ;;  %v6624_v33 = vrot.slane %v18048_v62, 4  ;;  %v4960_v4 = vpack.c.bf16 %v4360_v37, %v4360_v37  ;;  %v18267_v41 = vld [vmem:[#allocation43_spill] sm:$0xff] }
 0x3ed   :  { %6748 = vrot.lane.b32.xlu0 %v6724_v6, %s11378_s28  ;;  %v6644_v44 = vrot.slane %v6486_v3, 1  ;;  %v6643_v28 = vsel %vm2898_vm14, %v6642_v60, %v6641_v63  ;;  %v6619_v24 = vsel %vm2888_vm9, %v6618_v56, %v18043_v58  ;;  %v6626_v48 = vrot.slane %v18226_v59, 3  ;;  %v18269_v58 = vld [vmem:[#allocation39_spill] sm:$0xff]  ;;  %v15584_v59 = vpop.permute.xlu0 %6116 }
 0x3ee   :  { %v6621_v6 = vsel %vm2890_vm10, %v6620_v23, %v6619_v24  ;;  %v6628_v3 = vrot.slane %v15447_v55, 2  ;;  %v18268_v17 = vrot.slane %v18267_v41, 6  ;;  %v6485_v8 = vunpack.c.l.b16 %v4960_v4  ;;  %v18271_v24 = vld [vmem:[#allocation55_spill] sm:$0xff] }
 0x3ef   :  { %v6645_v10 = vsel %vm2900_vm15, %v6644_v44, %v6643_v28  ;;  %v6623_v57 = vsel %vm2892_vm11, %v6622_v39, %v6621_v6  ;;  %v5405_v60 = vrot.slane %v18269_v58, 5  ;;  %v5407_v37 = vrot.slane %v18249_v46, 4 }
 0x3f0   :  { %v5404_v62 = vsel %vm2890_vm10, %v18268_v17, %v18266_v5  ;;  %v6726_v49 = vpack.c.b16 %v6645_v10, %v6645_v10  ;;  %v6625_v2 = vsel %vm2894_vm12, %v6624_v33, %v6623_v57  ;;  %v5409_v56 = vrot.slane %v18244_v30, 3  ;;  %v18270_v33 = vld [vmem:[#allocation151_spill] sm:$0xff]  ;;  %v18273_v10 = vld [vmem:[#allocation54_spill] sm:$0xff] }
 0x3f1   :  { %v5411_v55 = vrot.slane %v18246_v36, 2  ;;  %v6627_v23 = vsel %vm2896_vm13, %v6626_v48, %v6625_v2  ;;  %v6630_v63 = vrot.slane %v6485_v8, 1  ;;  %v5406_v44 = vsel %vm2892_vm11, %v5405_v60, %v5404_v62 }
 0x3f2   :  { %6752 = vrot.lane.b32.xlu1 %v6726_v49, %s11378_s28  ;;  %v5413_v39 = vrot.slane %v18247_v16, 1  ;;  %v6629_v28 = vsel %vm2898_vm14, %v6628_v3, %v6627_v23  ;;  %v5408_v4 = vsel %vm2894_vm12, %v5407_v37, %v5406_v44  ;;  %v18272_v46 = vrot.slane %v18271_v24, 6  ;;  %v15605_v16 = vpop.permute.xlu1 %6431 }
 0x3f3   :  { %v5433_v36 = vrot.slane %v18273_v10, 5  ;;  %v6631_v6 = vsel %vm2900_vm15, %v6630_v63, %v6629_v28  ;;  %v5410_v48 = vsel %vm2896_vm13, %v5409_v56, %v5408_v4  ;;  %v5435_v5 = vrot.slane %v18260_v50, 4  ;;  %v18280_v10 = vld [vmem:[#allocation164_spill] sm:$0xff] }
 0x3f4   :  { %v5432_v30 = vsel %vm2890_vm10, %v18272_v46, %v18270_v33  ;;  %v5437_v41 = vrot.slane %v18256_v53, 3  ;;  %v6725_v3 = vpack.c.b16 %v6631_v6, %v6631_v6  ;;  %v5412_v17 = vsel %vm2898_vm14, %v5411_v55, %v5410_v48  ;;  %v15616_v53 = vpop.permute.xlu0 %6427  ;;  %v18276_v33 = vld [vmem:[#allocation68_spill] sm:$0xff] }
 0x3f5   :  { %v5434_v62 = vsel %vm2892_vm11, %v5433_v36, %v5432_v30  ;;  %v5439_v49 = vrot.slane %v18258_v47, 2  ;;  %v5414_v8 = vsel %vm2900_vm15, %v5413_v39, %v5412_v17  ;;  %v5441_v58 = vrot.slane %v18261_v43, 1  ;;  %v18279_v30 = vld [vmem:[#allocation160_spill] sm:$0xff]  ;;  %v18283_v17 = vld [vmem:[#allocation177_spill] sm:$0xff] }
 0x3f6   :  { %v5436_v57 = vsel %vm2894_vm12, %v5435_v5, %v5434_v62  ;;  %v18274_v50 = vmax.f32 %v18254_v13, 0.0  ;;  %6750 = vrot.lane.b32.xlu0 %v6725_v3, %s11378_s28  ;;  %v6646_v37 = vrot.slane %v18232_v12, 7  ;;  %v6648_v47 = vrot.slane %v18233_v45, 6  ;;  %v15640_v46 = vpop.permute.xlu1 %5815 }
 0x3f7   :  { %v5438_v2 = vsel %vm2896_vm13, %v5437_v41, %v5436_v57  ;;  %v6650_v56 = vrot.slane %v18235_v34, 5  ;;  %v6652_v43 = vrot.slane %v18240_v29, 4  ;;  %v6654_v13 = vrot.slane %v18241_v9, 3  ;;  %v18277_v29 = vld [vmem:[#allocation158_spill] sm:$0xff]  ;;  %v18282_v41 = vld [vmem:[#allocation84_spill] sm:$0xff] }
 0x3f8   :  { %v4456_v60 = vrot.slane %v18274_v50, %v18144_v11  ;;  %v5440_v55 = vsel %vm2898_vm14, %v5439_v49, %v5438_v2  ;;  %v6647_v44 = vsel %vm2888_vm9, %v6646_v37, %v18231_v18  ;;  %v6656_v39 = vrot.slane %v15485_v35, 2  ;;  %v15649_v49 = vpop.permute.xlu0 %5811 }
 0x3f9   :  { %v5442_v63 = vsel %vm2900_vm15, %v5441_v58, %v5440_v55  ;;  %v18275_v12 = vpack.c.bf16 %v18253_v25, %v18253_v25  ;;  %v6649_v4 = vsel %vm2890_vm10, %v6648_v47, %v6647_v44  ;;  %v18278_v24 = vrot.slane %v18277_v29, 7  ;;  %v18281_v25 = vld [vmem:[#allocation166_spill] sm:$0xff]  ;;  %v18285_v47 = vld [vmem:[#allocation77_spill] sm:$0xff] }
 0x3fa   :  { %v4984_v23 = vpack.c.bf16 %v4456_v60, %v4456_v60  ;;  %v7158_v34 = vpack.c.b16 %v5442_v63, %v5414_v8  ;;  %v6651_v18 = vsel %vm2892_vm11, %v6650_v56, %v6649_v4  ;;  %v6363_v35 = vrot.slane %v18279_v30, 6 }
 0x3fb   :  { %v15633_v45 = vunpack.c.l.b16 %v18275_v12  ;;  %v6362_v9 = vsel %vm2888_vm9, %v18278_v24, %v18276_v33  ;;  %v6365_v36 = vrot.slane %v18280_v10, 5  ;;  %v6367_v6 = vrot.slane %v18281_v25, 4 }
 0x3fc   :  { %v6487_v28 = vunpack.c.l.b16 %v4984_v23  ;;  %8030 = vmatmul.mubr.bf16.gmra.mxu1 %v7158_v34  ;;  %v6653_v48 = vsel %vm2894_vm12, %v6652_v43, %v6651_v18  ;;  %v6369_v3 = vrot.slane %v18282_v41, 3  ;;  %v6371_v62 = vrot.slane %v18283_v17, 2 }
 0x3fd   :  { %v6655_v8 = vsel %vm2896_vm13, %v6654_v13, %v6653_v48  ;;  %v6364_v57 = vsel %vm2890_vm10, %v6363_v35, %v6362_v9  ;;  %v6373_v58 = vrot.slane %v15633_v45, 1  ;;  %v18284_v50 = vpack.c.bf16 %v18257_v15, %v18257_v15 }
 0x3fe   :  { %v6658_v5 = vrot.slane %v6487_v28, 1  ;;  %v6657_v2 = vsel %vm2898_vm14, %v6656_v39, %v6655_v8  ;;  %v6366_v37 = vsel %vm2892_vm11, %v6365_v36, %v6364_v57  ;;  %v18286_v56 = vrot.slane %v18169_v1, 7  ;;  %v15673_v28 = vpop.permute.xlu1 %6126  ;;  %v15686_v57 = vpop.permute.xlu0 %6122 }
 0x3ff   :  { %v15657_v60 = vunpack.c.l.b16 %v18284_v50  ;;  %v6391_v23 = vrot.slane %v18170_v14, 6  ;;  %v6368_v13 = vsel %vm2894_vm12, %v6367_v6, %v6366_v37  ;;  %v6393_v63 = vrot.slane %v18172_v42, 5  ;;  %v18287_v6 = vld [vmem:[#allocation81_spill] sm:$0xff] }
 0x400   :  { %v6390_v55 = vsel %vm2888_vm9, %v18286_v56, %v18285_v47  ;;  %v6659_v43 = vsel %vm2900_vm15, %v6658_v5, %v6657_v2  ;;  %v6395_v15 = vrot.slane %v18173_v52, 4  ;;  %v6370_v39 = vsel %vm2896_vm13, %v6369_v3, %v6368_v13  ;;  %v18289_v3 = vld [vmem:[#allocation159_spill] sm:$0xff]  ;;  %v18290_v2 = vld [vmem:[#allocation161_spill] sm:$0xff] }
 0x401   :  { %v6727_v44 = vpack.c.b16 %v6659_v43, %v6659_v43  ;;  %v6392_v12 = vsel %vm2890_vm10, %v6391_v23, %v6390_v55  ;;  %v6397_v34 = vrot.slane %v15072_v38, 3  ;;  %v6372_v4 = vsel %vm2898_vm14, %v6371_v62, %v6370_v39  ;;  %v18291_v56 = vld [vmem:[#allocation165_spill] sm:$0xff] }
 0x402   :  { %v6394_v24 = vsel %vm2892_vm11, %v6393_v63, %v6392_v12  ;;  %v6399_v9 = vrot.slane %v15278_v27, 2  ;;  %v6401_v18 = vrot.slane %v15657_v60, 1  ;;  %v6374_v35 = vsel %vm2900_vm15, %v6373_v58, %v6372_v4  ;;  %v18292_v43 = vld [vmem:[#allocation157_spill] sm:$0xff]  ;;  %v18293_v63 = vld [vmem:[#allocation80_spill] sm:$0xff]  ;;  %v18295_v4 = vld [vmem:[#allocation23_spill] sm:$0xff] }
 0x403   :  { %6754 = vrot.lane.b32.xlu1 %v6727_v44, %s11378_s28  ;;  %v6396_v36 = vsel %vm2894_vm12, %v6395_v15, %v6394_v24  ;;  %v18288_v48 = vmax.f32 %v18287_v6, 0.0  ;;  %v6660_v8 = vrot.slane %v18289_v3, 7  ;;  %v6416_v62 = vpack.c.b16 %v6374_v35, %v6374_v35  ;;  %v18294_v12 = vld [vmem:[#allocation176_spill] sm:$0xff] }
 0x404   :  { %v6398_v50 = vsel %vm2896_vm13, %v6397_v34, %v6396_v36  ;;  %v6662_v37 = vrot.slane %v18290_v2, 6  ;;  %v6664_v55 = vrot.slane %v18291_v56, 5  ;;  %v6666_v15 = vrot.slane %v18293_v63, 4 }
 0x405   :  { %v4548_v5 = vrot.slane %v18288_v48, %v18130_v26  ;;  %v6400_v23 = vsel %vm2898_vm14, %v6399_v9, %v6398_v50  ;;  %v6661_v13 = vsel %vm2888_vm9, %v6660_v8, %v18292_v43  ;;  %6445 = vrot.lane.b32.xlu0 %v6416_v62, %s11377_s11  ;;  %v6668_v34 = vrot.slane %v18294_v12, 3  ;;  %v18296_v48 = vld [vmem:[#allocation74_spill] sm:$0xff]  ;;  %v15704_v50 = vpop.permute.xlu1 %6128 }
 0x406   :  { %v6402_v44 = vsel %vm2900_vm15, %v6401_v18, %v6400_v23  ;;  %v6663_v39 = vsel %vm2890_vm10, %v6662_v37, %v6661_v13  ;;  %v6670_v24 = vrot.slane %v18295_v4, 2  ;;  %v6688_v18 = vrot.slane %v18107_v51, 7  ;;  %v18298_v4 = vld [vmem:[#allocation32_spill] sm:$0xff] }
 0x407   :  { %v5007_v58 = vpack.c.bf16 %v4548_v5, %v4548_v5  ;;  %v6418_v35 = vpack.c.b16 %v6402_v44, %v6402_v44  ;;  %v6665_v9 = vsel %vm2892_vm11, %v6664_v55, %v6663_v39  ;;  %v18297_v5 = vmax.f32 %v18296_v48, 0.0  ;;  %v15713_v44 = vpop.permute.xlu0 %6124 }
 0x408   :  { %v6667_v62 = vsel %vm2894_vm12, %v6666_v15, %v6665_v9  ;;  %v6690_v37 = vrot.slane %v18108_v32, 6  ;;  %v6692_v23 = vrot.slane %v18109_v7, 5  ;;  %v6694_v63 = vrot.slane %v18110_v19, 4 }
 0x409   :  { %v6488_v36 = vunpack.c.l.b16 %v5007_v58  ;;  %v4644_v8 = vrot.slane %v18297_v5, %v18130_v26  ;;  %6449 = vrot.lane.b32.xlu1 %v6418_v35, %s11377_s11  ;;  %v6669_v58 = vsel %vm2896_vm13, %v6668_v34, %v6667_v62  ;;  %v6689_v15 = vsel %vm2888_vm9, %v6688_v18, %v18105_v61 }
 0x40a   :  { %v6671_v39 = vsel %vm2898_vm14, %v6670_v24, %v6669_v58  ;;  %v6696_v12 = vrot.slane %v14772_v40, 3  ;;  %v6698_v9 = vrot.slane %v18298_v4, 2  ;;  %v6691_v34 = vsel %vm2890_vm10, %v6690_v37, %v6689_v15 }
 0x40b   :  { %v6672_v13 = vrot.slane %v6488_v36, 1  ;;  %v5031_v55 = vpack.c.bf16 %v4644_v8, %v4644_v8  ;;  %v18299_v36 = vmax.f32 %v18287_v6, 0.0  ;;  %v6693_v62 = vsel %vm2892_vm11, %v6692_v23, %v6691_v34  ;;  %v15741_v34 = vpop.permute.xlu0 %6435 }
 0x40c   :  { %v6674_v24 = vrot.slane %v18279_v30, 7  ;;  %v6676_v18 = vrot.slane %v18280_v10, 6  ;;  %v6695_v40 = vsel %vm2894_vm12, %v6694_v63, %v6693_v62  ;;  %v6680_v23 = vrot.slane %v18282_v41, 4 }
 0x40d   :  { %v6673_v5 = vsel %vm2900_vm15, %v6672_v13, %v6671_v39  ;;  %v6490_v35 = vunpack.c.l.b16 %v5031_v55  ;;  %v4552_v19 = vrot.slane %v18299_v36, %v18144_v11  ;;  %v6678_v13 = vrot.slane %v18281_v25, 5  ;;  %v15730_v55 = vpop.permute.xlu1 %6439 }
 0x40e   :  { %v6728_v8 = vpack.c.b16 %v6673_v5, %v6673_v5  ;;  %v6697_v6 = vsel %vm2896_vm13, %v6696_v12, %v6695_v40  ;;  %v6675_v37 = vsel %vm2888_vm9, %v6674_v24, %v18277_v29  ;;  %v6682_v39 = vrot.slane %v18283_v17, 3 }
 0x40f   :  { %v6700_v58 = vrot.slane %v6490_v35, 1  ;;  %v5008_v4 = vpack.c.bf16 %v4552_v19, %v4552_v19  ;;  %v6699_v15 = vsel %vm2898_vm14, %v6698_v9, %v6697_v6  ;;  %v6677_v5 = vsel %vm2890_vm10, %v6676_v18, %v6675_v37 }
 0x410   :  { %6756 = vrot.lane.b32.xlu0 %v6728_v8, %s11378_s28  ;;  %v6684_v35 = vrot.slane %v15633_v45, 2  ;;  %v6679_v12 = vsel %vm2892_vm11, %v6678_v13, %v6677_v5  ;;  %v18300_v19 = vmax.f32 %v18296_v48, 0.0  ;;  %v6702_v41 = vrot.slane %v18170_v14, 7 }
 0x411   :  { %v6489_v63 = vunpack.c.l.b16 %v5008_v4  ;;  %v6701_v36 = vsel %vm2900_vm15, %v6700_v58, %v6699_v15  ;;  %v6681_v9 = vsel %vm2894_vm12, %v6680_v23, %v6679_v12  ;;  %v6704_v24 = vrot.slane %v18172_v42, 6  ;;  %v15760_v37 = vpop.permute.xlu1 %6447  ;;  %v18301_v12 = vld [vmem:[#allocation163_spill] sm:$0xff] }
 0x412   :  { %v4648_v8 = vrot.slane %v18300_v19, %v18144_v11  ;;  %v6730_v17 = vpack.c.b16 %v6701_v36, %v6701_v36  ;;  %v6683_v45 = vsel %vm2896_vm13, %v6682_v39, %v6681_v9  ;;  %v6703_v40 = vsel %vm2888_vm9, %v6702_v41, %v18169_v1 }
 0x413   :  { %v6686_v62 = vrot.slane %v6489_v63, 1  ;;  %v6706_v58 = vrot.slane %v18173_v52, 5  ;;  %v6685_v48 = vsel %vm2898_vm14, %v6684_v35, %v6683_v45  ;;  %v6705_v4 = vsel %vm2890_vm10, %v6704_v24, %v6703_v40  ;;  %v18302_v35 = vld [vmem:[#allocation63_spill] sm:$0xff] }
 0x414   :  { %v5032_v18 = vpack.c.bf16 %v4648_v8, %v4648_v8  ;;  %6760 = vrot.lane.b32.xlu1 %v6730_v17, %s11378_s28  ;;  %v6708_v13 = vrot.slane %v15072_v38, 4  ;;  %v6710_v6 = vrot.slane %v15278_v27, 3  ;;  %v6712_v63 = vrot.slane %v15657_v60, 2  ;;  %v15771_v27 = vpop.permute.xlu0 %5819 }
 0x415   :  { %v6687_v23 = vsel %vm2900_vm15, %v6686_v62, %v6685_v48  ;;  %v6707_v15 = vsel %vm2892_vm11, %v6706_v58, %v6705_v4  ;;  %v18303_v19 = vrot.slane %v18302_v35, 6  ;;  %v5475_v38 = vrot.slane %v18276_v33, 5  ;;  %v18304_v58 = vld [vmem:[#allocation171_spill] sm:$0xff]  ;;  %v18305_v48 = vld [vmem:[#allocation70_spill] sm:$0xff] }
 0x416   :  { %v6491_v39 = vunpack.c.l.b16 %v5032_v18  ;;  %v6729_v5 = vpack.c.b16 %v6687_v23, %v6687_v23  ;;  %v6709_v36 = vsel %vm2894_vm12, %v6708_v13, %v6707_v15  ;;  %v6139_v41 = vsel %vm6138_vm2, %v15259_v54, %v15428_v0  ;;  %v15793_v15 = vpop.permute.xlu1 %6425 }
 0x417   :  { %v5474_v8 = vsel %vm2890_vm10, %v18303_v19, %v18301_v12  ;;  %v6711_v17 = vsel %vm2896_vm13, %v6710_v6, %v6709_v36  ;;  %v5477_v60 = vrot.slane %v18277_v29, 4  ;;  %v5479_v45 = vrot.slane %v18279_v30, 3 }
 0x418   :  { %v6714_v9 = vrot.slane %v6491_v39, 1  ;;  %6758 = vrot.lane.b32.xlu0 %v6729_v5, %s11378_s28  ;;  %v6713_v62 = vsel %vm2898_vm14, %v6712_v63, %v6711_v17  ;;  %v5476_v24 = vsel %vm2892_vm11, %v5475_v38, %v5474_v8  ;;  %v5481_v33 = vrot.slane %v18280_v10, 2  ;;  %v15805_v12 = vpop.permute.xlu0 %6130  ;;  %v18307_v8 = vld [vmem:[#allocation107_spill] sm:$0xff] }
 0x419   :  { %v5478_v40 = vsel %vm2894_vm12, %v5477_v60, %v5476_v24  ;;  %v18306_v4 = vrot.slane %v18305_v48, 6  ;;  %v5503_v29 = vrot.slane %v18285_v47, 5  ;;  %v5483_v39 = vrot.slane %v18281_v25, 1  ;;  %v11266_v48 = vld [vmem:[%s17186_s3 + $0x464] ss:$8 sps:$4 sm:$0xff]  }
 0x41a   :  { %v6715_v18 = vsel %vm2900_vm15, %v6714_v9, %v6713_v62  ;;  %v5480_v23 = vsel %vm2896_vm13, %v5479_v45, %v5478_v40  ;;  %v5505_v30 = vrot.slane %v18169_v1, 4  ;;  %v6140_v10 = vsel %vm6138_vm2, %v15373_v21, %v15423_v22  ;;  %v18309_v62 = vld [vmem:[#allocation162_spill] sm:$0xff] }
 0x41b   :  { %v5502_v13 = vsel %vm2890_vm10, %v18306_v4, %v18304_v58  ;;  %v6731_v6 = vpack.c.b16 %v6715_v18, %v6715_v18  ;;  %v5482_v63 = vsel %vm2898_vm14, %v5481_v33, %v5480_v23  ;;  %v5507_v36 = vrot.slane %v18170_v14, 3  ;;  %v18308_v14 = vld [vmem:[#allocation88_spill] sm:$0xff]  ;;  %v18313_v23 = vld [vmem:[#allocation86_spill] sm:$0xff] }
 0x41c   :  { %v5504_v5 = vsel %vm2892_vm11, %v5503_v29, %v5502_v13  ;;  %v5484_v47 = vsel %vm2900_vm15, %v5483_v39, %v5482_v63  ;;  %v5509_v1 = vrot.slane %v18172_v42, 2  ;;  %v5511_v19 = vrot.slane %v18173_v52, 1  ;;  %v18310_v42 = vld [vmem:[#allocation67_spill] sm:$0xff]  ;;  %v18312_v33 = vld [vmem:[#allocation64_spill] sm:$0xff] }
 0x41d   :  { %6762 = vrot.lane.b32.xlu1 %v6731_v6, %s11378_s28  ;;  %v5506_v25 = vsel %vm2894_vm12, %v5505_v30, %v5504_v5  ;;  %v6825_v38 = vsel %vm6451_vm3, %v15428_v0, %v18307_v8  ;;  %v6828_v17 = vsel %vm6451_vm3, %v15423_v22, %v18308_v14  ;;  %v18311_v24 = vrot.slane %v18310_v42, 6  ;;  %v11258_v52 = vld [vmem:[%s17186_s3 + $0x470] ss:$8 sps:$4 sm:$0xff]   ;;  %v15831_v6 = vpop.permute.xlu1 %6736  ;;  %v18314_v30 = vld [vmem:[#allocation170_spill] sm:$0xff] }
 0x41e   :  { %v5508_v35 = vsel %vm2896_vm13, %v5507_v36, %v5506_v25  ;;  %v10675_v60 = vcombine.low %v6825_v38, %v6828_v17  ;;  %v5461_v18 = vrot.slane %v18312_v33, 5  ;;  %v10674_v40 = vcombine.low %v6139_v41, %v6140_v10  ;;  %v18315_v10 = vld [vmem:[#allocation75_spill] sm:$0xff]  ;;  %v18317_v5 = vld [vmem:[#allocation76_spill] sm:$0xff]  ;;  %v15849_v38 = vpop.permute.xlu0 %6132 }
 0x41f   :  { %v5510_v9 = vsel %vm2898_vm14, %v5509_v1, %v5508_v35  ;;  %v5460_v45 = vsel %vm2890_vm10, %v18311_v24, %v18309_v62  ;;  %v5519_v0 = vpack.c.b16 %v5484_v47, %v5484_v47  ;;  %v5463_v22 = vrot.slane %v18292_v43, 4  ;;  %v18318_v47 = vld [vmem:[#allocation93_spill] sm:$0xff] }
 0x420   :  { %v5512_v58 = vsel %vm2900_vm15, %v5511_v19, %v5510_v9  ;;  %v5462_v13 = vsel %vm2892_vm11, %v5461_v18, %v5460_v45  ;;  %v5465_v29 = vrot.slane %v18289_v3, 3  ;;  %8155 = vmatprep.mubr.bf16.mxu0 %v10675_v60  ;;  %v18316_v43 = vrot.slane %v18315_v10, 6  ;;  %v11264_v19 = vld [vmem:[%s17186_s3 + $0x460] ss:$8 sps:$4 sm:$0xff]   ;;  %v11272_v62 = vld [vmem:[%s17186_s3 + $0x454] ss:$8 sps:$4 sm:$0xff]  }
 0x421   :  { %v5520_v4 = vpack.c.b16 %v5512_v58, %v5512_v58  ;;  %v6793_v41 = vsel %vm616_vm8, %v5519_v0, %v18313_v23  ;;  %v5464_v39 = vsel %vm2894_vm12, %v5463_v22, %v5462_v13  ;;  %v5489_v36 = vrot.slane %v18317_v5, 5  ;;  %8156 = vmatmul.mubr.bf16.vlgmr.msra.gmra.mxu0 %v10674_v40  ;;  %v18320_v40 = vld [vmem:[#allocation105_spill] sm:$0xff]  ;;  %v15869_v58 = vpop.permute.xlu1 %6738  ;;  %v18321_v22 = vld [vmem:[#allocation124_spill] sm:$0xff] }
 0x422   :  { %v5488_v63 = vsel %vm2890_vm10, %v18316_v43, %v18314_v30  ;;  %v5466_v3 = vsel %vm2896_vm13, %v5465_v29, %v5464_v39  ;;  %v5467_v1 = vrot.slane %v18290_v2, 2  ;;  %v5491_v35 = vrot.slane %v18105_v61, 4  ;;  %8270 = vmatpush1.bf16.msra.mxu0 %v11258_v52  ;;  %v15888_v39 = vpop.permute.xlu0 %6443  ;;  %v18322_v43 = vld [vmem:[#allocation101_spill] sm:$0xff] }
 0x423   :  { %v6796_v25 = vsel %vm616_vm8, %v5520_v4, %v18318_v47  ;;  %v5490_v9 = vsel %vm2892_vm11, %v5489_v36, %v5488_v63  ;;  %v5493_v60 = vrot.slane %v18107_v51, 3  ;;  %8271 = vmatprep.subr.bf16.mxu0 %v11266_v48  ;;  %v5495_v42 = vrot.slane %v18108_v32, 2  ;;  %v18319_v51 = vld [vmem:[#allocation21_spill] sm:$0xff]  ;;  %v11276_v36 = vld [vmem:[%s17186_s3 + $0x440] ss:$8 sps:$4 sm:$0xff]  }
 0x424   :  { %v10698_v17 = vcombine.low %v6793_v41, %v6796_v25  ;;  %v5468_v2 = vsel %vm2898_vm14, %v5467_v1, %v5466_v3  ;;  %v5492_v61 = vsel %vm2894_vm12, %v5491_v35, %v5490_v9  ;;  %v5469_v24 = vrot.slane %v18291_v56, 1  ;;  %v11270_v41 = vld [vmem:[%s17186_s3 + $0x450] ss:$8 sps:$4 sm:$0xff]   ;;  %v11284_v35 = vld [vmem:[%s17186_s3 + $0x434] ss:$8 sps:$4 sm:$0xff]  }
 0x425   :  { %v5494_v45 = vsel %vm2896_vm13, %v5493_v60, %v5492_v61  ;;  %v5497_v33 = vrot.slane %v18109_v7, 1  ;;  %v6803_v18 = vsel %vm6138_vm2, %v18319_v51, %v15373_v21  ;;  %v6142_v0 = vsel %vm6138_vm2, %v18320_v40, %v15573_v31  ;;  %v15905_v25 = vpop.permute.xlu1 %5823  ;;  %v18323_v3 = vld [vmem:[#allocation120_spill] sm:$0xff] }
 0x426   :  { %8039 = vmatprep.mubr.bf16.mxu1 %v10698_v17  ;;  %v5496_v52 = vsel %vm2898_vm14, %v5495_v42, %v5494_v45  ;;  %8272 = vmatpush1.bf16.msra.mxu0 %v11264_v19  ;;  %v5470_v32 = vsel %vm2900_vm15, %v5469_v24, %v5468_v2  ;;  %v6831_v7 = vsel %vm6451_vm3, %v15584_v59, %v15616_v53  ;;  %v18324_v19 = vld [vmem:[#allocation103_spill] sm:$0xff]  ;;  %v15916_v9 = vpop.permute.xlu0 %6421  ;;  %v18325_v60 = vld [vmem:[#allocation104_spill] sm:$0xff] }
 0x427   :  { %v5498_v56 = vsel %vm2900_vm15, %v5497_v33, %v5496_v52  ;;  %v6834_v21 = vsel %vm6451_vm3, %v15573_v31, %v15605_v16  ;;  %8273 = vmatprep.subr.bf16.mxu0 %v11272_v62  ;;  %v6800_v48 = vsel %vm6138_vm2, %v18321_v22, %v15259_v54  ;;  %v6141_v13 = vsel %vm6138_vm2, %v15555_v20, %v15584_v59  ;;  %v11278_v31 = vld [vmem:[%s17186_s3 + $0x444] ss:$8 sps:$4 sm:$0xff]   ;;  %v11240_v61 = vld [vmem:[%s17186_s3 + $0x370] ss:$8 sps:$4 sm:$0xff]   ;;  %v11243_v52 = vld [vmem:[%s17186_s3 + $0x360] ss:$8 sps:$4 sm:$0xff]  }
 0x428   :  { %v7168_v4 = vpack.c.b16 %v5498_v56, %v5470_v32  ;;  %v10684_v29 = vcombine.low %v6831_v7, %v6834_v21  ;;  %v10673_v30 = vcombine.low %v6800_v48, %v6803_v18  ;;  %v10683_v10 = vcombine.low %v6141_v13, %v6142_v0  ;;  %v11282_v33 = vld [vmem:[%s17186_s3 + $0x430] ss:$8 sps:$4 sm:$0xff]   ;;  %v18326_v32 = vld [vmem:[#allocation35_spill] sm:$0xff] }
 0x429   :  { %v6837_v54 = vsel %vm6451_vm3, %v15713_v44, %v15741_v34  ;;  %v6840_v59 = vsel %vm6451_vm3, %v15704_v50, %v15730_v55  ;;  %v6809_v63 = vsel %vm6138_vm2, %v18322_v43, %v18320_v40  ;;  %v5827_v1 = vsel %vm616_vm8, %v18323_v3, %v18319_v51  ;;  %v6135_v18 = vpop.permute.xlu1 %6134  ;;  %v11288_v7 = vld [vmem:[%s17186_s3 + $0x420] ss:$8 sps:$4 sm:$0xff]   ;;  %v11254_v3 = vld [vmem:[%s17186_s3 + $0x334] ss:$8 sps:$4 sm:$0xff]  }
 0x42a   :  { %8040 = vmatmul.mubr.bf16.gmra.mxu1 %v7168_v4  ;;  %8165 = vmatprep.mubr.bf16.mxu0 %v10684_v29  ;;  %v10693_v5 = vcombine.low %v6837_v54, %v6840_v59  ;;  %v6806_v17 = vsel %vm6138_vm2, %v18324_v19, %v15555_v20  ;;  %v5826_v62 = vsel %vm616_vm8, %v18325_v60, %v18321_v22  ;;  %v11245_v20 = vld [vmem:[%s17186_s3 + $0x364] ss:$8 sps:$4 sm:$0xff]   ;;  %v15948_v0 = vpop.permute.xlu0 %6732  ;;  %v11246_v4 = vld [vmem:[%s17186_s3 + $0x350] ss:$8 sps:$4 sm:$0xff]   ;;  %v11300_v60 = vld [vmem:[%s17186_s3 + $0x400] ss:$8 sps:$4 sm:$0xff]  }
 0x42b   :  { %8082 = vmatprep.mubr.bf16.mxu1 %v10673_v30  ;;  %8166 = vmatmul.mubr.bf16.gmra.mxu0 %v10683_v10  ;;  %v10682_v2 = vcombine.low %v6806_v17, %v6809_v63  ;;  %v6144_v42 = vsel %vm6138_vm2, %v15673_v28, %v15704_v50  ;;  %v10672_v24 = vcombine.low %v5826_v62, %v5827_v1  ;;  %v11290_v50 = vld [vmem:[%s17186_s3 + $0x424] ss:$8 sps:$4 sm:$0xff]  }
 0x42c   :  { %8274 = vmatpush1.bf16.msra.mxu0 %v11270_v41  ;;  %8175 = vmatprep.mubr.bf16.mxu0 %v10693_v5  ;;  %v6143_v45 = vsel %vm6138_vm2, %v15686_v57, %v15713_v44  ;;  %v11248_v44 = vld [vmem:[%s17186_s3 + $0x354] ss:$8 sps:$4 sm:$0xff]   ;;  %v6815_v40 = vsel %vm6138_vm2, %v15640_v46, %v15673_v28  ;;  %v5829_v56 = vsel %vm616_vm8, %v18326_v32, %v18322_v43  ;;  %v18327_v22 = vld [vmem:[#allocation126_spill] sm:$0xff] }
 0x42d   :  { %8275 = vmatprep.subr.bf16.mxu0 %v11278_v31  ;;  %v10692_v51 = vcombine.low %v6143_v45, %v6144_v42  ;;  %v6812_v21 = vsel %vm6138_vm2, %v15649_v49, %v15686_v57  ;;  %v11296_v28 = vld [vmem:[%s17186_s3 + $0x414] ss:$8 sps:$4 sm:$0xff]   ;;  %v5828_v48 = vsel %vm616_vm8, %v18327_v22, %v18324_v19  ;;  %v11251_v57 = vld [vmem:[%s17186_s3 + $0x344] ss:$8 sps:$4 sm:$0xff]   ;;  %v6145_v30 = vsel %vm6138_vm2, %v15805_v12, %v15849_v38  ;;  %v11294_v31 = vld [vmem:[%s17186_s3 + $0x410] ss:$8 sps:$4 sm:$0xff]  }
 0x42e   :  { %v10691_v13 = vcombine.low %v6812_v21, %v6815_v40  ;;  %v10681_v29 = vcombine.low %v5828_v48, %v5829_v56  ;;  %v6843_v10 = vsel %vm6451_vm3, %v15849_v38, %v15888_v39  ;;  %v11302_v63 = vld [vmem:[%s17186_s3 + $0x404] ss:$8 sps:$4 sm:$0xff]   ;;  %v11249_v38 = vld [vmem:[%s17186_s3 + $0x340] ss:$8 sps:$4 sm:$0xff]   ;;  %v6821_v1 = vsel %vm6138_vm2, %v15905_v25, %v6135_v18  ;;  %v11252_v42 = vld [vmem:[%s17186_s3 + $0x330] ss:$8 sps:$4 sm:$0xff]  }
 0x42f   :  { %v6735_v43 = vpop.permute.xlu0 %6734  ;;  %v6818_v62 = vsel %vm6138_vm2, %v15771_v27, %v15805_v12  ;;  %v11257_v12 = vld [vmem:[%s17186_s3 + $0x324] ss:$8 sps:$4 sm:$0xff]   ;;  %v11306_v45 = vld [vmem:[%s17186_s3 + $0x4a0] ss:$8 sps:$4 sm:$0xff]   ;;  %v11275_v48 = vld [vmem:[%s17186_s3 + $0x3f4] ss:$8 sps:$4 sm:$0xff]  }
 0x430   :  { %8276 = vmatpush1.bf16.msra.mxu0 %v11276_v36  ;;  %v10679_v17 = vcombine.low %v6735_v43, %v15869_v58  ;;  %v11320_v32 = vld [vmem:[%s17186_s3 + $0x484] ss:$8 sps:$4 sm:$0xff]   ;;  %v11318_v22 = vld [vmem:[%s17186_s3 + $0x480] ss:$8 sps:$4 sm:$0xff]  }
 0x431   :  { %8277 = vmatprep.subr.bf16.mxu0 %v11284_v35  ;;  %v18328_v35 = vld [vmem:[#allocation28_spill] sm:$0xff]  ;;  %v11269_v56 = vld [vmem:[%s17186_s3 + $0x304] ss:$8 sps:$4 sm:$0xff]  }
 0x432   :  { %8083 = vmatmul.mubr.bf16.vlgmr.msra.gmra.mxu1 %v10672_v24  ;;  %v6137_v41 = vpop.permute.xlu1 %6136  ;;  %v5831_v19 = vsel %vm616_vm8, %v18328_v35, %v15640_v46  ;;  %v10700_v24 = vcombine.low %v6818_v62, %v6821_v1  ;;  %v11305_v1 = vld [vmem:[%s17186_s3 + $0x3a4] ss:$8 sps:$4 sm:$0xff]   ;;  %v11303_v35 = vld [vmem:[%s17186_s3 + $0x3a0] ss:$8 sps:$4 sm:$0xff]  }
 0x433   :  { %8197 = vmatpush1.bf16.msra.mxu1 %v11240_v61  ;;  %8092 = vmatprep.mubr.bf16.mxu1 %v10682_v2  ;;  %v6146_v54 = vsel %vm6138_vm2, %v6135_v18, %v6137_v41  ;;  %v6846_v59 = vsel %vm6451_vm3, %v6137_v41, %v15760_v37  ;;  %v11308_v2 = vld [vmem:[%s17186_s3 + $0x4a4] ss:$8 sps:$4 sm:$0xff]   ;;  %v18329_v61 = vld [vmem:[#allocation33_spill] sm:$0xff] }
 0x434   :  { %8198 = vmatprep.subr.bf16.mxu1 %v11245_v20  ;;  %8176 = vmatmul.mubr.bf16.gmra.mxu0 %v10692_v51  ;;  %v10701_v5 = vcombine.low %v6145_v30, %v6146_v54  ;;  %v10702_v36 = vcombine.low %v6843_v10, %v6846_v59  ;;  %v5830_v46 = vsel %vm616_vm8, %v18329_v61, %v15649_v49  ;;  %v11314_v49 = vld [vmem:[%s17186_s3 + $0x494] ss:$8 sps:$4 sm:$0xff]   ;;  %v11312_v18 = vld [vmem:[%s17186_s3 + $0x490] ss:$8 sps:$4 sm:$0xff]   ;;  %v11315_v61 = vld [vmem:[%s17186_s3 + $0x380] ss:$8 sps:$4 sm:$0xff]  }
 0x435   :  { %8278 = vmatpush1.bf16.msra.mxu0 %v11282_v33  ;;  %v10690_v20 = vcombine.low %v5830_v46, %v5831_v19  ;;  %v11255_v33 = vld [vmem:[%s17186_s3 + $0x320] ss:$8 sps:$4 sm:$0xff]   ;;  %v11263_v51 = vld [vmem:[%s17186_s3 + $0x314] ss:$8 sps:$4 sm:$0xff]   ;;  %v11273_v41 = vld [vmem:[%s17186_s3 + $0x3f0] ss:$8 sps:$4 sm:$0xff]  }
 0x436   :  { %8279 = vmatprep.subr.bf16.mxu0 %v11290_v50  ;;  %8185 = vmatprep.mubr.bf16.mxu0 %v10702_v36  ;;  %v5833_v50 = vsel %vm616_vm8, %v18318_v47, %v15905_v25  ;;  %v11261_v47 = vld [vmem:[%s17186_s3 + $0x310] ss:$8 sps:$4 sm:$0xff]   ;;  %v5832_v25 = vsel %vm616_vm8, %v18313_v23, %v15771_v27  ;;  %v11267_v27 = vld [vmem:[%s17186_s3 + $0x300] ss:$8 sps:$4 sm:$0xff]   ;;  %v6765_v23 = vsel %vm6764_vm6, %v15948_v0, %v6735_v43  ;;  %v11287_v54 = vld [vmem:[%s17186_s3 + $0x3d4] ss:$8 sps:$4 sm:$0xff]  }
 0x437   :  { %8199 = vmatpush1.bf16.msra.mxu1 %v11243_v52  ;;  %v6850_v52 = vsel %vm6764_vm6, %v15916_v9, %v15948_v0  ;;  %v10699_v21 = vcombine.low %v5832_v25, %v5833_v50  ;;  %v11281_v0 = vld [vmem:[%s17186_s3 + $0x3e4] ss:$8 sps:$4 sm:$0xff]   ;;  %v11291_v36 = vld [vmem:[%s17186_s3 + $0x3c0] ss:$8 sps:$4 sm:$0xff]   ;;  %v11311_v19 = vld [vmem:[%s17186_s3 + $0x394] ss:$8 sps:$4 sm:$0xff]  }
 0x438   :  { %8200 = vmatprep.subr.bf16.mxu1 %v11248_v44  ;;  %v16038_v44 = vpop.permute.xlu0 %6429  ;;  %vm11383_vm8 = vmmov 0  }
 0x439   :  { %8280 = vmatpush1.bf16.msra.mxu0 %v11288_v7  ;;  %v6853_v7 = vsel %vm6764_vm6, %v15793_v15, %v15831_v6 }
 0x43a   :  { %8093 = vmatmul.mubr.bf16.gmra.mxu1 %v10681_v29  ;;  %8281 = vmatprep.subr.bf16.mxu0 %v11296_v28  ;;  %v10677_v28 = vcombine.low %v6850_v52, %v6853_v7  ;;  %v6766_v29 = vsel %vm6764_vm6, %v15831_v6, %v15869_v58  ;;  %v11279_v6 = vld [vmem:[%s17186_s3 + $0x3e0] ss:$8 sps:$4 sm:$0xff]  }
 0x43b   :  { %8201 = vmatpush1.bf16.msra.mxu1 %v11246_v4  ;;  %8102 = vmatprep.mubr.bf16.mxu1 %v10691_v13  ;;  %v16040_v40 = vpop.permute.xlu1 %6433 }
 0x43c   :  { %8202 = vmatprep.subr.bf16.mxu1 %v11251_v57  ;;  %8186 = vmatmul.mubr.bf16.gmra.mxu0 %v10701_v5  ;;  %v10678_v57 = vcombine.low %v6765_v23, %v6766_v29  ;;  %v11293_v5 = vld [vmem:[%s17186_s3 + $0x3c4] ss:$8 sps:$4 sm:$0xff]  }
 0x43d   :  { %8282 = vmatpush1.bf16.msra.mxu0 %v11294_v31  ;;  %10857 = vmatprep.mubr.msk.bf16.mxu0 %vm7964_vm5, %v10679_v17  ;;  %v11309_v17 = vld [vmem:[%s17186_s3 + $0x390] ss:$8 sps:$4 sm:$0xff]  }
 0x43e   :  { %8283 = vmatprep.subr.bf16.mxu0 %v11302_v63  ;;  %v11285_v63 = vld [vmem:[%s17186_s3 + $0x3d0] ss:$8 sps:$4 sm:$0xff]  }
 0x43f   :  { %8203 = vmatpush1.bf16.msra.mxu1 %v11249_v38  ;;  %v11299_v38 = vld [vmem:[%s17186_s3 + $0x3b4] ss:$8 sps:$4 sm:$0xff]  }
 0x440   :  { %8204 = vmatprep.subr.bf16.mxu1 %v11254_v3  ;;  %v6741_v4 = vpop.permute.xlu0 %6740  ;;  %v11297_v3 = vld [vmem:[%s17186_s3 + $0x3b0] ss:$8 sps:$4 sm:$0xff]  }
 0x441   :  { %8284 = vmatpush1.bf16.msra.mxu0 %v11300_v60  ;;  %v11317_v60 = vld [vmem:[%s17186_s3 + $0x384] ss:$8 sps:$4 sm:$0xff]  }
 0x442   :  { %8103 = vmatmul.mubr.bf16.gmra.mxu1 %v10690_v20  ;;  %8295 = vmatprep.subr.bf16.mxu0 %v11308_v2 }
 0x443   :  { %8205 = vmatpush1.bf16.msra.mxu1 %v11252_v42  ;;  %8112 = vmatprep.mubr.bf16.mxu1 %v10700_v24  ;;  %v6452_v42 = vsel %vm6451_vm3, %v18307_v8, %v15916_v9  ;;  %v6856_v24 = vsel %vm6764_vm6, %v16038_v44, %v6741_v4  ;;  %v6455_v8 = vsel %vm6451_vm3, %v15605_v16, %v16040_v40 }
 0x444   :  { %8206 = vmatprep.subr.bf16.mxu1 %v11257_v12  ;;  %v6745_v13 = vpop.permute.xlu1 %6744  ;;  %v6453_v12 = vsel %vm6451_vm3, %v18308_v14, %v15793_v15  ;;  %v6454_v9 = vsel %vm6451_vm3, %v15616_v53, %v16038_v44 }
 0x445   :  { %8296 = vmatpush2.bf16.msra.mxu0 %v11306_v45  ;;  %v6859_v46 = vsel %vm6764_vm6, %v16040_v40, %v6745_v13  ;;  %v10685_v25 = vcombine.low %v6454_v9, %v6455_v8 }
 0x446   :  { %8297 = vmatprep.subr.bf16.mxu0 %v11314_v49  ;;  %v10686_v45 = vcombine.low %v6856_v24, %v6859_v46  ;;  %v10676_v49 = vcombine.low %v6452_v42, %v6453_v12 }
 0x447   :  { %8207 = vmatpush1.bf16.msra.mxu1 %v11255_v33 }
 0x448   :  { %8208 = vmatprep.subr.bf16.mxu1 %v11263_v51 }
 0x449   :  { %8298 = vmatpush2.bf16.msra.mxu0 %v11312_v18  ;;  %v6743_v30 = vpop.permute.xlu0 %6742 }
 0x44a   :  { %8113 = vmatmul.mubr.bf16.gmra.mxu1 %v10699_v21  ;;  %8299 = vmatprep.subr.bf16.mxu0 %v11320_v32  ;;  %v6767_v59 = vsel %vm6764_vm6, %v6741_v4, %v6743_v30 }
 0x44b   :  { %8209 = vmatpush1.bf16.msra.mxu1 %v11261_v47  ;;  %8228 = vmatprep.mubr.bf16.mxu1 %v10677_v28 }
 0x44c   :  { %8210 = vmatprep.subr.bf16.mxu1 %v11269_v56 }
 0x44d   :  { %8300 = vmatpush2.bf16.msra.mxu0 %v11318_v22 }
 0x44e   :  { %v6747_v10 = vpop.permute.xlu1 %6746 }
 0x44f   :  { %8211 = vmatpush1.bf16.msra.mxu1 %v11267_v27  ;;  %v6768_v58 = vsel %vm6764_vm6, %v6745_v13, %v6747_v10  ;;  %v10688_v31 = vcombine.low %v6743_v30, %v6747_v10 }
 0x450   :  { %8212 = vmatprep.subr.bf16.mxu1 %v11275_v48  ;;  %8302 = vmatmul.mubr.bf16.vlgmr.msra.gmra.mxu0 %v10678_v57  ;;  %v10687_v43 = vcombine.low %v6767_v59, %v6768_v58 }
 0x451   :  { %10858 = vmatprep.mubr.msk.bf16.mxu0 %vm7964_vm5, %v10688_v31 }
 0x452   :  { %v6438_v62 = vpop.permute.xlu0 %6437 }
 0x453   :  { %8213 = vmatpush2.bf16.msra.mxu1 %v11273_v41  ;;  %v6456_v44 = vsel %vm6451_vm3, %v15741_v34, %v6438_v62 }
 0x454   :  { %8214 = vmatprep.subr.bf16.mxu1 %v11281_v0  ;;  %v8011_v0 = vpop.f32.mrf.mxu1 }
 0x456   :  { %v8013_v30 = vpop.f32.mrf.mxu1 }
 0x457   :  { %8215 = vmatpush2.bf16.msra.mxu1 %v11279_v6 }
 0x458   :  { %8216 = vmatprep.subr.bf16.mxu1 %v11287_v54  ;;  %8312 = vmatmul.mubr.bf16.gmra.mxu0 %v10687_v43  ;;  %v8015_v10 = vpop.f32.mrf.mxu1 }
 0x459   :  { %v6442_v2 = vpop.permute.xlu1 %6441 }
 0x45a   :  { %v6457_v16 = vsel %vm6451_vm3, %v15730_v55, %v6442_v2  ;;  %v8017_v6 = vpop.f32.mrf.mxu1 }
 0x45b   :  { %8217 = vmatpush2.bf16.msra.mxu1 %v11285_v63  ;;  %v10694_v40 = vcombine.low %v6456_v44, %v6457_v16  ;;  %v7126_v44 = vld [vmem:[%s17187_s4] sm:$0x3]  ;;  %s11379_s4 = smov 108  }
 0x45c   :  { %8218 = vmatprep.subr.bf16.mxu1 %v11293_v5 }
 0x45f   :  { %8219 = vmatpush2.bf16.msra.mxu1 %v11291_v36  ;;  %v6749_v20 = vpop.permute.xlu0 %6748 }
 0x460   :  { %8220 = vmatprep.subr.bf16.mxu1 %v11299_v38  ;;  %v6862_v18 = vsel %vm6764_vm6, %v6438_v62, %v6749_v20 }
 0x463   :  { %8221 = vmatpush2.bf16.msra.mxu1 %v11297_v3 }
 0x464   :  { %8222 = vmatprep.subr.bf16.mxu1 %v11305_v1  ;;  %v6753_v33 = vpop.permute.xlu1 %6752 }
 0x465   :  { %v6865_v51 = vsel %vm6764_vm6, %v6442_v2, %v6753_v33 }
 0x466   :  { %v10695_v14 = vcombine.low %v6862_v18, %v6865_v51 }
 0x467   :  { %8223 = vmatpush2.bf16.msra.mxu1 %v11303_v35 }
 0x468   :  { %8224 = vmatprep.subr.bf16.mxu1 %v11311_v19  ;;  %v6751_v50 = vpop.permute.xlu0 %6750 }
 0x469   :  { %v6769_v52 = vsel %vm6764_vm6, %v6749_v20, %v6751_v50 }
 0x46b   :  { %8225 = vmatpush2.bf16.msra.mxu1 %v11309_v17 }
 0x46c   :  { %8226 = vmatprep.subr.bf16.mxu1 %v11317_v60 }
 0x46f   :  { %8227 = vmatpush2.bf16.msra.mxu1 %v11315_v61 }
 0x472   :  { %8229 = vmatmul.mubr.bf16.vlgmr.msra.gmra.mxu1 %v10676_v49 }
 0x473   :  { %8238 = vmatprep.mubr.bf16.mxu1 %v10686_v45 }
 0x475   :  { %v6755_v15 = vpop.permute.xlu1 %6754 }
 0x476   :  { %v6770_v32 = vsel %vm6764_vm6, %v6753_v33, %v6755_v15  ;;  %v10697_v47 = vcombine.low %v6751_v50, %v6755_v15 }
 0x477   :  { %v10696_v56 = vcombine.low %v6769_v52, %v6770_v32  ;;  %v6446_v53 = vpop.permute.xlu0 %6445 }
 0x478   :  { %10859 = vmatprep.mubr.msk.bf16.mxu0 %vm7964_vm5, %v10697_v47  ;;  %v6458_v48 = vsel %vm6451_vm3, %v15888_v39, %v6446_v53  ;;  %v16153_v39 = vpop.f32.mrf.mxu1 }
 0x479   :  { %8322 = vmatmul.mubr.bf16.gmra.mxu0 %v10696_v56 }
 0x47a   :  { %8239 = vmatmul.mubr.bf16.gmra.mxu1 %v10685_v25  ;;  %v16155_v58 = vpop.f32.mrf.mxu1 }
 0x47b   :  { %8248 = vmatprep.mubr.bf16.mxu1 %v10695_v14  ;;  %v6450_v7 = vpop.permute.xlu1 %6449 }
 0x47c   :  { %v6459_v28 = vsel %vm6451_vm3, %v15760_v37, %v6450_v7  ;;  %v16157_v31 = vpop.f32.mrf.mxu1 }
 0x47d   :  { %v10703_v4 = vcombine.low %v6458_v48, %v6459_v28 }
 0x47e   :  { %v16159_v54 = vpop.f32.mrf.mxu1 }
 0x482   :  { %8249 = vmatmul.mubr.bf16.gmra.mxu1 %v10694_v40  ;;  %v6757_v21 = vpop.permute.xlu0 %6756 }
 0x483   :  { %v6868_v27 = vsel %vm6764_vm6, %v6446_v53, %v6757_v21 }
 0x486   :  { %v6761_v22 = vpop.permute.xlu1 %6760 }
 0x487   :  { %v6871_v23 = vsel %vm6764_vm6, %v6450_v7, %v6761_v22 }
 0x488   :  { %v10704_v55 = vcombine.low %v6868_v27, %v6871_v23 }
 0x48a   :  { %8258 = vmatprep.mubr.bf16.mxu1 %v10704_v55  ;;  %v6759_v34 = vpop.permute.xlu0 %6758 }
 0x48b   :  { %8259 = vmatmul.mubr.bf16.gmra.mxu1 %v10703_v4  ;;  %v6771_v29 = vsel %vm6764_vm6, %v6757_v21, %v6759_v34  ;;  %v7131_v21 = vrot.slane %v7126_v44, %v18130_v26 }
 0x48d   :  { %v8012_v55 = vadd.f32 %v8011_v0, %v7131_v21  ;;  %v8022_v0 = vadd.f32 %v16153_v39, %v7131_v21 }
 0x48f   :  { %v6763_v13 = vpop.permute.xlu1 %6762 }
 0x490   :  { %v6772_v57 = vsel %vm6764_vm6, %v6761_v22, %v6763_v13  ;;  %v10706_v41 = vcombine.low %v6759_v34, %v6763_v13  ;;  %v18334_v22 = vld [vmem:[#allocation2_spill] sm:$0xff] }
 0x491   :  { %v10705_v37 = vcombine.low %v6771_v29, %v6772_v57  ;;  %v18335_v27 = vsub.s32 1, %v18334_v22 }
 0x492   :  { %10860 = vmatprep.mubr.msk.bf16.mxu0 %vm7964_vm5, %v10706_v41  ;;  %v8016_v41 = vadd.f32 %v8015_v10, %v7131_v21 }
 0x493   :  { %8332 = vmatmul.mubr.bf16.gmra.mxu0 %v10705_v37  ;;  %v7135_v23 = vrot.slane %v7126_v44, %v18335_v27 }
 0x495   :  { %v8014_v34 = vadd.f32 %v8013_v30, %v7135_v23  ;;  %v8018_v11 = vadd.f32 %v8017_v6, %v7135_v23  ;;  %v8024_v30 = vadd.f32 %v16155_v58, %v7135_v23 }
 0x4bc   :  { %v16161_v59 = vpop.f32.mrf.mxu1 }
 0x4bd   :  { %v8032_v6 = vadd.f32 %v16161_v59, %v7131_v21 }
 0x4be   :  { %v16163_v43 = vpop.f32.mrf.mxu1 }
 0x4c0   :  { %v16165_v63 = vpop.f32.mrf.mxu1 }
 0x4c2   :  { %v16167_v36 = vpop.f32.mrf.mxu1 }
 0x4c3   :  { %v8038_v58 = vadd.f32 %v16167_v36, %v7135_v23 }
 0x4e1   :  { %v8157_v5 = vpop.f32.mrf.mxu0 }
 0x4e3   :  { %v8159_v3 = vpop.f32.mrf.mxu0 }
 0x4e5   :  { %v8161_v35 = vpop.f32.mrf.mxu0 }
 0x4e7   :  { %v16175_v17 = vpop.f32.mrf.mxu0 }
 0x4ea   :  { %v16169_v38 = vpop.f32.mrf.mxu1 }
 0x4eb   :  { %v16179_v62 = vpop.f32.mrf.mxu0 }
 0x4ec   :  { %v16171_v1 = vpop.f32.mrf.mxu1 }
 0x4ed   :  { %v16181_v61 = vpop.f32.mrf.mxu0 }
 0x4ee   :  { %v16173_v19 = vpop.f32.mrf.mxu1 }
 0x4ef   :  { %v16183_v42 = vpop.f32.mrf.mxu0 }
 0x4f0   :  { %v16177_v60 = vpop.f32.mrf.mxu1 }
 0x4f1   :  { %v16185_v20 = vpop.f32.mrf.mxu0 }
 0x4f2   :  { %v8084_v2 = vpop.f32.mrf.mxu1 }
 0x4f3   :  { %v8085_v13 = vadd.f32 %v8084_v2, %v8012_v55  ;;  %v8026_v2 = vadd.f32 %v16157_v31, %v7131_v21  ;;  %v8028_v55 = vadd.f32 %v16159_v54, %v7135_v23  ;;  %v8042_v31 = vadd.f32 %v16169_v38, %v7131_v21 }
 0x4f4   :  { %v8086_v46 = vpop.f32.mrf.mxu1  ;;  %v16187_v12 = vpop.f32.mrf.mxu0 }
 0x4f5   :  { %v8087_v57 = vadd.f32 %v8086_v46, %v8014_v34 }
 0x4f6   :  { %v8088_v24 = vpop.f32.mrf.mxu1  ;;  %v16189_v49 = vpop.f32.mrf.mxu0 }
 0x4f7   :  { %v8089_v26 = vadd.f32 %v8088_v24, %v8016_v41  ;;  %v8160_v44 = vadd.f32 %v8159_v3, %v8087_v57 }
 0x4f8   :  { %v8090_v45 = vpop.f32.mrf.mxu1  ;;  %v16191_v51 = vpop.f32.mrf.mxu0 }
 0x4f9   :  { %v8162_v24 = vadd.f32 %v8161_v35, %v8089_v26  ;;  %v8046_v35 = vadd.f32 %v16173_v19, %v7131_v21 }
 0x4fa   :  { %v8094_v33 = vpop.f32.mrf.mxu1  ;;  %v16193_v8 = vpop.f32.mrf.mxu0 }
 0x4fc   :  { %v8096_v50 = vpop.f32.mrf.mxu1  ;;  %v16195_v18 = vpop.f32.mrf.mxu0 }
 0x4fd   :  { %18330 = vst [vmem:[#allocation108_spill] sm:$0xff] %v16195_v18  ;;  %v8091_v18 = vadd.f32 %v8090_v45, %v8018_v11  ;;  %v8036_v11 = vadd.f32 %v16165_v63, %v7131_v21  ;;  %v8097_v59 = vadd.f32 %v8096_v50, %v8024_v30  ;;  %v8048_v63 = vadd.f32 %v16177_v60, %v7135_v23  ;;  %v18336_v50 = vld [vmem:[#allocation4_spill] sm:$0xff] }
 0x4fe   :  { %v8098_v9 = vpop.f32.mrf.mxu1  ;;  %v16197_v14 = vpop.f32.mrf.mxu0 }
 0x4ff   :  { %18331 = vst [vmem:[#allocation133_spill] sm:$0xff] %v16197_v14  ;;  %v8164_v39 = vadd.f32 %v16175_v17, %v8091_v18  ;;  %v8170_v38 = vadd.f32 %v16181_v61, %v8097_v59 }
 0x500   :  { %v8100_v15 = vpop.f32.mrf.mxu1  ;;  %v16201_v32 = vpop.f32.mrf.mxu0 }
 0x501   :  { %18332 = vst [vmem:[#allocation136_spill] sm:$0xff] %v16201_v32 }
 0x502   :  { %v16199_v52 = vpop.f32.mrf.mxu1  ;;  %v16205_v25 = vpop.f32.mrf.mxu0 }
 0x503   :  { %18333 = vst [vmem:[#allocation142_spill] sm:$0xff] %v16205_v25  ;;  %v8158_v25 = vadd.f32 %v8157_v5, %v8085_v13  ;;  %v8034_v5 = vadd.f32 %v16163_v43, %v7135_v23  ;;  %v8095_v13 = vadd.f32 %v8094_v33, %v8022_v0  ;;  %v8105_v19 = vadd.f32 %v16199_v52, %v8032_v6 }
 0x504   :  { %v16203_v47 = vpop.f32.mrf.mxu1 }
 0x505   :  { %v8168_v36 = vadd.f32 %v16179_v62, %v8095_v13  ;;  %v8107_v60 = vadd.f32 %v16203_v47, %v8034_v5 }
 0x506   :  { %v16207_v56 = vpop.f32.mrf.mxu1 }
 0x507   :  { %v8180_v0 = vadd.f32 %v16189_v49, %v8107_v60 }
 0x508   :  { %v16209_v53 = vpop.f32.mrf.mxu1 }
 0x509   :  { %v8111_v61 = vadd.f32 %v16209_v53, %v8038_v58 }
 0x50a   :  { %v16214_v40 = vpop.f32.mrf.mxu1 }
 0x50b   :  { %v16256_v47 = vadd.f32 %v16193_v8, %v8111_v61 }
 0x50c   :  { %v16217_v28 = vpop.f32.mrf.mxu1 }
 0x50e   :  { %v16221_v4 = vpop.f32.mrf.mxu1 }
 0x50f   :  { %v8119_v5 = vadd.f32 %v16221_v4, %v8046_v35 }
 0x510   :  { %v8303_v16 = vpop.f32.mrf.mxu0  ;;  %v16223_v37 = vpop.f32.mrf.mxu1 }
 0x512   :  { %v8305_v7 = vpop.f32.mrf.mxu0 }
 0x514   :  { %v8307_v48 = vpop.f32.mrf.mxu0 }
 0x516   :  { %v8309_v29 = vpop.f32.mrf.mxu0 }
 0x518   :  { %v16225_v32 = vpop.f32.mrf.mxu0 }
 0x51a   :  { %v8315_v10 = vpop.f32.mrf.mxu0 }
 0x51c   :  { %v8317_v26 = vpop.f32.mrf.mxu0 }
 0x51e   :  { %v8319_v62 = vpop.f32.mrf.mxu0 }
 0x532   :  { %v8230_v14 = vpop.f32.mrf.mxu1 }
 0x533   :  { %v8231_v22 = vadd.f32 %v8230_v14, %v8158_v25  ;;  %v8044_v14 = vadd.f32 %v16171_v1, %v7135_v23 }
 0x534   :  { %v8232_v27 = vpop.f32.mrf.mxu1 }
 0x535   :  { %v8233_v46 = vadd.f32 %v8232_v27, %v8160_v44  ;;  %v8304_v3 = vadd.f32 %v8303_v16, %v8231_v22  ;;  %v8099_v16 = vadd.f32 %v8098_v9, %v8026_v2  ;;  %v8109_v9 = vadd.f32 %v16207_v56, %v8036_v11 }
 0x536   :  { %v8234_v34 = vpop.f32.mrf.mxu1  ;;  %v8115_v56 = vadd.f32 %v16214_v40, %v8042_v31 }
 0x537   :  { %v8306_v45 = vadd.f32 %v8305_v7, %v8233_v46  ;;  %v8235_v25 = vadd.f32 %v8234_v34, %v8162_v24  ;;  %v8101_v7 = vadd.f32 %v8100_v15, %v8028_v55  ;;  %v8172_v41 = vadd.f32 %v16183_v42, %v8099_v16  ;;  %v18337_v24 = vld [vmem:[#allocation108_spill] sm:$0xff] }
 0x538   :  { %v8236_v54 = vpop.f32.mrf.mxu1  ;;  %v16264_v34 = vadd.f32 %v18337_v24, %v8115_v56 }
 0x539   :  { %v8358_v57 = vcombine.low %v8304_v3, %v8306_v45  ;;  %v8237_v43 = vadd.f32 %v8236_v54, %v8164_v39  ;;  %v8359_v18 = vcombine.high %v8304_v3, %v8306_v45  ;;  %v8174_v33 = vadd.f32 %v16185_v20, %v8101_v7  ;;  %v8323_v49 = vpop.f32.mrf.mxu0 }
 0x53a   :  { %v8240_v17 = vpop.f32.mrf.mxu1  ;;  %v8308_v44 = vadd.f32 %v8307_v48, %v8235_v25  ;;  %v8178_v20 = vadd.f32 %v16187_v12, %v8105_v19  ;;  %v16252_v48 = vadd.f32 %v16191_v51, %v8109_v9  ;;  %v8117_v51 = vadd.f32 %v16217_v28, %v8044_v14  ;;  %v18339_v14 = vld [vmem:[#allocation136_spill] sm:$0xff] }
 0x53b   :  { %v8310_v1 = vadd.f32 %v8309_v29, %v8237_v43  ;;  %v8366_v22 = vrot.slane %v8358_v57, %v18336_v50  ;;  %v8241_v15 = vadd.f32 %v8240_v17, %v8168_v36  ;;  %v8373_v52 = vrot.slane %v8359_v18, %v18336_v50  ;;  %v8325_v57 = vpop.f32.mrf.mxu0 }
 0x53c   :  { %v8242_v27 = vpop.f32.mrf.mxu1  ;;  %v8121_v39 = vadd.f32 %v16223_v37, %v8048_v63  ;;  %v16272_v4 = vadd.f32 %v18339_v14, %v8119_v5 }
 0x53d   :  { %v8376_v21 = vcombine.low %v8308_v44, %v8310_v1  ;;  %v8377_v23 = vcombine.high %v8308_v44, %v8310_v1  ;;  %v8243_v29 = vadd.f32 %v8242_v27, %v8170_v38  ;;  %v8374_v30 = vcombine.high %v8366_v22, %v8366_v22 }
 0x53e   :  { %v8244_v42 = vpop.f32.mrf.mxu1  ;;  %v8314_v55 = vadd.f32 %v16225_v32, %v8241_v15  ;;  %v8375_v11 = vcombine.high %v8373_v52, %v8373_v52  ;;  %v18338_v32 = vld [vmem:[#allocation133_spill] sm:$0xff]  ;;  %v10861_v31 = vrot.slane %v8366_v22, 9  ;;  %v10863_v37 = vrot.slane %v8373_v52, 9 }
 0x53f   :  { %v8316_v53 = vadd.f32 %v8315_v10, %v8243_v29  ;;  %v8384_v46 = vrot.slane %v8376_v21, %v18336_v50  ;;  %v8245_v12 = vadd.f32 %v8244_v42, %v8172_v41  ;;  %v8391_v8 = vrot.slane %v8377_v23, %v18336_v50  ;;  %v18340_v42 = vld [vmem:[#allocation142_spill] sm:$0xff] }
 0x540   :  { %v8246_v2 = vpop.f32.mrf.mxu1  ;;  %v16269_v58 = vadd.f32 %v18338_v32, %v8117_v51  ;;  %v10862_v25 = vrot.slane %v8374_v30, 9  ;;  %v10864_v63 = vrot.slane %v8375_v11, 9  ;;  %v16276_v18 = vmax.f32 %v8366_v22, %v10861_v31 }
 0x541   :  { %v8247_v6 = vadd.f32 %v8246_v2, %v8174_v33  ;;  %v8394_v10 = vcombine.low %v8314_v55, %v8316_v53  ;;  %v8395_v3 = vcombine.high %v8314_v55, %v8316_v53  ;;  %v8392_v54 = vcombine.high %v8384_v46, %v8384_v46  ;;  %v18341_v53 = vld [vmem:[#allocation5_spill] sm:$0xff] }
 0x542   :  { %v8250_v40 = vpop.f32.mrf.mxu1  ;;  %v8318_v59 = vadd.f32 %v8317_v26, %v8245_v12  ;;  %v8393_v43 = vcombine.high %v8391_v8, %v8391_v8  ;;  %v16278_v1 = vmax.f32 %v8374_v30, %v10862_v25  ;;  %v10865_v41 = vrot.slane %v8384_v46, 9  ;;  %v8327_v30 = vpop.f32.mrf.mxu0 }
 0x543   :  { %v8320_v45 = vadd.f32 %v8319_v62, %v8247_v6  ;;  %v8402_v13 = vrot.slane %v8394_v10, %v18336_v50  ;;  %v8409_v35 = vrot.slane %v8395_v3, %v18336_v50  ;;  %v8251_v16 = vadd.f32 %v8250_v40, %v8178_v20 }
 0x544   :  { %v8252_v28 = vpop.f32.mrf.mxu1  ;;  %v10866_v44 = vrot.slane %v8392_v54, 9  ;;  %v10867_v27 = vrot.slane %v8391_v8, 9  ;;  %v10868_v60 = vrot.slane %v8393_v43, 9  ;;  %v16287_v20 = vadd.f32 %v18340_v42, %v8121_v39  ;;  %v18342_v39 = vld [vmem:[#allocation3_spill] sm:$0xff]  ;;  %v8329_v25 = vpop.f32.mrf.mxu0 }
 0x545   :  { %v8253_v7 = vadd.f32 %v8252_v28, %v8180_v0  ;;  %v8412_v17 = vcombine.low %v8318_v59, %v8320_v45  ;;  %v8413_v36 = vcombine.high %v8318_v59, %v8320_v45  ;;  %v8410_v26 = vcombine.high %v8402_v13, %v8402_v13 }
 0x546   :  { %v8254_v38 = vpop.f32.mrf.mxu1  ;;  %v8324_v19 = vadd.f32 %v8323_v49, %v8251_v16  ;;  %v8411_v9 = vcombine.high %v8409_v35, %v8409_v35  ;;  %v10869_v15 = vrot.slane %v8402_v13, 9  ;;  %v10871_v62 = vrot.slane %v8409_v35, 9 }
 0x547   :  { %v8326_v33 = vadd.f32 %v8325_v57, %v8253_v7  ;;  %v16281_v61 = vrot.slane %v8412_v17, %v18336_v50  ;;  %v16284_v21 = vrot.slane %v8413_v36, %v18336_v50  ;;  %v16289_v0 = vmax.f32 %v8373_v52, %v10863_v37 }
 0x548   :  { %v8256_v29 = vpop.f32.mrf.mxu1  ;;  %v16291_v56 = vmax.f32 %v8375_v11, %v10864_v63  ;;  %v8701_v2 = vrot.slane %v16276_v18, %v18341_v53  ;;  %v16295_v55 = vmax.f32 %v8384_v46, %v10865_v41  ;;  %v16297_v12 = vmax.f32 %v8391_v8, %v10867_v27 }
 0x549   :  { %v8430_v22 = vcombine.low %v8324_v19, %v8326_v33  ;;  %v8431_v23 = vcombine.high %v8324_v19, %v8326_v33  ;;  %v10870_v6 = vrot.slane %v8410_v26, 9  ;;  %v8709_v49 = vrot.slane %v16278_v1, %v18341_v53 }
 0x54a   :  { %v16301_v51 = vmax.f32 %v8392_v54, %v10866_v44  ;;  %v16303_v5 = vmax.f32 %v8393_v43, %v10868_v60  ;;  %v10872_v52 = vrot.slane %v8411_v9, 9  ;;  %v16305_v24 = vmax.f32 %v8402_v13, %v10869_v15 }
 0x54b   :  { %v16307_v40 = vmax.f32 %v8409_v35, %v10871_v62  ;;  %v16311_v11 = vcombine.high %v16281_v61, %v16281_v61  ;;  %v16315_v46 = vcombine.high %v16284_v21, %v16284_v21  ;;  %v8255_v8 = vadd.f32 %v8254_v38, %v16252_v48  ;;  %v8260_v10 = vpop.f32.mrf.mxu1 }
 0x54c   :  { %v8717_v3 = vrot.slane %v16289_v0, %v18341_v53  ;;  %v8953_v45 = vsel %vm2888_vm9, %v8709_v49, %v8701_v2  ;;  %v8697_v32 = vrot.slane %v16276_v18, %v18342_v39  ;;  %v8705_v31 = vrot.slane %v16278_v1, %v18342_v39 }
 0x54d   :  { %v16325_v28 = vmax.f32 %v8410_v26, %v10870_v6  ;;  %v10873_v14 = vrot.slane %v16281_v61, 9  ;;  %v10875_v54 = vrot.slane %v16284_v21, 9  ;;  %v8725_v48 = vrot.slane %v16291_v56, %v18341_v53  ;;  %v8262_v17 = vpop.f32.mrf.mxu1 }
 0x54e   :  { %v16332_v13 = vrot.slane %v8430_v22, %v18336_v50  ;;  %v8954_v59 = vsel %vm2890_vm10, %v8717_v3, %v8953_v45  ;;  %v8713_v57 = vrot.slane %v16289_v0, %v18342_v39  ;;  %v8950_v43 = vsel %vm2888_vm9, %v8705_v31, %v8697_v32 }
 0x54f   :  { %v16339_v16 = vrot.slane %v8431_v23, %v18336_v50  ;;  %v8955_v7 = vsel %vm2892_vm11, %v8725_v48, %v8954_v59  ;;  %v8721_v37 = vrot.slane %v16291_v56, %v18342_v39  ;;  %v8257_v63 = vadd.f32 %v8256_v29, %v16256_v47  ;;  %v8264_v2 = vpop.f32.mrf.mxu1 }
 0x550   :  { %v8328_v36 = vadd.f32 %v8327_v30, %v8255_v8  ;;  %9000 = vrot.lane.b32.xlu1 %v8955_v7, %s11379_s4  ;;  %v8951_v38 = vsel %vm2890_vm10, %v8713_v57, %v8950_v43  ;;  %v8733_v41 = vrot.slane %v16295_v55, %v18341_v53  ;;  %v8741_v33 = vrot.slane %v16301_v51, %v18341_v53 }
 0x551   :  { %v8952_v44 = vsel %vm2892_vm11, %v8721_v37, %v8951_v38  ;;  %v8330_v27 = vadd.f32 %v8329_v25, %v8257_v63  ;;  %v8261_v26 = vadd.f32 %v8260_v10, %v16264_v34  ;;  %v8749_v47 = vrot.slane %v16297_v12, %v18341_v53 }
 0x552   :  { %v16355_v19 = vmax.f32 %v8411_v9, %v10872_v52  ;;  %8998 = vrot.lane.b32.xlu0 %v8952_v44, %s11379_s4  ;;  %v8757_v60 = vrot.slane %v16303_v5, %v18341_v53  ;;  %v8959_v15 = vsel %vm2888_vm9, %v8741_v33, %v8733_v41  ;;  %v8263_v62 = vadd.f32 %v8262_v17, %v16269_v58  ;;  %v8266_v17 = vpop.f32.mrf.mxu1 }
 0x553   :  { %v8333_v35 = vpop.f32.mrf.mxu0  ;;  %v10874_v23 = vrot.slane %v16311_v11, 9  ;;  %v8448_v29 = vcombine.low %v8328_v36, %v8330_v27  ;;  %v8449_v42 = vcombine.high %v8328_v36, %v8330_v27  ;;  %v8960_v34 = vsel %vm2890_vm10, %v8749_v47, %v8959_v15 }
 0x554   :  { %v10876_v30 = vrot.slane %v16315_v46, 9  ;;  %v8961_v9 = vsel %vm2892_vm11, %v8757_v60, %v8960_v34  ;;  %v8729_v6 = vrot.slane %v16295_v55, %v18342_v39  ;;  %v8737_v49 = vrot.slane %v16301_v51, %v18342_v39 }
 0x555   :  { %v8335_v22 = vpop.f32.mrf.mxu0  ;;  %v8446_v58 = vcombine.high %v16332_v13, %v16332_v13  ;;  %v8447_v52 = vcombine.high %v16339_v16, %v16339_v16  ;;  %9004 = vrot.lane.b32.xlu1 %v8961_v9, %s11379_s4  ;;  %v16375_v8 = vadd.f32 %v8333_v35, %v8261_v26  ;;  %v8769_v10 = vrot.slane %v16325_v28, %v18342_v39 }
 0x556   :  { %9047 = vrot.lane.b32.xlu0 %v8952_v44, %s11380_s26  ;;  %v8745_v3 = vrot.slane %v16297_v12, %v18342_v39  ;;  %v8956_v45 = vsel %vm2888_vm9, %v8737_v49, %v8729_v6  ;;  %v8761_v32 = vrot.slane %v16305_v24, %v18342_v39  ;;  %v8336_v31 = vadd.f32 %v8335_v22, %v8263_v62 }
 0x557   :  { %v8337_v25 = vpop.f32.mrf.mxu0  ;;  %v10877_v48 = vrot.slane %v16332_v13, 9  ;;  %v8456_v59 = vrot.slane %v8448_v29, %v18336_v50  ;;  %v8753_v57 = vrot.slane %v16303_v5, %v18342_v39  ;;  %v8777_v43 = vrot.slane %v16307_v40, %v18342_v39 }
 0x558   :  { %v8957_v35 = vsel %vm2890_vm10, %v8745_v3, %v8956_v45  ;;  %v8962_v7 = vsel %vm2888_vm9, %v8769_v10, %v8761_v32  ;;  %v8466_v37 = vcombine.low %v16375_v8, %v8336_v31  ;;  %v8467_v63 = vcombine.high %v16375_v8, %v8336_v31 }
 0x559   :  { %v16396_v36 = vmax.f32 %v16281_v61, %v10873_v14  ;;  %v16399_v38 = vmax.f32 %v16284_v21, %v10875_v54  ;;  %v8265_v41 = vadd.f32 %v8264_v2, %v16272_v4  ;;  %v8785_v33 = vrot.slane %v16355_v19, %v18342_v39  ;;  %v8339_v60 = vpop.f32.mrf.mxu0 }
 0x55a   :  { %v16405_v44 = vmax.f32 %v16311_v11, %v10874_v23  ;;  %v8463_v27 = vrot.slane %v8449_v42, %v18336_v50  ;;  %v8958_v26 = vsel %vm2892_vm11, %v8753_v57, %v8957_v35  ;;  %v8963_v47 = vsel %vm2890_vm10, %v8777_v43, %v8962_v7 }
 0x55b   :  { %v16411_v61 = vmax.f32 %v16315_v46, %v10876_v30  ;;  %v8464_v21 = vcombine.high %v8456_v59, %v8456_v59  ;;  %9002 = vrot.lane.b32.xlu0 %v8958_v26, %s11379_s4  ;;  %v8964_v4 = vsel %vm2892_vm11, %v8785_v33, %v8963_v47  ;;  %v8267_v14 = vadd.f32 %v8266_v17, %v16287_v20 }
 0x55c   :  { %v10878_v54 = vrot.slane %v8446_v58, 9  ;;  %v10879_v11 = vrot.slane %v16339_v16, 9  ;;  %v10880_v15 = vrot.slane %v8447_v52, 9  ;;  %v16418_v62 = vmax.f32 %v16332_v13, %v10877_v48  ;;  %9006 = vrot.lane.b32.xlu1 %v8964_v4, %s11379_s4 }
 0x55d   :  { %v8474_v22 = vrot.slane %v8466_v37, %v18336_v50  ;;  %v8338_v46 = vadd.f32 %v8337_v25, %v8265_v41  ;;  %v8340_v23 = vadd.f32 %v8339_v60, %v8267_v14  ;;  %v8773_v29 = vrot.slane %v16325_v28, %v18341_v53 }
 0x55e   :  { %v8465_v42 = vcombine.high %v8463_v27, %v8463_v27  ;;  %v10881_v34 = vrot.slane %v8456_v59, 9  ;;  %v10883_v30 = vrot.slane %v8463_v27, 9  ;;  %v8765_v20 = vrot.slane %v16305_v24, %v18341_v53 }
 0x55f   :  { %v10882_v9 = vrot.slane %v8464_v21, 9  ;;  %9049 = vrot.lane.b32.xlu0 %v8958_v26, %s11380_s26  ;;  %v8484_v13 = vcombine.low %v8338_v46, %v8340_v23  ;;  %v8485_v2 = vcombine.high %v8338_v46, %v8340_v23  ;;  %v8781_v6 = vrot.slane %v16307_v40, %v18341_v53 }
 0x560   :  { %v16429_v49 = vmax.f32 %v8446_v58, %v10878_v54  ;;  %v16432_v8 = vmax.f32 %v16339_v16, %v10879_v11  ;;  %9051 = vrot.lane.b32.xlu1 %v8964_v4, %s11380_s26  ;;  %v8789_v10 = vrot.slane %v16355_v19, %v18341_v53  ;;  %v8965_v3 = vsel %vm2888_vm9, %v8773_v29, %v8765_v20 }
 0x561   :  { %v16438_v45 = vmax.f32 %v8447_v52, %v10880_v15  ;;  %v8482_v32 = vcombine.high %v8474_v22, %v8474_v22  ;;  %v8966_v31 = vsel %vm2890_vm10, %v8781_v6, %v8965_v3  ;;  %v8805_v25 = vrot.slane %v16405_v44, %v18341_v53 }
 0x562   :  { %v10884_v58 = vrot.slane %v8465_v42, 9  ;;  %v16443_v48 = vmax.f32 %v8456_v59, %v10881_v34  ;;  %v8967_v16 = vsel %vm2892_vm11, %v8789_v10, %v8966_v31  ;;  %v8797_v57 = vrot.slane %v16396_v36, %v18341_v53 }
 0x563   :  { %v16448_v43 = vmax.f32 %v8464_v21, %v10882_v9  ;;  %v16450_v35 = vmax.f32 %v8463_v27, %v10883_v30  ;;  %v8481_v52 = vrot.slane %v8467_v63, %v18336_v50  ;;  %v16454_v7 = vrot.slane %v8484_v13, %v18336_v50  ;;  %9008 = vrot.lane.b32.xlu0 %v8967_v16, %s11379_s4 }
 0x564   :  { %v8813_v59 = vrot.slane %v16399_v38, %v18341_v53  ;;  %v8971_v37 = vsel %vm2888_vm9, %v8805_v25, %v8797_v57  ;;  %v8793_v17 = vrot.slane %v16396_v36, %v18342_v39  ;;  %v8801_v41 = vrot.slane %v16405_v44, %v18342_v39 }
 0x565   :  { %v10885_v33 = vrot.slane %v8474_v22, 9  ;;  %v10886_v27 = vrot.slane %v8482_v32, 9  ;;  %v8821_v63 = vrot.slane %v16411_v61, %v18341_v53  ;;  %v8809_v26 = vrot.slane %v16399_v38, %v18342_v39 }
 0x566   :  { %v8972_v47 = vsel %vm2890_vm10, %v8813_v59, %v8971_v37  ;;  %v8817_v60 = vrot.slane %v16411_v61, %v18342_v39  ;;  %v8968_v21 = vsel %vm2888_vm9, %v8801_v41, %v8793_v17  ;;  %v8837_v4 = vrot.slane %v16429_v49, %v18341_v53 }
 0x567   :  { %v16474_v14 = vmax.f32 %v8465_v42, %v10884_v58  ;;  %v8973_v54 = vsel %vm2892_vm11, %v8821_v63, %v8972_v47  ;;  %v8969_v11 = vsel %vm2890_vm10, %v8809_v26, %v8968_v21  ;;  %v8829_v15 = vrot.slane %v16418_v62, %v18341_v53 }
 0x568   :  { %v8483_v46 = vcombine.high %v8481_v52, %v8481_v52  ;;  %v10887_v23 = vrot.slane %v8481_v52, 9  ;;  %v8500_v29 = vcombine.high %v16454_v7, %v16454_v7  ;;  %9012 = vrot.lane.b32.xlu1 %v8973_v54, %s11379_s4  ;;  %v8970_v34 = vsel %vm2892_vm11, %v8817_v60, %v8969_v11 }
 0x569   :  { %v16484_v30 = vmax.f32 %v8474_v22, %v10885_v33  ;;  %9010 = vrot.lane.b32.xlu0 %v8970_v34, %s11379_s4  ;;  %v8977_v42 = vsel %vm2888_vm9, %v8837_v4, %v8829_v15  ;;  %v8825_v20 = vrot.slane %v16418_v62, %v18342_v39  ;;  %v8833_v9 = vrot.slane %v16429_v49, %v18342_v39 }
 0x56a   :  { %v16492_v13 = vmax.f32 %v8482_v32, %v10886_v27  ;;  %v8845_v6 = vrot.slane %v16432_v8, %v18341_v53  ;;  %v8841_v10 = vrot.slane %v16432_v8, %v18342_v39  ;;  %v8865_v22 = vrot.slane %v16448_v43, %v18342_v39 }
 0x56b   :  { %v8499_v3 = vrot.slane %v8485_v2, %v18336_v50  ;;  %v8849_v31 = vrot.slane %v16438_v45, %v18342_v39  ;;  %v8974_v25 = vsel %vm2888_vm9, %v8833_v9, %v8825_v20  ;;  %v8857_v32 = vrot.slane %v16443_v48, %v18342_v39 }
 0x56c   :  { %v10890_v58 = vrot.slane %v8500_v29, 9  ;;  %9053 = vrot.lane.b32.xlu1 %v8970_v34, %s11380_s26  ;;  %v8978_v16 = vsel %vm2890_vm10, %v8845_v6, %v8977_v42  ;;  %v8975_v57 = vsel %vm2890_vm10, %v8841_v10, %v8974_v25  ;;  %v8869_v59 = vrot.slane %v16448_v43, %v18341_v53 }
 0x56d   :  { %v8853_v2 = vrot.slane %v16438_v45, %v18341_v53  ;;  %v8976_v37 = vsel %vm2892_vm11, %v8849_v31, %v8975_v57  ;;  %v8980_v17 = vsel %vm2888_vm9, %v8865_v22, %v8857_v32  ;;  %v8861_v41 = vrot.slane %v16443_v48, %v18341_v53 }
 0x56e   :  { %v10888_v33 = vrot.slane %v8483_v46, 9  ;;  %v10889_v27 = vrot.slane %v16454_v7, 9  ;;  %9014 = vrot.lane.b32.xlu0 %v8976_v37, %s11379_s4  ;;  %v8873_v63 = vrot.slane %v16450_v35, %v18342_v39  ;;  %v8897_v60 = vrot.slane %v16492_v13, %v18342_v39 }
 0x56f   :  { %v8979_v26 = vsel %vm2892_vm11, %v8853_v2, %v8978_v16  ;;  %v8983_v47 = vsel %vm2888_vm9, %v8869_v59, %v8861_v41  ;;  %v16525_v21 = vmax.f32 %v8481_v52, %v10887_v23  ;;  %v8501_v4 = vcombine.high %v8499_v3, %v8499_v3 }
 0x570   :  { %9016 = vrot.lane.b32.xlu1 %v8979_v26, %s11379_s4  ;;  %v8981_v54 = vsel %vm2890_vm10, %v8873_v63, %v8980_v17  ;;  %v8877_v11 = vrot.slane %v16450_v35, %v18341_v53  ;;  %v16531_v15 = vmax.f32 %v8500_v29, %v10890_v58  ;;  %v8881_v34 = vrot.slane %v16474_v14, %v18342_v39 }
 0x571   :  { %v8901_v42 = vrot.slane %v16492_v13, %v18341_v53  ;;  %v8889_v52 = vrot.slane %v16484_v30, %v18342_v39  ;;  %v16539_v23 = vmax.f32 %v8483_v46, %v10888_v33  ;;  %v10891_v20 = vrot.slane %v8499_v3, 9 }
 0x572   :  { %18343 = vst [vmem:[#allocation143_spill] sm:$0xff] %v16531_v15  ;;  %v16542_v9 = vmax.f32 %v16454_v7, %v10889_v27  ;;  %9055 = vrot.lane.b32.xlu0 %v8976_v37, %s11380_s26  ;;  %v8984_v29 = vsel %vm2890_vm10, %v8877_v11, %v8983_v47  ;;  %v8982_v6 = vsel %vm2892_vm11, %v8881_v34, %v8981_v54  ;;  %v10892_v46 = vrot.slane %v8501_v4, 9 }
 0x573   :  { %v8885_v10 = vrot.slane %v16474_v14, %v18341_v53  ;;  %v8893_v22 = vrot.slane %v16484_v30, %v18341_v53  ;;  %v8986_v31 = vsel %vm2888_vm9, %v8897_v60, %v8889_v52  ;;  %v8905_v7 = vrot.slane %v16525_v21, %v18342_v39 }
 0x574   :  { %18344 = vst [vmem:[#allocation44_spill] sm:$0xff] %v16542_v9  ;;  %9018 = vrot.lane.b32.xlu1 %v8982_v6, %s11379_s4  ;;  %v8929_v58 = vrot.slane %v16531_v15, %v18342_v39  ;;  %v16559_v16 = vmax.f32 %v8499_v3, %v10891_v20  ;;  %v8909_v57 = vrot.slane %v16525_v21, %v18341_v53 }
 0x575   :  { %v8985_v25 = vsel %vm2892_vm11, %v8885_v10, %v8984_v29  ;;  %v8989_v32 = vsel %vm2888_vm9, %v8901_v42, %v8893_v22  ;;  %v8987_v59 = vsel %vm2890_vm10, %v8905_v7, %v8986_v31  ;;  %v8913_v2 = vrot.slane %v16539_v23, %v18342_v39  ;;  %v11322_v10 = vld [vmem:[%s17188_s5 + $0x38] sm:$0xff]   ;;  %v11323_v22 = vld [vmem:[%s17188_s5 + $0x70] sm:$0xff]   ;;  %v11325_v7 = vld [vmem:[%s17188_s5 + $0x68] sm:$0xff]  }
 0x576   :  { %18345 = vst [vmem:[#allocation50_spill] sm:$0xff] %v16559_v16  ;;  %9020 = vrot.lane.b32.xlu0 %v8985_v25, %s11379_s4  ;;  %v8921_v37 = vrot.slane %v16542_v9, %v18342_v39  ;;  %v8933_v17 = vrot.slane %v16531_v15, %v18341_v53  ;;  %v16571_v41 = vmax.f32 %v8501_v4, %v10892_v46  ;;  %v11324_v46 = vld [vmem:[%s17188_s5 + $0x30] sm:$0xff]  }
 0x577   :  { %v8990_v3 = vsel %vm2890_vm10, %v8909_v57, %v8989_v32  ;;  %v8917_v33 = vrot.slane %v16539_v23, %v18341_v53  ;;  %v8988_v27 = vsel %vm2892_vm11, %v8913_v2, %v8987_v59  ;;  %v8925_v26 = vrot.slane %v16542_v9, %v18341_v53  ;;  %v11326_v32 = vld [vmem:[%s17188_s5 + $0x28] sm:$0xff]   ;;  %v11328_v57 = vld [vmem:[%s17188_s5 + $0xb8] sm:$0xff]   ;;  %v11329_v59 = vld [vmem:[%s17188_s5 + $0x60] sm:$0xff]  }
 0x578   :  { %18346 = vst [vmem:[#allocation92_spill] sm:$0xff] %v16571_v41  ;;  %9057 = vrot.lane.b32.xlu1 %v8982_v6, %s11380_s26  ;;  %v8992_v63 = vsel %vm2888_vm9, %v8929_v58, %v8921_v37  ;;  %v8937_v47 = vrot.slane %v16559_v16, %v18342_v39  ;;  %v8941_v11 = vrot.slane %v16559_v16, %v18341_v53  ;;  %v11321_v6 = vld [vmem:[%s17188_s5 + $0x78] sm:$0xff]  }
 0x579   :  { %v8991_v60 = vsel %vm2892_vm11, %v8917_v33, %v8990_v3  ;;  %v8995_v4 = vsel %vm2888_vm9, %v8933_v17, %v8925_v26  ;;  %v8945_v34 = vrot.slane %v16571_v41, %v18342_v39  ;;  %v8949_v20 = vrot.slane %v16571_v41, %v18341_v53  ;;  %10940 = vmatprep.subr.bf16.mxu0 %v11321_v6  ;;  %v11327_v58 = vld [vmem:[%s17188_s5 + $0xf8] sm:$0xff]   ;;  %v11330_v17 = vld [vmem:[%s17188_s5 + $0x20] sm:$0xff]   ;;  %v11332_v26 = vld [vmem:[%s17188_s5 + $0xb0] sm:$0xff]  }
 0x57a   :  { %9022 = vrot.lane.b32.xlu0 %v8988_v27, %s11379_s4  ;;  %v8993_v54 = vsel %vm2890_vm10, %v8937_v47, %v8992_v63  ;;  %v8996_v42 = vsel %vm2890_vm10, %v8941_v11, %v8995_v4  ;;  %10941 = vmatpush3.bf16.msra.mxu0 %v11322_v10  ;;  %v11333_v47 = vld [vmem:[%s17188_s5 + $0x58] sm:$0xff]   ;;  %v11335_v11 = vld [vmem:[%s17188_s5 + $0xe8] sm:$0xff]   ;;  %v11337_v6 = vld [vmem:[%s17188_s5 + $0x50] sm:$0xff]  }
 0x57b   :  { %v8994_v52 = vsel %vm2892_vm11, %v8945_v34, %v8993_v54  ;;  %v8997_v29 = vsel %vm2892_vm11, %v8949_v20, %v8996_v42  ;;  %10942 = vmatprep.subr.bf16.mxu0 %v11323_v22  ;;  %10962 = vmatprep.subr.bf16.mxu1 %v11327_v58  ;;  %v11334_v4 = vld [vmem:[%s17188_s5 + $0x18] sm:$0xff]  }
 0x57c   :  { %9024 = vrot.lane.b32.xlu1 %v8991_v60, %s11379_s4  ;;  %10963 = vmatpush3.bf16.msra.mxu1 %v11328_v57 }
 0x57e   :  { %9059 = vrot.lane.b32.xlu0 %v8988_v27, %s11380_s26  ;;  %10943 = vmatpush3.bf16.msra.mxu0 %v11324_v46  ;;  %v11331_v27 = vld [vmem:[%s17188_s5 + $0xf0] sm:$0xff]  }
 0x57f   :  { %10944 = vmatprep.subr.bf16.mxu0 %v11325_v7  ;;  %10964 = vmatprep.subr.bf16.mxu1 %v11331_v27  ;;  %v11338_v7 = vld [vmem:[%s17188_s5 + $0x10] sm:$0xff]  }
 0x580   :  { %9026 = vrot.lane.b32.xlu1 %v8994_v52, %s11379_s4  ;;  %10965 = vmatpush3.bf16.msra.mxu1 %v11332_v26  ;;  %v11341_v26 = vld [vmem:[%s17188_s5 + $0x48] sm:$0xff]  }
 0x581   :  { %10966 = vmatprep.subr.bf16.mxu1 %v11335_v11 }
 0x582   :  { %9028 = vrot.lane.b32.xlu0 %v8997_v29, %s11379_s4  ;;  %10945 = vmatpush3.bf16.msra.mxu0 %v11326_v32  ;;  %v11336_v29 = vld [vmem:[%s17188_s5 + $0xa8] sm:$0xff]  }
 0x583   :  { %10946 = vmatprep.subr.bf16.mxu0 %v11329_v59 }
 0x584   :  { %9061 = vrot.lane.b32.xlu1 %v8994_v52, %s11380_s26  ;;  %10967 = vmatpush3.bf16.msra.mxu1 %v11336_v29  ;;  %v11344_v29 = vld [vmem:[%s17188_s5 + $0x98] sm:$0xff]  }
 0x586   :  { %10947 = vmatpush3.bf16.msra.mxu0 %v11330_v17 }
 0x587   :  { %10948 = vmatprep.subr.bf16.mxu0 %v11333_v47 }
 0x58a   :  { %10949 = vmatpush3.bf16.msra.mxu0 %v11334_v4 }
 0x58b   :  { %10950 = vmatprep.subr.bf16.mxu0 %v11337_v6 }
 0x58e   :  { %10951 = vmatpush3.bf16.msra.mxu0 %v11338_v7 }
 0x58f   :  { %10952 = vmatprep.subr.bf16.mxu0 %v11341_v26 }
 0x5c2   :  { %v9001_v31 = vpop.permute.xlu1 %9000 }
 0x5c4   :  { %v8999_v25 = vpop.permute.xlu0 %8998 }
 0x5c5   :  { %v9031_v3 = vsel %vm9030_vm7, %v8999_v25, %v9001_v31 }
 0x5c7   :  { %v9005_v2 = vpop.permute.xlu1 %9004 }
 0x5c8   :  { %v9048_v37 = vpop.permute.xlu0 %9047 }
 0x5c9   :  { %v9071_v33 = vsel %vm867_vm4, %v9001_v31, %v9048_v37 }
 0x5ca   :  { %v9087_v63 = vcombine.low %v9031_v3, %v9071_v33 }
 0x5cc   :  { %v9094_v60 = vrot.slane %v9087_v63, %v18336_v50 }
 0x5cd   :  { %v9003_v54 = vpop.permute.xlu0 %9002 }
 0x5ce   :  { %v9095_v34 = vcombine.high %v9094_v60, %v9094_v60  ;;  %v9159_v42 = vrot.slane %v9094_v60, 1  ;;  %v9207_v52 = vmax.f32 %v16276_v18, %v9094_v60  ;;  %v9007_v20 = vpop.permute.xlu1 %9006  ;;  %v9032_v37 = vsel %vm9030_vm7, %v9003_v54, %v9005_v2 }
 0x5d0   :  { %v9160_v10 = vrot.slane %v9095_v34, 1  ;;  %v9208_v22 = vmax.f32 %v16278_v1, %v9159_v42  ;;  %v9209_v31 = vmax.f32 %v16289_v0, %v9095_v34  ;;  %v9239_v46 = vmax.f32 %v9207_v52, 0.0  ;;  %v11339_v1 = vld [vmem:[%s17188_s5 + $0xe0] sm:$0xff]   ;;  %v11343_v52 = vld [vmem:[%s17188_s5 + $0xd8] sm:$0xff]  }
 0x5d1   :  { %v9050_v18 = vpop.permute.xlu0 %9049  ;;  %v11340_v0 = vld [vmem:[%s17188_s5 + $0xa0] sm:$0xff]   ;;  %10968 = vmatprep.subr.bf16.mxu1 %v11339_v1 }
 0x5d2   :  { %v9210_v25 = vmax.f32 %v16291_v56, %v9160_v10  ;;  %v9240_v32 = vmax.f32 %v9208_v22, 0.0  ;;  %v9241_v58 = vmax.f32 %v9209_v31, 0.0  ;;  %v9306_v57 = vrot.slane %v9239_v46, %v18342_v39  ;;  %v9052_v63 = vpop.permute.xlu1 %9051  ;;  %10969 = vmatpush3.bf16.msra.mxu1 %v11340_v0 }
 0x5d3   :  { %v9310_v59 = vrot.slane %v9239_v46, %v18341_v53  ;;  %v9072_v17 = vsel %vm867_vm4, %v9005_v2, %v9050_v18  ;;  %v11342_v2 = vld [vmem:[%s17188_s5 + $0x8] sm:$0xff]   ;;  %10970 = vmatprep.subr.bf16.mxu1 %v11343_v52  ;;  %v11345_v46 = vld [vmem:[%s17188_s5 + $0x40] sm:$0xff]  }
 0x5d4   :  { %v9242_v56 = vmax.f32 %v9210_v25, 0.0  ;;  %v9314_v3 = vrot.slane %v9240_v32, %v18342_v39  ;;  %v9318_v33 = vrot.slane %v9240_v32, %v18341_v53  ;;  %v9322_v27 = vrot.slane %v9241_v58, %v18342_v39  ;;  %v11346_v32 = vld [vmem:[%s17188_s5] sm:$0xff]   ;;  %10953 = vmatpush3.bf16.msra.mxu0 %v11342_v2 }
 0x5d5   :  { %v9326_v47 = vrot.slane %v9241_v58, %v18341_v53  ;;  %v9623_v60 = vpack.c.bf16 %v9306_v57, %v9306_v57  ;;  %v9096_v4 = vcombine.low %v9032_v37, %v9072_v17  ;;  %v9009_v54 = vpop.permute.xlu0 %9008  ;;  %v9624_v42 = vpack.c.bf16 %v9310_v59, %v9310_v59  ;;  %v11347_v37 = vld [vmem:[%s17188_s5 + $0xd0] sm:$0xff]   ;;  %10954 = vmatprep.subr.bf16.mxu0 %v11345_v46 }
 0x5d6   :  { %v9330_v11 = vrot.slane %v9242_v56, %v18342_v39  ;;  %v9334_v34 = vrot.slane %v9242_v56, %v18341_v53  ;;  %v9625_v6 = vpack.c.bf16 %v9314_v3, %v9314_v3  ;;  %v9626_v10 = vpack.c.bf16 %v9318_v33, %v9318_v33  ;;  %10971 = vmatpush3.bf16.msra.mxu1 %v11344_v29 }
 0x5d7   :  { %v9627_v22 = vpack.c.bf16 %v9322_v27, %v9322_v27  ;;  %v9628_v31 = vpack.c.bf16 %v9326_v47, %v9326_v47  ;;  %v16693_v18 = vunpack.c.l.b16 %v9623_v60  ;;  %v9103_v7 = vrot.slane %v9096_v4, %v18336_v50  ;;  %v11348_v27 = vld [vmem:[%s17188_s5 + $0x90] sm:$0xff]   ;;  %10972 = vmatprep.subr.bf16.mxu1 %v11347_v37 }
 0x5d8   :  { %v9033_v25 = vsel %vm9030_vm7, %v9007_v20, %v9009_v54  ;;  %v9629_v58 = vpack.c.bf16 %v9330_v11, %v9330_v11  ;;  %v9630_v57 = vpack.c.bf16 %v9334_v34, %v9334_v34  ;;  %v16700_v1 = vunpack.c.l.b16 %v9624_v42  ;;  %10955 = vmatpush3.bf16.msra.mxu0 %v11346_v32 }
 0x5d9   :  { %v9073_v59 = vsel %vm867_vm4, %v9009_v54, %v9052_v63  ;;  %v9104_v17 = vcombine.high %v9103_v7, %v9103_v7  ;;  %v9161_v20 = vrot.slane %v9103_v7, 1  ;;  %v9211_v56 = vmax.f32 %v16295_v55, %v9103_v7 }
 0x5da   :  { %v16702_v0 = vpop.permute.xlu1 %9012  ;;  %v9105_v3 = vcombine.low %v9033_v25, %v9073_v59  ;;  %v9766_v26 = vunpack.c.l.b16 %v9625_v6  ;;  %v9767_v47 = vunpack.c.l.b16 %v9626_v10  ;;  %v16712_v60 = vunpack.c.l.b16 %v9627_v22  ;;  %10973 = vmatpush3.bf16.msra.mxu1 %v11348_v27 }
 0x5db   :  { %v9011_v33 = vpop.permute.xlu0 %9010  ;;  %v16714_v63 = vunpack.c.l.b16 %v9628_v31  ;;  %v9162_v4 = vrot.slane %v9104_v17, 1  ;;  %v9212_v54 = vmax.f32 %v16301_v51, %v9161_v20  ;;  %v9213_v2 = vmax.f32 %v16297_v12, %v9104_v17 }
 0x5dc   :  { %v9243_v55 = vmax.f32 %v9211_v56, 0.0  ;;  %v16718_v11 = vunpack.c.l.b16 %v9629_v58  ;;  %v16720_v34 = vunpack.c.l.b16 %v9630_v57  ;;  %v9112_v42 = vrot.slane %v9105_v3, %v18336_v50 }
 0x5dd   :  { %v16725_v29 = vsel %vm9030_vm7, %v9011_v33, %v16702_v0  ;;  %v9214_v6 = vmax.f32 %v16303_v5, %v9162_v4  ;;  %v9244_v10 = vmax.f32 %v9212_v54, 0.0  ;;  %v9245_v51 = vmax.f32 %v9213_v2, 0.0 }
 0x5de   :  { %18347 = vst [vmem:[#allocation85_spill] sm:$0xff] %v16718_v11  ;;  %18348 = vst [vmem:[#allocation106_spill] sm:$0xff] %v16720_v34  ;;  %v9054_v52 = vpop.permute.xlu1 %9053  ;;  %v9338_v12 = vrot.slane %v9243_v55, %v18342_v39  ;;  %v9342_v22 = vrot.slane %v9243_v55, %v18341_v53  ;;  %v9113_v31 = vcombine.high %v9112_v42, %v9112_v42  ;;  %v9163_v46 = vrot.slane %v9112_v42, 1 }
 0x5df   :  { %v9215_v7 = vmax.f32 %v16305_v24, %v9112_v42  ;;  %v9246_v58 = vmax.f32 %v9214_v6, 0.0  ;;  %v9346_v57 = vrot.slane %v9244_v10, %v18342_v39  ;;  %v9350_v59 = vrot.slane %v9244_v10, %v18341_v53 }
 0x5e0   :  { %v9015_v25 = vpop.permute.xlu0 %9014  ;;  %v9354_v32 = vrot.slane %v9245_v51, %v18342_v39  ;;  %v9358_v5 = vrot.slane %v9245_v51, %v18341_v53  ;;  %v9631_v37 = vpack.c.bf16 %v9338_v12, %v9338_v12  ;;  %v9632_v17 = vpack.c.bf16 %v9342_v22, %v9342_v22 }
 0x5e1   :  { %v9164_v20 = vrot.slane %v9113_v31, 1  ;;  %v9362_v3 = vrot.slane %v9246_v58, %v18342_v39  ;;  %v9366_v33 = vrot.slane %v9246_v58, %v18341_v53  ;;  %v9633_v27 = vpack.c.bf16 %v9346_v57, %v9346_v57 }
 0x5e2   :  { %v9017_v56 = vpop.permute.xlu1 %9016  ;;  %v9634_v24 = vpack.c.bf16 %v9350_v59, %v9350_v59  ;;  %v9635_v4 = vpack.c.bf16 %v9354_v32, %v9354_v32  ;;  %v9636_v54 = vpack.c.bf16 %v9358_v5, %v9358_v5  ;;  %v9705_v2 = vunpack.c.l.b16 %v9631_v37 }
 0x5e3   :  { %v9706_v55 = vunpack.c.l.b16 %v9632_v17  ;;  %v9637_v6 = vpack.c.bf16 %v9362_v3, %v9362_v3  ;;  %v9638_v10 = vpack.c.bf16 %v9366_v33, %v9366_v33  ;;  %v9768_v11 = vunpack.c.l.b16 %v9633_v27 }
 0x5e4   :  { %v9056_v42 = vpop.permute.xlu0 %9055  ;;  %v9769_v34 = vunpack.c.l.b16 %v9634_v24  ;;  %v9719_v51 = vrot.slane %v9705_v2, 7  ;;  %v9836_v22 = vunpack.c.l.b16 %v9635_v4  ;;  %v9837_v41 = vunpack.c.l.b16 %v9636_v54 }
 0x5e5   :  { %v9733_v12 = vrot.slane %v9706_v55, 7  ;;  %v9782_v16 = vrot.slane %v9768_v11, 7  ;;  %v16737_v9 = vunpack.c.l.b16 %v9637_v6  ;;  %v16739_v58 = vunpack.c.l.b16 %v9638_v10 }
 0x5e6   :  { %v9796_v15 = vrot.slane %v9769_v34, 7  ;;  %v16741_v57 = vpop.permute.xlu1 %9018  ;;  %v9720_v59 = vsel %vm2888_vm9, %v9719_v51, %v16693_v18  ;;  %v9850_v5 = vrot.slane %v9836_v22, 7  ;;  %v9864_v37 = vrot.slane %v9837_v41, 7 }
 0x5e7   :  { %v16747_v32 = vsel %vm2888_vm9, %v9733_v12, %v16700_v1  ;;  %v16750_v17 = vsel %vm2888_vm9, %v9782_v16, %v9766_v26  ;;  %v9216_v41 = vmax.f32 %v16325_v28, %v9163_v46  ;;  %v9217_v16 = vmax.f32 %v16307_v40, %v9113_v31 }
 0x5e8   :  { %v16753_v11 = vsel %vm2888_vm9, %v9796_v15, %v9767_v47  ;;  %v9021_v33 = vpop.permute.xlu0 %9020  ;;  %v16759_v18 = vsel %vm2888_vm9, %v9850_v5, %v16712_v60  ;;  %v16763_v1 = vsel %vm2888_vm9, %v9864_v37, %v16714_v63  ;;  %v9218_v15 = vmax.f32 %v16355_v19, %v9164_v20 }
 0x5e9   :  { %v9247_v26 = vmax.f32 %v9215_v7, 0.0  ;;  %v9074_v47 = vsel %vm867_vm4, %v16702_v0, %v9054_v52  ;;  %v9035_v27 = vsel %vm9030_vm7, %v9015_v25, %v9017_v56  ;;  %v9248_v24 = vmax.f32 %v9216_v41, 0.0 }
 0x5ea   :  { %v9249_v4 = vmax.f32 %v9217_v16, 0.0  ;;  %v9114_v60 = vcombine.low %v16725_v29, %v9074_v47  ;;  %v9075_v54 = vsel %vm867_vm4, %v9017_v56, %v9056_v42  ;;  %v9250_v63 = vmax.f32 %v9218_v15, 0.0  ;;  %v9058_v31 = vpop.permute.xlu1 %9057 }
 0x5eb   :  { %v9370_v2 = vrot.slane %v9247_v26, %v18342_v39  ;;  %v9374_v28 = vrot.slane %v9247_v26, %v18341_v53  ;;  %v9123_v40 = vcombine.low %v9035_v27, %v9075_v54  ;;  %v9378_v19 = vrot.slane %v9248_v24, %v18342_v39 }
 0x5ec   :  { %v9382_v46 = vrot.slane %v9248_v24, %v18341_v53  ;;  %v9386_v0 = vrot.slane %v9249_v4, %v18342_v39  ;;  %v9390_v52 = vrot.slane %v9249_v4, %v18341_v53  ;;  %v9394_v7 = vrot.slane %v9250_v63, %v18342_v39  ;;  %v9023_v56 = vpop.permute.xlu0 %9022 }
 0x5ed   :  { %v9398_v29 = vrot.slane %v9250_v63, %v18341_v53  ;;  %v9639_v25 = vpack.c.bf16 %v9370_v2, %v9370_v2  ;;  %v9640_v20 = vpack.c.bf16 %v9374_v28, %v9374_v28  ;;  %v9641_v55 = vpack.c.bf16 %v9378_v19, %v9378_v19 }
 0x5ee   :  { %v9642_v42 = vpack.c.bf16 %v9382_v46, %v9382_v46  ;;  %v9643_v6 = vpack.c.bf16 %v9386_v0, %v9386_v0  ;;  %v9644_v10 = vpack.c.bf16 %v9390_v52, %v9390_v52  ;;  %v9645_v51 = vpack.c.bf16 %v9394_v7, %v9394_v7  ;;  %v9025_v4 = vpop.permute.xlu1 %9024 }
 0x5ef   :  { %v9646_v12 = vpack.c.bf16 %v9398_v29, %v9398_v29  ;;  %v9707_v22 = vunpack.c.l.b16 %v9639_v25  ;;  %v16781_v5 = vunpack.c.l.b16 %v9640_v20  ;;  %v16783_v37 = vunpack.c.l.b16 %v9641_v55 }
 0x5f0   :  { %v16785_v41 = vunpack.c.l.b16 %v9642_v42  ;;  %v16787_v16 = vunpack.c.l.b16 %v9643_v6  ;;  %v16789_v15 = vunpack.c.l.b16 %v9644_v10  ;;  %v16792_v27 = vunpack.c.l.b16 %v9645_v51  ;;  %v9060_v7 = vpop.permute.xlu0 %9059 }
 0x5f1   :  { %v9721_v26 = vrot.slane %v9707_v22, 6  ;;  %v16794_v24 = vunpack.c.l.b16 %v9646_v12  ;;  %v9784_v54 = vrot.slane %v16783_v37, 6  ;;  %v9121_v52 = vrot.slane %v9114_v60, %v18336_v50 }
 0x5f2   :  { %v9852_v2 = vrot.slane %v16787_v16, 6  ;;  %v9130_v29 = vrot.slane %v9123_v40, %v18336_v50  ;;  %v16807_v25 = vsel %vm9030_vm7, %v16741_v57, %v9021_v33  ;;  %v16810_v20 = vsel %vm867_vm4, %v9021_v33, %v9058_v31 }
 0x5f3   :  { %v9722_v19 = vsel %vm2890_vm10, %v9721_v26, %v9720_v59  ;;  %v16813_v55 = vsel %vm9030_vm7, %v9023_v56, %v9025_v4  ;;  %v9122_v59 = vcombine.high %v9121_v52, %v9121_v52  ;;  %v9165_v42 = vrot.slane %v9121_v52, 1 }
 0x5f4   :  { %v9219_v6 = vmax.f32 %v16396_v36, %v9121_v52  ;;  %v9132_v60 = vcombine.low %v16807_v25, %v16810_v20  ;;  %v9131_v10 = vcombine.high %v9130_v29, %v9130_v29  ;;  %v9167_v51 = vrot.slane %v9130_v29, 1 }
 0x5f5   :  { %v9223_v40 = vmax.f32 %v16418_v62, %v9130_v29  ;;  %v16820_v57 = vsel %vm867_vm4, %v9025_v4, %v9060_v7  ;;  %v9166_v12 = vrot.slane %v9122_v59, 1  ;;  %v9220_v33 = vmax.f32 %v16405_v44, %v9165_v42 }
 0x5f6   :  { %v9221_v31 = vmax.f32 %v16399_v38, %v9122_v59  ;;  %v9251_v56 = vmax.f32 %v9219_v6, 0.0  ;;  %v9168_v22 = vrot.slane %v9131_v10, 1  ;;  %v9224_v26 = vmax.f32 %v16429_v49, %v9167_v51 }
 0x5f7   :  { %v9225_v36 = vmax.f32 %v16432_v8, %v9131_v10  ;;  %v9255_v52 = vmax.f32 %v9223_v40, 0.0  ;;  %v9222_v47 = vmax.f32 %v16411_v61, %v9166_v12  ;;  %v9252_v46 = vmax.f32 %v9220_v33, 0.0 }
 0x5f8   :  { %v9253_v34 = vmax.f32 %v9221_v31, 0.0  ;;  %v9402_v62 = vrot.slane %v9251_v56, %v18342_v39  ;;  %v9406_v4 = vrot.slane %v9251_v56, %v18341_v53  ;;  %v9226_v7 = vmax.f32 %v16438_v45, %v9168_v22 }
 0x5f9   :  { %v9256_v44 = vmax.f32 %v9224_v26, 0.0  ;;  %v9257_v29 = vmax.f32 %v9225_v36, 0.0  ;;  %v9254_v38 = vmax.f32 %v9222_v47, 0.0  ;;  %v9410_v59 = vrot.slane %v9252_v46, %v18342_v39 }
 0x5fa   :  { %v9414_v49 = vrot.slane %v9252_v46, %v18341_v53  ;;  %v9418_v8 = vrot.slane %v9253_v34, %v18342_v39  ;;  %v9422_v42 = vrot.slane %v9253_v34, %v18341_v53  ;;  %v9647_v61 = vpack.c.bf16 %v9402_v62, %v9402_v62 }
 0x5fb   :  { %v9648_v6 = vpack.c.bf16 %v9406_v4, %v9406_v4  ;;  %v9258_v10 = vmax.f32 %v9226_v7, 0.0  ;;  %v9426_v51 = vrot.slane %v9254_v38, %v18342_v39  ;;  %v9430_v40 = vrot.slane %v9254_v38, %v18341_v53 }
 0x5fc   :  { %v9649_v12 = vpack.c.bf16 %v9410_v59, %v9410_v59  ;;  %v9650_v45 = vpack.c.bf16 %v9414_v49, %v9414_v49  ;;  %v9651_v33 = vpack.c.bf16 %v9418_v8, %v9418_v8  ;;  %v9652_v31 = vpack.c.bf16 %v9422_v42, %v9422_v42 }
 0x5fd   :  { %v9709_v47 = vunpack.c.l.b16 %v9647_v61  ;;  %v16836_v56 = vunpack.c.l.b16 %v9648_v6  ;;  %v9653_v22 = vpack.c.bf16 %v9426_v51, %v9426_v51  ;;  %v9654_v46 = vpack.c.bf16 %v9430_v40, %v9430_v40 }
 0x5fe   :  { %v16838_v26 = vunpack.c.l.b16 %v9649_v12  ;;  %v16840_v36 = vunpack.c.l.b16 %v9650_v45  ;;  %v9840_v4 = vunpack.c.l.b16 %v9651_v33  ;;  %v16843_v7 = vunpack.c.l.b16 %v9652_v31  ;;  %v9027_v31 = vpop.permute.xlu1 %9026 }
 0x5ff   :  { %v9723_v34 = vrot.slane %v9709_v47, 5  ;;  %v16847_v49 = vunpack.c.l.b16 %v9653_v22  ;;  %v16849_v8 = vunpack.c.l.b16 %v9654_v46  ;;  %v9434_v51 = vrot.slane %v9255_v52, %v18342_v39 }
 0x600   :  { %v9786_v38 = vrot.slane %v16838_v26, 5  ;;  %v9854_v61 = vrot.slane %v9840_v4, 5  ;;  %v9438_v45 = vrot.slane %v9255_v52, %v18341_v53  ;;  %v9442_v33 = vrot.slane %v9256_v44, %v18342_v39 }
 0x601   :  { %v9724_v42 = vsel %vm2892_vm11, %v9723_v34, %v9722_v19  ;;  %v9446_v47 = vrot.slane %v9256_v44, %v18341_v53  ;;  %v9450_v22 = vrot.slane %v9257_v29, %v18342_v39  ;;  %v9454_v19 = vrot.slane %v9257_v29, %v18341_v53 }
 0x602   :  { %v9458_v46 = vrot.slane %v9258_v10, %v18342_v39  ;;  %v9462_v26 = vrot.slane %v9258_v10, %v18341_v53  ;;  %v9655_v34 = vpack.c.bf16 %v9434_v51, %v9434_v51  ;;  %v9656_v4 = vpack.c.bf16 %v9438_v45, %v9438_v45 }
 0x603   :  { %v9657_v62 = vpack.c.bf16 %v9442_v33, %v9442_v33  ;;  %v9658_v40 = vpack.c.bf16 %v9446_v47, %v9446_v47  ;;  %v9659_v12 = vpack.c.bf16 %v9450_v22, %v9450_v22  ;;  %v9660_v0 = vpack.c.bf16 %v9454_v19, %v9454_v19  ;;  %v9062_v22 = vpop.permute.xlu1 %9061  ;;  %v9029_v19 = vpop.permute.xlu0 %9028 }
 0x604   :  { %v9661_v52 = vpack.c.bf16 %v9458_v46, %v9458_v46  ;;  %v9662_v3 = vpack.c.bf16 %v9462_v26, %v9462_v26  ;;  %v9711_v59 = vunpack.c.l.b16 %v9655_v34  ;;  %v16863_v63 = vunpack.c.l.b16 %v9656_v4 }
 0x605   :  { %v16865_v44 = vunpack.c.l.b16 %v9657_v62  ;;  %v16867_v6 = vunpack.c.l.b16 %v9658_v40  ;;  %v16869_v29 = vunpack.c.l.b16 %v9659_v12  ;;  %v16871_v28 = vunpack.c.l.b16 %v9660_v0  ;;  %v18351_v62 = vld [vmem:[#allocation143_spill] sm:$0xff] }
 0x606   :  { %v16873_v10 = vunpack.c.l.b16 %v9661_v52  ;;  %v9725_v51 = vrot.slane %v9711_v59, 4  ;;  %v16877_v47 = vunpack.c.l.b16 %v9662_v3  ;;  %v9139_v3 = vrot.slane %v9132_v60, %v18336_v50 }
 0x607   :  { %v9788_v33 = vrot.slane %v16865_v44, 4  ;;  %v9856_v40 = vrot.slane %v16869_v29, 4  ;;  %v9141_v26 = vcombine.low %v16813_v55, %v16820_v57  ;;  %v9038_v34 = vsel %vm9030_vm7, %v9027_v31, %v9029_v19 }
 0x608   :  { %v16884_v46 = vsel %vm2894_vm12, %v9725_v51, %v9724_v42  ;;  %v9078_v4 = vsel %vm867_vm4, %v9029_v19, %v9062_v22  ;;  %v9785_v42 = vsel %vm2890_vm10, %v9784_v54, %v16750_v17  ;;  %v9853_v52 = vsel %vm2890_vm10, %v9852_v2, %v16759_v18 }
 0x609   :  { %v9140_v51 = vcombine.high %v9139_v3, %v9139_v3  ;;  %v9169_v25 = vrot.slane %v9139_v3, 1  ;;  %v9227_v20 = vmax.f32 %v16443_v48, %v9139_v3  ;;  %v9148_v55 = vrot.slane %v9141_v26, %v18336_v50 }
 0x60a   :  { %v9150_v60 = vcombine.low %v9038_v34, %v9078_v4  ;;  %v16906_v57 = vsel %vm2892_vm11, %v9786_v38, %v9785_v42  ;;  %v16909_v31 = vsel %vm2892_vm11, %v9854_v61, %v9853_v52  ;;  %v18349_v17 = vrot.slane %v16789_v15, 6 }
 0x60b   :  { %v9170_v18 = vrot.slane %v9140_v51, 1  ;;  %v9228_v16 = vmax.f32 %v16448_v43, %v9169_v25  ;;  %v9229_v48 = vmax.f32 %v16450_v35, %v9140_v51  ;;  %v9259_v54 = vmax.f32 %v9227_v20, 0.0 }
 0x60c   :  { %v16915_v37 = vsel %vm2890_vm10, %v18349_v17, %v16763_v1  ;;  %v9149_v2 = vcombine.high %v9148_v55, %v9148_v55  ;;  %v9171_v22 = vrot.slane %v9148_v55, 1  ;;  %v9231_v38 = vmax.f32 %v16484_v30, %v9148_v55 }
 0x60d   :  { %v16921_v19 = vrot.slane %v9150_v60, %v18336_v50  ;;  %v9230_v61 = vmax.f32 %v16474_v14, %v9170_v18  ;;  %v9260_v3 = vmax.f32 %v9228_v16, 0.0  ;;  %v9261_v15 = vmax.f32 %v9229_v48, 0.0 }
 0x60e   :  { %v9466_v1 = vrot.slane %v9259_v54, %v18342_v39  ;;  %v9470_v26 = vrot.slane %v9259_v54, %v18341_v53  ;;  %v9172_v34 = vrot.slane %v9149_v2, 1  ;;  %v9232_v43 = vmax.f32 %v16492_v13, %v9171_v22 }
 0x60f   :  { %v9233_v35 = vmax.f32 %v16525_v21, %v9149_v2  ;;  %v9262_v4 = vmax.f32 %v9230_v61, 0.0  ;;  %v9474_v42 = vrot.slane %v9260_v3, %v18342_v39  ;;  %v9478_v30 = vrot.slane %v9260_v3, %v18341_v53 }
 0x610   :  { %v9482_v50 = vrot.slane %v9261_v15, %v18342_v39  ;;  %v9486_v14 = vrot.slane %v9261_v15, %v18341_v53  ;;  %v9663_v52 = vpack.c.bf16 %v9466_v1, %v9466_v1  ;;  %v9664_v51 = vpack.c.bf16 %v9470_v26, %v9470_v26 }
 0x611   :  { %v9234_v25 = vmax.f32 %v16539_v23, %v9172_v34  ;;  %v9490_v20 = vrot.slane %v9262_v4, %v18342_v39  ;;  %v9494_v55 = vrot.slane %v9262_v4, %v18341_v53  ;;  %v9665_v13 = vpack.c.bf16 %v9474_v42, %v9474_v42  ;;  %v18350_v23 = vld [vmem:[#allocation44_spill] sm:$0xff] }
 0x612   :  { %v9666_v60 = vpack.c.bf16 %v9478_v30, %v9478_v30  ;;  %v9667_v21 = vpack.c.bf16 %v9482_v50, %v9482_v50  ;;  %v9668_v17 = vpack.c.bf16 %v9486_v14, %v9486_v14  ;;  %v16935_v18 = vunpack.c.l.b16 %v9663_v52 }
 0x613   :  { %v16937_v16 = vunpack.c.l.b16 %v9664_v51  ;;  %v9669_v48 = vpack.c.bf16 %v9490_v20, %v9490_v20  ;;  %v9670_v54 = vpack.c.bf16 %v9494_v55, %v9494_v55  ;;  %v9776_v2 = vunpack.c.l.b16 %v9665_v13 }
 0x614   :  { %v16939_v22 = vunpack.c.l.b16 %v9666_v60  ;;  %v9844_v3 = vunpack.c.l.b16 %v9667_v21  ;;  %v16943_v15 = vunpack.c.l.b16 %v9668_v17  ;;  %v9263_v50 = vmax.f32 %v9231_v38, 0.0 }
 0x615   :  { %v9790_v1 = vrot.slane %v9776_v2, 3  ;;  %v16946_v34 = vunpack.c.l.b16 %v9669_v48  ;;  %v16948_v4 = vunpack.c.l.b16 %v9670_v54  ;;  %v9264_v14 = vmax.f32 %v9232_v43, 0.0 }
 0x616   :  { %v9858_v42 = vrot.slane %v9844_v3, 3  ;;  %v9872_v30 = vrot.slane %v16943_v15, 3  ;;  %v9265_v52 = vmax.f32 %v9233_v35, 0.0  ;;  %v9266_v51 = vmax.f32 %v9234_v25, 0.0 }
 0x617   :  { %v9158_v20 = vcombine.high %v16921_v19, %v16921_v19  ;;  %v9173_v55 = vrot.slane %v16921_v19, 1  ;;  %v9498_v13 = vrot.slane %v9263_v50, %v18342_v39  ;;  %v9502_v60 = vrot.slane %v9263_v50, %v18341_v53 }
 0x618   :  { %v9506_v21 = vrot.slane %v9264_v14, %v18342_v39  ;;  %v9510_v17 = vrot.slane %v9264_v14, %v18341_v53  ;;  %v9514_v48 = vrot.slane %v9265_v52, %v18342_v39  ;;  %v9518_v38 = vrot.slane %v9265_v52, %v18341_v53 }
 0x619   :  { %v16961_v43 = vrot.slane %v9266_v51, %v18342_v39  ;;  %v16964_v35 = vrot.slane %v9266_v51, %v18341_v53  ;;  %v9671_v25 = vpack.c.bf16 %v9498_v13, %v9498_v13  ;;  %v9672_v54 = vpack.c.bf16 %v9502_v60, %v9502_v60  ;;  %v18352_v60 = vld [vmem:[#allocation50_spill] sm:$0xff] }
 0x61a   :  { %v9673_v2 = vpack.c.bf16 %v9506_v21, %v9506_v21  ;;  %v9674_v3 = vpack.c.bf16 %v9510_v17, %v9510_v17  ;;  %v9675_v15 = vpack.c.bf16 %v9514_v48, %v9514_v48  ;;  %v9676_v50 = vpack.c.bf16 %v9518_v38, %v9518_v38  ;;  %v18353_v48 = vld [vmem:[#allocation92_spill] sm:$0xff] }
 0x61b   :  { %v9174_v61 = vrot.slane %v9158_v20, 1  ;;  %v9235_v14 = vmax.f32 %v18350_v23, %v16921_v19  ;;  %v16968_v45 = vunpack.c.l.b16 %v9671_v25  ;;  %v16970_v0 = vunpack.c.l.b16 %v9672_v54 }
 0x61c   :  { %v9778_v52 = vunpack.c.l.b16 %v9673_v2  ;;  %v16972_v59 = vunpack.c.l.b16 %v9674_v3  ;;  %v9846_v26 = vunpack.c.l.b16 %v9675_v15  ;;  %v9847_v51 = vunpack.c.l.b16 %v9676_v50  ;;  %v11349_v3 = vld [vmem:[%s17188_s5 + $0xc8] sm:$0xff]  }
 0x61d   :  { %v9236_v13 = vmax.f32 %v18351_v62, %v9173_v55  ;;  %v9237_v21 = vmax.f32 %v18352_v60, %v9158_v20  ;;  %v9729_v17 = vrot.slane %v16968_v45, 2  ;;  %v16978_v38 = vmax.f32 %v18353_v48, %v9174_v61  ;;  %10974 = vmatprep.subr.bf16.mxu1 %v11349_v3 }
 0x61e   :  { %v9267_v12 = vmax.f32 %v9235_v14, 0.0  ;;  %v9789_v19 = vsel %vm2894_vm12, %v9788_v33, %v16906_v57  ;;  %v9792_v2 = vrot.slane %v9778_v52, 2  ;;  %v9857_v61 = vsel %vm2894_vm12, %v9856_v40, %v16909_v31  ;;  %v11351_v31 = vld [vmem:[%s17188_s5 + $0x88] sm:$0xff]  }
 0x61f   :  { %v9268_v23 = vmax.f32 %v9236_v13, 0.0  ;;  %v9269_v25 = vmax.f32 %v9237_v21, 0.0  ;;  %v9791_v54 = vsel %vm2896_vm13, %v9790_v1, %v9789_v19  ;;  %v9270_v62 = vmax.f32 %v16978_v38, 0.0  ;;  %10975 = vmatpush3.bf16.msra.mxu1 %v11351_v31 }
 0x620   :  { %v9530_v20 = vrot.slane %v9267_v12, %v18342_v39  ;;  %v16988_v55 = vrot.slane %v9267_v12, %v18341_v53  ;;  %v9793_v33 = vsel %vm2898_vm14, %v9792_v2, %v9791_v54  ;;  %v9859_v1 = vsel %vm2896_vm13, %v9858_v42, %v9857_v61  ;;  %v11354_v61 = vld [vmem:[%s17188_s5 + $0x80] sm:$0xff]  }
 0x621   :  { %v9538_v44 = vrot.slane %v9268_v23, %v18342_v39  ;;  %v9546_v57 = vrot.slane %v9269_v25, %v18342_v39  ;;  %v9860_v12 = vrot.slane %v9846_v26, 2  ;;  %v9550_v50 = vrot.slane %v9269_v25, %v18341_v53 }
 0x622   :  { %v9679_v15 = vpack.c.bf16 %v9530_v20, %v9530_v20  ;;  %v18354_v29 = vrot.slane %v16843_v7, 5  ;;  %v18355_v42 = vrot.slane %v16871_v28, 4  ;;  %v9874_v60 = vrot.slane %v9847_v51, 2 }
 0x623   :  { %v9681_v14 = vpack.c.bf16 %v9538_v44, %v9538_v44  ;;  %v9683_v52 = vpack.c.bf16 %v9546_v57, %v9546_v57  ;;  %v9861_v21 = vsel %vm2898_vm14, %v9860_v12, %v9859_v1  ;;  %v9684_v48 = vpack.c.bf16 %v9550_v50, %v9550_v50 }
 0x624   :  { %v9869_v40 = vsel %vm2892_vm11, %v18354_v29, %v16915_v37  ;;  %v17012_v26 = vunpack.c.l.b16 %v9679_v15  ;;  %v11352_v37 = vld [vmem:[%s17188_s5 + $0xc0] sm:$0xff]   ;;  %v9542_v25 = vrot.slane %v9268_v23, %v18341_v53  ;;  %v18356_v2 = vrot.slane %v16785_v41, 6 }
 0x625   :  { %v9871_v13 = vsel %vm2894_vm12, %v18355_v42, %v9869_v40  ;;  %v9780_v38 = vunpack.c.l.b16 %v9681_v14  ;;  %v9848_v19 = vunpack.c.l.b16 %v9683_v52  ;;  %v9849_v54 = vunpack.c.l.b16 %v9684_v48  ;;  %10976 = vmatprep.subr.bf16.mxu1 %v11352_v37 }
 0x626   :  { %v9873_v7 = vsel %vm2896_vm13, %v9872_v30, %v9871_v13  ;;  %v9731_v51 = vrot.slane %v17012_v26, 1  ;;  %v9799_v20 = vsel %vm2890_vm10, %v18356_v2, %v16753_v11  ;;  %v9806_v30 = vrot.slane %v16972_v59, 2  ;;  %10977 = vmatpush3.bf16.msra.mxu1 %v11354_v61  ;;  %v18365_v61 = vld [vmem:[#allocation85_spill] sm:$0xff]  ;;  %v11353_v26 = vld [vmem:[%s17188_s5 + $0x130] sm:$0xff]  }
 0x627   :  { %v9875_v28 = vsel %vm2898_vm14, %v9874_v60, %v9873_v7  ;;  %v9794_v44 = vrot.slane %v9780_v38, 1  ;;  %v9862_v57 = vrot.slane %v9848_v19, 1  ;;  %v9682_v1 = vpack.c.bf16 %v9542_v25, %v9542_v25 }
 0x628   :  { %v18357_v23 = vrot.slane %v16840_v36, 5  ;;  %v9876_v15 = vrot.slane %v9849_v54, 1  ;;  %v18358_v12 = vrot.slane %v16867_v6, 4  ;;  %v9558_v11 = vrot.slane %v9270_v62, %v18341_v53 }
 0x629   :  { %v9678_v59 = vpack.c.bf16 %v16964_v35, %v16964_v35  ;;  %v9795_v50 = vsel %vm2900_vm15, %v9794_v44, %v9793_v33  ;;  %v9863_v29 = vsel %vm2900_vm15, %v9862_v57, %v9861_v21  ;;  %v9781_v40 = vunpack.c.l.b16 %v9682_v1  ;;  %v18360_v33 = vld [vmem:[#allocation106_spill] sm:$0xff] }
 0x62a   :  { %v9801_v3 = vsel %vm2892_vm11, %v18357_v23, %v9799_v20  ;;  %v18359_v36 = vrot.slane %v16939_v22, 3  ;;  %v9810_v14 = vpack.c.b16 %v9795_v50, %v9795_v50  ;;  %v9878_v52 = vpack.c.b16 %v9863_v29, %v9863_v29 }
 0x62b   :  { %v9803_v41 = vsel %vm2894_vm12, %v18358_v12, %v9801_v3  ;;  %v9877_v6 = vsel %vm2900_vm15, %v9876_v15, %v9875_v28  ;;  %v9808_v13 = vrot.slane %v9781_v40, 1  ;;  %v9686_v60 = vpack.c.bf16 %v9558_v11, %v9558_v11 }
 0x62c   :  { %v9805_v31 = vsel %vm2896_vm13, %v18359_v36, %v9803_v41  ;;  %v9879_v53 = vpack.c.b16 %v9877_v6, %v9877_v6  ;;  %v9914_v35 = vunpack.c.l.b16 %v9678_v59  ;;  %9812 = vrot.lane.b32.xlu0 %v9810_v14, %s11381_s25  ;;  %9880 = vrot.lane.b32.xlu1 %v9878_v52, %s11378_s28  ;;  %v18361_v21 = vrot.slane %v16739_v58, 7 }
 0x62d   :  { %v9807_v42 = vsel %vm2898_vm14, %v9806_v30, %v9805_v31  ;;  %v9939_v48 = vrot.slane %v16948_v4, 3  ;;  %v9554_v7 = vrot.slane %v9270_v62, %v18342_v39  ;;  %v9677_v37 = vpack.c.bf16 %v16961_v43, %v16961_v43 }
 0x62e   :  { %v9932_v22 = vsel %vm2888_vm9, %v18361_v21, %v18360_v33  ;;  %v9809_v38 = vsel %vm2900_vm15, %v9808_v13, %v9807_v42  ;;  %v9916_v19 = vunpack.c.l.b16 %v9686_v60  ;;  %v18362_v28 = vrot.slane %v16794_v24, 6  ;;  %v11350_v21 = vld [vmem:[%s17188_s5 + $0x138] sm:$0xff]  }
 0x62f   :  { %v9941_v54 = vrot.slane %v9914_v35, 2  ;;  %v9811_v2 = vpack.c.b16 %v9809_v38, %v9809_v38  ;;  %v18363_v58 = vrot.slane %v16849_v8, 5  ;;  %v9685_v30 = vpack.c.bf16 %v9554_v7, %v9554_v7  ;;  %v11355_v7 = vld [vmem:[%s17188_s5 + $0x128] sm:$0xff]  }
 0x630   :  { %v9934_v25 = vsel %vm2890_vm10, %v18362_v28, %v9932_v22  ;;  %v9913_v4 = vunpack.c.l.b16 %v9677_v37  ;;  %v18364_v39 = vrot.slane %v16877_v47, 4  ;;  %v9943_v43 = vrot.slane %v9916_v19, 1  ;;  %9882 = vrot.lane.b32.xlu0 %v9879_v53, %s11378_s28  ;;  %v11356_v28 = vld [vmem:[%s17188_s5 + $0x120] sm:$0xff]  }
 0x631   :  { %v9936_v20 = vsel %vm2892_vm11, %v18363_v58, %v9934_v25  ;;  %v18366_v44 = vrot.slane %v16737_v9, 7  ;;  %v9925_v57 = vrot.slane %v16946_v34, 3  ;;  %9814 = vrot.lane.b32.xlu1 %v9811_v2, %s11381_s25  ;;  %v9915_v1 = vunpack.c.l.b16 %v9685_v30  ;;  %v11357_v2 = vld [vmem:[%s17188_s5 + $0x118] sm:$0xff]   ;;  %v11358_v58 = vld [vmem:[%s17188_s5 + $0x110] sm:$0xff]   ;;  %v11360_v30 = vld [vmem:[%s17188_s5 + $0x100] sm:$0xff]  }
 0x632   :  { %v9938_v62 = vsel %vm2894_vm12, %v18364_v39, %v9936_v20  ;;  %v18367_v23 = vrot.slane %v16792_v27, 6  ;;  %v9927_v3 = vrot.slane %v9913_v4, 2  ;;  %v18368_v12 = vrot.slane %v16847_v49, 5  ;;  %v11359_v20 = vld [vmem:[%s17188_s5 + $0x108] sm:$0xff]  }
 0x633   :  { %v9918_v24 = vsel %vm2888_vm9, %v18366_v44, %v18365_v61  ;;  %v9940_v8 = vsel %vm2896_vm13, %v9939_v48, %v9938_v62  ;;  %v9680_v34 = vpack.c.bf16 %v16988_v55, %v16988_v55  ;;  %v18369_v41 = vrot.slane %v16781_v5, 6  ;;  %v11361_v62 = vld [vmem:[%s17189_s7 + $0x18] ss:$0 sps:$4 sm:$0x11]   ;;  %v11362_v61 = vld [vmem:[%s17189_s7 + $0x10] sm:$0xff]   ;;  %v11363_v44 = vld [vmem:[%s17189_s7 + $0x8] sm:$0xff]  }
 0x634   :  { %v9920_v47 = vsel %vm2890_vm10, %v18367_v23, %v9918_v24  ;;  %v9942_v15 = vsel %vm2898_vm14, %v9941_v54, %v9940_v8  ;;  %v18370_v27 = vrot.slane %v16873_v10, 4  ;;  %v9929_v29 = vrot.slane %v9915_v1, 1  ;;  %v11364_v24 = vld [vmem:[%s17189_s7] sm:$0xff]  }
 0x635   :  { %v9922_v9 = vsel %vm2892_vm11, %v18368_v12, %v9920_v47  ;;  %v9736_v11 = vsel %vm2890_vm10, %v18369_v41, %v16747_v32  ;;  %v9944_v59 = vsel %vm2900_vm15, %v9943_v43, %v9942_v15  ;;  %v18371_v40 = vrot.slane %v16836_v56, 5 }
 0x636   :  { %v9924_v50 = vsel %vm2894_vm12, %v18370_v27, %v9922_v9  ;;  %v9946_v36 = vpack.c.b16 %v9944_v59, %v9944_v59  ;;  %v9718_v55 = vunpack.c.l.b16 %v9680_v34  ;;  %v18372_v14 = vrot.slane %v16863_v63, 4  ;;  %v10893_v34 = vld [vmem:[%s17190_s6] ss:$0 sm:$0xff] }
 0x637   :  { %v9738_v49 = vsel %vm2892_vm11, %v18371_v40, %v9736_v11  ;;  %v9926_v31 = vsel %vm2896_vm13, %v9925_v57, %v9924_v50  ;;  %v18373_v52 = vrot.slane %v16937_v16, 3  ;;  %v9743_v6 = vrot.slane %v16970_v0, 2 }
 0x638   :  { %v9740_v5 = vsel %vm2894_vm12, %v18372_v14, %v9738_v49  ;;  %v9928_v32 = vsel %vm2898_vm14, %v9927_v3, %v9926_v31  ;;  %9949 = vrot.lane.b32.xlu1 %v9946_v36, %s11376_s0  ;;  %v9745_v42 = vrot.slane %v9718_v55, 1  ;;  %v18374_v53 = vrot.slane %v16935_v18, 3  ;;  %v10934_v55 = vld [vmem:[%s17191_s8] ss:$0 sm:$0xff] }
 0x639   :  { %v9742_v10 = vsel %vm2896_vm13, %v18373_v52, %v9740_v5  ;;  %v9930_v56 = vsel %vm2900_vm15, %v9929_v29, %v9928_v32  ;;  %v11382_v35 = vmov 0.0   ;;  %vm9816_vm4 = vcmask 261120  }
 0x63a   :  { %v9728_v63 = vsel %vm2896_vm13, %v18374_v53, %v16884_v46  ;;  %v9945_v13 = vpack.c.b16 %v9930_v56, %v9930_v56  ;;  %v9744_v60 = vsel %vm2898_vm14, %v9743_v6, %v9742_v10  ;;  %10998 = vmatprep.subr.bf16.mxu0 %v11382_v35  ;;  %11018 = vmatprep.subr.bf16.mxu1 %v11382_v35  ;;  %vm10454_vm9 = vcmask 1040384  }
 0x63b   :  { %v9730_v0 = vsel %vm2898_vm14, %v9729_v17, %v9728_v63  ;;  %v9746_v16 = vsel %vm2900_vm15, %v9745_v42, %v9744_v60  ;;  %v10456_v43 = vsel %vm10454_vm9, %v11361_v62, 0  ;;  %vm10450_vm10 = vcmask 408576  }
 0x63c   :  { %v9732_v18 = vsel %vm2900_vm15, %v9731_v51, %v9730_v0  ;;  %9947 = vrot.lane.b32.xlu0 %v9945_v13, %s11376_s0  ;;  %v9748_v46 = vpack.c.b16 %v9746_v16, %v9746_v16 }
 0x63d   :  { %v9747_v17 = vpack.c.b16 %v9732_v18, %v9732_v18 }
 0x69e   :  { %v9813_v33 = vpop.permute.xlu0 %9812  ;;  %v9881_v22 = vpop.permute.xlu1 %9880 }
 0x69f   :  { %v9956_v45 = vsel %vm9816_vm4, %v9748_v46, %v9813_v33 }
 0x6a0   :  { %10325 = vmatprep.mubr.bf16.mxu0 %v9956_v45 }
 0x6a1   :  { %10326 = vmatmul.mubr.bf16.vlgmr.msra.gmra.mxu0 %v9747_v17 }
 0x6a2   :  { %10999 = vmatpush3.bf16.msra.mxu0 %v11350_v21  ;;  %11014 = vmatprep.mubr.msk.bf16.mxu0 %vm11383_vm8, %v11382_v35  ;;  %v9883_v51 = vpop.permute.xlu0 %9882 }
 0x6a3   :  { %11000 = vmatprep.subr.bf16.mxu0 %v11382_v35  ;;  %v9815_v48 = vpop.permute.xlu1 %9814  ;;  %v9884_v38 = vsel %vm6764_vm6, %v9881_v22, %v9883_v51 }
 0x6a4   :  { %v9817_v37 = vsel %vm9816_vm4, %v9813_v33, %v9815_v48 }
 0x6a5   :  { %v9960_v54 = vsel %vm6764_vm6, %v9817_v37, %v9881_v22 }
 0x6a6   :  { %11001 = vmatpush3.bf16.msra.mxu0 %v11353_v26 }
 0x6a7   :  { %11002 = vmatprep.subr.bf16.mxu0 %v11382_v35 }
 0x6aa   :  { %11003 = vmatpush3.bf16.msra.mxu0 %v11355_v7  ;;  %v9950_v4 = vpop.permute.xlu1 %9949 }
 0x6ab   :  { %11004 = vmatprep.subr.bf16.mxu0 %v11382_v35 }
 0x6ae   :  { %v9948_v19 = vpop.permute.xlu0 %9947  ;;  %11005 = vmatpush3.bf16.msra.mxu0 %v11356_v28 }
 0x6af   :  { %v9964_v25 = vsel %vm6138_vm2, %v9884_v38, %v9948_v19  ;;  %11006 = vmatprep.subr.bf16.mxu0 %v11382_v35  ;;  %v9951_v39 = vsel %vm6138_vm2, %v9948_v19, %v9950_v4 }
 0x6b0   :  { %10365 = vmatprep.mubr.bf16.mxu1 %v9964_v25 }
 0x6b1   :  { %10366 = vmatmul.mubr.bf16.vlgmr.msra.gmra.mxu1 %v9960_v54 }
 0x6b2   :  { %11026 = vmatprep.mubr.msk.bf16.mxu1 %vm11383_vm8, %v11382_v35  ;;  %11007 = vmatpush3.bf16.msra.mxu0 %v11357_v2 }
 0x6b3   :  { %11008 = vmatprep.subr.bf16.mxu0 %v11382_v35  ;;  %11019 = vmatpush3.bf16.msra.mxu1 %v10456_v43 }
 0x6b4   :  { %11020 = vmatprep.subr.bf16.mxu1 %v11382_v35 }
 0x6b6   :  { %11009 = vmatpush3.bf16.msra.mxu0 %v11358_v58 }
 0x6b7   :  { %11010 = vmatprep.subr.bf16.mxu0 %v11382_v35  ;;  %11021 = vmatpush3.bf16.msra.mxu1 %v11362_v61 }
 0x6b8   :  { %11022 = vmatprep.subr.bf16.mxu1 %v11382_v35 }
 0x6ba   :  { %11011 = vmatpush3.bf16.msra.mxu0 %v11359_v20 }
 0x6bb   :  { %11012 = vmatprep.subr.bf16.mxu0 %v11382_v35  ;;  %11023 = vmatpush3.bf16.msra.mxu1 %v11363_v44 }
 0x6bc   :  { %11024 = vmatprep.subr.bf16.mxu1 %v11382_v35 }
 0x6be   :  { %11013 = vmatpush3.bf16.msra.mxu0 %v11360_v30 }
 0x6bf   :  { %11025 = vmatpush3.bf16.msra.mxu1 %v11364_v24 }
 0x6c1   :  { %11015 = vmatmul.mubr.bf16.vlgmr.msra.gmra.mxu0 %v9951_v39 }
 0x761   :  { %v10956_v57 = vpop.f32.mrf.mxu0 }
 0x763   :  { %v10957_v8 = vpop.f32.mrf.mxu0 }
 0x764   :  { %v10958_v9 = vadd.f32 %v10957_v8, %v10956_v57 }
 0x765   :  { %v10959_v1 = vpop.f32.mrf.mxu0 }
 0x766   :  { %v10328_v11 = vadd.f32 %v10958_v9, %v10893_v34 }
 0x767   :  { %v10960_v23 = vpop.f32.mrf.mxu0 }
 0x771   :  { %v10978_v47 = vpop.f32.mrf.mxu1 }
 0x773   :  { %v10979_v3 = vpop.f32.mrf.mxu1 }
 0x774   :  { %v10980_v41 = vadd.f32 %v10979_v3, %v10978_v47 }
 0x775   :  { %v10981_v15 = vpop.f32.mrf.mxu1 }
 0x776   :  { %v10368_v59 = vadd.f32 %v10980_v41, %v10328_v11 }
 0x777   :  { %v10982_v12 = vpop.f32.mrf.mxu1 }
 0x781   :  { %v10407_v27 = vpop.f32.mrf.mxu0 }
 0x782   :  { %v10408_v50 = vadd.f32 %v10407_v27, %v10368_v59 }
 0x783   :  { %v11016_v29 = vpop.f32.mrf.mxu0 }
 0x784   :  { %v10413_v40 = vmax.f32 %v10408_v50, 0.0 }
 0x785   :  { %v10410_v49 = vpop.f32.mrf.mxu0 }
 0x786   :  { %v10414_v36 = vpack.c.bf16 %v10413_v40, %v10413_v40 }
 0x787   :  { %v11017_v31 = vpop.f32.mrf.mxu0 }
 0x788   :  { %11027 = vmatmul.mubr.msk.bf16.vlgmr.msra.gmra.mxu1 %vm10450_vm10, %v10414_v36 }
 0x848   :  { %v10492_v14 = vpop.f32.mrf.mxu1 }
 0x849   :  { %v10493_v5 = vadd.f32 %v10934_v55, %v10492_v14 }
 0x84a   :  { %v11028_v32 = vpop.f32.mrf.mxu1 }
 0x84b   :  { %10498 = vmax.xlane.f32.xlu0 %v10493_v5 }
 0x84c   :  { %v10495_v52 = vpop.f32.mrf.mxu1 }
 0x84e   :  { %v11029_v10 = vpop.f32.mrf.mxu1 }
 0x8d4   :  { %v10499_v6 = vpop.xlane.xlu0 %10498 }
 0x8d5   :  { %v10500_v56 = vsub.f32 %v10493_v5, %v10499_v6 }
 0x8d7   :  { %v10501_v42 = vmul.f32 1.442695, %v10500_v56 }
 0x8d9   :  { %11365 = vpow2.f32 %v10501_v42 }
 0x8e6   :  { %v11366_v53 = vpop.eup %11365 }
 0x8e7   :  { %10503 = vadd.xlane.f32.xlu1 %v11366_v53 }
 0x970   :  { %v10504_v63 = vpop.xlane.xlu1 %10503 }
 0x971   :  { %11367 = vrcp.f32 %v10504_v63 }
 0x97e   :  { %v11368_v13 = vpop.eup %11367 }
 0x97f   :  { %v10506_v60 = vmul.f32 %v11368_v13, %v11366_v53 }
 0x981   :  { %10507 = vst [vmem:[%s17192_s9] sm:$0xff] %v10506_v60 }

</bundles_post_ra>
